<compile_context>
chip_gen: v7x
topology: tpu7x:2x2x1
jax: 0.10.0
libtpu: 0.0.40
codegen_flags: <defaults>
</compile_context>

<pallas_src>
import jax
import jax.numpy as jnp
from jax.experimental import pallas as pl
from jax.experimental.pallas import tpu as pltpu

NEG_SLOPE = 0.1  # nn.LeakyReLU(negative_slope=0.1)


def _leaky_relu(x):
    return jnp.where(x > 0, x, NEG_SLOPE * x)


# ---------------------------------------------------------------------------
# In-kernel building blocks (operate on VMEM-resident values, NHWC layout).
# ---------------------------------------------------------------------------
def _conv_leaky(x, w_r, b, KH, KW):
    """x: (B, H, W, Cin) f32; w_r: (KH*KW*Cin, Cout); b: (1, Cout). stride 1, pad k//2."""
    B, H, W, Cin = x.shape
    Cout = w_r.shape[1]
    ph, pw = KH // 2, KW // 2
    # Zero-pad via concatenation (avoids lax.pad inside the kernel).
    if ph:
        zh = jnp.zeros((B, ph, W, Cin), jnp.float32)
        x = jnp.concatenate([zh, x, zh], axis=1)
    if pw:
        zw = jnp.zeros((B, H + 2 * ph, pw, Cin), jnp.float32)
        x = jnp.concatenate([zw, x, zw], axis=2)
    # im2col: shifted slices concatenated along the channel (lane) axis.
    pats = []
    for kh in range(KH):
        for kw in range(KW):
            pats.append(x[:, kh:kh + H, kw:kw + W, :])
    patches = jnp.concatenate(pats, axis=-1).reshape(B * H * W, KH * KW * Cin)
    y = jnp.dot(patches, w_r, preferred_element_type=jnp.float32) + b
    return _leaky_relu(y).reshape(B, H, W, Cout)


def _maxpool2x2(x):
    """Non-overlapping 2x2 / stride-2 max pool of a (B, H, W, C) value."""
    B, H, W, C = x.shape
    Ho, Wo = H // 2, W // 2
    x = x[:, :2 * Ho, :2 * Wo, :]                    # PyTorch floor behavior
    x5 = x.reshape(B, Ho, 2, 2 * Wo, C)              # split a leading dim only
    yh = jnp.maximum(x5[:, :, 0], x5[:, :, 1])       # (B, Ho, 2*Wo, C): pooled along H
    cols = []
    for j in range(Wo):                              # pool along W with static slices
        a = yh[:, :, 2 * j:2 * j + 1, :]
        c = yh[:, :, 2 * j + 1:2 * j + 2, :]
        cols.append(jnp.maximum(a, c))
    return jnp.concatenate(cols, axis=2)             # (B, Ho, Wo, C)


def _build_fused_kernel(conv_meta, n_mlp):
    """conv_meta: list of (list_of_(KH,KW), pool_or_None) per block."""
    def kernel(x_ref, *refs):
        o_ref = refs[-1]
        wrefs = refs[:-1]
        x = x_ref[...].astype(jnp.float32)            # (BT, H, W, Cin)
        ri = 0
        for convs, pool in conv_meta:
            for (KH, KW) in convs:
                w = wrefs[ri][...]
                b = wrefs[ri + 1][...]
                ri += 2
                x = _conv_leaky(x, w, b, KH, KW)
            if pool is not None:
                x = _maxpool2x2(x)
        # AdaptiveAvgPool2d(1) + Flatten
        BT, Hf, Wf, Cf = x.shape
        h = jnp.sum(x, axis=1)                        # (BT, Wf, Cf)  leading-dim reduce
        h = jnp.sum(h, axis=1)                        # (BT, Cf)      sublane reduce
        h = h * (1.0 / float(Hf * Wf))
        # MLP
        for li in range(n_mlp):
            w = wrefs[ri][...]
            b = wrefs[ri + 1][...]
            ri += 2
            h = jnp.dot(h, w, preferred_element_type=jnp.float32) + b
            if li < n_mlp - 1:                        # no activation after last Linear
                h = _leaky_relu(h)
        o_ref[...] = h.astype(o_ref.dtype)
    return kernel


# ---------------------------------------------------------------------------
# Wrapper
# ---------------------------------------------------------------------------
def _const_spec(shape):
    nd = len(shape)
    return pl.BlockSpec(shape, lambda n, _nd=nd: (0,) * _nd)


def _pick_batch_tile(n, max_tile=8):
    for bt in range(min(n, max_tile), 0, -1):
        if n % bt == 0:
            return bt
    return 1


def yolov1_forward(x_nchw, params, batch_tile=None):
    x = jnp.transpose(x_nchw, (0, 2, 3, 1))           # single NCHW -> NHWC boundary op
    N, H, W, Cin = x.shape
    BT = batch_tile if batch_tile is not None else _pick_batch_tile(N)
    assert N % BT == 0

    conv_meta = []
    weight_args = []
    for block in params['cnn']:
        convs = []
        for (w, b, stride) in block['convs']:
            # TODO(synk): only stride=1 convolutions are needed for this configuration.
            assert stride == 1
            KH, KW, cin_w, Cout = w.shape
            weight_args.append(jnp.asarray(w).reshape(KH * KW * cin_w, Cout))
            weight_args.append(jnp.asarray(b).reshape(1, Cout))
            convs.append((KH, KW))
        pool = block['pool']
        if pool is not None:
            # TODO(synk): only kernel=2/stride=2 non-overlapping pooling implemented.
            assert tuple(pool) == (2, 2)
        conv_meta.append((convs, pool))
    for (w, b) in params['mlp']:
        weight_args.append(jnp.asarray(w))
        weight_args.append(jnp.asarray(b).reshape(1, -1))
    n_mlp = len(params['mlp'])
    out_size = params['mlp'][-1][0].shape[1]

    kernel = _build_fused_kernel(conv_meta, n_mlp)
    in_specs = [pl.BlockSpec((BT, H, W, Cin), lambda n: (n, 0, 0, 0))]
    in_specs += [_const_spec(a.shape) for a in weight_args]

    y = pl.pallas_call(
        kernel,
        out_shape=jax.ShapeDtypeStruct((N, out_size), x.dtype),
        grid=(N // BT,),
        in_specs=in_specs,
        out_specs=pl.BlockSpec((BT, out_size), lambda n: (n, 0)),
        compiler_params=pltpu.CompilerParams(dimension_semantics=("parallel",)),
    )(x, *weight_args)

    S, B, C = params['S'], params['B'], params['C']
    return y.reshape(-1, S, S, B * 5 + C)


# ---------------------------------------------------------------------------
# Parameter init (conv weights stored as (KH, KW, Cin, Cout); linear as (in, out))
# ---------------------------------------------------------------------------
def init_params(key, cnn_blocks, mlp_dict, model_params):
    params = {'S': model_params['S'], 'B': model_params['B'], 'C': model_params['C']}
    cnn = []
    for block in cnn_blocks:
        in_c = block['in_c']
        convs = []
        for ch, k, st in zip(block['channels'], block['kernels'], block['strides']):
            key, kw_, kb_ = jax.random.split(key, 3)
            scale = 1.0 / jnp.sqrt(in_c * k * k)
            w = jax.random.uniform(kw_, (k, k, in_c, ch), jnp.float32, -scale, scale)
            b = jax.random.uniform(kb_, (ch,), jnp.float32, -scale, scale)
            convs.append((w, b, st))
            in_c = ch
        pool = tuple(block['pool']) if block['pool'] else None
        cnn.append({'convs': convs, 'pool': pool})
    params['cnn'] = cnn

    mlp = []
    sizes = [mlp_dict['in_size']] + list(mlp_dict['hidden_sizes']) + [mlp_dict['out_size']]
    for i in range(len(sizes) - 1):
        key, kw_, kb_ = jax.random.split(key, 3)
        scale = 1.0 / jnp.sqrt(sizes[i])
        w = jax.random.uniform(kw_, (sizes[i], sizes[i + 1]), jnp.float32, -scale, scale)
        b = jax.random.uniform(kb_, (sizes[i + 1],), jnp.float32, -scale, scale)
        mlp.append((w, b))
    params['mlp'] = mlp
    return params


# ---------------------------------------------------------------------------
# Pure-JAX reference (for a correctness check of the fused kernel)
# ---------------------------------------------------------------------------
def _reference_forward(x_nchw, params):
    x = jnp.transpose(x_nchw, (0, 2, 3, 1))
    for block in params['cnn']:
        for (w, b, stride) in block['convs']:
            k = w.shape[0]
            x = jax.lax.conv_general_dilated(
                x, w, window_strides=(stride, stride),
                padding=[(k // 2, k // 2), (k // 2, k // 2)],
                dimension_numbers=('NHWC', 'HWIO', 'NHWC'),
                precision=jax.lax.Precision.HIGHEST)
            x = x + b.reshape(1, 1, 1, -1)
            x = jnp.where(x > 0, x, NEG_SLOPE * x)
        if block['pool'] is not None:
            N_, H_, W_, C_ = x.shape
            x = x[:, :H_ // 2 * 2, :W_ // 2 * 2, :]
            x = x.reshape(N_, H_ // 2, 2, W_ // 2, 2, C_).max(axis=(2, 4))
    h = x.mean(axis=(1, 2))
    for i, (w, b) in enumerate(params['mlp']):
        h = jnp.dot(h, w, precision=jax.lax.Precision.HIGHEST) + b
        if i < len(params['mlp']) - 1:
            h = jnp.where(h > 0, h, NEG_SLOPE * h)
    S, B, C = params['S'], params['B'], params['C']
    return h.reshape(-1, S, S, B * 5 + C)


if __name__ == "__main__":
    model_params = {'S': 2, 'B': 1, 'C': 3}
    cnn_blocks = [
        {'in_c': 4, 'channels': [8],  'kernels': [3], 'strides': [1], 'pool': (2, 2)},
        {'in_c': 8, 'channels': [16], 'kernels': [3], 'strides': [1], 'pool': (2, 2)},
    ]
    out_size = model_params['S'] ** 2 * (model_params['B'] * 5 + model_params['C'])
    mlp_dict = {'in_size': 16, 'hidden_sizes': [32], 'out_size': out_size}

    key = jax.random.PRNGKey(0)
    key, xk = jax.random.split(key)
    x = jax.random.normal(xk, (2, 4, 16, 16), jnp.float32)   # NCHW, like PyTorch input
    params = init_params(key, cnn_blocks, mlp_dict, model_params)

    out = jax.block_until_ready(yolov1_forward(x, params))
    ref = jax.block_until_ready(_reference_forward(x, params))

    assert out.shape == (2, model_params['S'], model_params['S'],
                         model_params['B'] * 5 + model_params['C'])
    assert out.dtype == jnp.float32
    max_err = float(jnp.max(jnp.abs(out - ref)))
    assert max_err < 2e-2, f"kernel/reference mismatch: max abs err = {max_err}"
    print("KERNEL_OK")
</pallas_src>

<mosaic_0001>
module attributes {stable_mosaic.version = 11 : i64} {
  func.func @kernel(%arg0: i32, %arg1: memref<2x16x16x4xf32, #tpu.memory_space<vmem>>, %arg2: memref<36x8xf32, #tpu.memory_space<vmem>>, %arg3: memref<1x8xf32, #tpu.memory_space<vmem>>, %arg4: memref<72x16xf32, #tpu.memory_space<vmem>>, %arg5: memref<1x16xf32, #tpu.memory_space<vmem>>, %arg6: memref<16x32xf32, #tpu.memory_space<vmem>>, %arg7: memref<1x32xf32, #tpu.memory_space<vmem>>, %arg8: memref<32x32xf32, #tpu.memory_space<vmem>>, %arg9: memref<1x32xf32, #tpu.memory_space<vmem>>, %arg10: memref<2x32xf32, #tpu.memory_space<vmem>>) attributes {dimension_semantics = [#tpu.dimension_semantics<parallel>], iteration_bounds = array<i64: 1>, scalar_prefetch = 0 : i64, scratch_operands = 0 : i64, tpu.core_type = #tpu.core_type<tc>, window_params = [{transform_indices = @transform_0, window_bounds = array<i64: 2, 16, 16, 4>}, {pipeline_mode = #tpu.pipeline_mode<synchronous>, transform_indices = @transform_1, window_bounds = array<i64: 36, 8>}, {pipeline_mode = #tpu.pipeline_mode<synchronous>, transform_indices = @transform_2, window_bounds = array<i64: 1, 8>}, {pipeline_mode = #tpu.pipeline_mode<synchronous>, transform_indices = @transform_3, window_bounds = array<i64: 72, 16>}, {pipeline_mode = #tpu.pipeline_mode<synchronous>, transform_indices = @transform_4, window_bounds = array<i64: 1, 16>}, {pipeline_mode = #tpu.pipeline_mode<synchronous>, transform_indices = @transform_5, window_bounds = array<i64: 16, 32>}, {pipeline_mode = #tpu.pipeline_mode<synchronous>, transform_indices = @transform_6, window_bounds = array<i64: 1, 32>}, {pipeline_mode = #tpu.pipeline_mode<synchronous>, transform_indices = @transform_7, window_bounds = array<i64: 32, 32>}, {pipeline_mode = #tpu.pipeline_mode<synchronous>, transform_indices = @transform_8, window_bounds = array<i64: 1, 32>}, {transform_indices = @transform_9, window_bounds = array<i64: 2, 32>}]} {
    %c0 = arith.constant 0 : index
    %c0_0 = arith.constant 0 : index
    %c0_1 = arith.constant 0 : index
    %c0_2 = arith.constant 0 : index
    %0 = vector.load %arg1[%c0, %c0_0, %c0_1, %c0_2] : memref<2x16x16x4xf32, #tpu.memory_space<vmem>>, vector<2x16x16x4xf32>
    %c0_3 = arith.constant 0 : index
    %c0_4 = arith.constant 0 : index
    %1 = vector.load %arg2[%c0_3, %c0_4] : memref<36x8xf32, #tpu.memory_space<vmem>>, vector<36x8xf32>
    %c0_5 = arith.constant 0 : index
    %c0_6 = arith.constant 0 : index
    %2 = vector.load %arg3[%c0_5, %c0_6] : memref<1x8xf32, #tpu.memory_space<vmem>>, vector<1x8xf32>
    %cst = arith.constant 0.000000e+00 : f32
    %3 = vector.broadcast %cst : f32 to vector<2x1x16x4xf32>
    %4 = tpu.concatenate %3, %0, %3 in 1 : vector<2x1x16x4xf32>, vector<2x16x16x4xf32>, vector<2x1x16x4xf32> -> vector<2x18x16x4xf32>
    %cst_7 = arith.constant 0.000000e+00 : f32
    %5 = vector.broadcast %cst_7 : f32 to vector<2x18x1x4xf32>
    %6 = tpu.concatenate %5, %4, %5 in 2 : vector<2x18x1x4xf32>, vector<2x18x16x4xf32>, vector<2x18x1x4xf32> -> vector<2x18x18x4xf32>
    %7 = vector.extract_strided_slice %6 {offsets = [0, 0, 0, 0], sizes = [2, 16, 16, 4], strides = [1, 1, 1, 1]} : vector<2x18x18x4xf32> to vector<2x16x16x4xf32>
    %8 = vector.extract_strided_slice %6 {offsets = [0, 0, 1, 0], sizes = [2, 16, 16, 4], strides = [1, 1, 1, 1]} : vector<2x18x18x4xf32> to vector<2x16x16x4xf32>
    %9 = vector.extract_strided_slice %6 {offsets = [0, 0, 2, 0], sizes = [2, 16, 16, 4], strides = [1, 1, 1, 1]} : vector<2x18x18x4xf32> to vector<2x16x16x4xf32>
    %10 = vector.extract_strided_slice %6 {offsets = [0, 1, 0, 0], sizes = [2, 16, 16, 4], strides = [1, 1, 1, 1]} : vector<2x18x18x4xf32> to vector<2x16x16x4xf32>
    %11 = vector.extract_strided_slice %6 {offsets = [0, 1, 1, 0], sizes = [2, 16, 16, 4], strides = [1, 1, 1, 1]} : vector<2x18x18x4xf32> to vector<2x16x16x4xf32>
    %12 = vector.extract_strided_slice %6 {offsets = [0, 1, 2, 0], sizes = [2, 16, 16, 4], strides = [1, 1, 1, 1]} : vector<2x18x18x4xf32> to vector<2x16x16x4xf32>
    %13 = vector.extract_strided_slice %6 {offsets = [0, 2, 0, 0], sizes = [2, 16, 16, 4], strides = [1, 1, 1, 1]} : vector<2x18x18x4xf32> to vector<2x16x16x4xf32>
    %14 = vector.extract_strided_slice %6 {offsets = [0, 2, 1, 0], sizes = [2, 16, 16, 4], strides = [1, 1, 1, 1]} : vector<2x18x18x4xf32> to vector<2x16x16x4xf32>
    %15 = vector.extract_strided_slice %6 {offsets = [0, 2, 2, 0], sizes = [2, 16, 16, 4], strides = [1, 1, 1, 1]} : vector<2x18x18x4xf32> to vector<2x16x16x4xf32>
    %16 = tpu.concatenate %7, %8, %9, %10, %11, %12, %13, %14, %15 in 3 : vector<2x16x16x4xf32>, vector<2x16x16x4xf32>, vector<2x16x16x4xf32>, vector<2x16x16x4xf32>, vector<2x16x16x4xf32>, vector<2x16x16x4xf32>, vector<2x16x16x4xf32>, vector<2x16x16x4xf32>, vector<2x16x16x4xf32> -> vector<2x16x16x36xf32>
    %17 = vector.shape_cast %16 : vector<2x16x16x36xf32> to vector<512x36xf32>
    %cst_8 = arith.constant dense<0.000000e+00> : vector<512x8xf32>
    %18 = tpu.matmul %17, %1, %cst_8 {dimension_numbers = #tpu.dot_dimension_numbers<[1], [0], [0], [1], [0, 0, 1, 1], [], []>} : vector<512x36xf32>, vector<36x8xf32>, vector<512x8xf32> -> vector<512x8xf32>
    %19 = vector.broadcast %2 : vector<1x8xf32> to vector<512x8xf32>
    %20 = arith.addf %18, %19 : vector<512x8xf32>
    %cst_9 = arith.constant 0.000000e+00 : f32
    %21 = vector.broadcast %cst_9 : f32 to vector<512x8xf32>
    %22 = arith.cmpf ogt, %20, %21 : vector<512x8xf32>
    %cst_10 = arith.constant 1.000000e-01 : f32
    %23 = vector.broadcast %cst_10 : f32 to vector<512x8xf32>
    %24 = arith.mulf %23, %20 : vector<512x8xf32>
    %25 = arith.select %22, %20, %24 : vector<512x8xi1>, vector<512x8xf32>
    %26 = vector.shape_cast %25 : vector<512x8xf32> to vector<2x16x16x8xf32>
    %27 = vector.shape_cast %26 : vector<2x16x16x8xf32> to vector<2x8x2x16x8xf32>
    %28 = vector.extract_strided_slice %27 {offsets = [0, 0, 0, 0, 0], sizes = [2, 8, 1, 16, 8], strides = [1, 1, 1, 1, 1]} : vector<2x8x2x16x8xf32> to vector<2x8x1x16x8xf32>
    %29 = vector.shape_cast %28 : vector<2x8x1x16x8xf32> to vector<2x8x16x8xf32>
    %30 = vector.extract_strided_slice %27 {offsets = [0, 0, 1, 0, 0], sizes = [2, 8, 1, 16, 8], strides = [1, 1, 1, 1, 1]} : vector<2x8x2x16x8xf32> to vector<2x8x1x16x8xf32>
    %31 = vector.shape_cast %30 : vector<2x8x1x16x8xf32> to vector<2x8x16x8xf32>
    %32 = arith.maximumf %29, %31 : vector<2x8x16x8xf32>
    %33 = vector.extract_strided_slice %32 {offsets = [0, 0, 0, 0], sizes = [2, 8, 1, 8], strides = [1, 1, 1, 1]} : vector<2x8x16x8xf32> to vector<2x8x1x8xf32>
    %34 = vector.extract_strided_slice %32 {offsets = [0, 0, 1, 0], sizes = [2, 8, 1, 8], strides = [1, 1, 1, 1]} : vector<2x8x16x8xf32> to vector<2x8x1x8xf32>
    %35 = arith.maximumf %33, %34 : vector<2x8x1x8xf32>
    %36 = vector.extract_strided_slice %32 {offsets = [0, 0, 2, 0], sizes = [2, 8, 1, 8], strides = [1, 1, 1, 1]} : vector<2x8x16x8xf32> to vector<2x8x1x8xf32>
    %37 = vector.extract_strided_slice %32 {offsets = [0, 0, 3, 0], sizes = [2, 8, 1, 8], strides = [1, 1, 1, 1]} : vector<2x8x16x8xf32> to vector<2x8x1x8xf32>
    %38 = arith.maximumf %36, %37 : vector<2x8x1x8xf32>
    %39 = vector.extract_strided_slice %32 {offsets = [0, 0, 4, 0], sizes = [2, 8, 1, 8], strides = [1, 1, 1, 1]} : vector<2x8x16x8xf32> to vector<2x8x1x8xf32>
    %40 = vector.extract_strided_slice %32 {offsets = [0, 0, 5, 0], sizes = [2, 8, 1, 8], strides = [1, 1, 1, 1]} : vector<2x8x16x8xf32> to vector<2x8x1x8xf32>
    %41 = arith.maximumf %39, %40 : vector<2x8x1x8xf32>
    %42 = vector.extract_strided_slice %32 {offsets = [0, 0, 6, 0], sizes = [2, 8, 1, 8], strides = [1, 1, 1, 1]} : vector<2x8x16x8xf32> to vector<2x8x1x8xf32>
    %43 = vector.extract_strided_slice %32 {offsets = [0, 0, 7, 0], sizes = [2, 8, 1, 8], strides = [1, 1, 1, 1]} : vector<2x8x16x8xf32> to vector<2x8x1x8xf32>
    %44 = arith.maximumf %42, %43 : vector<2x8x1x8xf32>
    %45 = vector.extract_strided_slice %32 {offsets = [0, 0, 8, 0], sizes = [2, 8, 1, 8], strides = [1, 1, 1, 1]} : vector<2x8x16x8xf32> to vector<2x8x1x8xf32>
    %46 = vector.extract_strided_slice %32 {offsets = [0, 0, 9, 0], sizes = [2, 8, 1, 8], strides = [1, 1, 1, 1]} : vector<2x8x16x8xf32> to vector<2x8x1x8xf32>
    %47 = arith.maximumf %45, %46 : vector<2x8x1x8xf32>
    %48 = vector.extract_strided_slice %32 {offsets = [0, 0, 10, 0], sizes = [2, 8, 1, 8], strides = [1, 1, 1, 1]} : vector<2x8x16x8xf32> to vector<2x8x1x8xf32>
    %49 = vector.extract_strided_slice %32 {offsets = [0, 0, 11, 0], sizes = [2, 8, 1, 8], strides = [1, 1, 1, 1]} : vector<2x8x16x8xf32> to vector<2x8x1x8xf32>
    %50 = arith.maximumf %48, %49 : vector<2x8x1x8xf32>
    %51 = vector.extract_strided_slice %32 {offsets = [0, 0, 12, 0], sizes = [2, 8, 1, 8], strides = [1, 1, 1, 1]} : vector<2x8x16x8xf32> to vector<2x8x1x8xf32>
    %52 = vector.extract_strided_slice %32 {offsets = [0, 0, 13, 0], sizes = [2, 8, 1, 8], strides = [1, 1, 1, 1]} : vector<2x8x16x8xf32> to vector<2x8x1x8xf32>
    %53 = arith.maximumf %51, %52 : vector<2x8x1x8xf32>
    %54 = vector.extract_strided_slice %32 {offsets = [0, 0, 14, 0], sizes = [2, 8, 1, 8], strides = [1, 1, 1, 1]} : vector<2x8x16x8xf32> to vector<2x8x1x8xf32>
    %55 = vector.extract_strided_slice %32 {offsets = [0, 0, 15, 0], sizes = [2, 8, 1, 8], strides = [1, 1, 1, 1]} : vector<2x8x16x8xf32> to vector<2x8x1x8xf32>
    %56 = arith.maximumf %54, %55 : vector<2x8x1x8xf32>
    %57 = tpu.concatenate %35, %38, %41, %44, %47, %50, %53, %56 in 2 : vector<2x8x1x8xf32>, vector<2x8x1x8xf32>, vector<2x8x1x8xf32>, vector<2x8x1x8xf32>, vector<2x8x1x8xf32>, vector<2x8x1x8xf32>, vector<2x8x1x8xf32>, vector<2x8x1x8xf32> -> vector<2x8x8x8xf32>
    %c0_11 = arith.constant 0 : index
    %c0_12 = arith.constant 0 : index
    %58 = vector.load %arg4[%c0_11, %c0_12] : memref<72x16xf32, #tpu.memory_space<vmem>>, vector<72x16xf32>
    %c0_13 = arith.constant 0 : index
    %c0_14 = arith.constant 0 : index
    %59 = vector.load %arg5[%c0_13, %c0_14] : memref<1x16xf32, #tpu.memory_space<vmem>>, vector<1x16xf32>
    %cst_15 = arith.constant 0.000000e+00 : f32
    %60 = vector.broadcast %cst_15 : f32 to vector<2x1x8x8xf32>
    %61 = tpu.concatenate %60, %57, %60 in 1 : vector<2x1x8x8xf32>, vector<2x8x8x8xf32>, vector<2x1x8x8xf32> -> vector<2x10x8x8xf32>
    %cst_16 = arith.constant 0.000000e+00 : f32
    %62 = vector.broadcast %cst_16 : f32 to vector<2x10x1x8xf32>
    %63 = tpu.concatenate %62, %61, %62 in 2 : vector<2x10x1x8xf32>, vector<2x10x8x8xf32>, vector<2x10x1x8xf32> -> vector<2x10x10x8xf32>
    %64 = vector.extract_strided_slice %63 {offsets = [0, 0, 0, 0], sizes = [2, 8, 8, 8], strides = [1, 1, 1, 1]} : vector<2x10x10x8xf32> to vector<2x8x8x8xf32>
    %65 = vector.extract_strided_slice %63 {offsets = [0, 0, 1, 0], sizes = [2, 8, 8, 8], strides = [1, 1, 1, 1]} : vector<2x10x10x8xf32> to vector<2x8x8x8xf32>
    %66 = vector.extract_strided_slice %63 {offsets = [0, 0, 2, 0], sizes = [2, 8, 8, 8], strides = [1, 1, 1, 1]} : vector<2x10x10x8xf32> to vector<2x8x8x8xf32>
    %67 = vector.extract_strided_slice %63 {offsets = [0, 1, 0, 0], sizes = [2, 8, 8, 8], strides = [1, 1, 1, 1]} : vector<2x10x10x8xf32> to vector<2x8x8x8xf32>
    %68 = vector.extract_strided_slice %63 {offsets = [0, 1, 1, 0], sizes = [2, 8, 8, 8], strides = [1, 1, 1, 1]} : vector<2x10x10x8xf32> to vector<2x8x8x8xf32>
    %69 = vector.extract_strided_slice %63 {offsets = [0, 1, 2, 0], sizes = [2, 8, 8, 8], strides = [1, 1, 1, 1]} : vector<2x10x10x8xf32> to vector<2x8x8x8xf32>
    %70 = vector.extract_strided_slice %63 {offsets = [0, 2, 0, 0], sizes = [2, 8, 8, 8], strides = [1, 1, 1, 1]} : vector<2x10x10x8xf32> to vector<2x8x8x8xf32>
    %71 = vector.extract_strided_slice %63 {offsets = [0, 2, 1, 0], sizes = [2, 8, 8, 8], strides = [1, 1, 1, 1]} : vector<2x10x10x8xf32> to vector<2x8x8x8xf32>
    %72 = vector.extract_strided_slice %63 {offsets = [0, 2, 2, 0], sizes = [2, 8, 8, 8], strides = [1, 1, 1, 1]} : vector<2x10x10x8xf32> to vector<2x8x8x8xf32>
    %73 = tpu.concatenate %64, %65, %66, %67, %68, %69, %70, %71, %72 in 3 : vector<2x8x8x8xf32>, vector<2x8x8x8xf32>, vector<2x8x8x8xf32>, vector<2x8x8x8xf32>, vector<2x8x8x8xf32>, vector<2x8x8x8xf32>, vector<2x8x8x8xf32>, vector<2x8x8x8xf32>, vector<2x8x8x8xf32> -> vector<2x8x8x72xf32>
    %74 = vector.shape_cast %73 : vector<2x8x8x72xf32> to vector<128x72xf32>
    %cst_17 = arith.constant dense<0.000000e+00> : vector<128x16xf32>
    %75 = tpu.matmul %74, %58, %cst_17 {dimension_numbers = #tpu.dot_dimension_numbers<[1], [0], [0], [1], [0, 0, 1, 1], [], []>} : vector<128x72xf32>, vector<72x16xf32>, vector<128x16xf32> -> vector<128x16xf32>
    %76 = vector.broadcast %59 : vector<1x16xf32> to vector<128x16xf32>
    %77 = arith.addf %75, %76 : vector<128x16xf32>
    %cst_18 = arith.constant 0.000000e+00 : f32
    %78 = vector.broadcast %cst_18 : f32 to vector<128x16xf32>
    %79 = arith.cmpf ogt, %77, %78 : vector<128x16xf32>
    %cst_19 = arith.constant 1.000000e-01 : f32
    %80 = vector.broadcast %cst_19 : f32 to vector<128x16xf32>
    %81 = arith.mulf %80, %77 : vector<128x16xf32>
    %82 = arith.select %79, %77, %81 : vector<128x16xi1>, vector<128x16xf32>
    %83 = vector.shape_cast %82 : vector<128x16xf32> to vector<2x8x8x16xf32>
    %84 = vector.shape_cast %83 : vector<2x8x8x16xf32> to vector<2x4x2x8x16xf32>
    %85 = vector.extract_strided_slice %84 {offsets = [0, 0, 0, 0, 0], sizes = [2, 4, 1, 8, 16], strides = [1, 1, 1, 1, 1]} : vector<2x4x2x8x16xf32> to vector<2x4x1x8x16xf32>
    %86 = vector.shape_cast %85 : vector<2x4x1x8x16xf32> to vector<2x4x8x16xf32>
    %87 = vector.extract_strided_slice %84 {offsets = [0, 0, 1, 0, 0], sizes = [2, 4, 1, 8, 16], strides = [1, 1, 1, 1, 1]} : vector<2x4x2x8x16xf32> to vector<2x4x1x8x16xf32>
    %88 = vector.shape_cast %87 : vector<2x4x1x8x16xf32> to vector<2x4x8x16xf32>
    %89 = arith.maximumf %86, %88 : vector<2x4x8x16xf32>
    %90 = vector.extract_strided_slice %89 {offsets = [0, 0, 0, 0], sizes = [2, 4, 1, 16], strides = [1, 1, 1, 1]} : vector<2x4x8x16xf32> to vector<2x4x1x16xf32>
    %91 = vector.extract_strided_slice %89 {offsets = [0, 0, 1, 0], sizes = [2, 4, 1, 16], strides = [1, 1, 1, 1]} : vector<2x4x8x16xf32> to vector<2x4x1x16xf32>
    %92 = arith.maximumf %90, %91 : vector<2x4x1x16xf32>
    %93 = vector.extract_strided_slice %89 {offsets = [0, 0, 2, 0], sizes = [2, 4, 1, 16], strides = [1, 1, 1, 1]} : vector<2x4x8x16xf32> to vector<2x4x1x16xf32>
    %94 = vector.extract_strided_slice %89 {offsets = [0, 0, 3, 0], sizes = [2, 4, 1, 16], strides = [1, 1, 1, 1]} : vector<2x4x8x16xf32> to vector<2x4x1x16xf32>
    %95 = arith.maximumf %93, %94 : vector<2x4x1x16xf32>
    %96 = vector.extract_strided_slice %89 {offsets = [0, 0, 4, 0], sizes = [2, 4, 1, 16], strides = [1, 1, 1, 1]} : vector<2x4x8x16xf32> to vector<2x4x1x16xf32>
    %97 = vector.extract_strided_slice %89 {offsets = [0, 0, 5, 0], sizes = [2, 4, 1, 16], strides = [1, 1, 1, 1]} : vector<2x4x8x16xf32> to vector<2x4x1x16xf32>
    %98 = arith.maximumf %96, %97 : vector<2x4x1x16xf32>
    %99 = vector.extract_strided_slice %89 {offsets = [0, 0, 6, 0], sizes = [2, 4, 1, 16], strides = [1, 1, 1, 1]} : vector<2x4x8x16xf32> to vector<2x4x1x16xf32>
    %100 = vector.extract_strided_slice %89 {offsets = [0, 0, 7, 0], sizes = [2, 4, 1, 16], strides = [1, 1, 1, 1]} : vector<2x4x8x16xf32> to vector<2x4x1x16xf32>
    %101 = arith.maximumf %99, %100 : vector<2x4x1x16xf32>
    %102 = tpu.concatenate %92, %95, %98, %101 in 2 : vector<2x4x1x16xf32>, vector<2x4x1x16xf32>, vector<2x4x1x16xf32>, vector<2x4x1x16xf32> -> vector<2x4x4x16xf32>
    %cst_20 = arith.constant dense<0.000000e+00> : vector<2x4x16xf32>
    %103 = vector.multi_reduction <add>, %102, %cst_20 [1] : vector<2x4x4x16xf32> to vector<2x4x16xf32>
    %cst_21 = arith.constant dense<0.000000e+00> : vector<2x16xf32>
    %104 = vector.multi_reduction <add>, %103, %cst_21 [1] : vector<2x4x16xf32> to vector<2x16xf32>
    %cst_22 = arith.constant 6.250000e-02 : f32
    %105 = vector.broadcast %cst_22 : f32 to vector<2x16xf32>
    %106 = arith.mulf %104, %105 : vector<2x16xf32>
    %c0_23 = arith.constant 0 : index
    %c0_24 = arith.constant 0 : index
    %107 = vector.load %arg6[%c0_23, %c0_24] : memref<16x32xf32, #tpu.memory_space<vmem>>, vector<16x32xf32>
    %c0_25 = arith.constant 0 : index
    %c0_26 = arith.constant 0 : index
    %108 = vector.load %arg7[%c0_25, %c0_26] : memref<1x32xf32, #tpu.memory_space<vmem>>, vector<1x32xf32>
    %cst_27 = arith.constant dense<0.000000e+00> : vector<2x32xf32>
    %109 = tpu.matmul %106, %107, %cst_27 {dimension_numbers = #tpu.dot_dimension_numbers<[1], [0], [0], [1], [0, 0, 1, 1], [], []>} : vector<2x16xf32>, vector<16x32xf32>, vector<2x32xf32> -> vector<2x32xf32>
    %110 = vector.broadcast %108 : vector<1x32xf32> to vector<2x32xf32>
    %111 = arith.addf %109, %110 : vector<2x32xf32>
    %cst_28 = arith.constant 0.000000e+00 : f32
    %112 = vector.broadcast %cst_28 : f32 to vector<2x32xf32>
    %113 = arith.cmpf ogt, %111, %112 : vector<2x32xf32>
    %cst_29 = arith.constant 1.000000e-01 : f32
    %114 = vector.broadcast %cst_29 : f32 to vector<2x32xf32>
    %115 = arith.mulf %114, %111 : vector<2x32xf32>
    %116 = arith.select %113, %111, %115 : vector<2x32xi1>, vector<2x32xf32>
    %c0_30 = arith.constant 0 : index
    %c0_31 = arith.constant 0 : index
    %117 = vector.load %arg8[%c0_30, %c0_31] : memref<32x32xf32, #tpu.memory_space<vmem>>, vector<32x32xf32>
    %c0_32 = arith.constant 0 : index
    %c0_33 = arith.constant 0 : index
    %118 = vector.load %arg9[%c0_32, %c0_33] : memref<1x32xf32, #tpu.memory_space<vmem>>, vector<1x32xf32>
    %cst_34 = arith.constant dense<0.000000e+00> : vector<2x32xf32>
    %119 = tpu.matmul %116, %117, %cst_34 {dimension_numbers = #tpu.dot_dimension_numbers<[1], [0], [0], [1], [0, 0, 1, 1], [], []>} : vector<2x32xf32>, vector<32x32xf32>, vector<2x32xf32> -> vector<2x32xf32>
    %120 = vector.broadcast %118 : vector<1x32xf32> to vector<2x32xf32>
    %121 = arith.addf %119, %120 : vector<2x32xf32>
    %c0_35 = arith.constant 0 : index
    %c0_36 = arith.constant 0 : index
    %122 = vector.load %arg10[%c0_35, %c0_36] : memref<2x32xf32, #tpu.memory_space<vmem>>, vector<2x32xf32>
    tpu.vector_store %arg10[%c0_35, %c0_36], %121 {strides = array<i32>} : memref<2x32xf32, #tpu.memory_space<vmem>>, vector<2x32xf32>,
    return
  }
  func.func @transform_0(%arg0: i32) -> (i32, i32, i32, i32) {
    %c0_i32 = arith.constant 0 : i32
    %c0_i32_0 = arith.constant 0 : i32
    %c0_i32_1 = arith.constant 0 : i32
    %c0_i32_2 = arith.constant 0 : i32
    return %arg0, %c0_i32, %c0_i32_0, %c0_i32_1 : i32, i32, i32, i32
  }
  func.func @transform_1(%arg0: i32) -> (i32, i32) {
    %c0_i32 = arith.constant 0 : i32
    %c0_i32_0 = arith.constant 0 : i32
    %c0_i32_1 = arith.constant 0 : i32
    return %c0_i32, %c0_i32_0 : i32, i32
  }
  func.func @transform_2(%arg0: i32) -> (i32, i32) {
    %c0_i32 = arith.constant 0 : i32
    %c0_i32_0 = arith.constant 0 : i32
    %c0_i32_1 = arith.constant 0 : i32
    return %c0_i32, %c0_i32_0 : i32, i32
  }
  func.func @transform_3(%arg0: i32) -> (i32, i32) {
    %c0_i32 = arith.constant 0 : i32
    %c0_i32_0 = arith.constant 0 : i32
    %c0_i32_1 = arith.constant 0 : i32
    return %c0_i32, %c0_i32_0 : i32, i32
  }
  func.func @transform_4(%arg0: i32) -> (i32, i32) {
    %c0_i32 = arith.constant 0 : i32
    %c0_i32_0 = arith.constant 0 : i32
    %c0_i32_1 = arith.constant 0 : i32
    return %c0_i32, %c0_i32_0 : i32, i32
  }
  func.func @transform_5(%arg0: i32) -> (i32, i32) {
    %c0_i32 = arith.constant 0 : i32
    %c0_i32_0 = arith.constant 0 : i32
    %c0_i32_1 = arith.constant 0 : i32
    return %c0_i32, %c0_i32_0 : i32, i32
  }
  func.func @transform_6(%arg0: i32) -> (i32, i32) {
    %c0_i32 = arith.constant 0 : i32
    %c0_i32_0 = arith.constant 0 : i32
    %c0_i32_1 = arith.constant 0 : i32
    return %c0_i32, %c0_i32_0 : i32, i32
  }
  func.func @transform_7(%arg0: i32) -> (i32, i32) {
    %c0_i32 = arith.constant 0 : i32
    %c0_i32_0 = arith.constant 0 : i32
    %c0_i32_1 = arith.constant 0 : i32
    return %c0_i32, %c0_i32_0 : i32, i32
  }
  func.func @transform_8(%arg0: i32) -> (i32, i32) {
    %c0_i32 = arith.constant 0 : i32
    %c0_i32_0 = arith.constant 0 : i32
    %c0_i32_1 = arith.constant 0 : i32
    return %c0_i32, %c0_i32_0 : i32, i32
  }
  func.func @transform_9(%arg0: i32) -> (i32, i32) {
    %c0_i32 = arith.constant 0 : i32
    %c0_i32_0 = arith.constant 0 : i32
    return %arg0, %c0_i32 : i32, i32
  }
}

</mosaic_0001>

<bundles_post_ra>
// kernel: tpu_custom_call.1
= control target key start
LH: loop header
LB: loop body
LE: loop exit
PB: predicated region body
PF: predicated region fallthrough
CT: control target
= control target key end

     0   :  { %vm168_vm0 = vcmask 1040384   ;;  %v10415_v4 = vmov 0.0   ;;  %vm10588_vm1 = vcmask 1046528   ;;  %s5929_s23 = smov 4   ;;  %s10405_s0 = inlined_call_operand.vmem [shape: f32[2,16,16,4], index: 0, kind: input, shape index: {}]   ;;  %s10406_s1 = inlined_call_operand.vmem [shape: f32[36,8], index: 1, kind: input, shape index: {}]   ;;  %s10407_s2 = inlined_call_operand.vmem [shape: f32[1,8], index: 2, kind: input, shape index: {}]   ;;  %s10408_s3 = inlined_call_operand.vmem [shape: f32[72,16], index: 3, kind: input, shape index: {}]   ;;  %s10409_s4 = inlined_call_operand.vmem [shape: f32[1,16], index: 4, kind: input, shape index: {}]   ;;  %s10410_s5 = inlined_call_operand.vmem [shape: f32[16,32], index: 5, kind: input, shape index: {}]   ;;  %s10411_s6 = inlined_call_operand.vmem [shape: f32[1,32], index: 6, kind: input, shape index: {}]   ;;  %s10412_s7 = inlined_call_operand.vmem [shape: f32[32,32], index: 7, kind: input, shape index: {}]   ;;  %s10413_s8 = inlined_call_operand.vmem [shape: f32[1,32], index: 8, kind: input, shape index: {}]   ;;  %s10414_s9 = inlined_call_operand.hbm [shape: f32[2,32], index: 9, kind: output, shape index: {}]  }
   0x1   :  { %v33_v0 = vld [vmem:[%s10405_s0] sm:$0xff]  ;;  %v34_v1 = vld [vmem:[%s10405_s0 + $0x8] sm:$0xff]  ;;  %v6001_v5 = vrot.slane %v10415_v4, 7  ;;  %v35_v6 = vld [vmem:[%s10405_s0 + $0x10] sm:$0xff] }
   0x2   :  { %v171_v2 = vrot.slane %v33_v0, 7  ;;  %v172_v3 = vrot.slane %v34_v1, 7  ;;  %v36_v7 = vld [vmem:[%s10405_s0 + $0x18] sm:$0xff]  ;;  %v37_v8 = vld [vmem:[%s10405_s0 + $0x20] sm:$0xff]  ;;  %v174_v9 = vrot.slane %v35_v6, 7  ;;  %v38_v20 = vld [vmem:[%s10405_s0 + $0x28] sm:$0xff] }
   0x3   :  { %v175_v10 = vrot.slane %v36_v7, 7  ;;  %v177_v11 = vrot.slane %v37_v8, 7  ;;  %v6020_v14 = vsel %vm168_vm0, 0.0, %v6001_v5  ;;  %v6024_v15 = vsel %vm168_vm0, %v6001_v5, 0.0  ;;  %v39_v28 = vld [vmem:[%s10405_s0 + $0x30] sm:$0xff]  ;;  %v40_v33 = vld [vmem:[%s10405_s0 + $0x38] sm:$0xff] }
   0x4   :  { %v6013_v12 = vsel %vm168_vm0, %v171_v2, %v172_v3  ;;  %v6016_v13 = vsel %vm168_vm0, %v172_v3, 0.0  ;;  %10626 = vst [vmem:[#allocation5_spill] sm:$0xff] %v6020_v14  ;;  %10627 = vst [vmem:[#allocation6_spill] sm:$0xff] %v6024_v15  ;;  %v10417_v18 = vrot.slane %v6020_v14, 1  ;;  %v493_v19 = vrot.slane %v6001_v5, 1  ;;  %v41_v37 = vld [vmem:[%s10405_s0 + $0x40] sm:$0xff] }
   0x5   :  { %v498_v16 = vrot.slane %v6013_v12, 1  ;;  %v500_v17 = vrot.slane %v6016_v13, 1  ;;  %v10418_v21 = vrot.slane %v6024_v15, 1  ;;  %v6035_v22 = vsel %vm168_vm0, %v174_v9, %v175_v10  ;;  %v42_v38 = vld [vmem:[%s10405_s0 + $0x48] sm:$0xff]  ;;  %v43_v51 = vld [vmem:[%s10405_s0 + $0x50] sm:$0xff]  ;;  %v44_v55 = vld [vmem:[%s10405_s0 + $0x58] sm:$0xff] }
   0x6   :  { %v6038_v23 = vsel %vm168_vm0, 0.0, %v174_v9  ;;  %v494_v25 = vsel %vm10588_vm1, %v10417_v18, %v493_v19  ;;  %v503_v27 = vrot.slane %v6035_v22, 1  ;;  %v6057_v30 = vsel %vm168_vm0, 0.0, %v171_v2  ;;  %v45_v59 = vld [vmem:[%s10405_s0 + $0x60] sm:$0xff]  ;;  %v46_v3 = vld [vmem:[%s10405_s0 + $0x68] sm:$0xff] }
   0x7   :  { %v6041_v24 = vsel %vm10588_vm1, %v498_v16, %v500_v17  ;;  %v502_v26 = vrot.slane %v6038_v23, 1  ;;  %v496_v29 = vsel %vm10588_vm1, %v493_v19, %v10418_v21  ;;  %v178_v31 = vrot.slane %v38_v20, 7 }
   0x8   :  { %653 = vrot.lane.b32.xlu1 %v6041_v24, %s5929_s23  ;;  %v6060_v32 = vsel %vm168_vm0, 0.0, %v177_v11  ;;  %v6065_v34 = vpack.i.bf16 %v496_v29, %v494_v25  ;;  %v497_v36 = vrot.slane %v6057_v30, 1  ;;  %v6082_v41 = vsel %vm168_vm0, %v175_v10, 0.0  ;;  %v47_v10 = vld [vmem:[%s10405_s0 + $0x70] sm:$0xff] }
   0x9   :  { %v6068_v35 = vsel %vm10588_vm1, %v502_v26, %v503_v27  ;;  %v6078_v39 = vsel %vm168_vm0, %v177_v11, %v178_v31  ;;  %v507_v40 = vrot.slane %v6060_v32, 1  ;;  %v180_v42 = vrot.slane %v39_v28, 7  ;;  %v48_v11 = vld [vmem:[%s10405_s0 + $0x78] sm:$0xff] }
   0xa   :  { %10628 = vst [vmem:[#allocation7_spill] sm:$0xff] %v6065_v34  ;;  %5877 = vrot.lane.b32.xlu0 %v6065_v34, %s5929_s23  ;;  %v6087_v43 = vsel %vm10588_vm1, %v497_v36, %v498_v16  ;;  %v508_v44 = vrot.slane %v6078_v39, 1  ;;  %v505_v45 = vrot.slane %v6082_v41, 1  ;;  %v181_v46 = vrot.slane %v40_v33, 7 }
   0xb   :  { %v6094_v47 = vsel %vm168_vm0, 0.0, %v180_v42  ;;  %v6097_v48 = vsel %vm168_vm0, %v178_v31, 0.0  ;;  %v183_v49 = vrot.slane %v41_v37, 7  ;;  %v184_v50 = vrot.slane %v42_v38, 7 }
   0xc   :  { %655 = vrot.lane.b32.xlu1 %v6068_v35, %s5929_s23  ;;  %v6103_v52 = vsel %vm10588_vm1, %v507_v40, %v508_v44  ;;  %v6106_v53 = vsel %vm168_vm0, %v180_v42, %v181_v46  ;;  %v512_v54 = vrot.slane %v6094_v47, 1  ;;  %v6125_v60 = vsel %vm10588_vm1, %v503_v27, %v505_v45 }
   0xd   :  { %v513_v56 = vrot.slane %v6106_v53, 1  ;;  %v6114_v57 = vsel %vm168_vm0, %v183_v49, %v184_v50  ;;  %v6117_v58 = vsel %vm168_vm0, 0.0, %v183_v49  ;;  %v510_v61 = vrot.slane %v6097_v48, 1 }
   0xe   :  { %651 = vrot.lane.b32.xlu0 %v6087_v43, %s5929_s23  ;;  %v186_v62 = vrot.slane %v43_v51, 7  ;;  %v517_v63 = vrot.slane %v6117_v58, 1  ;;  %v518_v0 = vrot.slane %v6114_v57, 1  ;;  %v6133_v1 = vsel %vm168_vm0, %v181_v46, 0.0 }
   0xf   :  { %v187_v2 = vrot.slane %v44_v55, 7  ;;  %v6139_v6 = vsel %vm10588_vm1, %v512_v54, %v513_v56  ;;  %v189_v8 = vrot.slane %v45_v59, 7  ;;  %v515_v16 = vrot.slane %v6133_v1, 1 }
  0x10   :  { %659 = vrot.lane.b32.xlu1 %v6103_v52, %s5929_s23  ;;  %v6142_v7 = vsel %vm168_vm0, 0.0, %v186_v62  ;;  %v190_v17 = vrot.slane %v46_v3, 7  ;;  %v6159_v19 = vsel %vm10588_vm1, %v508_v44, %v510_v61  ;;  %v6162_v20 = vsel %vm10588_vm1, %v517_v63, %v518_v0 }
  0x11   :  { %v6145_v9 = vsel %vm168_vm0, %v186_v62, %v187_v2  ;;  %v522_v25 = vrot.slane %v6142_v7, 1 }
  0x12   :  { %657 = vrot.lane.b32.xlu0 %v6125_v60, %s5929_s23  ;;  %v523_v26 = vrot.slane %v6145_v9, 1 }
  0x14   :  { %663 = vrot.lane.b32.xlu1 %v6139_v6, %s5929_s23 }
  0x15   :  { %14 = vsyncpa [#allocation3], 0  ;;  %v6167_v27 = vsel %vm168_vm0, %v184_v50, 0.0  ;;  %v6170_v28 = vsel %vm168_vm0, 0.0, %v189_v8  ;;  %v192_v29 = vrot.slane %v47_v10, 7  ;;  %v193_v31 = vrot.slane %v48_v11, 7 }
  0x16   :  { %v6173_v33 = vsel %vm168_vm0, %v189_v8, %v190_v17  ;;  %v49_v36 = vld [vmem:[%s10405_s0 + $0x80] sm:$0xff]  ;;  %661 = vrot.lane.b32.xlu0 %v6159_v19, %s5929_s23  ;;  %v6181_v37 = vsel %vm10588_vm1, %v513_v56, %v515_v16  ;;  %v50_v38 = vld [vmem:[%s10405_s0 + $0x88] sm:$0xff]  ;;  %v6189_v40 = vsel %vm10588_vm1, %v522_v25, %v523_v26  ;;  %v520_v42 = vrot.slane %v6167_v27, 1  ;;  %v51_v55 = vld [vmem:[%s10405_s0 + $0x90] sm:$0xff]  ;;  %s5930_s13 = smov 8   ;;  %s5931_s14 = smov 12  }
  0x17   :  { %v527_v44 = vrot.slane %v6170_v28, 1  ;;  %v6194_v45 = vsel %vm168_vm0, %v187_v2, 0.0  ;;  %v528_v46 = vrot.slane %v6173_v33, 1  ;;  %v6198_v49 = vsel %vm168_vm0, %v192_v29, %v193_v31  ;;  %v52_v56 = vld [vmem:[%s10405_s0 + $0x98] sm:$0xff]  ;;  %v54_v25 = vld [vmem:[%s10405_s0 + $0xa8] sm:$0xff]  ;;  %s5932_s15 = smov 16  }
  0x18   :  { %667 = vrot.lane.b32.xlu1 %v6162_v20, %s5929_s23  ;;  %10629 = vst [vmem:[#allocation8_spill] sm:$0xff] %v6198_v49  ;;  %v6201_v50 = vsel %vm168_vm0, 0.0, %v192_v29  ;;  %v195_v51 = vrot.slane %v49_v36, 7  ;;  %v196_v54 = vrot.slane %v50_v38, 7  ;;  %v525_v59 = vrot.slane %v6194_v45, 1  ;;  %s5933_s16 = smov 20  }
  0x19   :  { %v6215_v61 = vsel %vm10588_vm1, %v518_v0, %v520_v42  ;;  %v532_v62 = vrot.slane %v6201_v50, 1  ;;  %v533_v63 = vrot.slane %v6198_v49, 1  ;;  %v6220_v2 = vsel %vm168_vm0, %v190_v17, 0.0  ;;  %v53_v0 = vld [vmem:[%s10405_s0 + $0xa0] sm:$0xff]  ;;  %s5934_s17 = smov 24   ;;  %s5935_s27 = smov 28  }
  0x1a   :  { %665 = vrot.lane.b32.xlu0 %v6181_v37, %s5929_s23  ;;  %v6223_v3 = vsel %vm10588_vm1, %v527_v44, %v528_v46  ;;  %v6226_v8 = vsel %vm168_vm0, 0.0, %v195_v51  ;;  %v198_v10 = vrot.slane %v51_v55, 7  ;;  %v199_v11 = vrot.slane %v52_v56, 7  ;;  %s5938_s20 = smov 48   ;;  %s5939_s30 = smov 56  }
  0x1b   :  { %10630 = vst [vmem:[#allocation9_spill] sm:$0xff] %v6226_v8  ;;  %v6229_v16 = vsel %vm168_vm0, %v195_v51, %v196_v54  ;;  %v6237_v17 = vsel %vm10588_vm1, %v523_v26, %v525_v59  ;;  %v6245_v29 = vsel %vm10588_vm1, %v532_v62, %v533_v63  ;;  %v530_v36 = vrot.slane %v6220_v2, 1  ;;  %v55_v59 = vld [vmem:[%s10405_s0 + $0xb0] sm:$0xff]  ;;  %v56_v62 = vld [vmem:[%s10405_s0 + $0xb8] sm:$0xff]  ;;  %s5943_s28 = smov [#allocation2]  }
  0x1c   :  { %671 = vrot.lane.b32.xlu1 %v6189_v40, %s5929_s23  ;;  %10631 = vst [vmem:[#allocation10_spill] sm:$0xff] %v6229_v16  ;;  %10632 = vst [vmem:[#allocation11_spill] sm:$0xff] %v6245_v29  ;;  %v537_v38 = vrot.slane %v6226_v8, 1  ;;  %v6250_v42 = vsel %vm168_vm0, %v193_v31, 0.0  ;;  %v538_v26 = vrot.slane %v6229_v16, 1  ;;  %v6254_v44 = vsel %vm168_vm0, %v198_v10, %v199_v11 }
  0x1d   :  { %10633 = vst [vmem:[#allocation12_spill] sm:$0xff] %v6250_v42  ;;  %10634 = vst [vmem:[#allocation13_spill] sm:$0xff] %v6254_v44  ;;  %v6257_v51 = vsel %vm168_vm0, 0.0, %v198_v10  ;;  %v201_v55 = vrot.slane %v53_v0, 7  ;;  %v202_v56 = vrot.slane %v54_v25, 7  ;;  %v535_v31 = vrot.slane %v6250_v42, 1 }
  0x1e   :  { %669 = vrot.lane.b32.xlu0 %v6215_v61, %s5929_s23  ;;  %10635 = vst [vmem:[#allocation14_spill] sm:$0xff] %v6257_v51  ;;  %v6271_v10 = vsel %vm10588_vm1, %v528_v46, %v530_v36  ;;  %v542_v0 = vrot.slane %v6257_v51, 1  ;;  %v543_v25 = vrot.slane %v6254_v44, 1  ;;  %v6276_v4 = vsel %vm168_vm0, %v196_v54, 0.0  ;;  %v57_v46 = vld [vmem:[%s10405_s0 + $0xc0] sm:$0xff]  ;;  %v58_v36 = vld [vmem:[%s10405_s0 + $0xc8] sm:$0xff] }
  0x1f   :  { %10636 = vst [vmem:[#allocation15_spill] sm:$0xff] %v6276_v4  ;;  %v6279_v18 = vsel %vm10588_vm1, %v537_v38, %v538_v26  ;;  %v6282_v21 = vsel %vm168_vm0, 0.0, %v201_v55  ;;  %v204_v34 = vrot.slane %v55_v59, 7  ;;  %v205_v16 = vrot.slane %v56_v62, 7 }
  0x20   :  { %675 = vrot.lane.b32.xlu1 %v6223_v3, %s5929_s23  ;;  %10637 = vst [vmem:[#allocation16_spill] sm:$0xff] %v6279_v18  ;;  %10638 = vst [vmem:[#allocation17_spill] sm:$0xff] %v6282_v21  ;;  %v6285_v8 = vsel %vm168_vm0, %v201_v55, %v202_v56  ;;  %v6293_v54 = vsel %vm10588_vm1, %v533_v63, %v535_v31  ;;  %v6301_v38 = vsel %vm10588_vm1, %v542_v0, %v543_v25  ;;  %v59_v0 = vld [vmem:[%s10405_s0 + $0xd0] sm:$0xff]  ;;  %vm10589_vm2 = vcmask 1045504  }
  0x21   :  { %10639 = vst [vmem:[#allocation18_spill] sm:$0xff] %v6285_v8  ;;  %10640 = vst [vmem:[#allocation19_spill] sm:$0xff] %v6293_v54  ;;  %v540_v55 = vrot.slane %v6276_v4, 1  ;;  %v547_v59 = vrot.slane %v6282_v21, 1  ;;  %v6306_v62 = vsel %vm168_vm0, %v199_v11, 0.0  ;;  %v548_v63 = vrot.slane %v6285_v8, 1 }
  0x22   :  { %673 = vrot.lane.b32.xlu0 %v6237_v17, %s5929_s23  ;;  %10641 = vst [vmem:[#allocation20_spill] sm:$0xff] %v6301_v38  ;;  %10642 = vst [vmem:[#allocation21_spill] sm:$0xff] %v6306_v62  ;;  %v6310_v31 = vsel %vm168_vm0, %v204_v34, %v205_v16  ;;  %v6313_v44 = vsel %vm168_vm0, 0.0, %v204_v34  ;;  %v207_v51 = vrot.slane %v57_v46, 7  ;;  %v60_v21 = vld [vmem:[%s10405_s0 + $0xd8] sm:$0xff]  ;;  %v545_v11 = vrot.slane %v6306_v62, 1 }
  0x23   :  { %10643 = vst [vmem:[#allocation22_spill] sm:$0xff] %v6310_v31  ;;  %10644 = vst [vmem:[#allocation23_spill] sm:$0xff] %v6313_v44  ;;  %v6327_v34 = vsel %vm10588_vm1, %v538_v26, %v540_v55  ;;  %v552_v46 = vrot.slane %v6313_v44, 1  ;;  %v6332_v8 = vsel %vm168_vm0, %v202_v56, 0.0  ;;  %v6335_v4 = vsel %vm10588_vm1, %v547_v59, %v548_v63  ;;  %v61_v26 = vld [vmem:[%s10405_s0 + $0xe0] sm:$0xff]  ;;  %v62_v55 = vld [vmem:[%s10405_s0 + $0xe8] sm:$0xff] }
  0x24   :  { %679 = vrot.lane.b32.xlu1 %v6245_v29, %s5929_s23  ;;  %10645 = vst [vmem:[#allocation24_spill] sm:$0xff] %v6327_v34  ;;  %10646 = vst [vmem:[#allocation25_spill] sm:$0xff] %v6332_v8  ;;  %v6338_v42 = vsel %vm168_vm0, 0.0, %v207_v51  ;;  %v210_v62 = vrot.slane %v59_v0, 7  ;;  %v6349_v56 = vsel %vm10588_vm1, %v543_v25, %v545_v11  ;;  %v6362_v0 = vsel %vm168_vm0, %v205_v16, 0.0 }
  0x25   :  { %10647 = vst [vmem:[#allocation26_spill] sm:$0xff] %v6335_v4  ;;  %10648 = vst [vmem:[#allocation27_spill] sm:$0xff] %v6338_v42  ;;  %v557_v59 = vrot.slane %v6338_v42, 1  ;;  %v213_v44 = vrot.slane %v61_v26, 7  ;;  %v555_v16 = vrot.slane %v6362_v0, 1  ;;  %vm10591_vm3 = vcmask 1043456  }
  0x26   :  { %677 = vrot.lane.b32.xlu0 %v6271_v10, %s5929_s23  ;;  %10650 = vst [vmem:[#allocation29_spill] sm:$0xff] %v6349_v56  ;;  %10652 = vst [vmem:[#allocation31_spill] sm:$0xff] %v6362_v0  ;;  %vm2333_vm4 = vcmask 31744   ;;  %vm2396_vm5 = vcmask 64512   ;;  %vm2459_vm6 = vcmask 97280   ;;  %vm2589_vm7 = vcmask 162816  }
  0x27   :  { %v6394_v0 = vsel %vm168_vm0, 0.0, %v213_v44  ;;  %vm2524_vm8 = vcmask 130048   ;;  %vm2654_vm9 = vcmask 195584   ;;  %vm2719_vm10 = vcmask 228352  }
  0x28   :  { %683 = vrot.lane.b32.xlu1 %v6279_v18, %s5929_s23  ;;  %v208_v18 = vrot.slane %v58_v36, 7  ;;  %v553_v36 = vrot.slane %v6310_v31, 1  ;;  %v6369_v31 = vsel %vm168_vm0, 0.0, %v210_v62  ;;  %10658 = vst [vmem:[#allocation37_spill] sm:$0xff] %v6394_v0  ;;  %vm2784_vm11 = vcmask 261120  }
  0x29   :  { %10654 = vst [vmem:[#allocation33_spill] sm:$0xff] %v6369_v31  ;;  %v562_v26 = vrot.slane %v6369_v31, 1  ;;  %vm2855_vm12 = vcmask 293888  }
  0x2a   :  { %681 = vrot.lane.b32.xlu0 %v6293_v54, %s5929_s23  ;;  %v211_v54 = vrot.slane %v60_v21, 7  ;;  %v6357_v21 = vsel %vm10588_vm1, %v552_v46, %v553_v36  ;;  %v65_v46 = vld [vmem:[%s10405_s0 + $0x100] sm:$0xff] }
  0x2b   :  { %10651 = vst [vmem:[#allocation30_spill] sm:$0xff] %v6357_v21 }
  0x2c   :  { %687 = vrot.lane.b32.xlu1 %v6301_v38, %s5929_s23  ;;  %v6341_v38 = vsel %vm168_vm0, %v207_v51, %v208_v18  ;;  %v550_v51 = vrot.slane %v6332_v8, 1  ;;  %v6366_v11 = vsel %vm168_vm0, %v210_v62, %v211_v54  ;;  %v6391_v8 = vsel %vm168_vm0, %v208_v18, 0.0 }
  0x2d   :  { %10649 = vst [vmem:[#allocation28_spill] sm:$0xff] %v6341_v38  ;;  %v558_v25 = vrot.slane %v6341_v38, 1  ;;  %10653 = vst [vmem:[#allocation32_spill] sm:$0xff] %v6366_v11  ;;  %v66_v38 = vld [vmem:[%s10405_s0 + $0x108] sm:$0xff]  ;;  %v6408_v18 = vsel %vm10588_vm1, %v553_v36, %v555_v16 }
  0x2e   :  { %685 = vrot.lane.b32.xlu0 %v6327_v34, %s5929_s23  ;;  %v6383_v62 = vsel %vm10588_vm1, %v548_v63, %v550_v51  ;;  %10657 = vst [vmem:[#allocation36_spill] sm:$0xff] %v6391_v8  ;;  %v67_v63 = vld [vmem:[%s10405_s0 + $0x110] sm:$0xff]  ;;  %v68_v51 = vld [vmem:[%s10405_s0 + $0x118] sm:$0xff]  ;;  %10660 = vst [vmem:[#allocation39_spill] sm:$0xff] %v6408_v18 }
  0x2f   :  { %10655 = vst [vmem:[#allocation34_spill] sm:$0xff] %v6383_v62  ;;  %v6388_v42 = vsel %vm10588_vm1, %v557_v59, %v558_v25  ;;  %v567_v59 = vrot.slane %v6394_v0, 1  ;;  %v222_v36 = vrot.slane %v67_v63, 7  ;;  %v223_v16 = vrot.slane %v68_v51, 7 }
  0x30   :  { %691 = vrot.lane.b32.xlu1 %v6335_v4, %s5929_s23  ;;  %v214_v4 = vrot.slane %v62_v55, 7  ;;  %v563_v55 = vrot.slane %v6366_v11, 1  ;;  %10656 = vst [vmem:[#allocation35_spill] sm:$0xff] %v6388_v42 }
  0x32   :  { %689 = vrot.lane.b32.xlu0 %v6349_v56, %s5929_s23  ;;  %v219_v56 = vrot.slane %v65_v46, 7  ;;  %v6397_v34 = vsel %vm168_vm0, %v213_v44, %v214_v4  ;;  %v6413_v44 = vsel %vm10588_vm1, %v562_v26, %v563_v55  ;;  %v6418_v46 = vsel %vm168_vm0, %v211_v54, 0.0  ;;  %v69_v26 = vld [vmem:[%s10405_s0 + $0x120] sm:$0xff]  ;;  %v70_v54 = vld [vmem:[%s10405_s0 + $0x128] sm:$0xff] }
  0x33   :  { %10659 = vst [vmem:[#allocation38_spill] sm:$0xff] %v6397_v34  ;;  %10661 = vst [vmem:[#allocation40_spill] sm:$0xff] %v6413_v44  ;;  %v568_v11 = vrot.slane %v6397_v34, 1  ;;  %v6443_v34 = vsel %vm168_vm0, %v214_v4, 0.0  ;;  %v71_v4 = vld [vmem:[%s10405_s0 + $0x130] sm:$0xff] }
  0x34   :  { %695 = vrot.lane.b32.xlu1 %v6357_v21, %s5929_s23  ;;  %v220_v21 = vrot.slane %v66_v38, 7  ;;  %v560_v38 = vrot.slane %v6391_v8, 1  ;;  %10662 = vst [vmem:[#allocation41_spill] sm:$0xff] %v6418_v46  ;;  %v6422_v31 = vsel %vm168_vm0, 0.0, %v219_v56  ;;  %10666 = vst [vmem:[#allocation45_spill] sm:$0xff] %v6443_v34 }
  0x35   :  { %10663 = vst [vmem:[#allocation42_spill] sm:$0xff] %v6422_v31  ;;  %v572_v51 = vrot.slane %v6422_v31, 1  ;;  %v6446_v0 = vsel %vm10588_vm1, %v567_v59, %v568_v11  ;;  %v570_v31 = vrot.slane %v6443_v34, 1  ;;  %v72_v59 = vld [vmem:[%s10405_s0 + $0x138] sm:$0xff] }
  0x36   :  { %693 = vrot.lane.b32.xlu0 %v6383_v62, %s5929_s23  ;;  %v6425_v62 = vsel %vm168_vm0, %v219_v56, %v220_v21  ;;  %v6438_v63 = vsel %vm10588_vm1, %v558_v25, %v560_v38  ;;  %v565_v56 = vrot.slane %v6418_v46, 1  ;;  %10667 = vst [vmem:[#allocation46_spill] sm:$0xff] %v6446_v0  ;;  %v225_v25 = vrot.slane %v69_v26, 7 }
  0x37   :  { %10664 = vst [vmem:[#allocation43_spill] sm:$0xff] %v6425_v62  ;;  %10665 = vst [vmem:[#allocation44_spill] sm:$0xff] %v6438_v63  ;;  %v573_v8 = vrot.slane %v6425_v62, 1  ;;  %v226_v38 = vrot.slane %v70_v54, 7  ;;  %v6475_v34 = vsel %vm168_vm0, %v220_v21, 0.0  ;;  %v73_v21 = vld [vmem:[%s10405_s0 + $0x140] sm:$0xff] }
  0x38   :  { %699 = vrot.lane.b32.xlu1 %v6388_v42, %s5929_s23  ;;  %v6450_v42 = vsel %vm168_vm0, %v222_v36, %v223_v16  ;;  %10672 = vst [vmem:[#allocation51_spill] sm:$0xff] %v6475_v34 }
  0x39   :  { %10668 = vst [vmem:[#allocation47_spill] sm:$0xff] %v6450_v42  ;;  %v578_v54 = vrot.slane %v6450_v42, 1  ;;  %v6472_v62 = vsel %vm10588_vm1, %v572_v51, %v573_v8  ;;  %v6478_v46 = vsel %vm168_vm0, %v225_v25, %v226_v38  ;;  %v74_v51 = vld [vmem:[%s10405_s0 + $0x148] sm:$0xff]  ;;  %v835_v42 = vrot.slane %v6001_v5, 2 }
  0x3a   :  { %697 = vrot.lane.b32.xlu0 %v6408_v18, %s5929_s23  ;;  %10671 = vst [vmem:[#allocation50_spill] sm:$0xff] %v6472_v62  ;;  %10673 = vst [vmem:[#allocation52_spill] sm:$0xff] %v6478_v46  ;;  %v229_v18 = vrot.slane %v72_v59, 7  ;;  %v6502_v59 = vsel %vm168_vm0, %v223_v16, 0.0  ;;  %v75_v16 = vld [vmem:[%s10405_s0 + $0x150] sm:$0xff] }
  0x3b   :  { %10677 = vst [vmem:[#allocation56_spill] sm:$0xff] %v6502_v59 }
  0x3c   :  { %703 = vrot.lane.b32.xlu1 %v6413_v44, %s5929_s23  ;;  %v6453_v44 = vsel %vm168_vm0, 0.0, %v222_v36  ;;  %v6467_v36 = vsel %vm10588_vm1, %v563_v55, %v565_v56  ;;  %v6487_v56 = vsel %vm10588_vm1, %v568_v11, %v570_v31  ;;  %v583_v11 = vrot.slane %v6478_v46, 1  ;;  %v76_v55 = vld [vmem:[%s10405_s0 + $0x158] sm:$0xff] }
  0x3d   :  { %10669 = vst [vmem:[#allocation48_spill] sm:$0xff] %v6453_v44  ;;  %10670 = vst [vmem:[#allocation49_spill] sm:$0xff] %v6467_v36  ;;  %v577_v26 = vrot.slane %v6453_v44, 1  ;;  %v10680_v46 = vrot.slane %v6020_v14, 2 }
  0x3e   :  { %701 = vrot.lane.b32.xlu0 %v6438_v63, %s5929_s23  ;;  %v6481_v63 = vsel %vm168_vm0, 0.0, %v225_v25  ;;  %10675 = vst [vmem:[#allocation54_spill] sm:$0xff] %v6487_v56 }
  0x3f   :  { %10674 = vst [vmem:[#allocation53_spill] sm:$0xff] %v6481_v63  ;;  %v6498_v25 = vsel %vm10588_vm1, %v577_v26, %v578_v54  ;;  %v582_v31 = vrot.slane %v6481_v63, 1  ;;  %v836_v63 = vsel %vm10589_vm2, %v10680_v46, %v835_v42 }
  0x40   :  { %707 = vrot.lane.b32.xlu1 %v6446_v0, %s5929_s23  ;;  %v228_v0 = vrot.slane %v71_v4, 7  ;;  %10676 = vst [vmem:[#allocation55_spill] sm:$0xff] %v6498_v25  ;;  %v575_v4 = vrot.slane %v6475_v34, 1  ;;  %v232_v34 = vrot.slane %v74_v51, 7 }
  0x41   :  { %v6537_v49 = vsel %vm10588_vm1, %v582_v31, %v583_v11 }
  0x42   :  { %705 = vrot.lane.b32.xlu0 %v6467_v36, %s5929_s23  ;;  %v6509_v44 = vsel %vm168_vm0, %v228_v0, %v229_v18  ;;  %v6512_v26 = vsel %vm168_vm0, 0.0, %v228_v0  ;;  %v10681_v0 = vrot.slane %v6024_v15, 2  ;;  %v6531_v51 = vsel %vm10588_vm1, %v573_v8, %v575_v4  ;;  %10684 = vst [vmem:[#allocation61_spill] sm:$0xff] %v6537_v49 }
  0x43   :  { %10678 = vst [vmem:[#allocation57_spill] sm:$0xff] %v6509_v44  ;;  %10679 = vst [vmem:[#allocation58_spill] sm:$0xff] %v6512_v26  ;;  %v587_v29 = vrot.slane %v6512_v26, 1  ;;  %v588_v46 = vrot.slane %v6509_v44, 1  ;;  %v6542_v15 = vsel %vm168_vm0, %v226_v38, 0.0  ;;  %v234_v4 = vrot.slane %v75_v16, 7 }
  0x44   :  { %711 = vrot.lane.b32.xlu1 %v6472_v62, %s5929_s23  ;;  %v231_v62 = vrot.slane %v73_v21, 7  ;;  %v838_v21 = vsel %vm10589_vm2, %v835_v42, %v10681_v0  ;;  %10682 = vst [vmem:[#allocation59_spill] sm:$0xff] %v6531_v51  ;;  %10685 = vst [vmem:[#allocation62_spill] sm:$0xff] %v6542_v15  ;;  %v235_v0 = vrot.slane %v76_v55, 7  ;;  %v78_v38 = vld [vmem:[%s10405_s0 + $0x168] sm:$0xff]  ;;  %v6570_v44 = vsel %vm168_vm0, %v229_v18, 0.0 }
  0x45   :  { %v6534_v36 = vpack.i.bf16 %v838_v21, %v836_v63  ;;  %v77_v63 = vld [vmem:[%s10405_s0 + $0x160] sm:$0xff]  ;;  %v6565_v55 = vsel %vm10588_vm1, %v587_v29, %v588_v46  ;;  %10690 = vst [vmem:[#allocation67_spill] sm:$0xff] %v6570_v44  ;;  %v79_v29 = vld [vmem:[%s10405_s0 + $0x170] sm:$0xff]  ;;  %v80_v18 = vld [vmem:[%s10405_s0 + $0x178] sm:$0xff] }
  0x46   :  { %709 = vrot.lane.b32.xlu0 %v6487_v56, %s5929_s23  ;;  %v580_v56 = vrot.slane %v6502_v59, 1  ;;  %v6545_v42 = vsel %vm168_vm0, %v231_v62, %v232_v34  ;;  %v6548_v8 = vsel %vm168_vm0, 0.0, %v231_v62  ;;  %v585_v62 = vrot.slane %v6542_v15, 1  ;;  %10689 = vst [vmem:[#allocation66_spill] sm:$0xff] %v6565_v55 }
  0x47   :  { %10683 = vst [vmem:[#allocation60_spill] sm:$0xff] %v6534_v36  ;;  %10686 = vst [vmem:[#allocation63_spill] sm:$0xff] %v6545_v42  ;;  %v592_v16 = vrot.slane %v6548_v8, 1  ;;  %v593_v21 = vrot.slane %v6545_v42, 1  ;;  %v6573_v26 = vsel %vm168_vm0, %v234_v4, %v235_v0  ;;  %v6598_v15 = vsel %vm168_vm0, %v232_v34, 0.0  ;;  %v82_v34 = vld [vmem:[%s10405_s0 + $0x188] sm:$0xff] }
  0x48   :  { %715 = vrot.lane.b32.xlu1 %v6498_v25, %s5929_s23  ;;  %10687 = vst [vmem:[#allocation64_spill] sm:$0xff] %v6548_v8  ;;  %v6561_v31 = vsel %vm10588_vm1, %v578_v54, %v580_v56  ;;  %v237_v54 = vrot.slane %v77_v63, 7  ;;  %v238_v56 = vrot.slane %v78_v38, 7  ;;  %v6589_v42 = vsel %vm10588_vm1, %v583_v11, %v585_v62  ;;  %10693 = vst [vmem:[#allocation70_spill] sm:$0xff] %v6598_v15 }
  0x49   :  { %10688 = vst [vmem:[#allocation65_spill] sm:$0xff] %v6561_v31  ;;  %10691 = vst [vmem:[#allocation68_spill] sm:$0xff] %v6589_v42  ;;  %v6593_v63 = vsel %vm10588_vm1, %v592_v16, %v593_v21  ;;  %v598_v8 = vrot.slane %v6573_v26, 1  ;;  %v240_v11 = vrot.slane %v79_v29, 7  ;;  %v241_v62 = vrot.slane %v80_v18, 7  ;;  %v81_v16 = vld [vmem:[%s10405_s0 + $0x180] sm:$0xff] }
  0x4a   :  { %713 = vrot.lane.b32.xlu0 %v6531_v51, %s5929_s23  ;;  %10692 = vst [vmem:[#allocation69_spill] sm:$0xff] %v6593_v63  ;;  %v6601_v59 = vsel %vm168_vm0, %v237_v54, %v238_v56  ;;  %v6654_v51 = vsel %vm168_vm0, %v238_v56, 0.0  ;;  %v86_v56 = vld [vmem:[%s10405_s0 + $0x1a8] sm:$0xff] }
  0x4b   :  { %10694 = vst [vmem:[#allocation71_spill] sm:$0xff] %v6601_v59  ;;  %v6629_v25 = vsel %vm168_vm0, %v240_v11, %v241_v62  ;;  %10703 = vst [vmem:[#allocation80_spill] sm:$0xff] %v6654_v51 }
  0x4c   :  { %719 = vrot.lane.b32.xlu1 %v6537_v49, %s5929_s23  ;;  %v6576_v49 = vsel %vm168_vm0, 0.0, %v234_v4  ;;  %v590_v4 = vrot.slane %v6570_v44, 1  ;;  %10699 = vst [vmem:[#allocation76_spill] sm:$0xff] %v6629_v25 }
  0x4d   :  { %v597_v38 = vrot.slane %v6576_v49, 1 }
  0x4e   :  { %717 = vrot.lane.b32.xlu0 %v6561_v31, %s5929_s23  ;;  %v6617_v44 = vsel %vm10588_vm1, %v588_v46, %v590_v4  ;;  %v6626_v31 = vsel %vm168_vm0, %v235_v0, 0.0  ;;  %v243_v46 = vrot.slane %v81_v16, 7  ;;  %v244_v4 = vrot.slane %v82_v34, 7  ;;  %v84_v0 = vld [vmem:[%s10405_s0 + $0x198] sm:$0xff] }
  0x4f   :  { %10696 = vst [vmem:[#allocation73_spill] sm:$0xff] %v6617_v44  ;;  %v6621_v29 = vsel %vm10588_vm1, %v597_v38, %v598_v8  ;;  %10698 = vst [vmem:[#allocation75_spill] sm:$0xff] %v6626_v31  ;;  %v83_v38 = vld [vmem:[%s10405_s0 + $0x190] sm:$0xff] }
  0x50   :  { %723 = vrot.lane.b32.xlu1 %v6565_v55, %s5929_s23  ;;  %v6604_v55 = vsel %vm168_vm0, 0.0, %v237_v54  ;;  %v595_v54 = vrot.slane %v6598_v15, 1  ;;  %10697 = vst [vmem:[#allocation74_spill] sm:$0xff] %v6621_v29 }
  0x51   :  { %10695 = vst [vmem:[#allocation72_spill] sm:$0xff] %v6604_v55  ;;  %v602_v18 = vrot.slane %v6604_v55, 1 }
  0x52   :  { %721 = vrot.lane.b32.xlu0 %v6589_v42, %s5929_s23  ;;  %v603_v42 = vrot.slane %v6601_v59, 1  ;;  %v6645_v15 = vsel %vm10588_vm1, %v593_v21, %v595_v54  ;;  %v6657_v59 = vsel %vm168_vm0, %v243_v46, %v244_v4  ;;  %v246_v21 = vrot.slane %v83_v38, 7 }
  0x53   :  { %10701 = vst [vmem:[#allocation78_spill] sm:$0xff] %v6645_v15  ;;  %10704 = vst [vmem:[#allocation81_spill] sm:$0xff] %v6657_v59  ;;  %v247_v54 = vrot.slane %v84_v0, 7 }
  0x54   :  { %727 = vrot.lane.b32.xlu1 %v6593_v63, %s5929_s23  ;;  %v6632_v63 = vsel %vm168_vm0, 0.0, %v240_v11  ;;  %v600_v11 = vrot.slane %v6626_v31, 1  ;;  %v6649_v16 = vsel %vm10588_vm1, %v602_v18, %v603_v42  ;;  %v85_v18 = vld [vmem:[%s10405_s0 + $0x1a0] sm:$0xff] }
  0x55   :  { %10700 = vst [vmem:[#allocation77_spill] sm:$0xff] %v6632_v63  ;;  %10702 = vst [vmem:[#allocation79_spill] sm:$0xff] %v6649_v16  ;;  %v607_v34 = vrot.slane %v6632_v63, 1  ;;  %v6682_v63 = vsel %vm168_vm0, %v241_v62, 0.0  ;;  %v6685_v55 = vsel %vm168_vm0, %v246_v21, %v247_v54 }
  0x56   :  { %725 = vrot.lane.b32.xlu0 %v6617_v44, %s5929_s23  ;;  %v608_v44 = vrot.slane %v6629_v25, 1  ;;  %v6673_v25 = vsel %vm10588_vm1, %v598_v8, %v600_v11  ;;  %10708 = vst [vmem:[#allocation85_spill] sm:$0xff] %v6682_v63  ;;  %10709 = vst [vmem:[#allocation86_spill] sm:$0xff] %v6685_v55  ;;  %v249_v8 = vrot.slane %v85_v18, 7  ;;  %v250_v11 = vrot.slane %v86_v56, 7 }
  0x57   :  { %10706 = vst [vmem:[#allocation83_spill] sm:$0xff] %v6673_v25  ;;  %v610_v62 = vrot.slane %v6682_v63, 1  ;;  %v6704_v18 = vsel %vm168_vm0, %v244_v4, 0.0 }
  0x58   :  { %731 = vrot.lane.b32.xlu1 %v6621_v29, %s5929_s23  ;;  %v6660_v29 = vsel %vm168_vm0, 0.0, %v243_v46  ;;  %v605_v46 = vrot.slane %v6654_v51, 1  ;;  %v6677_v38 = vsel %vm10588_vm1, %v607_v34, %v608_v44  ;;  %10713 = vst [vmem:[#allocation90_spill] sm:$0xff] %v6704_v18  ;;  %v6707_v56 = vsel %vm168_vm0, %v249_v8, %v250_v11 }
  0x59   :  { %10705 = vst [vmem:[#allocation82_spill] sm:$0xff] %v6660_v29  ;;  %10707 = vst [vmem:[#allocation84_spill] sm:$0xff] %v6677_v38  ;;  %v612_v0 = vrot.slane %v6660_v29, 1 }
  0x5a   :  { %729 = vrot.lane.b32.xlu0 %v6645_v15, %s5929_s23  ;;  %v613_v15 = vrot.slane %v6657_v59, 1  ;;  %v6695_v34 = vsel %vm10588_vm1, %v603_v42, %v605_v46  ;;  %10714 = vst [vmem:[#allocation91_spill] sm:$0xff] %v6707_v56  ;;  %v6717_v42 = vsel %vm10588_vm1, %v608_v44, %v610_v62  ;;  %v615_v46 = vrot.slane %v6704_v18, 1 }
  0x5b   :  { %10711 = vst [vmem:[#allocation88_spill] sm:$0xff] %v6695_v34  ;;  %10716 = vst [vmem:[#allocation93_spill] sm:$0xff] %v6717_v42 }
  0x5c   :  { %735 = vrot.lane.b32.xlu1 %v6649_v16, %s5929_s23  ;;  %v6688_v16 = vsel %vm168_vm0, 0.0, %v246_v21  ;;  %v6699_v59 = vsel %vm10588_vm1, %v612_v0, %v613_v15  ;;  %v618_v21 = vrot.slane %v6685_v55, 1  ;;  %v623_v55 = vrot.slane %v6707_v56, 1  ;;  %v100_v56 = vld [vmem:[%s10406_s1 + $0x18] sm:$0xff] }
  0x5d   :  { %10710 = vst [vmem:[#allocation87_spill] sm:$0xff] %v6688_v16  ;;  %10712 = vst [vmem:[#allocation89_spill] sm:$0xff] %v6699_v59  ;;  %v617_v29 = vrot.slane %v6688_v16, 1  ;;  %v6733_v44 = vsel %vm10588_vm1, %v613_v15, %v615_v46  ;;  %v840_v46 = vrot.slane %v6013_v12, 2 }
  0x5e   :  { %733 = vrot.lane.b32.xlu0 %v6673_v25, %s5929_s23  ;;  %v6710_v25 = vsel %vm168_vm0, 0.0, %v249_v8  ;;  %v6726_v8 = vsel %vm168_vm0, %v247_v54, 0.0  ;;  %10719 = vst [vmem:[#allocation96_spill] sm:$0xff] %v6733_v44 }
  0x5f   :  { %10715 = vst [vmem:[#allocation92_spill] sm:$0xff] %v6710_v25  ;;  %v6721_v4 = vsel %vm10588_vm1, %v617_v29, %v618_v21  ;;  %v622_v0 = vrot.slane %v6710_v25, 1  ;;  %10718 = vst [vmem:[#allocation95_spill] sm:$0xff] %v6726_v8  ;;  %v620_v62 = vrot.slane %v6726_v8, 1  ;;  %v6740_v25 = vsel %vm168_vm0, %v250_v11, 0.0 }
  0x60   :  { %739 = vrot.lane.b32.xlu1 %v6677_v38, %s5929_s23  ;;  %10717 = vst [vmem:[#allocation94_spill] sm:$0xff] %v6721_v4  ;;  %10721 = vst [vmem:[#allocation98_spill] sm:$0xff] %v6740_v25  ;;  %v625_v15 = vrot.slane %v6740_v25, 1  ;;  %v844_v8 = vrot.slane %v6038_v23, 2 }
  0x61   :  { %v6737_v29 = vsel %vm10588_vm1, %v622_v0, %v623_v55  ;;  %v6747_v54 = vsel %vm10588_vm1, %v618_v21, %v620_v62  ;;  %v839_v21 = vrot.slane %v6057_v30, 2  ;;  %v842_v62 = vrot.slane %v6016_v13, 2  ;;  %v97_v13 = vld [vmem:[%s10406_s1] sm:$0xff] }
  0x62   :  { %737 = vrot.lane.b32.xlu0 %v6695_v34, %s5929_s23  ;;  %10720 = vst [vmem:[#allocation97_spill] sm:$0xff] %v6737_v29  ;;  %10722 = vst [vmem:[#allocation99_spill] sm:$0xff] %v6747_v54  ;;  %v6755_v11 = vsel %vm10588_vm1, %v623_v55, %v625_v15 }
  0x63   :  { %10723 = vst [vmem:[#allocation100_spill] sm:$0xff] %v6755_v11  ;;  %v841_v55 = vsel %vm10589_vm2, %v839_v21, %v840_v46 }
  0x64   :  { %743 = vrot.lane.b32.xlu1 %v6699_v59, %s5929_s23 }
  0x66   :  { %741 = vrot.lane.b32.xlu0 %v6717_v42, %s5929_s23 }
  0x68   :  { %747 = vrot.lane.b32.xlu1 %v6721_v4, %s5929_s23 }
  0x6a   :  { %745 = vrot.lane.b32.xlu0 %v6733_v44, %s5929_s23 }
  0x6c   :  { %751 = vrot.lane.b32.xlu1 %v6737_v29, %s5929_s23 }
  0x6e   :  { %749 = vrot.lane.b32.xlu0 %v6747_v54, %s5929_s23  ;;  %v845_v54 = vrot.slane %v6035_v22, 2 }
  0x70   :  { %5882 = vrot.lane.b32.xlu1 %v6534_v36, %s5930_s13  ;;  %v850_v36 = vrot.slane %v6078_v39, 2 }
  0x72   :  { %753 = vrot.lane.b32.xlu0 %v6755_v11, %s5929_s23  ;;  %v98_v11 = vld [vmem:[%s10406_s1 + $0x8] sm:$0xff] }
  0x74   :  { %1179 = vrot.lane.b32.xlu1 %v6013_v12, %s5931_s14 }
  0x76   :  { %1177 = vrot.lane.b32.xlu0 %v6057_v30, %s5931_s14 }
  0x78   :  { %1383 = vrot.lane.b32.xlu1 %v6041_v24, %s5932_s15  ;;  %v843_v24 = vsel %vm10589_vm2, %v840_v46, %v842_v62  ;;  %v99_v62 = vld [vmem:[%s10406_s1 + $0x10] sm:$0xff] }
  0x7a   :  { %v6768_v0 = vpop.permute.xlu1 %653  ;;  %1381 = vrot.lane.b32.xlu0 %v6087_v43, %s5932_s15 }
  0x7c   :  { %993 = vrot.lane.b32.xlu1 %v841_v55, %s5930_s13  ;;  %v6774_v15 = vpop.permute.xlu0 %5877 }
  0x7e   :  { %v6776_v25 = vpop.permute.xlu1 %655  ;;  %1583 = vrot.lane.b32.xlu0 %v841_v55, %s5933_s16  ;;  %v5821_v55 = vpack.c.bf16 %v98_v11, %v97_v13  ;;  %v5825_v11 = vpack.c.bf16 %v100_v56, %v99_v62  ;;  %v101_v56 = vld [vmem:[%s10406_s1 + $0x20] sm:$0xf]  ;;  %s5936_s1 = smov 32  }
  0x80   :  { %1775 = vrot.lane.b32.xlu1 %v6038_v23, %s5934_s17  ;;  %v6782_v21 = vpop.permute.xlu0 %651  ;;  %5822 = vmatprep.subr.bf16.mxu0 %v5821_v55 }
  0x81   :  { %5854 = vmatprep.subr.bf16.mxu1 %v5821_v55  ;;  %5824 = vmatpush3.bf16.msra.mxu0 %v5821_v55 }
  0x82   :  { %v6784_v43 = vpop.permute.xlu1 %659  ;;  %1585 = vrot.lane.b32.xlu0 %v843_v24, %s5933_s16  ;;  %5857 = vmatpush3.bf16.msra.mxu1 %v5821_v55  ;;  %v846_v55 = vsel %vm10589_vm2, %v844_v8, %v845_v54  ;;  %v847_v8 = vrot.slane %v6082_v41, 2 }
  0x83   :  { %5826 = vmatprep.subr.bf16.mxu0 %v5825_v11  ;;  %5855 = vmatprep.subr.bf16.mxu1 %v5825_v11 }
  0x84   :  { %1181 = vrot.lane.b32.xlu1 %v6038_v23, %s5931_s14  ;;  %v6795_v29 = vpop.permute.xlu0 %657  ;;  %v848_v18 = vsel %vm10589_vm2, %v845_v54, %v847_v8  ;;  %v849_v8 = vrot.slane %v6060_v32, 2 }
  0x85   :  { %5828 = vmatpush3.bf16.msra.mxu0 %v5825_v11 }
  0x86   :  { %v6797_v46 = vpop.permute.xlu1 %663  ;;  %995 = vrot.lane.b32.xlu0 %v843_v24, %s5930_s13  ;;  %5858 = vmatpush3.bf16.msra.mxu1 %v5825_v11 }
  0x87   :  { %5663 = vmatprep.subr.msk.mxu0 %vm10591_vm3, %v101_v56  ;;  %5856 = vmatprep.subr.msk.mxu1 %vm10591_vm3, %v101_v56 }
  0x88   :  { %1961 = vrot.lane.b32.xlu1 %v6068_v35, %s5935_s27  ;;  %v6808_v13 = vpop.permute.xlu0 %661 }
  0x89   :  { %5664 = vmatpush3.msk.msra.mxu0 %vm10591_vm3, %v101_v56 }
  0x8a   :  { %v6812_v4 = vpop.permute.xlu1 %667  ;;  %1777 = vrot.lane.b32.xlu0 %v6035_v22, %s5934_s17  ;;  %5859 = vmatpush3.msk.msra.mxu1 %vm10591_vm3, %v101_v56 }
  0x8c   :  { %1385 = vrot.lane.b32.xlu1 %v6068_v35, %s5932_s15  ;;  %v6822_v24 = vpop.permute.xlu0 %665 }
  0x8e   :  { %v6826_v62 = vpop.permute.xlu1 %671  ;;  %1183 = vrot.lane.b32.xlu0 %v6035_v22, %s5931_s14 }
  0x90   :  { %2147 = vrot.lane.b32.xlu1 %v846_v55, %s5936_s1  ;;  %v6833_v35 = vpop.permute.xlu0 %669 }
  0x92   :  { %v6835_v11 = vpop.permute.xlu1 %675  ;;  %1963 = vrot.lane.b32.xlu0 %v6125_v60, %s5935_s27 }
  0x94   :  { %1587 = vrot.lane.b32.xlu1 %v846_v55, %s5933_s16  ;;  %v6841_v16 = vpop.permute.xlu0 %673 }
  0x96   :  { %v6843_v56 = vpop.permute.xlu1 %679  ;;  %1387 = vrot.lane.b32.xlu0 %v6125_v60, %s5932_s15 }
  0x98   :  { %997 = vrot.lane.b32.xlu1 %v846_v55, %s5930_s13  ;;  %v6849_v44 = vpop.permute.xlu0 %677 }
  0x9a   :  { %v6851_v59 = vpop.permute.xlu1 %683  ;;  %2149 = vrot.lane.b32.xlu0 %v848_v18, %s5936_s1 }
  0x9c   :  { %1779 = vrot.lane.b32.xlu1 %v6060_v32, %s5934_s17  ;;  %v6856_v41 = vpop.permute.xlu0 %681 }
  0x9e   :  { %v6858_v63 = vpop.permute.xlu1 %687  ;;  %1589 = vrot.lane.b32.xlu0 %v848_v18, %s5933_s16 }
  0x9f   :  { %10724 = vst [vmem:[#allocation101_spill] sm:$0xff] %v6858_v63 }
  0xa0   :  { %1185 = vrot.lane.b32.xlu1 %v6060_v32, %s5931_s14  ;;  %v6863_v60 = vpop.permute.xlu0 %685 }
  0xa1   :  { %10725 = vst [vmem:[#allocation102_spill] sm:$0xff] %v6863_v60 }
  0xa2   :  { %v6865_v54 = vpop.permute.xlu1 %691  ;;  %999 = vrot.lane.b32.xlu0 %v848_v18, %s5930_s13  ;;  %v851_v18 = vsel %vm10589_vm2, %v849_v8, %v850_v36 }
  0xa3   :  { %10726 = vst [vmem:[#allocation103_spill] sm:$0xff] %v6865_v54 }
  0xa4   :  { %1965 = vrot.lane.b32.xlu1 %v6103_v52, %s5935_s27  ;;  %v6870_v55 = vpop.permute.xlu0 %689 }
  0xa5   :  { %10727 = vst [vmem:[#allocation104_spill] sm:$0xff] %v6870_v55 }
  0xa6   :  { %v6874_v42 = vpop.permute.xlu1 %695  ;;  %1781 = vrot.lane.b32.xlu0 %v6078_v39, %s5934_s17 }
  0xa7   :  { %10728 = vst [vmem:[#allocation105_spill] sm:$0xff] %v6874_v42 }
  0xa8   :  { %1389 = vrot.lane.b32.xlu1 %v6103_v52, %s5932_s15  ;;  %v6880_v38 = vpop.permute.xlu0 %693  ;;  %v852_v52 = vrot.slane %v6097_v48, 2 }
  0xa9   :  { %10729 = vst [vmem:[#allocation106_spill] sm:$0xff] %v6880_v38 }
  0xaa   :  { %v6883_v54 = vpop.permute.xlu1 %699  ;;  %1187 = vrot.lane.b32.xlu0 %v6078_v39, %s5931_s14 }
  0xab   :  { %10730 = vst [vmem:[#allocation107_spill] sm:$0xff] %v6883_v54  ;;  %v853_v54 = vsel %vm10589_vm2, %v850_v36, %v852_v52  ;;  %v854_v52 = vrot.slane %v6094_v47, 2 }
  0xac   :  { %2151 = vrot.lane.b32.xlu1 %v851_v18, %s5936_s1  ;;  %v6888_v51 = vpop.permute.xlu0 %697 }
  0xad   :  { %10731 = vst [vmem:[#allocation108_spill] sm:$0xff] %v6888_v51 }
  0xae   :  { %v6890_v42 = vpop.permute.xlu1 %703  ;;  %1967 = vrot.lane.b32.xlu0 %v6159_v19, %s5935_s27 }
  0xaf   :  { %10732 = vst [vmem:[#allocation109_spill] sm:$0xff] %v6890_v42 }
  0xb0   :  { %1591 = vrot.lane.b32.xlu1 %v851_v18, %s5933_s16  ;;  %v6896_v38 = vpop.permute.xlu0 %701 }
  0xb1   :  { %10733 = vst [vmem:[#allocation110_spill] sm:$0xff] %v6896_v38 }
  0xb2   :  { %v6898_v8 = vpop.permute.xlu1 %707  ;;  %1391 = vrot.lane.b32.xlu0 %v6159_v19, %s5932_s15 }
  0xb3   :  { %10734 = vst [vmem:[#allocation111_spill] sm:$0xff] %v6898_v8 }
  0xb4   :  { %1001 = vrot.lane.b32.xlu1 %v851_v18, %s5930_s13  ;;  %v6904_v51 = vpop.permute.xlu0 %705 }
  0xb5   :  { %10735 = vst [vmem:[#allocation112_spill] sm:$0xff] %v6904_v51  ;;  %v865_v51 = vrot.slane %v6145_v9, 2 }
  0xb6   :  { %v6906_v42 = vpop.permute.xlu1 %711  ;;  %2153 = vrot.lane.b32.xlu0 %v853_v54, %s5936_s1 }
  0xb7   :  { %10736 = vst [vmem:[#allocation113_spill] sm:$0xff] %v6906_v42 }
  0xb8   :  { %1783 = vrot.lane.b32.xlu1 %v6094_v47, %s5934_s17  ;;  %v6911_v48 = vpop.permute.xlu0 %709 }
  0xb9   :  { %10737 = vst [vmem:[#allocation114_spill] sm:$0xff] %v6911_v48 }
  0xba   :  { %v6913_v38 = vpop.permute.xlu1 %715  ;;  %1593 = vrot.lane.b32.xlu0 %v853_v54, %s5933_s16 }
  0xbb   :  { %10738 = vst [vmem:[#allocation115_spill] sm:$0xff] %v6913_v38  ;;  %v855_v38 = vrot.slane %v6106_v53, 2 }
  0xbc   :  { %1189 = vrot.lane.b32.xlu1 %v6094_v47, %s5931_s14  ;;  %v6918_v19 = vpop.permute.xlu0 %713 }
  0xbd   :  { %10739 = vst [vmem:[#allocation116_spill] sm:$0xff] %v6918_v19 }
  0xbe   :  { %v6920_v36 = vpop.permute.xlu1 %719  ;;  %1003 = vrot.lane.b32.xlu0 %v853_v54, %s5930_s13  ;;  %v856_v54 = vsel %vm10589_vm2, %v854_v52, %v855_v38 }
  0xbf   :  { %10740 = vst [vmem:[#allocation117_spill] sm:$0xff] %v6920_v36 }
  0xc0   :  { %1969 = vrot.lane.b32.xlu1 %v6139_v6, %s5935_s27  ;;  %v6925_v18 = vpop.permute.xlu0 %717 }
  0xc1   :  { %10741 = vst [vmem:[#allocation118_spill] sm:$0xff] %v6925_v18 }
  0xc2   :  { %v6929_v42 = vpop.permute.xlu1 %723  ;;  %1785 = vrot.lane.b32.xlu0 %v6106_v53, %s5934_s17 }
  0xc3   :  { %10742 = vst [vmem:[#allocation119_spill] sm:$0xff] %v6929_v42 }
  0xc4   :  { %1393 = vrot.lane.b32.xlu1 %v6139_v6, %s5932_s15  ;;  %v6935_v36 = vpop.permute.xlu0 %721  ;;  %v857_v6 = vrot.slane %v6133_v1, 2 }
  0xc5   :  { %10743 = vst [vmem:[#allocation120_spill] sm:$0xff] %v6935_v36 }
  0xc6   :  { %v6938_v19 = vpop.permute.xlu1 %727  ;;  %1191 = vrot.lane.b32.xlu0 %v6106_v53, %s5931_s14 }
  0xc7   :  { %10744 = vst [vmem:[#allocation121_spill] sm:$0xff] %v6938_v19  ;;  %v858_v19 = vsel %vm10589_vm2, %v855_v38, %v857_v6  ;;  %v859_v6 = vrot.slane %v6117_v58, 2 }
  0xc8   :  { %2155 = vrot.lane.b32.xlu1 %v856_v54, %s5936_s1  ;;  %v6943_v18 = vpop.permute.xlu0 %725 }
  0xc9   :  { %10745 = vst [vmem:[#allocation122_spill] sm:$0xff] %v6943_v18 }
  0xca   :  { %v6945_v42 = vpop.permute.xlu1 %731  ;;  %1971 = vrot.lane.b32.xlu0 %v6181_v37, %s5935_s27 }
  0xcb   :  { %10746 = vst [vmem:[#allocation123_spill] sm:$0xff] %v6945_v42  ;;  %v864_v42 = vrot.slane %v6142_v7, 2 }
  0xcc   :  { %1595 = vrot.lane.b32.xlu1 %v856_v54, %s5933_s16  ;;  %v6951_v36 = vpop.permute.xlu0 %729 }
  0xcd   :  { %10747 = vst [vmem:[#allocation124_spill] sm:$0xff] %v6951_v36 }
  0xce   :  { %v6953_v52 = vpop.permute.xlu1 %735  ;;  %1395 = vrot.lane.b32.xlu0 %v6181_v37, %s5932_s15 }
  0xcf   :  { %10748 = vst [vmem:[#allocation125_spill] sm:$0xff] %v6953_v52 }
  0xd0   :  { %1005 = vrot.lane.b32.xlu1 %v856_v54, %s5930_s13  ;;  %v6959_v18 = vpop.permute.xlu0 %733 }
  0xd1   :  { %10749 = vst [vmem:[#allocation126_spill] sm:$0xff] %v6959_v18 }
  0xd2   :  { %v6961_v48 = vpop.permute.xlu1 %739  ;;  %2157 = vrot.lane.b32.xlu0 %v858_v19, %s5936_s1 }
  0xd3   :  { %10750 = vst [vmem:[#allocation127_spill] sm:$0xff] %v6961_v48 }
  0xd4   :  { %1787 = vrot.lane.b32.xlu1 %v6117_v58, %s5934_s17  ;;  %v6966_v1 = vpop.permute.xlu0 %737 }
  0xd5   :  { %10751 = vst [vmem:[#allocation128_spill] sm:$0xff] %v6966_v1 }
  0xd6   :  { %v6968_v36 = vpop.permute.xlu1 %743  ;;  %1597 = vrot.lane.b32.xlu0 %v858_v19, %s5933_s16 }
  0xd7   :  { %10752 = vst [vmem:[#allocation129_spill] sm:$0xff] %v6968_v36  ;;  %v860_v36 = vrot.slane %v6114_v57, 2 }
  0xd8   :  { %1193 = vrot.lane.b32.xlu1 %v6117_v58, %s5931_s14  ;;  %v6973_v37 = vpop.permute.xlu0 %741 }
  0xd9   :  { %10753 = vst [vmem:[#allocation130_spill] sm:$0xff] %v6973_v37 }
  0xda   :  { %v6975_v38 = vpop.permute.xlu1 %747  ;;  %1007 = vrot.lane.b32.xlu0 %v858_v19, %s5930_s13  ;;  %v861_v19 = vsel %vm10589_vm2, %v859_v6, %v860_v36 }
  0xdb   :  { %10754 = vst [vmem:[#allocation131_spill] sm:$0xff] %v6975_v38 }
  0xdc   :  { %1973 = vrot.lane.b32.xlu1 %v6162_v20, %s5935_s27  ;;  %v6980_v54 = vpop.permute.xlu0 %745 }
  0xdd   :  { %10755 = vst [vmem:[#allocation132_spill] sm:$0xff] %v6980_v54 }
  0xde   :  { %v6984_v48 = vpop.permute.xlu1 %751  ;;  %1789 = vrot.lane.b32.xlu0 %v6114_v57, %s5934_s17 }
  0xdf   :  { %10756 = vst [vmem:[#allocation133_spill] sm:$0xff] %v6984_v48 }
  0xe0   :  { %1397 = vrot.lane.b32.xlu1 %v6162_v20, %s5932_s15  ;;  %v6990_v38 = vpop.permute.xlu0 %749  ;;  %v862_v20 = vrot.slane %v6167_v27, 2 }
  0xe1   :  { %10757 = vst [vmem:[#allocation134_spill] sm:$0xff] %v6990_v38 }
  0xe2   :  { %v6993_v37 = vpop.permute.xlu1 %5882  ;;  %1195 = vrot.lane.b32.xlu0 %v6114_v57, %s5931_s14  ;;  %v863_v1 = vsel %vm10589_vm2, %v860_v36, %v862_v20 }
  0xe3   :  { %v5884_v36 = vunpack.i.l.bf16 %v6993_v37 }
  0xe4   :  { %2159 = vrot.lane.b32.xlu1 %v861_v19, %s5936_s1  ;;  %v6998_v54 = vpop.permute.xlu0 %753 }
  0xe5   :  { %10758 = vst [vmem:[#allocation135_spill] sm:$0xff] %v6998_v54 }
  0xe6   :  { %v7000_v48 = vpop.permute.xlu1 %1179  ;;  %1975 = vrot.lane.b32.xlu0 %v6215_v61, %s5935_s27 }
  0xe8   :  { %1599 = vrot.lane.b32.xlu1 %v861_v19, %s5933_s16  ;;  %v1178_v38 = vpop.permute.xlu0 %1177 }
  0xea   :  { %v7006_v6 = vpop.permute.xlu1 %1383  ;;  %1399 = vrot.lane.b32.xlu0 %v6215_v61, %s5932_s15 }
  0xec   :  { %1009 = vrot.lane.b32.xlu1 %v861_v19, %s5930_s13  ;;  %v1382_v54 = vpop.permute.xlu0 %1381  ;;  %v5879_v19 = vunpack.i.l.bf16 %v6774_v15 }
  0xee   :  { %v7012_v52 = vpop.permute.xlu1 %993  ;;  %2161 = vrot.lane.b32.xlu0 %v863_v1, %s5936_s1  ;;  %v2334_v34 = vsel %vm2333_vm4, %v6020_v14, %v5879_v19  ;;  %v866_v19 = vsel %vm10589_vm2, %v864_v42, %v865_v51  ;;  %v5885_v42 = vunpack.i.h.bf16 %v6993_v37 }
  0xef   :  { %v7034_v63 = vsel %vm2396_vm5, %v2334_v34, %v5884_v36 }
  0xf0   :  { %1791 = vrot.lane.b32.xlu1 %v6142_v7, %s5934_s17  ;;  %v1584_v18 = vpop.permute.xlu0 %1583 }
  0xf2   :  { %v1776_v27 = vpop.permute.xlu1 %1775  ;;  %1601 = vrot.lane.b32.xlu0 %v863_v1, %s5933_s16 }
  0xf4   :  { %1197 = vrot.lane.b32.xlu1 %v6142_v7, %s5931_s14  ;;  %v1586_v61 = vpop.permute.xlu0 %1585 }
  0xf6   :  { %v7021_v8 = vpop.permute.xlu1 %1181  ;;  %1011 = vrot.lane.b32.xlu0 %v863_v1, %s5930_s13  ;;  %v2460_v1 = vsel %vm2459_vm6, %v7034_v63, %v1178_v38  ;;  %v5880_v38 = vunpack.i.h.bf16 %v6774_v15  ;;  %v867_v15 = vrot.slane %v6194_v45, 2 }
  0xf7   :  { %v2525_v60 = vsel %vm2524_vm8, %v2460_v1, %v1382_v54 }
  0xf8   :  { %1977 = vrot.lane.b32.xlu1 %v6189_v40, %s5935_s27  ;;  %v7027_v20 = vpop.permute.xlu0 %995  ;;  %v2590_v14 = vsel %vm2589_vm7, %v2525_v60, %v1584_v18  ;;  %v868_v1 = vsel %vm10589_vm2, %v865_v51, %v867_v15  ;;  %v870_v15 = vrot.slane %v6173_v33, 2 }
  0xfa   :  { %v1962_v55 = vpop.permute.xlu1 %1961  ;;  %1793 = vrot.lane.b32.xlu0 %v6145_v9, %s5934_s17 }
  0xfc   :  { %1401 = vrot.lane.b32.xlu1 %v6189_v40, %s5932_s15  ;;  %v1778_v31 = vpop.permute.xlu0 %1777  ;;  %v2655_v40 = vsel %vm2654_vm9, %v2590_v14, %v1776_v27  ;;  %v2335_v14 = vsel %vm2333_vm4, %v6001_v5, %v5880_v38 }
  0xfd   :  { %v2720_v60 = vsel %vm2719_vm10, %v2655_v40, %v1962_v55  ;;  %v7063_v37 = vsel %vm2396_vm5, %v2335_v14, %v5885_v42 }
  0xfe   :  { %v1386_v34 = vpop.permute.xlu1 %1385  ;;  %1199 = vrot.lane.b32.xlu0 %v6145_v9, %s5931_s14  ;;  %v2461_v40 = vsel %vm2459_vm6, %v7063_v37, %v7000_v48 }
  0xff   :  { %v2526_v38 = vsel %vm2524_vm8, %v2461_v40, %v7006_v6 }
 0x100   :  { %2163 = vrot.lane.b32.xlu1 %v866_v19, %s5936_s1  ;;  %v7050_v36 = vpop.permute.xlu0 %1183  ;;  %v2591_v42 = vsel %vm2589_vm7, %v2526_v38, %v1586_v61 }
 0x102   :  { %v2148_v18 = vpop.permute.xlu1 %2147  ;;  %1979 = vrot.lane.b32.xlu0 %v6237_v17, %s5935_s27 }
 0x103   :  { %v2785_v54 = vsel %vm2784_vm11, %v2720_v60, %v2148_v18 }
 0x104   :  { %1603 = vrot.lane.b32.xlu1 %v866_v19, %s5933_s16  ;;  %5665 = vmatprep.mubr.msk.f32.mxu0 %vm2855_vm12, %v2785_v54  ;;  %v1964_v27 = vpop.permute.xlu0 %1963  ;;  %v869_v54 = vrot.slane %v6170_v28, 2 }
 0x106   :  { %v1588_v55 = vpop.permute.xlu1 %1587  ;;  %1403 = vrot.lane.b32.xlu0 %v6237_v17, %s5932_s15  ;;  %v2656_v17 = vsel %vm2654_vm9, %v2591_v42, %v1778_v31  ;;  %v871_v38 = vsel %vm10589_vm2, %v869_v54, %v870_v15 }
 0x107   :  { %v2721_v51 = vsel %vm2719_vm10, %v2656_v17, %v1964_v27  ;;  %v2336_v27 = vsel %vm2333_vm4, %v6057_v30, %v6782_v21 }
 0x108   :  { %1013 = vrot.lane.b32.xlu1 %v866_v19, %s5930_s13  ;;  %v1388_v45 = vpop.permute.xlu0 %1387 }
 0x10a   :  { %v7074_v60 = vpop.permute.xlu1 %997  ;;  %2165 = vrot.lane.b32.xlu0 %v868_v1, %s5936_s1 }
 0x10c   :  { %1795 = vrot.lane.b32.xlu1 %v6170_v28, %s5934_s17  ;;  %v2150_v19 = vpop.permute.xlu0 %2149 }
 0x10d   :  { %v2786_v48 = vsel %vm2784_vm11, %v2721_v51, %v2150_v19 }
 0x10e   :  { %v1780_v18 = vpop.permute.xlu1 %1779  ;;  %1605 = vrot.lane.b32.xlu0 %v868_v1, %s5933_s16  ;;  %5666 = vmatmul.mubr.msk.f32.vlgmr.msra.gmra.mrb[0].mxu0 %vm2855_vm12, %v2786_v48 }
 0x110   :  { %1201 = vrot.lane.b32.xlu1 %v6170_v28, %s5931_s14  ;;  %v1590_v6 = vpop.permute.xlu0 %1589 }
 0x112   :  { %v7087_v61 = vpop.permute.xlu1 %1185  ;;  %1015 = vrot.lane.b32.xlu0 %v868_v1, %s5930_s13  ;;  %v2399_v1 = vsel %vm2396_vm5, %v2336_v27, %v7012_v52 }
 0x113   :  { %v2462_v42 = vsel %vm2459_vm6, %v2399_v1, %v7021_v8  ;;  %v872_v8 = vrot.slane %v6220_v2, 2 }
 0x114   :  { %1981 = vrot.lane.b32.xlu1 %v6223_v3, %s5935_s27  ;;  %v7092_v31 = vpop.permute.xlu0 %999  ;;  %v2527_v51 = vsel %vm2524_vm8, %v2462_v42, %v1386_v34 }
 0x115   :  { %v2592_v30 = vsel %vm2589_vm7, %v2527_v51, %v1588_v55  ;;  %v874_v51 = vrot.slane %v6201_v50, 2 }
 0x116   :  { %v1966_v14 = vpop.permute.xlu1 %1965  ;;  %1797 = vrot.lane.b32.xlu0 %v6173_v33, %s5934_s17 }
 0x118   :  { %1405 = vrot.lane.b32.xlu1 %v6223_v3, %s5932_s15  ;;  %v1782_v40 = vpop.permute.xlu0 %1781  ;;  %v2657_v3 = vsel %vm2654_vm9, %v2592_v30, %v1780_v18  ;;  %v2337_v18 = vsel %vm2333_vm4, %v6013_v12, %v6768_v0  ;;  %v10760_v30 = vld [vmem:[#allocation8_spill] sm:$0xff] }
 0x119   :  { %v2722_v52 = vsel %vm2719_vm10, %v2657_v3, %v1966_v14  ;;  %v2400_v54 = vsel %vm2396_vm5, %v2337_v18, %v7027_v20  ;;  %v873_v14 = vsel %vm10589_vm2, %v870_v15, %v872_v8  ;;  %v875_v3 = vrot.slane %v10760_v30, 2 }
 0x11a   :  { %v1390_v17 = vpop.permute.xlu1 %1389  ;;  %1203 = vrot.lane.b32.xlu0 %v6173_v33, %s5931_s14  ;;  %v2463_v27 = vsel %vm2459_vm6, %v2400_v54, %v7050_v36 }
 0x11b   :  { %v2528_v1 = vsel %vm2524_vm8, %v2463_v27, %v1388_v45 }
 0x11c   :  { %2167 = vrot.lane.b32.xlu1 %v871_v38, %s5936_s1  ;;  %v7114_v21 = vpop.permute.xlu0 %1187  ;;  %v2593_v12 = vsel %vm2589_vm7, %v2528_v1, %v1590_v6 }
 0x11e   :  { %v2152_v19 = vpop.permute.xlu1 %2151  ;;  %1983 = vrot.lane.b32.xlu0 %v6271_v10, %s5935_s27 }
 0x11f   :  { %v2787_v48 = vsel %vm2784_vm11, %v2722_v52, %v2152_v19  ;;  %v2338_v19 = vsel %vm2333_vm4, %v6038_v23, %v6776_v25 }
 0x120   :  { %1607 = vrot.lane.b32.xlu1 %v871_v38, %s5933_s16  ;;  %5668 = vmatprep.mubr.msk.f32.mxu0 %vm2855_vm12, %v2787_v48  ;;  %v1968_v34 = vpop.permute.xlu0 %1967  ;;  %v2401_v48 = vsel %vm2396_vm5, %v2338_v19, %v7074_v60 }
 0x121   :  { %v2464_v18 = vsel %vm2459_vm6, %v2401_v48, %v7087_v61  ;;  %v10761_v61 = vld [vmem:[#allocation19_spill] sm:$0xff] }
 0x122   :  { %v1592_v55 = vpop.permute.xlu1 %1591  ;;  %1407 = vrot.lane.b32.xlu0 %v6271_v10, %s5932_s15  ;;  %v2658_v10 = vsel %vm2654_vm9, %v2593_v12, %v1782_v40  ;;  %v10759_v40 = vld [vmem:[#allocation11_spill] sm:$0xff] }
 0x123   :  { %v2723_v0 = vsel %vm2719_vm10, %v2658_v10, %v1968_v34  ;;  %v876_v34 = vsel %vm10589_vm2, %v874_v51, %v875_v3 }
 0x124   :  { %1017 = vrot.lane.b32.xlu1 %v871_v38, %s5930_s13  ;;  %v1392_v2 = vpop.permute.xlu0 %1391 }
 0x126   :  { %v7135_v42 = vpop.permute.xlu1 %1001  ;;  %2169 = vrot.lane.b32.xlu0 %v873_v14, %s5936_s1 }
 0x128   :  { %1799 = vrot.lane.b32.xlu1 %v6201_v50, %s5934_s17  ;;  %v2154_v20 = vpop.permute.xlu0 %2153 }
 0x129   :  { %v2788_v15 = vsel %vm2784_vm11, %v2723_v0, %v2154_v20  ;;  %v2339_v20 = vsel %vm2333_vm4, %v6035_v22, %v6795_v29 }
 0x12a   :  { %v1784_v36 = vpop.permute.xlu1 %1783  ;;  %1609 = vrot.lane.b32.xlu0 %v873_v14, %s5933_s16  ;;  %5669 = vmatmul.mubr.msk.f32.gmra.mrb[2].mxu0 %vm2855_vm12, %v2788_v15  ;;  %v2402_v15 = vsel %vm2396_vm5, %v2339_v20, %v7092_v31  ;;  %v10763_v31 = vld [vmem:[#allocation9_spill] sm:$0xff] }
 0x12c   :  { %1205 = vrot.lane.b32.xlu1 %v6201_v50, %s5931_s14  ;;  %v1594_v45 = vpop.permute.xlu0 %1593 }
 0x12e   :  { %v7148_v6 = vpop.permute.xlu1 %1189  ;;  %1019 = vrot.lane.b32.xlu0 %v873_v14, %s5930_s13  ;;  %v2529_v14 = vsel %vm2524_vm8, %v2464_v18, %v1390_v17  ;;  %v10762_v17 = vld [vmem:[#allocation12_spill] sm:$0xff] }
 0x12f   :  { %v2594_v23 = vsel %vm2589_vm7, %v2529_v14, %v1592_v55  ;;  %v877_v55 = vrot.slane %v10762_v17, 2  ;;  %v879_v14 = vrot.slane %v10763_v31, 2 }
 0x130   :  { %1985 = vrot.lane.b32.xlu1 %v10759_v40, %s5935_s27  ;;  %v7153_v38 = vpop.permute.xlu0 %1003  ;;  %v2659_v25 = vsel %vm2654_vm9, %v2594_v23, %v1784_v36  ;;  %v10765_v23 = vld [vmem:[#allocation10_spill] sm:$0xff] }
 0x131   :  { %v878_v36 = vsel %vm10589_vm2, %v875_v3, %v877_v55 }
 0x132   :  { %v1970_v52 = vpop.permute.xlu1 %1969  ;;  %1801 = vrot.lane.b32.xlu0 %v10760_v30, %s5934_s17 }
 0x133   :  { %v2724_v60 = vsel %vm2719_vm10, %v2659_v25, %v1970_v52  ;;  %v880_v25 = vrot.slane %v10765_v23, 2 }
 0x134   :  { %1409 = vrot.lane.b32.xlu1 %v10759_v40, %s5932_s15  ;;  %v1786_v8 = vpop.permute.xlu0 %1785  ;;  %v2465_v40 = vsel %vm2459_vm6, %v2402_v15, %v7114_v21 }
 0x135   :  { %v2530_v52 = vsel %vm2524_vm8, %v2465_v40, %v1392_v2  ;;  %v881_v17 = vsel %vm10589_vm2, %v879_v14, %v880_v25 }
 0x136   :  { %v1394_v54 = vpop.permute.xlu1 %1393  ;;  %1207 = vrot.lane.b32.xlu0 %v10760_v30, %s5931_s14  ;;  %v2595_v22 = vsel %vm2589_vm7, %v2530_v52, %v1594_v45 }
 0x137   :  { %v2660_v29 = vsel %vm2654_vm9, %v2595_v22, %v1786_v8  ;;  %v10764_v8 = vld [vmem:[#allocation16_spill] sm:$0xff] }
 0x138   :  { %2171 = vrot.lane.b32.xlu1 %v876_v34, %s5936_s1  ;;  %v7175_v27 = vpop.permute.xlu0 %1191 }
 0x13a   :  { %v2156_v1 = vpop.permute.xlu1 %2155  ;;  %1987 = vrot.lane.b32.xlu0 %v10761_v61, %s5935_s27 }
 0x13b   :  { %v2789_v12 = vsel %vm2784_vm11, %v2724_v60, %v2156_v1  ;;  %v2340_v1 = vsel %vm2333_vm4, %v6060_v32, %v6784_v43 }
 0x13c   :  { %1611 = vrot.lane.b32.xlu1 %v876_v34, %s5933_s16  ;;  %5671 = vmatprep.mubr.msk.f32.mxu0 %vm2855_vm12, %v2789_v12  ;;  %v1972_v10 = vpop.permute.xlu0 %1971  ;;  %v2403_v12 = vsel %vm2396_vm5, %v2340_v1, %v7135_v42 }
 0x13d   :  { %v2725_v48 = vsel %vm2719_vm10, %v2660_v29, %v1972_v10  ;;  %v2466_v55 = vsel %vm2459_vm6, %v2403_v12, %v7148_v6  ;;  %v10766_v6 = vld [vmem:[#allocation24_spill] sm:$0xff]  ;;  %v2341_v29 = vsel %vm2333_vm4, %v6078_v39, %v6808_v13 }
 0x13e   :  { %v1596_v0 = vpop.permute.xlu1 %1595  ;;  %1411 = vrot.lane.b32.xlu0 %v10761_v61, %s5932_s15  ;;  %v2531_v20 = vsel %vm2524_vm8, %v2466_v55, %v1394_v54  ;;  %v10767_v54 = vld [vmem:[#allocation15_spill] sm:$0xff]  ;;  %v10769_v12 = vld [vmem:[#allocation20_spill] sm:$0xff]  ;;  %v10770_v55 = vld [vmem:[#allocation13_spill] sm:$0xff] }
 0x13f   :  { %v2596_v32 = vsel %vm2589_vm7, %v2531_v20, %v1596_v0  ;;  %v882_v0 = vrot.slane %v10767_v54, 2  ;;  %v885_v20 = vrot.slane %v10770_v55, 2 }
 0x140   :  { %1021 = vrot.lane.b32.xlu1 %v876_v34, %s5930_s13  ;;  %v1396_v51 = vpop.permute.xlu0 %1395 }
 0x142   :  { %v7196_v19 = vpop.permute.xlu1 %1005  ;;  %2173 = vrot.lane.b32.xlu0 %v878_v36, %s5936_s1 }
 0x144   :  { %1803 = vrot.lane.b32.xlu1 %v10763_v31, %s5934_s17  ;;  %v2158_v3 = vpop.permute.xlu0 %2157 }
 0x145   :  { %v2790_v34 = vsel %vm2784_vm11, %v2725_v48, %v2158_v3  ;;  %v2404_v48 = vsel %vm2396_vm5, %v2341_v29, %v7153_v38  ;;  %v883_v3 = vsel %vm10589_vm2, %v880_v25, %v882_v0  ;;  %v10768_v38 = vld [vmem:[#allocation14_spill] sm:$0xff] }
 0x146   :  { %v1788_v21 = vpop.permute.xlu1 %1787  ;;  %1613 = vrot.lane.b32.xlu0 %v878_v36, %s5933_s16  ;;  %5672 = vmatmul.mubr.msk.f32.gmra.mrb[4].mxu0 %vm2855_vm12, %v2790_v34  ;;  %v2467_v34 = vsel %vm2459_vm6, %v2404_v48, %v7175_v27 }
 0x147   :  { %v2661_v43 = vsel %vm2654_vm9, %v2596_v32, %v1788_v21 }
 0x148   :  { %1209 = vrot.lane.b32.xlu1 %v10763_v31, %s5931_s14  ;;  %v1598_v2 = vpop.permute.xlu0 %1597 }
 0x14a   :  { %v7209_v45 = vpop.permute.xlu1 %1193  ;;  %1023 = vrot.lane.b32.xlu0 %v878_v36, %s5930_s13 }
 0x14c   :  { %1989 = vrot.lane.b32.xlu1 %v10764_v8, %s5935_s27  ;;  %v7214_v18 = vpop.permute.xlu0 %1007 }
 0x14e   :  { %v1974_v60 = vpop.permute.xlu1 %1973  ;;  %1805 = vrot.lane.b32.xlu0 %v10765_v23, %s5934_s17 }
 0x14f   :  { %v2726_v42 = vsel %vm2719_vm10, %v2661_v43, %v1974_v60  ;;  %v2342_v43 = vsel %vm2333_vm4, %v6094_v47, %v6797_v46 }
 0x150   :  { %1413 = vrot.lane.b32.xlu1 %v10764_v8, %s5932_s15  ;;  %v1790_v61 = vpop.permute.xlu0 %1789  ;;  %v2532_v8 = vsel %vm2524_vm8, %v2467_v34, %v1396_v51 }
 0x151   :  { %v2597_v39 = vsel %vm2589_vm7, %v2532_v8, %v1598_v2  ;;  %v2343_v8 = vsel %vm2333_vm4, %v6106_v53, %v6822_v24 }
 0x152   :  { %v1398_v10 = vpop.permute.xlu1 %1397  ;;  %1211 = vrot.lane.b32.xlu0 %v10765_v23, %s5931_s14  ;;  %v2662_v13 = vsel %vm2654_vm9, %v2597_v39, %v1790_v61  ;;  %v2406_v39 = vsel %vm2396_vm5, %v2343_v8, %v7214_v18  ;;  %v10773_v18 = vld [vmem:[#allocation17_spill] sm:$0xff] }
 0x154   :  { %2175 = vrot.lane.b32.xlu1 %v881_v17, %s5936_s1  ;;  %v7236_v15 = vpop.permute.xlu0 %1195 }
 0x156   :  { %v2160_v36 = vpop.permute.xlu1 %2159  ;;  %1991 = vrot.lane.b32.xlu0 %v10766_v6, %s5935_s27 }
 0x157   :  { %v2791_v40 = vsel %vm2784_vm11, %v2726_v42, %v2160_v36  ;;  %v2405_v42 = vsel %vm2396_vm5, %v2342_v43, %v7196_v19 }
 0x158   :  { %1615 = vrot.lane.b32.xlu1 %v881_v17, %s5933_s16  ;;  %5674 = vmatprep.mubr.msk.f32.mxu0 %vm2855_vm12, %v2791_v40  ;;  %v1976_v52 = vpop.permute.xlu0 %1975 }
 0x159   :  { %v2727_v60 = vsel %vm2719_vm10, %v2662_v13, %v1976_v52 }
 0x15a   :  { %v1600_v22 = vpop.permute.xlu1 %1599  ;;  %1415 = vrot.lane.b32.xlu0 %v10766_v6, %s5932_s15  ;;  %v2468_v6 = vsel %vm2459_vm6, %v2405_v42, %v7209_v45  ;;  %v10771_v45 = vld [vmem:[#allocation29_spill] sm:$0xff]  ;;  %v889_v42 = vrot.slane %v10773_v18, 2 }
 0x15b   :  { %v2533_v0 = vsel %vm2524_vm8, %v2468_v6, %v1398_v10  ;;  %v10772_v10 = vld [vmem:[#allocation21_spill] sm:$0xff] }
 0x15c   :  { %1025 = vrot.lane.b32.xlu1 %v881_v17, %s5930_s13  ;;  %v1400_v21 = vpop.permute.xlu0 %1399  ;;  %v884_v17 = vrot.slane %v10768_v38, 2  ;;  %v2598_v47 = vsel %vm2589_vm7, %v2533_v0, %v1600_v22  ;;  %v887_v22 = vrot.slane %v10772_v10, 2  ;;  %v2344_v0 = vsel %vm2333_vm4, %v6117_v58, %v6812_v4 }
 0x15e   :  { %v7257_v14 = vpop.permute.xlu1 %1009  ;;  %2177 = vrot.lane.b32.xlu0 %v883_v3, %s5936_s1  ;;  %v886_v40 = vsel %vm10589_vm2, %v884_v17, %v885_v20  ;;  %v888_v13 = vsel %vm10589_vm2, %v885_v20, %v887_v22 }
 0x160   :  { %1807 = vrot.lane.b32.xlu1 %v10768_v38, %s5934_s17  ;;  %v2162_v25 = vpop.permute.xlu0 %2161 }
 0x161   :  { %v2792_v1 = vsel %vm2784_vm11, %v2727_v60, %v2162_v25  ;;  %v2469_v60 = vsel %vm2459_vm6, %v2406_v39, %v7236_v15 }
 0x162   :  { %v1792_v27 = vpop.permute.xlu1 %1791  ;;  %1617 = vrot.lane.b32.xlu0 %v883_v3, %s5933_s16  ;;  %5675 = vmatmul.mubr.msk.f32.gmra.mrb[6].mxu0 %vm2855_vm12, %v2792_v1  ;;  %v2534_v1 = vsel %vm2524_vm8, %v2469_v60, %v1400_v21 }
 0x163   :  { %v2663_v46 = vsel %vm2654_vm9, %v2598_v47, %v1792_v27  ;;  %v2407_v47 = vsel %vm2396_vm5, %v2344_v0, %v7257_v14  ;;  %v10780_v0 = vld [vmem:[#allocation22_spill] sm:$0xff] }
 0x164   :  { %1213 = vrot.lane.b32.xlu1 %v10768_v38, %s5931_s14  ;;  %v1602_v51 = vpop.permute.xlu0 %1601 }
 0x165   :  { %v2599_v53 = vsel %vm2589_vm7, %v2534_v1, %v1602_v51 }
 0x166   :  { %v7270_v2 = vpop.permute.xlu1 %1197  ;;  %1027 = vrot.lane.b32.xlu0 %v883_v3, %s5930_s13 }
 0x168   :  { %1993 = vrot.lane.b32.xlu1 %v10769_v12, %s5935_s27  ;;  %v7275_v61 = vpop.permute.xlu0 %1011 }
 0x16a   :  { %v1978_v32 = vpop.permute.xlu1 %1977  ;;  %1809 = vrot.lane.b32.xlu0 %v10770_v55, %s5934_s17 }
 0x16b   :  { %v2728_v19 = vsel %vm2719_vm10, %v2663_v46, %v1978_v32  ;;  %v10774_v32 = vld [vmem:[#allocation26_spill] sm:$0xff] }
 0x16c   :  { %1417 = vrot.lane.b32.xlu1 %v10769_v12, %s5932_s15  ;;  %v1794_v36 = vpop.permute.xlu0 %1793 }
 0x16d   :  { %v2664_v24 = vsel %vm2654_vm9, %v2599_v53, %v1794_v36  ;;  %v10775_v36 = vld [vmem:[#allocation18_spill] sm:$0xff] }
 0x16e   :  { %v1402_v54 = vpop.permute.xlu1 %1401  ;;  %1215 = vrot.lane.b32.xlu0 %v10770_v55, %s5931_s14 }
 0x170   :  { %2179 = vrot.lane.b32.xlu1 %v886_v40, %s5936_s1  ;;  %v7297_v52 = vpop.permute.xlu0 %1199 }
 0x172   :  { %v2164_v29 = vpop.permute.xlu1 %2163  ;;  %1995 = vrot.lane.b32.xlu0 %v10771_v45, %s5935_s27 }
 0x173   :  { %v2793_v48 = vsel %vm2784_vm11, %v2728_v19, %v2164_v29  ;;  %v2470_v29 = vsel %vm2459_vm6, %v2407_v47, %v7270_v2  ;;  %v10776_v2 = vld [vmem:[#allocation34_spill] sm:$0xff]  ;;  %v895_v47 = vrot.slane %v10780_v0, 2 }
 0x174   :  { %1619 = vrot.lane.b32.xlu1 %v886_v40, %s5933_s16  ;;  %5677 = vmatprep.mubr.msk.f32.mxu0 %vm2855_vm12, %v2793_v48  ;;  %v1980_v3 = vpop.permute.xlu0 %1979 }
 0x175   :  { %v2729_v12 = vsel %vm2719_vm10, %v2664_v24, %v1980_v3 }
 0x176   :  { %v1604_v34 = vpop.permute.xlu1 %1603  ;;  %1419 = vrot.lane.b32.xlu0 %v10771_v45, %s5932_s15  ;;  %v2535_v45 = vsel %vm2524_vm8, %v2470_v29, %v1402_v54  ;;  %v10777_v54 = vld [vmem:[#allocation25_spill] sm:$0xff] }
 0x177   :  { %v2600_v58 = vsel %vm2589_vm7, %v2535_v45, %v1604_v34  ;;  %v892_v34 = vrot.slane %v10777_v54, 2 }
 0x178   :  { %1029 = vrot.lane.b32.xlu1 %v886_v40, %s5930_s13  ;;  %v1404_v25 = vpop.permute.xlu0 %1403  ;;  %v890_v40 = vrot.slane %v10775_v36, 2 }
 0x17a   :  { %v7318_v27 = vpop.permute.xlu1 %1013  ;;  %2181 = vrot.lane.b32.xlu0 %v888_v13, %s5936_s1  ;;  %v891_v19 = vsel %vm10589_vm2, %v889_v42, %v890_v40  ;;  %v893_v1 = vsel %vm10589_vm2, %v890_v40, %v892_v34  ;;  %v10779_v42 = vld [vmem:[#allocation30_spill] sm:$0xff] }
 0x17c   :  { %1811 = vrot.lane.b32.xlu1 %v10773_v18, %s5934_s17  ;;  %v2166_v17 = vpop.permute.xlu0 %2165 }
 0x17d   :  { %v2794_v20 = vsel %vm2784_vm11, %v2729_v12, %v2166_v17 }
 0x17e   :  { %v1796_v15 = vpop.permute.xlu1 %1795  ;;  %1621 = vrot.lane.b32.xlu0 %v888_v13, %s5933_s16  ;;  %5678 = vmatmul.mubr.msk.f32.gmra.mrb[8].mxu0 %vm2855_vm12, %v2794_v20 }
 0x17f   :  { %v2665_v4 = vsel %vm2654_vm9, %v2600_v58, %v1796_v15 }
 0x180   :  { %1217 = vrot.lane.b32.xlu1 %v10773_v18, %s5931_s14  ;;  %v1606_v21 = vpop.permute.xlu0 %1605 }
 0x182   :  { %v7331_v51 = vpop.permute.xlu1 %1201  ;;  %1031 = vrot.lane.b32.xlu0 %v888_v13, %s5930_s13  ;;  %v2345_v13 = vsel %vm2333_vm4, %v6114_v57, %v6833_v35 }
 0x183   :  { %v2408_v60 = vsel %vm2396_vm5, %v2345_v13, %v7275_v61  ;;  %v10778_v61 = vld [vmem:[#allocation23_spill] sm:$0xff]  ;;  %v2347_v13 = vsel %vm2333_vm4, %v6145_v9, %v6841_v16 }
 0x184   :  { %1997 = vrot.lane.b32.xlu1 %v10774_v32, %s5935_s27  ;;  %v7336_v43 = vpop.permute.xlu0 %1015  ;;  %v2471_v53 = vsel %vm2459_vm6, %v2408_v60, %v7297_v52 }
 0x185   :  { %v2536_v12 = vsel %vm2524_vm8, %v2471_v53, %v1404_v25  ;;  %v2410_v60 = vsel %vm2396_vm5, %v2347_v13, %v7336_v43  ;;  %v10783_v43 = vld [vmem:[#allocation27_spill] sm:$0xff] }
 0x186   :  { %v1982_v6 = vpop.permute.xlu1 %1981  ;;  %1813 = vrot.lane.b32.xlu0 %v10775_v36, %s5934_s17  ;;  %v2601_v57 = vsel %vm2589_vm7, %v2536_v12, %v1606_v21 }
 0x187   :  { %v2730_v14 = vsel %vm2719_vm10, %v2665_v4, %v1982_v6  ;;  %v894_v6 = vrot.slane %v10778_v61, 2 }
 0x188   :  { %1421 = vrot.lane.b32.xlu1 %v10774_v32, %s5932_s15  ;;  %v1798_v46 = vpop.permute.xlu0 %1797 }
 0x189   :  { %v2666_v35 = vsel %vm2654_vm9, %v2601_v57, %v1798_v46  ;;  %v896_v58 = vsel %vm10589_vm2, %v894_v6, %v895_v47  ;;  %v899_v6 = vrot.slane %v10783_v43, 2 }
 0x18a   :  { %v1406_v48 = vpop.permute.xlu1 %1405  ;;  %1219 = vrot.lane.b32.xlu0 %v10775_v36, %s5931_s14 }
 0x18c   :  { %2183 = vrot.lane.b32.xlu1 %v891_v19, %s5936_s1  ;;  %v7358_v10 = vpop.permute.xlu0 %1203 }
 0x18d   :  { %v2473_v53 = vsel %vm2459_vm6, %v2410_v60, %v7358_v10 }
 0x18e   :  { %v2168_v22 = vpop.permute.xlu1 %2167  ;;  %1999 = vrot.lane.b32.xlu0 %v10776_v2, %s5935_s27 }
 0x18f   :  { %v2795_v3 = vsel %vm2784_vm11, %v2730_v14, %v2168_v22 }
 0x190   :  { %1623 = vrot.lane.b32.xlu1 %v891_v19, %s5933_s16  ;;  %5680 = vmatprep.mubr.msk.f32.mxu0 %vm2855_vm12, %v2795_v3  ;;  %v1984_v8 = vpop.permute.xlu0 %1983 }
 0x191   :  { %v2731_v20 = vsel %vm2719_vm10, %v2666_v35, %v1984_v8 }
 0x192   :  { %v1608_v39 = vpop.permute.xlu1 %1607  ;;  %1423 = vrot.lane.b32.xlu0 %v10776_v2, %s5932_s15 }
 0x194   :  { %1033 = vrot.lane.b32.xlu1 %v891_v19, %s5930_s13  ;;  %v1408_v24 = vpop.permute.xlu0 %1407  ;;  %v2346_v19 = vsel %vm2333_vm4, %v6142_v7, %v6826_v62 }
 0x195   :  { %v2409_v29 = vsel %vm2396_vm5, %v2346_v19, %v7318_v27  ;;  %v2538_v57 = vsel %vm2524_vm8, %v2473_v53, %v1408_v24 }
 0x196   :  { %v7379_v17 = vpop.permute.xlu1 %1017  ;;  %2185 = vrot.lane.b32.xlu0 %v893_v1, %s5936_s1  ;;  %v2472_v4 = vsel %vm2459_vm6, %v2409_v29, %v7331_v51  ;;  %v10781_v51 = vld [vmem:[#allocation39_spill] sm:$0xff]  ;;  %v2348_v29 = vsel %vm2333_vm4, %v6170_v28, %v6835_v11 }
 0x197   :  { %v2537_v22 = vsel %vm2524_vm8, %v2472_v4, %v1406_v48  ;;  %v10782_v48 = vld [vmem:[#allocation31_spill] sm:$0xff] }
 0x198   :  { %1815 = vrot.lane.b32.xlu1 %v10778_v61, %s5934_s17  ;;  %v2170_v15 = vpop.permute.xlu0 %2169  ;;  %v2602_v7 = vsel %vm2589_vm7, %v2537_v22, %v1608_v39  ;;  %v897_v34 = vrot.slane %v10782_v48, 2 }
 0x199   :  { %v2796_v32 = vsel %vm2784_vm11, %v2731_v20, %v2170_v15 }
 0x19a   :  { %v1800_v52 = vpop.permute.xlu1 %1799  ;;  %1625 = vrot.lane.b32.xlu0 %v893_v1, %s5933_s16  ;;  %5681 = vmatmul.mubr.msk.f32.gmra.mrb[10].mxu0 %vm2855_vm12, %v2796_v32 }
 0x19b   :  { %v2667_v62 = vsel %vm2654_vm9, %v2602_v7, %v1800_v52 }
 0x19c   :  { %1221 = vrot.lane.b32.xlu1 %v10778_v61, %s5931_s14  ;;  %v1610_v25 = vpop.permute.xlu0 %1609 }
 0x19d   :  { %v2603_v9 = vsel %vm2589_vm7, %v2538_v57, %v1610_v25  ;;  %v10784_v25 = vld [vmem:[#allocation35_spill] sm:$0xff] }
 0x19e   :  { %v7392_v21 = vpop.permute.xlu1 %1205  ;;  %1035 = vrot.lane.b32.xlu0 %v893_v1, %s5930_s13  ;;  %v898_v1 = vsel %vm10589_vm2, %v895_v47, %v897_v34  ;;  %v10785_v47 = vld [vmem:[#allocation28_spill] sm:$0xff] }
 0x1a0   :  { %2001 = vrot.lane.b32.xlu1 %v10779_v42, %s5935_s27  ;;  %v7397_v40 = vpop.permute.xlu0 %1019 }
 0x1a2   :  { %v1986_v46 = vpop.permute.xlu1 %1985  ;;  %1817 = vrot.lane.b32.xlu0 %v10780_v0, %s5934_s17 }
 0x1a3   :  { %v2732_v27 = vsel %vm2719_vm10, %v2667_v62, %v1986_v46  ;;  %v900_v46 = vrot.slane %v10785_v47, 2 }
 0x1a4   :  { %1425 = vrot.lane.b32.xlu1 %v10779_v42, %s5932_s15  ;;  %v1802_v45 = vpop.permute.xlu0 %1801 }
 0x1a5   :  { %v2668_v16 = vsel %vm2654_vm9, %v2603_v9, %v1802_v45  ;;  %v2411_v45 = vsel %vm2396_vm5, %v2348_v29, %v7379_v17  ;;  %v901_v4 = vsel %vm10589_vm2, %v899_v6, %v900_v46 }
 0x1a6   :  { %v1410_v14 = vpop.permute.xlu1 %1409  ;;  %1223 = vrot.lane.b32.xlu0 %v10780_v0, %s5931_s14  ;;  %v2474_v22 = vsel %vm2459_vm6, %v2411_v45, %v7392_v21  ;;  %v10786_v21 = vld [vmem:[#allocation44_spill] sm:$0xff] }
 0x1a7   :  { %v2539_v62 = vsel %vm2524_vm8, %v2474_v22, %v1410_v14  ;;  %v10787_v14 = vld [vmem:[#allocation36_spill] sm:$0xff] }
 0x1a8   :  { %2187 = vrot.lane.b32.xlu1 %v896_v58, %s5936_s1  ;;  %v7419_v3 = vpop.permute.xlu0 %1207 }
 0x1aa   :  { %v2172_v2 = vpop.permute.xlu1 %2171  ;;  %2003 = vrot.lane.b32.xlu0 %v10781_v51, %s5935_s27 }
 0x1ab   :  { %v2797_v54 = vsel %vm2784_vm11, %v2732_v27, %v2172_v2 }
 0x1ac   :  { %1627 = vrot.lane.b32.xlu1 %v896_v58, %s5933_s16  ;;  %5683 = vmatprep.mubr.msk.f32.mxu0 %vm2855_vm12, %v2797_v54  ;;  %v1988_v8 = vpop.permute.xlu0 %1987 }
 0x1ad   :  { %v2733_v20 = vsel %vm2719_vm10, %v2668_v16, %v1988_v8  ;;  %v2349_v8 = vsel %vm2333_vm4, %v6173_v33, %v6849_v44 }
 0x1ae   :  { %v1612_v39 = vpop.permute.xlu1 %1611  ;;  %1427 = vrot.lane.b32.xlu0 %v10781_v51, %s5932_s15  ;;  %v902_v51 = vrot.slane %v10787_v14, 2 }
 0x1af   :  { %v2604_v28 = vsel %vm2589_vm7, %v2539_v62, %v1612_v39  ;;  %v2412_v39 = vsel %vm2396_vm5, %v2349_v8, %v7397_v40  ;;  %v10788_v40 = vld [vmem:[#allocation33_spill] sm:$0xff] }
 0x1b0   :  { %1037 = vrot.lane.b32.xlu1 %v896_v58, %s5930_s13  ;;  %v1412_v12 = vpop.permute.xlu0 %1411  ;;  %v903_v13 = vsel %vm10589_vm2, %v900_v46, %v902_v51  ;;  %v2475_v60 = vsel %vm2459_vm6, %v2412_v39, %v7419_v3 }
 0x1b1   :  { %v2540_v53 = vsel %vm2524_vm8, %v2475_v60, %v1412_v12 }
 0x1b2   :  { %v7440_v35 = vpop.permute.xlu1 %1021  ;;  %2189 = vrot.lane.b32.xlu0 %v898_v1, %s5936_s1 }
 0x1b4   :  { %1819 = vrot.lane.b32.xlu1 %v10783_v43, %s5934_s17  ;;  %v2174_v15 = vpop.permute.xlu0 %2173 }
 0x1b5   :  { %v2798_v32 = vsel %vm2784_vm11, %v2733_v20, %v2174_v15 }
 0x1b6   :  { %v1804_v10 = vpop.permute.xlu1 %1803  ;;  %1629 = vrot.lane.b32.xlu0 %v898_v1, %s5933_s16  ;;  %5684 = vmatmul.mubr.msk.f32.gmra.mrb[12].mxu0 %vm2855_vm12, %v2798_v32  ;;  %v10789_v32 = vld [vmem:[#allocation40_spill] sm:$0xff] }
 0x1b7   :  { %v2669_v11 = vsel %vm2654_vm9, %v2604_v28, %v1804_v10 }
 0x1b8   :  { %1225 = vrot.lane.b32.xlu1 %v10783_v43, %s5931_s14  ;;  %v1614_v24 = vpop.permute.xlu0 %1613 }
 0x1b9   :  { %v2605_v33 = vsel %vm2589_vm7, %v2540_v53, %v1614_v24  ;;  %v904_v24 = vrot.slane %v10788_v40, 2 }
 0x1ba   :  { %v7453_v52 = vpop.permute.xlu1 %1209  ;;  %1039 = vrot.lane.b32.xlu0 %v898_v1, %s5930_s13 }
 0x1bc   :  { %2005 = vrot.lane.b32.xlu1 %v10784_v25, %s5935_s27  ;;  %v7458_v42 = vpop.permute.xlu0 %1023 }
 0x1be   :  { %v1990_v19 = vpop.permute.xlu1 %1989  ;;  %1821 = vrot.lane.b32.xlu0 %v10785_v47, %s5934_s17 }
 0x1bf   :  { %v2734_v17 = vsel %vm2719_vm10, %v2669_v11, %v1990_v19  ;;  %v2350_v19 = vsel %vm2333_vm4, %v6201_v50, %v6843_v56 }
 0x1c0   :  { %1429 = vrot.lane.b32.xlu1 %v10784_v25, %s5932_s15  ;;  %v1806_v58 = vpop.permute.xlu0 %1805  ;;  %v10790_v25 = vld [vmem:[#allocation32_spill] sm:$0xff]  ;;  %v2413_v29 = vsel %vm2396_vm5, %v2350_v19, %v7440_v35 }
 0x1c1   :  { %v2670_v44 = vsel %vm2654_vm9, %v2605_v33, %v1806_v58  ;;  %v905_v6 = vrot.slane %v10790_v25, 2  ;;  %v7596_v19 = vld [vmem:[%s10407_s2] ss:$0 sm:$0xff] }
 0x1c2   :  { %v1414_v7 = vpop.permute.xlu1 %1413  ;;  %1227 = vrot.lane.b32.xlu0 %v10785_v47, %s5931_s14 }
 0x1c3   :  { %v906_v58 = vsel %vm10589_vm2, %v904_v24, %v905_v6 }
 0x1c4   :  { %2191 = vrot.lane.b32.xlu1 %v901_v4, %s5936_s1  ;;  %v7480_v27 = vpop.permute.xlu0 %1211 }
 0x1c6   :  { %v2176_v2 = vpop.permute.xlu1 %2175  ;;  %2007 = vrot.lane.b32.xlu0 %v10786_v21, %s5935_s27 }
 0x1c7   :  { %v2799_v54 = vsel %vm2784_vm11, %v2734_v17, %v2176_v2 }
 0x1c8   :  { %1631 = vrot.lane.b32.xlu1 %v901_v4, %s5933_s16  ;;  %5686 = vmatprep.mubr.msk.f32.mxu0 %vm2855_vm12, %v2799_v54  ;;  %v1992_v48 = vpop.permute.xlu0 %1991  ;;  %v10792_v54 = vld [vmem:[#allocation41_spill] sm:$0xff] }
 0x1c9   :  { %v2735_v9 = vsel %vm2719_vm10, %v2670_v44, %v1992_v48  ;;  %v2351_v48 = vsel %vm2333_vm4, %v10760_v30, %v6856_v41 }
 0x1ca   :  { %v1616_v34 = vpop.permute.xlu1 %1615  ;;  %1431 = vrot.lane.b32.xlu0 %v10786_v21, %s5932_s15  ;;  %v907_v21 = vrot.slane %v10792_v54, 2 }
 0x1cc   :  { %1041 = vrot.lane.b32.xlu1 %v901_v4, %s5930_s13  ;;  %v1416_v1 = vpop.permute.xlu0 %1415  ;;  %v2476_v4 = vsel %vm2459_vm6, %v2413_v29, %v7453_v52  ;;  %v908_v8 = vsel %vm10589_vm2, %v905_v6, %v907_v21 }
 0x1cd   :  { %v2541_v62 = vsel %vm2524_vm8, %v2476_v4, %v1414_v7  ;;  %v10791_v7 = vld [vmem:[#allocation49_spill] sm:$0xff] }
 0x1ce   :  { %v7501_v57 = vpop.permute.xlu1 %1025  ;;  %2193 = vrot.lane.b32.xlu0 %v903_v13, %s5936_s1  ;;  %v2606_v50 = vsel %vm2589_vm7, %v2541_v62, %v1616_v34  ;;  %v2414_v34 = vsel %vm2396_vm5, %v2351_v48, %v7458_v42  ;;  %v10793_v42 = vld [vmem:[#allocation37_spill] sm:$0xff] }
 0x1cf   :  { %v2477_v39 = vsel %vm2459_vm6, %v2414_v34, %v7480_v27 }
 0x1d0   :  { %1823 = vrot.lane.b32.xlu1 %v10788_v40, %s5934_s17  ;;  %v2178_v16 = vpop.permute.xlu0 %2177  ;;  %v2542_v60 = vsel %vm2524_vm8, %v2477_v39, %v1416_v1 }
 0x1d1   :  { %v2800_v20 = vsel %vm2784_vm11, %v2735_v9, %v2178_v16 }
 0x1d2   :  { %v1808_v3 = vpop.permute.xlu1 %1807  ;;  %1633 = vrot.lane.b32.xlu0 %v903_v13, %s5933_s16  ;;  %5687 = vmatmul.mubr.msk.f32.gmra.mrb[14].mxu0 %vm2855_vm12, %v2800_v20  ;;  %v10794_v20 = vld [vmem:[#allocation46_spill] sm:$0xff] }
 0x1d3   :  { %v2671_v56 = vsel %vm2654_vm9, %v2606_v50, %v1808_v3  ;;  %v939_v50 = vrot.slane %v6576_v49, 2 }
 0x1d4   :  { %1229 = vrot.lane.b32.xlu1 %v10788_v40, %s5931_s14  ;;  %v1618_v12 = vpop.permute.xlu0 %1617 }
 0x1d5   :  { %v2607_v41 = vsel %vm2589_vm7, %v2542_v60, %v1618_v12  ;;  %v909_v12 = vrot.slane %v10793_v42, 2 }
 0x1d6   :  { %v7514_v15 = vpop.permute.xlu1 %1213  ;;  %1043 = vrot.lane.b32.xlu0 %v903_v13, %s5930_s13 }
 0x1d8   :  { %2009 = vrot.lane.b32.xlu1 %v10789_v32, %s5935_s27  ;;  %v7519_v10 = vpop.permute.xlu0 %1027 }
 0x1da   :  { %v1994_v46 = vpop.permute.xlu1 %1993  ;;  %1825 = vrot.lane.b32.xlu0 %v10790_v25, %s5934_s17 }
 0x1db   :  { %v2736_v35 = vsel %vm2719_vm10, %v2671_v56, %v1994_v46  ;;  %v2352_v46 = vsel %vm2333_vm4, %v10763_v31, %v6851_v59 }
 0x1dc   :  { %1433 = vrot.lane.b32.xlu1 %v10789_v32, %s5932_s15  ;;  %v1810_v45 = vpop.permute.xlu0 %1809  ;;  %v10795_v32 = vld [vmem:[#allocation38_spill] sm:$0xff]  ;;  %v2415_v29 = vsel %vm2396_vm5, %v2352_v46, %v7501_v57  ;;  %v940_v57 = vrot.slane %v6573_v26, 2 }
 0x1dd   :  { %v2672_v30 = vsel %vm2654_vm9, %v2607_v41, %v1810_v45  ;;  %v910_v24 = vrot.slane %v10795_v32, 2  ;;  %v2478_v4 = vsel %vm2459_vm6, %v2415_v29, %v7514_v15  ;;  %v10796_v15 = vld [vmem:[#allocation45_spill] sm:$0xff] }
 0x1de   :  { %v1418_v22 = vpop.permute.xlu1 %1417  ;;  %1231 = vrot.lane.b32.xlu0 %v10790_v25, %s5931_s14  ;;  %v7629_v34 = vsel %vm10589_vm2, %v939_v50, %v940_v57 }
 0x1df   :  { %v2543_v59 = vsel %vm2524_vm8, %v2478_v4, %v1418_v22 }
 0x1e0   :  { %2195 = vrot.lane.b32.xlu1 %v906_v58, %s5936_s1  ;;  %v7541_v28 = vpop.permute.xlu0 %1215 }
 0x1e1   :  { %v5667_v11 = vpop.f32.mrb[0].mxu0 }
 0x1e2   :  { %v2180_v17 = vpop.permute.xlu1 %2179  ;;  %v3118_v2 = vpop.f32.mrb[1].mxu0  ;;  %2011 = vrot.lane.b32.xlu0 %v10791_v7, %s5935_s27  ;;  %v3124_v31 = vadd.f32 %v5667_v11, %v7596_v19 }
 0x1e3   :  { %v2801_v52 = vsel %vm2784_vm11, %v2736_v35, %v2180_v17  ;;  %v3119_v56 = vadd.f32 %v7596_v19, %v3118_v2  ;;  %v912_v17 = vrot.slane %v10796_v15, 2 }
 0x1e4   :  { %1635 = vrot.lane.b32.xlu1 %v906_v58, %s5933_s16  ;;  %5689 = vmatprep.mubr.msk.f32.mxu0 %vm2855_vm12, %v2801_v52  ;;  %v1996_v14 = vpop.permute.xlu0 %1995  ;;  %v3502_v21 = vmul.f32 0.1, %v3124_v31  ;;  %vm3438_vm13 = vcmp.gt.f32.partialorder %v3124_v31, 0.0 }
 0x1e5   :  { %v2737_v33 = vsel %vm2719_vm10, %v2672_v30, %v1996_v14  ;;  %v913_v60 = vsel %vm10589_vm2, %v910_v24, %v912_v17  ;;  %vm3437_vm14 = vcmp.gt.f32.partialorder %v3119_v56, 0.0 }
 0x1e6   :  { %v1620_v51 = vpop.permute.xlu1 %1619  ;;  %1435 = vrot.lane.b32.xlu0 %v10791_v7, %s5932_s15 }
 0x1e7   :  { %v2608_v35 = vsel %vm2589_vm7, %v2543_v59, %v1620_v51  ;;  %v10797_v51 = vld [vmem:[#allocation54_spill] sm:$0xff] }
 0x1e8   :  { %1045 = vrot.lane.b32.xlu1 %v906_v58, %s5930_s13  ;;  %v7561_v13 = vpop.permute.xlu0 %1419  ;;  %v7603_v58 = vsel %vm10589_vm2, %v909_v12, %v910_v24 }
 0x1ea   :  { %v7564_v53 = vpop.permute.xlu1 %1029  ;;  %2197 = vrot.lane.b32.xlu0 %v908_v8, %s5936_s1 }
 0x1ec   :  { %1827 = vrot.lane.b32.xlu1 %v10793_v42, %s5934_s17  ;;  %v2182_v44 = vpop.permute.xlu0 %2181 }
 0x1ed   :  { %v2802_v27 = vsel %vm2784_vm11, %v2737_v33, %v2182_v44  ;;  %v10798_v33 = vld [vmem:[#allocation75_spill] sm:$0xff] }
 0x1ee   :  { %v1812_v9 = vpop.permute.xlu1 %1811  ;;  %1637 = vrot.lane.b32.xlu0 %v908_v8, %s5933_s16  ;;  %5690 = vmatmul.mubr.msk.f32.gmra.mrb[16].mxu0 %vm2855_vm12, %v2802_v27  ;;  %v942_v44 = vrot.slane %v10798_v33, 2  ;;  %v64_v33 = vld [vmem:[%s10405_s0 + $0xf8] sm:$0xff] }
 0x1ef   :  { %v2673_v22 = vsel %vm2654_vm9, %v2608_v35, %v1812_v9 }
 0x1f0   :  { %1233 = vrot.lane.b32.xlu1 %v10793_v42, %s5931_s14  ;;  %v7577_v1 = vpop.permute.xlu0 %1621 }
 0x1f2   :  { %v7579_v16 = vpop.permute.xlu1 %1217  ;;  %1047 = vrot.lane.b32.xlu0 %v908_v8, %s5930_s13  ;;  %v3501_v8 = vmul.f32 0.1, %v3119_v56 }
 0x1f4   :  { %2013 = vrot.lane.b32.xlu1 %v10794_v20, %s5935_s27  ;;  %v7584_v3 = vpop.permute.xlu0 %1031  ;;  %v3565_v29 = vsel %vm3437_vm14, %v3119_v56, %v3501_v8  ;;  %vm10590_vm14 = vcmask 1044480  }
 0x1f6   :  { %v1998_v6 = vpop.permute.xlu1 %1997  ;;  %1829 = vrot.lane.b32.xlu0 %v10795_v32, %s5934_s17 }
 0x1f7   :  { %v2738_v11 = vsel %vm2719_vm10, %v2673_v22, %v1998_v6  ;;  %v3566_v6 = vsel %vm3438_vm13, %v3124_v31, %v3502_v21  ;;  %vm10592_vm13 = vcmask 1042432  }
 0x1f8   :  { %1437 = vrot.lane.b32.xlu1 %v10794_v20, %s5932_s15  ;;  %v1814_v45 = vpop.permute.xlu0 %1813  ;;  %v10799_v20 = vld [vmem:[#allocation102_spill] sm:$0xff] }
 0x1f9   :  { %v2353_v12 = vsel %vm2333_vm4, %v10765_v23, %v10799_v20  ;;  %v7652_v23 = vsel %vm10589_vm2, %v940_v57, %v942_v44  ;;  %v10801_v44 = vld [vmem:[#allocation72_spill] sm:$0xff] }
 0x1fa   :  { %v7607_v62 = vpop.permute.xlu1 %1421  ;;  %1235 = vrot.lane.b32.xlu0 %v10795_v32, %s5931_s14  ;;  %v2416_v24 = vsel %vm2396_vm5, %v2353_v12, %v7519_v10  ;;  %10800 = vst [vmem:[#allocation11_spill] sm:$0xff] %v7652_v23 }
 0x1fb   :  { %v2479_v50 = vsel %vm2459_vm6, %v2416_v24, %v7541_v28  ;;  %v217_v24 = vrot.slane %v64_v33, 7  ;;  %v10807_v33 = vld [vmem:[#allocation104_spill] sm:$0xff] }
 0x1fc   :  { %2199 = vrot.lane.b32.xlu1 %v7603_v58, %s5936_s1  ;;  %v7621_v52 = vpop.permute.xlu0 %1219  ;;  %v2544_v31 = vsel %vm2524_vm8, %v2479_v50, %v7561_v13  ;;  %v63_v13 = vld [vmem:[%s10405_s0 + $0xf0] sm:$0xff] }
 0x1fd   :  { %v5670_v7 = vpop.f32.mrb[2].mxu0  ;;  %v2609_v10 = vsel %vm2589_vm7, %v2544_v31, %v7577_v1 }
 0x1fe   :  { %v2184_v54 = vpop.permute.xlu1 %2183  ;;  %v3134_v14 = vadd.f32 %v5670_v7, %v7596_v19  ;;  %v3128_v48 = vpop.f32.mrb[3].mxu0  ;;  %2015 = vrot.lane.b32.xlu0 %v10797_v51, %s5935_s27  ;;  %v2674_v28 = vsel %vm2654_vm9, %v2609_v10, %v1814_v45  ;;  %v216_v45 = vrot.slane %v63_v13, 7 }
 0x1ff   :  { %v2803_v2 = vsel %vm2784_vm11, %v2738_v11, %v2184_v54  ;;  %v3129_v39 = vadd.f32 %v7596_v19, %v3128_v48 }
 0x200   :  { %1439 = vrot.lane.b32.xlu1 %v10797_v51, %s5932_s15  ;;  %5692 = vmatprep.mubr.msk.f32.mxu0 %vm2855_vm12, %v2803_v2  ;;  %vm3440_vm15 = vcmp.gt.f32.partialorder %v3134_v14, 0.0  ;;  %v3504_v41 = vmul.f32 0.1, %v3134_v14  ;;  %v2000_v30 = vpop.permute.xlu0 %1999  ;;  %v7686_v12 = vsel %vm168_vm0, 0.0, %v216_v45 }
 0x201   :  { %vm3439_vm1 = vcmp.gt.f32.partialorder %v3129_v39, 0.0  ;;  %v3503_v27 = vmul.f32 0.1, %v3129_v39  ;;  %v2739_v11 = vsel %vm2719_vm10, %v2674_v28, %v2000_v30  ;;  %v7706_v28 = vsel %vm168_vm0, %v216_v45, %v217_v24 }
 0x202   :  { %v7637_v9 = vpop.permute.xlu1 %1623  ;;  %v3568_v46 = vsel %vm3440_vm15, %v3134_v14, %v3504_v41  ;;  %1073 = vrot.lane.b32.xlu0 %v7629_v34, %s5930_s13  ;;  %vm10802_vm15 = vcmask 1046528   ;;  %v1372_v13 = vrot.slane %v7706_v28, 1 }
 0x203   :  { %v3630_v4 = vmax.f32 %v3566_v6, %v3568_v46  ;;  %v3567_v59 = vsel %vm3439_vm1, %v3129_v39, %v3503_v27  ;;  %vm10621_vm1 = vcmask 1041408  }
 0x204   :  { %2201 = vrot.lane.b32.xlu1 %v913_v60, %s5936_s1  ;;  %v3629_v35 = vmax.f32 %v3565_v29, %v3567_v59  ;;  %v7649_v15 = vpop.permute.xlu0 %1423 }
 0x205   :  { %v3741_v17 = vrot.slane %v3630_v4, 1 }
 0x206   :  { %v7656_v22 = vpop.permute.xlu1 %1033  ;;  %v3677_v56 = vrot.slane %v3629_v35, 1  ;;  %1639 = vrot.lane.b32.xlu0 %v7603_v58, %s5933_s16 }
 0x207   :  { %v3773_v54 = vmax.f32 %v3630_v4, %v3741_v17  ;;  %v10805_v17 = vld [vmem:[#allocation71_spill] sm:$0xff] }
 0x208   :  { %1075 = vrot.lane.b32.xlu1 %v7652_v23, %s5930_s13  ;;  %v3709_v57 = vmax.f32 %v3629_v35, %v3677_v56  ;;  %v2186_v7 = vpop.permute.xlu0 %2185 }
 0x209   :  { %v2804_v1 = vsel %vm2784_vm11, %v2739_v11, %v2186_v7  ;;  %v3917_v39 = vrot.slane %v3773_v54, 4  ;;  %v3981_v20 = vrot.slane %v3773_v54, 6  ;;  %v4013_v29 = vrot.slane %v3773_v54, 7 }
 0x20a   :  { %v1816_v21 = vpop.permute.xlu1 %1815  ;;  %v3805_v14 = vrot.slane %v3709_v57, 1  ;;  %v3837_v2 = vrot.slane %v3709_v57, 2  ;;  %1049 = vrot.lane.b32.xlu0 %v7603_v58, %s5930_s13  ;;  %5693 = vmatmul.mubr.msk.f32.gmra.mrb[18].mxu0 %vm2855_vm12, %v2804_v1  ;;  %v3869_v48 = vrot.slane %v3709_v57, 3  ;;  %v3949_v58 = vrot.slane %v3773_v54, 5 }
 0x20c   :  { %1641 = vrot.lane.b32.xlu1 %v913_v60, %s5933_s16  ;;  %v4045_v51 = vsel %vm168_vm0, %v3709_v57, %v3805_v14  ;;  %v1626_v8 = vpop.permute.xlu0 %1625 }
 0x20d   :  { %v4062_v41 = vsel %vm10621_vm1, %v4045_v51, %v3837_v2  ;;  %v412_v2 = vsel %vm168_vm0, %v217_v24, 0.0  ;;  %v945_v24 = vrot.slane %v10805_v17, 2 }
 0x20e   :  { %v7676_v30 = vpop.permute.xlu1 %1221  ;;  %1265 = vrot.lane.b32.xlu0 %v10801_v44, %s5931_s14  ;;  %v4079_v27 = vsel %vm10592_vm13, %v4062_v41, %v3869_v48  ;;  %v10806_v48 = vld [vmem:[#allocation79_spill] sm:$0xff] }
 0x20f   :  { %v4095_v6 = vsel %vm10591_vm3, %v4079_v27, %v3917_v39  ;;  %v1374_v39 = vrot.slane %v412_v2, 1 }
 0x210   :  { %1051 = vrot.lane.b32.xlu1 %v913_v60, %s5930_s13  ;;  %v7689_v46 = vpop.permute.xlu0 %1035  ;;  %v4112_v4 = vsel %vm10590_vm14, %v4095_v6, %v3949_v58  ;;  %v10804_v60 = vld [vmem:[#allocation101_spill] sm:$0xff]  ;;  %v2355_v58 = vsel %vm2333_vm4, %v10770_v55, %v10807_v33  ;;  %v944_v6 = vrot.slane %v10801_v44, 2 }
 0x211   :  { %v4128_v50 = vsel %vm10589_vm2, %v4112_v4, %v3981_v20  ;;  %v2354_v31 = vsel %vm2333_vm4, %v10768_v38, %v10804_v60  ;;  %v2418_v27 = vsel %vm2396_vm5, %v2355_v58, %v7584_v3  ;;  %v10808_v20 = vld [vmem:[#allocation88_spill] sm:$0xff]  ;;  %v1573_v60 = vrot.slane %v7686_v12, 2 }
 0x212   :  { %v2002_v59 = vpop.permute.xlu1 %2001  ;;  %1831 = vrot.lane.b32.xlu0 %v7686_v12, %s5934_s17  ;;  %v7696_v35 = vsel %vm10802_vm15, %v4128_v50, %v4013_v29  ;;  %v2417_v10 = vsel %vm2396_vm5, %v2354_v31, %v7564_v53  ;;  %v1371_v53 = vrot.slane %v7686_v12, 1  ;;  %v2481_v29 = vsel %vm2459_vm6, %v2418_v27, %v7621_v52 }
 0x213   :  { %10803 = vst [vmem:[#allocation8_spill] sm:$0xff] %v7696_v35  ;;  %v2480_v57 = vsel %vm2459_vm6, %v2417_v10, %v7579_v16  ;;  %v2546_v55 = vsel %vm2524_vm8, %v2481_v29, %v7649_v15  ;;  %v1574_v10 = vrot.slane %v7706_v28, 2  ;;  %v7760_v52 = vsel %vm10589_vm2, %v944_v6, %v945_v24 }
 0x214   :  { %1267 = vrot.lane.b32.xlu1 %v10805_v17, %s5931_s14  ;;  %v1818_v56 = vpop.permute.xlu0 %1817  ;;  %v2545_v7 = vsel %vm2524_vm8, %v2480_v57, %v7607_v62  ;;  %v2611_v3 = vsel %vm2589_vm7, %v2546_v55, %v1626_v8  ;;  %10809 = vst [vmem:[#allocation19_spill] sm:$0xff] %v7760_v52 }
 0x215   :  { %v2610_v38 = vsel %vm2589_vm7, %v2545_v7, %v7637_v9  ;;  %v2676_v31 = vsel %vm2654_vm9, %v2611_v3, %v1818_v56  ;;  %v1575_v8 = vsel %vm10589_vm2, %v1573_v60, %v1574_v10 }
 0x216   :  { %v7710_v11 = vpop.permute.xlu1 %1425  ;;  %1237 = vrot.lane.b32.xlu0 %v7686_v12, %s5931_s14  ;;  %v2675_v16 = vsel %vm2654_vm9, %v2610_v38, %v1816_v21  ;;  %v1373_v21 = vsel %vm10802_vm15, %v1371_v53, %v1372_v13 }
 0x217   :  { %v2740_v1 = vsel %vm2719_vm10, %v2675_v16, %v2002_v59  ;;  %v1375_v59 = vsel %vm10802_vm15, %v1372_v13, %v1374_v39 }
 0x218   :  { %1833 = vrot.lane.b32.xlu1 %v7706_v28, %s5934_s17  ;;  %v7723_v54 = vpop.permute.xlu0 %1223 }
 0x219   :  { %v5673_v62 = vpop.f32.mrb[4].mxu0 }
 0x21a   :  { %v2188_v14 = vpop.permute.xlu1 %2187  ;;  %v3138_v9 = vpop.f32.mrb[5].mxu0  ;;  %1469 = vrot.lane.b32.xlu0 %v10806_v48, %s5932_s15  ;;  %v10873_v48 = vld [vmem:[#allocation123_spill] sm:$0xff] }
 0x21b   :  { %v2805_v45 = vsel %vm2784_vm11, %v2740_v1, %v2188_v14  ;;  %v10811_v1 = vld [vmem:[#allocation103_spill] sm:$0xff] }
 0x21c   :  { %1239 = vrot.lane.b32.xlu1 %v7706_v28, %s5931_s14  ;;  %5695 = vmatprep.mubr.msk.f32.mxu0 %vm2855_vm12, %v2805_v45  ;;  %v2004_v51 = vpop.permute.xlu0 %2003  ;;  %v10810_v28 = vld [vmem:[#allocation80_spill] sm:$0xff]  ;;  %v2356_v14 = vsel %vm2333_vm4, %v10773_v18, %v10811_v1  ;;  %v10812_v45 = vld [vmem:[#allocation77_spill] sm:$0xff]  ;;  %v3144_v18 = vadd.f32 %v5673_v62, %v7596_v19 }
 0x21d   :  { %v2741_v57 = vsel %vm2719_vm10, %v2676_v31, %v2004_v51  ;;  %v947_v53 = vrot.slane %v10810_v28, 2  ;;  %v1576_v51 = vrot.slane %v412_v2, 2  ;;  %v2419_v39 = vsel %vm2396_vm5, %v2356_v14, %v7656_v22 }
 0x21e   :  { %v1628_v41 = vpop.permute.xlu1 %1627  ;;  %2017 = vrot.lane.b32.xlu0 %v1373_v21, %s5935_s27  ;;  %v2482_v58 = vsel %vm2459_vm6, %v2419_v39, %v7676_v30  ;;  %v3506_v55 = vmul.f32 0.1, %v3144_v18  ;;  %vm3442_vm15 = vcmp.gt.f32.partialorder %v3144_v18, 0.0 }
 0x21f   :  { %v2547_v6 = vsel %vm2524_vm8, %v2482_v58, %v7710_v11  ;;  %v1577_v22 = vsel %vm10589_vm2, %v1574_v10, %v1576_v51 }
 0x220   :  { %1471 = vrot.lane.b32.xlu1 %v10808_v20, %s5932_s15  ;;  %v7746_v4 = vpop.permute.xlu0 %1427  ;;  %v2612_v2 = vsel %vm2589_vm7, %v2547_v6, %v1628_v41  ;;  %v3570_v28 = vsel %vm3442_vm15, %v3144_v18, %v3506_v55  ;;  %v10816_v6 = vld [vmem:[#allocation76_spill] sm:$0xff]  ;;  %vm10824_vm15 = vcmask 1046528  }
 0x222   :  { %v7751_v50 = vpop.permute.xlu1 %1037  ;;  %1441 = vrot.lane.b32.xlu0 %v1373_v21, %s5932_s15  ;;  %v7784_v21 = vsel %vm10589_vm2, %v945_v24, %v947_v53  ;;  %v3139_v24 = vadd.f32 %v7596_v19, %v3138_v9 }
 0x223   :  { %10813 = vst [vmem:[#allocation12_spill] sm:$0xff] %v7784_v21 }
 0x224   :  { %2019 = vrot.lane.b32.xlu1 %v1375_v59, %s5935_s27  ;;  %v2190_v15 = vpop.permute.xlu0 %2189  ;;  %v3505_v41 = vmul.f32 0.1, %v3139_v24  ;;  %vm3441_vm2 = vcmp.gt.f32.partialorder %v3139_v24, 0.0 }
 0x225   :  { %v2806_v7 = vsel %vm2784_vm11, %v2741_v57, %v2190_v15 }
 0x226   :  { %v1820_v38 = vpop.permute.xlu1 %1819  ;;  %1671 = vrot.lane.b32.xlu0 %v7760_v52, %s5933_s16  ;;  %5696 = vmatmul.mubr.msk.f32.gmra.mrb[20].mxu0 %vm2855_vm12, %v2806_v7  ;;  %v3569_v51 = vsel %vm3441_vm2, %v3139_v24, %v3505_v41  ;;  %vm10820_vm2 = vcmask 1043456  }
 0x227   :  { %v2677_v30 = vsel %vm2654_vm9, %v2612_v2, %v1820_v38  ;;  %v10814_v38 = vld [vmem:[#allocation106_spill] sm:$0xff] }
 0x228   :  { %1077 = vrot.lane.b32.xlu1 %v7760_v52, %s5930_s13  ;;  %v1630_v12 = vpop.permute.xlu0 %1629 }
 0x22a   :  { %v7770_v56 = vpop.permute.xlu1 %1225  ;;  %2203 = vrot.lane.b32.xlu0 %v1575_v8, %s5936_s1 }
 0x22c   :  { %1643 = vrot.lane.b32.xlu1 %v1575_v8, %s5933_s16  ;;  %v7775_v13 = vpop.permute.xlu0 %1039  ;;  %v2357_v8 = vsel %vm2333_vm4, %v10775_v36, %v10814_v38 }
 0x22d   :  { %v2420_v14 = vsel %vm2396_vm5, %v2357_v8, %v7689_v46 }
 0x22e   :  { %v2006_v16 = vpop.permute.xlu1 %2005  ;;  %1443 = vrot.lane.b32.xlu0 %v1375_v59, %s5932_s15  ;;  %v2483_v36 = vsel %vm2459_vm6, %v2420_v14, %v7723_v54  ;;  %v950_v14 = vrot.slane %v10816_v6, 2 }
 0x22f   :  { %v2742_v11 = vsel %vm2719_vm10, %v2677_v30, %v2006_v16  ;;  %v10815_v16 = vld [vmem:[#allocation5_spill] sm:$0xff] }
 0x230   :  { %1863 = vrot.lane.b32.xlu1 %v10812_v45, %s5934_s17  ;;  %v1822_v33 = vpop.permute.xlu0 %1821  ;;  %v5886_v1 = vpack.i.bf16 %v6001_v5, %v10815_v16 }
 0x232   :  { %v7790_v27 = vpop.permute.xlu1 %1429  ;;  %1673 = vrot.lane.b32.xlu0 %v7784_v21, %s5933_s16 }
 0x234   :  { %1079 = vrot.lane.b32.xlu1 %v7784_v21, %s5930_s13  ;;  %v7803_v29 = vpop.permute.xlu0 %1227  ;;  %v10867_v21 = vld [vmem:[#allocation61_spill] sm:$0xff] }
 0x235   :  { %v5676_v59 = vpop.f32.mrb[6].mxu0 }
 0x236   :  { %v2192_v62 = vpop.permute.xlu1 %2191  ;;  %v3154_v3 = vadd.f32 %v5676_v59, %v7596_v19  ;;  %v3148_v60 = vpop.f32.mrb[7].mxu0  ;;  %2205 = vrot.lane.b32.xlu0 %v1577_v22, %s5936_s1  ;;  %v10817_v59 = vld [vmem:[#allocation42_spill] sm:$0xff] }
 0x237   :  { %v2807_v9 = vsel %vm2784_vm11, %v2742_v11, %v2192_v62  ;;  %v3149_v31 = vadd.f32 %v7596_v19, %v3148_v60 }
 0x238   :  { %1645 = vrot.lane.b32.xlu1 %v1577_v22, %s5933_s16  ;;  %5698 = vmatprep.mubr.msk.f32.mxu0 %vm2855_vm12, %v2807_v9  ;;  %vm3444_vm14 = vcmp.gt.f32.partialorder %v3154_v3, 0.0  ;;  %v3508_v10 = vmul.f32 0.1, %v3154_v3  ;;  %v2008_v57 = vpop.permute.xlu0 %2007  ;;  %v2548_v22 = vsel %vm2524_vm8, %v2483_v36, %v7746_v4 }
 0x239   :  { %vm3443_vm3 = vcmp.gt.f32.partialorder %v3149_v31, 0.0  ;;  %v3507_v15 = vmul.f32 0.1, %v3149_v31  ;;  %v2613_v46 = vsel %vm2589_vm7, %v2548_v22, %v1630_v12  ;;  %v10818_v12 = vld [vmem:[#allocation84_spill] sm:$0xff] }
 0x23a   :  { %v7812_v7 = vpop.permute.xlu1 %1631  ;;  %v3572_v53 = vsel %vm3444_vm14, %v3154_v3, %v3508_v10  ;;  %1269 = vrot.lane.b32.xlu0 %v10812_v45, %s5931_s14  ;;  %v2678_v11 = vsel %vm2654_vm9, %v2613_v46, %v1822_v33  ;;  %vm10822_vm14 = vcmask 1045504   ;;  %v10823_v46 = vld [vmem:[#allocation7_spill] sm:$0xff] }
 0x23b   :  { %v3632_v39 = vmax.f32 %v3570_v28, %v3572_v53  ;;  %v3571_v58 = vsel %vm3443_vm3, %v3149_v31, %v3507_v15  ;;  %v2743_v62 = vsel %vm2719_vm10, %v2678_v11, %v2008_v57  ;;  %v10819_v53 = vld [vmem:[#allocation93_spill] sm:$0xff]  ;;  %vm10821_vm3 = vcmask 1044480  }
 0x23c   :  { %1865 = vrot.lane.b32.xlu1 %v10816_v6, %s5934_s17  ;;  %v3631_v18 = vmax.f32 %v3569_v51, %v3571_v58  ;;  %v7827_v2 = vpop.permute.xlu0 %1431  ;;  %v10826_v11 = vld [vmem:[#allocation105_spill] sm:$0xff] }
 0x23d   :  { %v3742_v30 = vrot.slane %v3632_v39, 1 }
 0x23e   :  { %v7831_v5 = vpop.permute.xlu1 %1041  ;;  %v3678_v24 = vrot.slane %v3631_v18, 1  ;;  %5887 = vrot.lane.b32.xlu0 %v5886_v1, %s5934_s17  ;;  %v949_v1 = vrot.slane %v10812_v45, 2 }
 0x23f   :  { %v3774_v3 = vmax.f32 %v3632_v39, %v3742_v30 }
 0x240   :  { %1241 = vrot.lane.b32.xlu1 %v10817_v59, %s5931_s14  ;;  %v3710_v54 = vmax.f32 %v3631_v18, %v3678_v24  ;;  %v2194_v55 = vpop.permute.xlu0 %2193 }
 0x241   :  { %v2808_v4 = vsel %vm2784_vm11, %v2743_v62, %v2194_v55  ;;  %v3918_v57 = vrot.slane %v3774_v3, 4  ;;  %v3950_v8 = vrot.slane %v3774_v3, 5  ;;  %v3982_v51 = vrot.slane %v3774_v3, 6  ;;  %v10827_v62 = vld [vmem:[#allocation43_spill] sm:$0xff] }
 0x242   :  { %v1824_v9 = vpop.permute.xlu1 %1823  ;;  %v3806_v60 = vrot.slane %v3710_v54, 1  ;;  %v3838_v41 = vrot.slane %v3710_v54, 2  ;;  %2049 = vrot.lane.b32.xlu0 %v10818_v12, %s5935_s27  ;;  %5699 = vmatmul.mubr.msk.f32.gmra.mrb[22].mxu0 %vm2855_vm12, %v2808_v4  ;;  %v3870_v33 = vrot.slane %v3710_v54, 3  ;;  %v4014_v36 = vrot.slane %v3774_v3, 7 }
 0x244   :  { %1473 = vrot.lane.b32.xlu1 %v10818_v12, %s5932_s15  ;;  %v4046_v31 = vsel %vm168_vm0, %v3710_v54, %v3806_v60  ;;  %v1634_v10 = vpop.permute.xlu0 %1633  ;;  %v2358_v54 = vsel %vm2333_vm4, %v10778_v61, %v10826_v11 }
 0x245   :  { %v4063_v15 = vsel %vm10621_vm1, %v4046_v31, %v3838_v41  ;;  %v2421_v3 = vsel %vm2396_vm5, %v2358_v54, %v7751_v50 }
 0x246   :  { %v7847_v38 = vpop.permute.xlu1 %1229  ;;  %1271 = vrot.lane.b32.xlu0 %v10816_v6, %s5931_s14  ;;  %v4080_v28 = vsel %vm10592_vm13, %v4063_v15, %v3870_v33  ;;  %v2484_v60 = vsel %vm2459_vm6, %v2421_v3, %v7770_v56 }
 0x247   :  { %v4096_v39 = vsel %vm10820_vm2, %v4080_v28, %v3918_v57  ;;  %vm10828_vm2 = vmmov %vm10822_vm14  ;;  %v2549_v12 = vsel %vm2524_vm8, %v2484_v60, %v7790_v27  ;;  %v10829_v27 = vld [vmem:[#allocation50_spill] sm:$0xff]  ;;  %v10830_v28 = vld [vmem:[#allocation60_spill] sm:$0xff] }
 0x248   :  { %2051 = vrot.lane.b32.xlu1 %v10819_v53, %s5935_s27  ;;  %v7857_v58 = vpop.permute.xlu0 %1043  ;;  %v4113_v18 = vsel %vm10821_vm3, %v4096_v39, %v3950_v8  ;;  %v951_v55 = vsel %vm10828_vm2, %v949_v1, %v950_v14  ;;  %v2614_v61 = vsel %vm2589_vm7, %v2549_v12, %v7812_v7  ;;  %v10831_v7 = vld [vmem:[#allocation85_spill] sm:$0xff]  ;;  %v914_v1 = vrot.slane %v10817_v59, 2  ;;  %vm10833_vm3 = vmmov %vm10828_vm2 }
 0x249   :  { %v4129_v30 = vsel %vm10822_vm14, %v4113_v18, %v3982_v51  ;;  %v2679_v33 = vsel %vm2654_vm9, %v2614_v61, %v1824_v9  ;;  %v915_v51 = vrot.slane %v10827_v62, 2  ;;  %vm10834_vm14 = vmmov %vm10828_vm2  ;;  %v10835_v61 = vld [vmem:[#allocation59_spill] sm:$0xff] }
 0x24a   :  { %v2010_v22 = vpop.permute.xlu1 %2009  ;;  %5892 = vrot.lane.b32.xlu0 %v10823_v46, %s5935_s27  ;;  %v7864_v24 = vsel %vm10824_vm15, %v4129_v30, %v4014_v36  ;;  %v10832_v36 = vld [vmem:[#allocation108_spill] sm:$0xff]  ;;  %vm10838_vm15 = vmmov %vm10828_vm2 }
 0x24b   :  { %10825 = vst [vmem:[#allocation9_spill] sm:$0xff] %v7864_v24  ;;  %v2744_v50 = vsel %vm2719_vm10, %v2679_v33, %v2010_v22  ;;  %v2359_v18 = vsel %vm2333_vm4, %v10780_v0, %v10832_v36  ;;  %v916_v54 = vsel %vm10834_vm14, %v914_v1, %v915_v51  ;;  %v10837_v33 = vld [vmem:[#allocation51_spill] sm:$0xff] }
 0x24c   :  { %1243 = vrot.lane.b32.xlu1 %v10827_v62, %s5931_s14  ;;  %v1826_v4 = vpop.permute.xlu0 %1825  ;;  %v2422_v22 = vsel %vm2396_vm5, %v2359_v18, %v7775_v13 }
 0x24d   :  { %v2485_v46 = vsel %vm2459_vm6, %v2422_v22, %v7803_v29 }
 0x24e   :  { %v1434_v41 = vpop.permute.xlu1 %1433  ;;  %2235 = vrot.lane.b32.xlu0 %v951_v55, %s5936_s1  ;;  %v2550_v3 = vsel %vm2524_vm8, %v2485_v46, %v7827_v2  ;;  %v10836_v2 = vld [vmem:[#allocation82_spill] sm:$0xff] }
 0x24f   :  { %v2615_v60 = vsel %vm2589_vm7, %v2550_v3, %v1634_v10 }
 0x250   :  { %1475 = vrot.lane.b32.xlu1 %v10819_v53, %s5932_s15  ;;  %v7884_v31 = vpop.permute.xlu0 %1231  ;;  %v952_v53 = vrot.slane %v10831_v7, 2  ;;  %v2680_v13 = vsel %vm2654_vm9, %v2615_v60, %v1826_v4 }
 0x251   :  { %v5679_v57 = vpop.f32.mrb[8].mxu0 }
 0x252   :  { %v2196_v56 = vpop.permute.xlu1 %2195  ;;  %v3158_v8 = vpop.f32.mrb[9].mxu0  ;;  %1445 = vrot.lane.b32.xlu0 %v10829_v27, %s5932_s15  ;;  %v953_v30 = vsel %vm10833_vm3, %v950_v14, %v952_v53  ;;  %v3164_v18 = vadd.f32 %v5679_v57, %v7596_v19 }
 0x253   :  { %v2809_v15 = vsel %vm2784_vm11, %v2744_v50, %v2196_v56  ;;  %v917_v50 = vrot.slane %v10837_v33, 2 }
 0x254   :  { %5897 = vrot.lane.b32.xlu1 %v10830_v28, %s5936_s1  ;;  %5701 = vmatprep.mubr.msk.f32.mxu0 %vm2855_vm12, %v2809_v15  ;;  %v2012_v9 = vpop.permute.xlu0 %2011  ;;  %v10839_v28 = vld [vmem:[#allocation107_spill] sm:$0xff]  ;;  %v3510_v3 = vmul.f32 0.1, %v3164_v18  ;;  %vm3446_vm2 = vcmp.gt.f32.partialorder %v3164_v18, 0.0 }
 0x255   :  { %v2745_v14 = vsel %vm2719_vm10, %v2680_v13, %v2012_v9  ;;  %v918_v15 = vsel %vm10838_vm15, %v915_v51, %v917_v50  ;;  %v2360_v7 = vsel %vm2333_vm4, %v10783_v43, %v10839_v28  ;;  %v3159_v43 = vadd.f32 %v7596_v19, %v3158_v8  ;;  %v10841_v8 = vld [vmem:[#allocation48_spill] sm:$0xff] }
 0x256   :  { %v1636_v39 = vpop.permute.xlu1 %1635  ;;  %1675 = vrot.lane.b32.xlu0 %v951_v55, %s5933_s16  ;;  %v2423_v53 = vsel %vm2396_vm5, %v2360_v7, %v7831_v5  ;;  %v3574_v28 = vsel %vm3446_vm2, %v3164_v18, %v3510_v3  ;;  %vm10847_vm2 = vcmask 1045504  }
 0x257   :  { %v2486_v1 = vsel %vm2459_vm6, %v2423_v53, %v7847_v38  ;;  %vm3445_vm3 = vcmp.gt.f32.partialorder %v3159_v43, 0.0  ;;  %v10843_v53 = vld [vmem:[#allocation89_spill] sm:$0xff] }
 0x258   :  { %1081 = vrot.lane.b32.xlu1 %v951_v55, %s5930_s13  ;;  %v7906_v11 = vpop.permute.xlu0 %1435  ;;  %v2551_v51 = vsel %vm2524_vm8, %v2486_v1, %v1434_v41 }
 0x259   :  { %v2616_v22 = vsel %vm2589_vm7, %v2551_v51, %v1636_v39  ;;  %v10842_v39 = vld [vmem:[#allocation110_spill] sm:$0xff] }
 0x25a   :  { %v7911_v0 = vpop.permute.xlu1 %1045  ;;  %2237 = vrot.lane.b32.xlu0 %v953_v30, %s5936_s1 }
 0x25c   :  { %1647 = vrot.lane.b32.xlu1 %v916_v54, %s5933_s16  ;;  %v2198_v29 = vpop.permute.xlu0 %2197 }
 0x25d   :  { %v2810_v55 = vsel %vm2784_vm11, %v2745_v14, %v2198_v29  ;;  %v2361_v14 = vsel %vm2333_vm4, %v10785_v47, %v10842_v39  ;;  %v3509_v29 = vmul.f32 0.1, %v3159_v43 }
 0x25e   :  { %v1828_v12 = vpop.permute.xlu1 %1827  ;;  %1447 = vrot.lane.b32.xlu0 %v10835_v61, %s5932_s15  ;;  %5702 = vmatmul.mubr.msk.f32.gmra.mrb[24].mxu0 %vm2855_vm12, %v2810_v55 }
 0x25f   :  { %v2681_v5 = vsel %vm2654_vm9, %v2616_v22, %v1828_v12  ;;  %v2424_v12 = vsel %vm2396_vm5, %v2361_v14, %v7857_v58  ;;  %v3573_v58 = vsel %vm3445_vm3, %v3159_v43, %v3509_v29  ;;  %v10845_v14 = vld [vmem:[#allocation96_spill] sm:$0xff]  ;;  %v954_v29 = vrot.slane %v10836_v2, 2 }
 0x260   :  { %1867 = vrot.lane.b32.xlu1 %v10836_v2, %s5934_s17  ;;  %v1638_v10 = vpop.permute.xlu0 %1637  ;;  %v2487_v50 = vsel %vm2459_vm6, %v2424_v12, %v7884_v31  ;;  %vm10848_vm3 = vcmask 1043456  }
 0x262   :  { %v7925_v4 = vpop.permute.xlu1 %1233  ;;  %1677 = vrot.lane.b32.xlu0 %v953_v30, %s5933_s16 }
 0x264   :  { %1083 = vrot.lane.b32.xlu1 %v953_v30, %s5930_s13  ;;  %v7929_v56 = vpop.permute.xlu0 %1047  ;;  %v10840_v30 = vld [vmem:[#allocation81_spill] sm:$0xff] }
 0x266   :  { %v2014_v27 = vpop.permute.xlu1 %2013  ;;  %1053 = vrot.lane.b32.xlu0 %v916_v54, %s5930_s13 }
 0x267   :  { %v2746_v38 = vsel %vm2719_vm10, %v2681_v5, %v2014_v27 }
 0x268   :  { %1649 = vrot.lane.b32.xlu1 %v918_v15, %s5933_s16  ;;  %v1830_v9 = vpop.permute.xlu0 %1829 }
 0x26a   :  { %v7941_v36 = vpop.permute.xlu1 %1437  ;;  %1273 = vrot.lane.b32.xlu0 %v10836_v2, %s5931_s14 }
 0x26c   :  { %1869 = vrot.lane.b32.xlu1 %v10840_v30, %s5934_s17  ;;  %v7952_v46 = vpop.permute.xlu0 %1235 }
 0x26d   :  { %v5682_v54 = vpop.f32.mrb[10].mxu0 }
 0x26e   :  { %v2200_v41 = vpop.permute.xlu1 %2199  ;;  %v3174_v57 = vadd.f32 %v5682_v54, %v7596_v19  ;;  %v3168_v13 = vpop.f32.mrb[11].mxu0  ;;  %1839 = vrot.lane.b32.xlu0 %v10841_v8, %s5934_s17 }
 0x26f   :  { %v2811_v60 = vsel %vm2784_vm11, %v2746_v38, %v2200_v41  ;;  %v3169_v55 = vadd.f32 %v7596_v19, %v3168_v13 }
 0x270   :  { %1055 = vrot.lane.b32.xlu1 %v918_v15, %s5930_s13  ;;  %5704 = vmatprep.mubr.msk.f32.mxu0 %vm2855_vm12, %v2811_v60  ;;  %vm3448_vm14 = vcmp.gt.f32.partialorder %v3174_v57, 0.0  ;;  %v3512_v61 = vmul.f32 0.1, %v3174_v57  ;;  %v2016_v33 = vpop.permute.xlu0 %2015  ;;  %v2552_v15 = vsel %vm2524_vm8, %v2487_v50, %v7906_v11 }
 0x271   :  { %vm3447_vm15 = vcmp.gt.f32.partialorder %v3169_v55, 0.0  ;;  %v3511_v47 = vmul.f32 0.1, %v3169_v55  ;;  %v2617_v1 = vsel %vm2589_vm7, %v2552_v15, %v1638_v10  ;;  %v10844_v10 = vld [vmem:[#allocation47_spill] sm:$0xff] }
 0x272   :  { %v7969_v27 = vpop.permute.xlu1 %1439  ;;  %v3576_v7 = vsel %vm3448_vm14, %v3174_v57, %v3512_v61  ;;  %2053 = vrot.lane.b32.xlu0 %v10843_v53, %s5935_s27  ;;  %v2682_v31 = vsel %vm2654_vm9, %v2617_v1, %v1830_v9  ;;  %vm10849_vm14 = vcmask 1044480  }
 0x273   :  { %v3634_v51 = vmax.f32 %v3574_v28, %v3576_v7  ;;  %v3575_v22 = vsel %vm3447_vm15, %v3169_v55, %v3511_v47  ;;  %v2747_v11 = vsel %vm2719_vm10, %v2682_v31, %v2016_v33  ;;  %v955_v55 = vrot.slane %v10840_v30, 2  ;;  %v10846_v7 = vld [vmem:[#allocation55_spill] sm:$0xff]  ;;  %vm10850_vm15 = vmmov %vm10847_vm2 }
 0x274   :  { %1275 = vrot.lane.b32.xlu1 %v10840_v30, %s5931_s14  ;;  %v3633_v5 = vmax.f32 %v3573_v58, %v3575_v22  ;;  %v7979_v38 = vpop.permute.xlu0 %1073 }
 0x275   :  { %v3743_v18 = vrot.slane %v3634_v51, 1  ;;  %v956_v1 = vsel %vm10847_vm2, %v954_v29, %v955_v55  ;;  %v920_v29 = vrot.slane %v10844_v10, 2 }
 0x276   :  { %v2202_v54 = vpop.permute.xlu1 %2201  ;;  %v3679_v41 = vrot.slane %v3633_v5, 1  ;;  %1245 = vrot.lane.b32.xlu0 %v10841_v8, %s5931_s14 }
 0x277   :  { %v2812_v3 = vsel %vm2784_vm11, %v2747_v11, %v2202_v54  ;;  %v3775_v57 = vmax.f32 %v3634_v51, %v3743_v18 }
 0x278   :  { %1841 = vrot.lane.b32.xlu1 %v10844_v10, %s5934_s17  ;;  %5705 = vmatmul.mubr.msk.f32.gmra.mrb[26].mxu0 %vm2855_vm12, %v2812_v3  ;;  %v3711_v43 = vmax.f32 %v3633_v5, %v3679_v41  ;;  %v7988_v9 = vpop.permute.xlu0 %1639  ;;  %v10853_v3 = vld [vmem:[#allocation90_spill] sm:$0xff] }
 0x279   :  { %v3919_v50 = vrot.slane %v3775_v57, 4  ;;  %v3951_v15 = vrot.slane %v3775_v57, 5  ;;  %v3983_v58 = vrot.slane %v3775_v57, 6  ;;  %v4015_v31 = vrot.slane %v3775_v57, 7  ;;  %v10854_v57 = vld [vmem:[#allocation65_spill] sm:$0xff] }
 0x27a   :  { %v7990_v60 = vpop.permute.xlu1 %1075  ;;  %v3807_v13 = vrot.slane %v3711_v43, 1  ;;  %v3839_v39 = vrot.slane %v3711_v43, 2  ;;  %1477 = vrot.lane.b32.xlu0 %v10843_v53, %s5932_s15  ;;  %v3871_v12 = vrot.slane %v3711_v43, 3 }
 0x27c   :  { %2055 = vrot.lane.b32.xlu1 %v10845_v14, %s5935_s27  ;;  %v4047_v61 = vsel %vm168_vm0, %v3711_v43, %v3807_v13  ;;  %v7999_v33 = vpop.permute.xlu0 %1049  ;;  %v957_v43 = vrot.slane %v10853_v3, 2 }
 0x27d   :  { %v4064_v47 = vsel %vm10621_vm1, %v4047_v61, %v3839_v39  ;;  %v919_v39 = vrot.slane %v10841_v8, 2 }
 0x27e   :  { %v8002_v28 = vpop.permute.xlu1 %1641  ;;  %2025 = vrot.lane.b32.xlu0 %v10846_v7, %s5935_s27  ;;  %v4081_v53 = vsel %vm10592_vm13, %v4064_v47, %v3871_v12  ;;  %vm10851_vm13 = vcmask 1046528  }
 0x27f   :  { %v4097_v51 = vsel %vm10848_vm3, %v4081_v53, %v3919_v50  ;;  %vm10857_vm3 = vmmov %vm10847_vm2 }
 0x280   :  { %1247 = vrot.lane.b32.xlu1 %v10844_v10, %s5931_s14  ;;  %v8011_v22 = vpop.permute.xlu0 %1265  ;;  %v4114_v5 = vsel %vm10849_vm14, %v4097_v51, %v3951_v15  ;;  %v921_v15 = vsel %vm10847_vm2, %v919_v39, %v920_v29 }
 0x281   :  { %v4130_v11 = vsel %vm10850_vm15, %v4114_v5, %v3983_v58 }
 0x282   :  { %v8014_v18 = vpop.permute.xlu1 %1051  ;;  %2239 = vrot.lane.b32.xlu0 %v956_v1, %s5936_s1  ;;  %v8019_v54 = vsel %vm10851_vm13, %v4130_v11, %v4015_v31  ;;  %vm10855_vm13 = vmmov %vm10847_vm2 }
 0x283   :  { %10852 = vst [vmem:[#allocation16_spill] sm:$0xff] %v8019_v54  ;;  %v958_v61 = vsel %vm10855_vm13, %v955_v55, %v957_v43  ;;  %v10856_v55 = vld [vmem:[#allocation56_spill] sm:$0xff]  ;;  %v10858_v43 = vld [vmem:[#allocation109_spill] sm:$0xff] }
 0x284   :  { %1479 = vrot.lane.b32.xlu1 %v10845_v14, %s5932_s15  ;;  %v1832_v41 = vpop.permute.xlu0 %1831  ;;  %v922_v51 = vrot.slane %v10856_v55, 2  ;;  %v2362_v39 = vsel %vm2333_vm4, %v10788_v40, %v10858_v43  ;;  %v10859_v43 = vld [vmem:[#allocation87_spill] sm:$0xff] }
 0x286   :  { %v8024_v13 = vpop.permute.xlu1 %1267  ;;  %1449 = vrot.lane.b32.xlu0 %v10846_v7, %s5932_s15  ;;  %v923_v11 = vsel %vm10857_vm3, %v920_v29, %v922_v51  ;;  %vm10868_vm3 = vcmask 1042432  }
 0x288   :  { %2027 = vrot.lane.b32.xlu1 %v10854_v57, %s5935_s27  ;;  %v8032_v12 = vpop.permute.xlu0 %1237 }
 0x289   :  { %v5685_v14 = vpop.f32.mrb[12].mxu0 }
 0x28a   :  { %v1834_v50 = vpop.permute.xlu1 %1833  ;;  %v3178_v47 = vpop.f32.mrb[13].mxu0  ;;  %1679 = vrot.lane.b32.xlu0 %v956_v1, %s5933_s16 }
 0x28c   :  { %2241 = vrot.lane.b32.xlu1 %v958_v61, %s5936_s1  ;;  %v8038_v7 = vpop.permute.xlu0 %1469 }
 0x28e   :  { %v8040_v53 = vpop.permute.xlu1 %1239  ;;  %2211 = vrot.lane.b32.xlu0 %v921_v15, %s5936_s1 }
 0x290   :  { %1451 = vrot.lane.b32.xlu1 %v10854_v57, %s5932_s15  ;;  %v2018_v58 = vpop.permute.xlu0 %2017  ;;  %v2425_v57 = vsel %vm2396_vm5, %v2362_v39, %v7911_v0 }
 0x292   :  { %v8046_v31 = vpop.permute.xlu1 %1471  ;;  %1085 = vrot.lane.b32.xlu0 %v956_v1, %s5930_s13  ;;  %v2488_v1 = vsel %vm2459_vm6, %v2425_v57, %v7925_v4 }
 0x293   :  { %v2553_v29 = vsel %vm2524_vm8, %v2488_v1, %v7941_v36  ;;  %v3179_v1 = vadd.f32 %v7596_v19, %v3178_v47 }
 0x294   :  { %1681 = vrot.lane.b32.xlu1 %v958_v61, %s5933_s16  ;;  %v8050_v5 = vpop.permute.xlu0 %1441  ;;  %v2618_v40 = vsel %vm2589_vm7, %v2553_v29, %v7988_v9  ;;  %v10861_v29 = vld [vmem:[#allocation86_spill] sm:$0xff] }
 0x295   :  { %v2683_v0 = vsel %vm2654_vm9, %v2618_v40, %v1832_v41  ;;  %v10860_v41 = vld [vmem:[#allocation112_spill] sm:$0xff]  ;;  %vm3449_vm15 = vcmp.gt.f32.partialorder %v3179_v1, 0.0 }
 0x296   :  { %v2020_v3 = vpop.permute.xlu1 %2019  ;;  %1651 = vrot.lane.b32.xlu0 %v921_v15, %s5933_s16  ;;  %v2748_v39 = vsel %vm2719_vm10, %v2683_v0, %v2018_v58  ;;  %v3184_v58 = vadd.f32 %v5685_v14, %v7596_v19 }
 0x298   :  { %2213 = vrot.lane.b32.xlu1 %v923_v11, %s5936_s1  ;;  %v8062_v55 = vpop.permute.xlu0 %1671  ;;  %vm3450_vm14 = vcmp.gt.f32.partialorder %v3184_v58, 0.0 }
 0x29a   :  { %v8066_v51 = vpop.permute.xlu1 %1077  ;;  %1871 = vrot.lane.b32.xlu0 %v10859_v43, %s5934_s17 }
 0x29c   :  { %1087 = vrot.lane.b32.xlu1 %v958_v61, %s5930_s13  ;;  %v2204_v4 = vpop.permute.xlu0 %2203  ;;  %v2363_v61 = vsel %vm2333_vm4, %v10790_v25, %v10860_v41  ;;  %v10862_v41 = vld [vmem:[#allocation53_spill] sm:$0xff] }
 0x29d   :  { %v2813_v57 = vsel %vm2784_vm11, %v2748_v39, %v2204_v4 }
 0x29e   :  { %v8076_v54 = vpop.permute.xlu1 %1643  ;;  %1057 = vrot.lane.b32.xlu0 %v921_v15, %s5930_s13  ;;  %5707 = vmatprep.mubr.msk.f32.mxu0 %vm2855_vm12, %v2813_v57  ;;  %v2426_v15 = vsel %vm2396_vm5, %v2363_v61, %v7929_v56  ;;  %v3514_v56 = vmul.f32 0.1, %v3184_v58  ;;  %v3513_v61 = vmul.f32 0.1, %v3179_v1 }
 0x29f   :  { %v2489_v40 = vsel %vm2459_vm6, %v2426_v15, %v7952_v46 }
 0x2a0   :  { %1653 = vrot.lane.b32.xlu1 %v923_v11, %s5933_s16  ;;  %v8081_v36 = vpop.permute.xlu0 %1443  ;;  %v2554_v25 = vsel %vm2524_vm8, %v2489_v40, %v7969_v27  ;;  %v3578_v16 = vsel %vm3450_vm14, %v3184_v58, %v3514_v56  ;;  %v10864_v58 = vld [vmem:[#allocation52_spill] sm:$0xff]  ;;  %vm10869_vm14 = vcmask 1045504  }
 0x2a1   :  { %v2619_v4 = vsel %vm2589_vm7, %v2554_v25, %v8002_v28 }
 0x2a2   :  { %v8083_v9 = vpop.permute.xlu1 %1863  ;;  %1277 = vrot.lane.b32.xlu0 %v10859_v43, %s5931_s14  ;;  %v2684_v46 = vsel %vm2654_vm9, %v2619_v4, %v1834_v50  ;;  %v10863_v50 = vld [vmem:[#allocation94_spill] sm:$0xff] }
 0x2a3   :  { %v2749_v27 = vsel %vm2719_vm10, %v2684_v46, %v2020_v3 }
 0x2a4   :  { %1873 = vrot.lane.b32.xlu1 %v10861_v29, %s5934_s17  ;;  %v8098_v0 = vpop.permute.xlu0 %1673 }
 0x2a5   :  { %v5688_v14 = vpop.f32.mrb[14].mxu0 }
 0x2a6   :  { %v8102_v39 = vpop.permute.xlu1 %1079  ;;  %v3194_v47 = vadd.f32 %v5688_v14, %v7596_v19  ;;  %v3188_v57 = vpop.f32.mrb[15].mxu0  ;;  %1843 = vrot.lane.b32.xlu0 %v10862_v41, %s5934_s17 }
 0x2a7   :  { %v3189_v15 = vadd.f32 %v7596_v19, %v3188_v57  ;;  %v3577_v19 = vsel %vm3449_vm15, %v3179_v1, %v3513_v61  ;;  %vm10870_vm15 = vcmask 1043456  }
 0x2a8   :  { %1059 = vrot.lane.b32.xlu1 %v923_v11, %s5930_s13  ;;  %vm3452_vm13 = vcmp.gt.f32.partialorder %v3194_v47, 0.0  ;;  %v3516_v28 = vmul.f32 0.1, %v3194_v47  ;;  %v2206_v40 = vpop.permute.xlu0 %2205 }
 0x2a9   :  { %vm3451_vm2 = vcmp.gt.f32.partialorder %v3189_v15, 0.0  ;;  %v3515_v25 = vmul.f32 0.1, %v3189_v15  ;;  %v2814_v14 = vsel %vm2784_vm11, %v2749_v27, %v2206_v40 }
 0x2aa   :  { %v8114_v24 = vpop.permute.xlu1 %1645  ;;  %v3580_v35 = vsel %vm3452_vm13, %v3194_v47, %v3516_v28  ;;  %2057 = vrot.lane.b32.xlu0 %v10863_v50, %s5935_s27  ;;  %5708 = vmatmul.mubr.msk.f32.gmra.mrb[28].mxu0 %vm2855_vm12, %v2814_v14  ;;  %v959_v28 = vrot.slane %v10859_v43, 2  ;;  %vm10871_vm13 = vcmask 1044480  }
 0x2ab   :  { %v3636_v11 = vmax.f32 %v3578_v16, %v3580_v35  ;;  %v3579_v4 = vsel %vm3451_vm2, %v3189_v15, %v3515_v25  ;;  %v10866_v15 = vld [vmem:[#allocation99_spill] sm:$0xff]  ;;  %v960_v25 = vrot.slane %v10861_v29, 2  ;;  %vm10872_vm2 = vmmov %vm10869_vm14 }
 0x2ac   :  { %1279 = vrot.lane.b32.xlu1 %v10861_v29, %s5931_s14  ;;  %v3635_v3 = vmax.f32 %v3577_v19, %v3579_v4  ;;  %v8121_v57 = vpop.permute.xlu0 %1269 }
 0x2ad   :  { %v3744_v46 = vrot.slane %v3636_v11, 1  ;;  %v8149_v52 = vsel %vm10869_vm14, %v959_v28, %v960_v25  ;;  %vm10879_vm14 = vmmov %vm10872_vm2 }
 0x2ae   :  { %v8123_v27 = vpop.permute.xlu1 %1865  ;;  %v3680_v40 = vrot.slane %v3635_v3, 1  ;;  %1249 = vrot.lane.b32.xlu0 %v10862_v41, %s5931_s14 }
 0x2af   :  { %v3776_v35 = vmax.f32 %v3636_v11, %v3744_v46 }
 0x2b0   :  { %1845 = vrot.lane.b32.xlu1 %v10864_v58, %s5934_s17  ;;  %v3712_v56 = vmax.f32 %v3635_v3, %v3680_v40  ;;  %v8129_v1 = vpop.permute.xlu0 %5887 }
 0x2b1   :  { %10865 = vst [vmem:[#allocation10_spill] sm:$0xff] %v8129_v1  ;;  %v3920_v3 = vrot.slane %v3776_v35, 4  ;;  %v3952_v40 = vrot.slane %v3776_v35, 5  ;;  %v3984_v29 = vrot.slane %v3776_v35, 6 }
 0x2b2   :  { %v8131_v16 = vpop.permute.xlu1 %1241  ;;  %v3808_v47 = vrot.slane %v3712_v56, 1  ;;  %v3840_v61 = vrot.slane %v3712_v56, 2  ;;  %1481 = vrot.lane.b32.xlu0 %v10863_v50, %s5932_s15  ;;  %v3872_v14 = vrot.slane %v3712_v56, 3 }
 0x2b4   :  { %2059 = vrot.lane.b32.xlu1 %v10866_v15, %s5935_s27  ;;  %v4048_v19 = vsel %vm168_vm0, %v3712_v56, %v3808_v47  ;;  %v2050_v4 = vpop.permute.xlu0 %2049 }
 0x2b5   :  { %v4065_v11 = vsel %vm10621_vm1, %v4048_v19, %v3840_v61  ;;  %v4016_v61 = vrot.slane %v3776_v35, 7 }
 0x2b6   :  { %v8141_v46 = vpop.permute.xlu1 %1473  ;;  %2029 = vrot.lane.b32.xlu0 %v10867_v21, %s5935_s27  ;;  %v4082_v50 = vsel %vm10868_vm3, %v4065_v11, %v3872_v14  ;;  %v2376_v14 = vsel %vm2333_vm4, %v6576_v49, %v10873_v48  ;;  %vm10874_vm3 = vcmask 1046528   ;;  %v10877_v11 = vld [vmem:[#allocation95_spill] sm:$0xff] }
 0x2b7   :  { %v4098_v56 = vsel %vm10870_vm15, %v4082_v50, %v3920_v3  ;;  %v2439_v3 = vsel %vm2396_vm5, %v2376_v14, %v7979_v38  ;;  %v10880_v14 = vld [vmem:[#allocation111_spill] sm:$0xff]  ;;  %vm10882_vm15 = vmmov %vm10872_vm2 }
 0x2b8   :  { %1251 = vrot.lane.b32.xlu1 %v10864_v58, %s5931_s14  ;;  %v8152_v47 = vpop.permute.xlu0 %1271  ;;  %v4115_v19 = vsel %vm10871_vm13, %v4098_v56, %v3952_v40  ;;  %v2504_v35 = vsel %vm2459_vm6, %v2439_v3, %v8011_v22  ;;  %v962_v40 = vrot.slane %v10877_v11, 2  ;;  %v925_v56 = vrot.slane %v10864_v58, 2  ;;  %vm10886_vm13 = vmmov %vm10872_vm2 }
 0x2b9   :  { %v4131_v43 = vsel %vm10872_vm2, %v4115_v19, %v3984_v29  ;;  %v2569_v48 = vsel %vm2524_vm8, %v2504_v35, %v8038_v7  ;;  %v2364_v3 = vsel %vm2333_vm4, %v10793_v42, %v10880_v14  ;;  %v10881_v35 = vld [vmem:[#allocation114_spill] sm:$0xff]  ;;  %v10599_v42 = vunpack.i.h.bf16 %v8129_v1 }
 0x2ba   :  { %v8155_v20 = vpop.permute.xlu1 %2051  ;;  %2243 = vrot.lane.b32.xlu0 %v8149_v52, %s5936_s1  ;;  %v8164_v28 = vsel %vm10874_vm3, %v4131_v43, %v4016_v61  ;;  %v924_v43 = vrot.slane %v10862_v41, 2  ;;  %v2634_v38 = vsel %vm2589_vm7, %v2569_v48, %v8062_v55  ;;  %v963_v19 = vsel %vm10879_vm14, %v960_v25, %v962_v40  ;;  %v10883_v14 = vld [vmem:[#allocation126_spill] sm:$0xff] }
 0x2bb   :  { %10875 = vst [vmem:[#allocation24_spill] sm:$0xff] %v8164_v28  ;;  %v2699_v22 = vsel %vm2654_vm9, %v2634_v38, %v8083_v9  ;;  %v2365_v55 = vsel %vm2333_vm4, %v10795_v32, %v10881_v35  ;;  %v10602_v40 = vunpack.i.l.bf16 %v8129_v1  ;;  %v10893_v28 = vld [vmem:[#allocation125_spill] sm:$0xff]  ;;  %v10894_v41 = vld [vmem:[#allocation66_spill] sm:$0xff] }
 0x2bc   :  { %1483 = vrot.lane.b32.xlu1 %v10866_v15, %s5932_s15  ;;  %v8172_v29 = vpop.permute.xlu0 %5892  ;;  %v10878_v15 = vld [vmem:[#allocation68_spill] sm:$0xff]  ;;  %v2764_v7 = vsel %vm2719_vm10, %v2699_v22, %v2050_v4  ;;  %v926_v48 = vsel %vm10882_vm15, %v924_v43, %v925_v56  ;;  %v2427_v4 = vsel %vm2396_vm5, %v2364_v3, %v7999_v33  ;;  %v2428_v25 = vsel %vm2396_vm5, %v2365_v55, %v8014_v18 }
 0x2bd   :  { %10876 = vst [vmem:[#allocation15_spill] sm:$0xff] %v8172_v29  ;;  %v2490_v32 = vsel %vm2459_vm6, %v2427_v4, %v8032_v12  ;;  %v2491_v43 = vsel %vm2459_vm6, %v2428_v25, %v8040_v53  ;;  %v10598_v33 = vunpack.i.h.bf16 %v8172_v29  ;;  %v10601_v18 = vunpack.i.l.bf16 %v8172_v29 }
 0x2be   :  { %v8177_v50 = vpop.permute.xlu1 %1243  ;;  %1453 = vrot.lane.b32.xlu0 %v10867_v21, %s5932_s15  ;;  %v2555_v22 = vsel %vm2524_vm8, %v2490_v32, %v8050_v5  ;;  %v2377_v12 = vsel %vm2333_vm4, %v6573_v26, %v10883_v14 }
 0x2bf   :  { %v2620_v53 = vsel %vm2589_vm7, %v2555_v22, %v8076_v54  ;;  %v2440_v54 = vsel %vm2396_vm5, %v2377_v12, %v7990_v60 }
 0x2c0   :  { %2031 = vrot.lane.b32.xlu1 %v10878_v15, %s5935_s27  ;;  %v2236_v61 = vpop.permute.xlu0 %2235  ;;  %v2505_v25 = vsel %vm2459_vm6, %v2440_v54, %v8024_v13 }
 0x2c1   :  { %v8197_v21 = vpop.f32.mrb[16].mxu0  ;;  %v2829_v9 = vsel %vm2784_vm11, %v2764_v7, %v2236_v61  ;;  %v2556_v7 = vsel %vm2524_vm8, %v2491_v43, %v8081_v36  ;;  %v2685_v36 = vsel %vm2654_vm9, %v2620_v53, %v10602_v40  ;;  %v10885_v43 = vld [vmem:[#allocation62_spill] sm:$0xff] }
 0x2c2   :  { %v8199_v11 = vpop.permute.xlu1 %1475  ;;  %v3198_v38 = vpop.f32.mrb[17].mxu0  ;;  %1683 = vrot.lane.b32.xlu0 %v8149_v52, %s5933_s16  ;;  %5731 = vmatprep.mubr.msk.f32.mxu1 %vm2855_vm12, %v2829_v9  ;;  %v2621_v3 = vsel %vm2589_vm7, %v2556_v7, %v8114_v24  ;;  %v2750_v24 = vsel %vm2719_vm10, %v2685_v36, %v10601_v18  ;;  %v927_v22 = vrot.slane %v10885_v43, 2  ;;  %v2570_v7 = vsel %vm2524_vm8, %v2505_v25, %v8046_v31 }
 0x2c3   :  { %v2686_v9 = vsel %vm2654_vm9, %v2621_v3, %v10599_v42  ;;  %v2635_v13 = vsel %vm2589_vm7, %v2570_v7, %v8098_v0  ;;  %v10890_v42 = vld [vmem:[#allocation97_spill] sm:$0xff] }
 0x2c4   :  { %2245 = vrot.lane.b32.xlu1 %v963_v19, %s5936_s1  ;;  %v8223_v61 = vpop.permute.xlu0 %1445  ;;  %v2751_v4 = vsel %vm2719_vm10, %v2686_v9, %v10598_v33  ;;  %v2700_v12 = vsel %vm2654_vm9, %v2635_v13, %v8123_v27  ;;  %v928_v3 = vsel %vm10886_vm13, %v925_v56, %v927_v22  ;;  %v10887_v27 = vld [vmem:[#allocation92_spill] sm:$0xff]  ;;  %vm10895_vm13 = vcmask 1042432  }
 0x2c5   :  { %v2765_v31 = vsel %vm2719_vm10, %v2700_v12, %v8155_v20  ;;  %v10889_v12 = vld [vmem:[#allocation58_spill] sm:$0xff] }
 0x2c6   :  { %v8232_v35 = vpop.permute.xlu1 %5897  ;;  %2215 = vrot.lane.b32.xlu0 %v926_v48, %s5936_s1 }
 0x2c7   :  { %10884 = vst [vmem:[#allocation14_spill] sm:$0xff] %v8232_v35  ;;  %v10597_v55 = vunpack.i.h.bf16 %v8232_v35  ;;  %v10600_v5 = vunpack.i.l.bf16 %v8232_v35 }
 0x2c8   :  { %1455 = vrot.lane.b32.xlu1 %v10878_v15, %s5932_s15  ;;  %v8255_v32 = vpop.permute.xlu0 %1675 }
 0x2c9   :  { %v2815_v60 = vsel %vm2784_vm11, %v2750_v24, %v10600_v5  ;;  %v2816_v15 = vsel %vm2784_vm11, %v2751_v4, %v10597_v55  ;;  %v8306_v4 = vld [vmem:[%s10407_s2] ss:$0 sm:$0xff] }
 0x2ca   :  { %v8266_v14 = vpop.permute.xlu1 %1081  ;;  %5710 = vmatprep.mubr.msk.f32.mxu0 %vm2855_vm12, %v2815_v60  ;;  %1089 = vrot.lane.b32.xlu0 %v8149_v52, %s5930_s13  ;;  %v3199_v25 = vadd.f32 %v8306_v4, %v3198_v38 }
 0x2cb   :  { %5711 = vmatmul.mubr.msk.f32.gmra.mrb[30].mxu0 %vm2855_vm12, %v2816_v15 }
 0x2cc   :  { %1685 = vrot.lane.b32.xlu1 %v963_v19, %s5933_s16  ;;  %v2238_v53 = vpop.permute.xlu0 %2237  ;;  %vm3453_vm3 = vcmp.gt.f32.partialorder %v3199_v25, 0.0 }
 0x2cd   :  { %v2830_v36 = vsel %vm2784_vm11, %v2765_v31, %v2238_v53 }
 0x2ce   :  { %v8281_v9 = vpop.permute.xlu1 %1647  ;;  %1655 = vrot.lane.b32.xlu0 %v926_v48, %s5933_s16  ;;  %5732 = vmatmul.mubr.msk.f32.vlgmr.msra.gmra.mrb[0].mxu1 %vm2855_vm12, %v2830_v36 }
 0x2d0   :  { %2217 = vrot.lane.b32.xlu1 %v928_v3, %s5936_s1  ;;  %v8286_v52 = vpop.permute.xlu0 %1447 }
 0x2d2   :  { %v8288_v0 = vpop.permute.xlu1 %1867  ;;  %1875 = vrot.lane.b32.xlu0 %v10887_v27, %s5934_s17 }
 0x2d4   :  { %1091 = vrot.lane.b32.xlu1 %v963_v19, %s5930_s13  ;;  %v8293_v20 = vpop.permute.xlu0 %1677  ;;  %v3204_v19 = vadd.f32 %v8306_v4, %v8197_v21  ;;  %v3517_v21 = vmul.f32 0.1, %v3199_v25 }
 0x2d6   :  { %v8295_v56 = vpop.permute.xlu1 %1083  ;;  %1061 = vrot.lane.b32.xlu0 %v926_v48, %s5930_s13  ;;  %v10888_v48 = vld [vmem:[#allocation91_spill] sm:$0xff]  ;;  %v3518_v22 = vmul.f32 0.1, %v3204_v19  ;;  %vm3454_vm2 = vcmp.gt.f32.partialorder %v3204_v19, 0.0  ;;  %v3581_v5 = vsel %vm3453_vm3, %v3199_v25, %v3517_v21  ;;  %vm10897_vm3 = vcmask 1043456  }
 0x2d8   :  { %1657 = vrot.lane.b32.xlu1 %v928_v3, %s5933_s16  ;;  %v8299_v54 = vpop.permute.xlu0 %1053 }
 0x2da   :  { %v8301_v24 = vpop.permute.xlu1 %1649  ;;  %1281 = vrot.lane.b32.xlu0 %v10887_v27, %s5931_s14 }
 0x2dc   :  { %1877 = vrot.lane.b32.xlu1 %v10888_v48, %s5934_s17  ;;  %v8315_v60 = vpop.permute.xlu0 %1273 }
 0x2dd   :  { %v5694_v15 = vpop.f32.mrb[18].mxu0 }
 0x2de   :  { %v8317_v43 = vpop.permute.xlu1 %1869  ;;  %v3214_v7 = vadd.f32 %v8306_v4, %v5694_v15  ;;  %v3208_v13 = vpop.f32.mrb[19].mxu0  ;;  %1847 = vrot.lane.b32.xlu0 %v10889_v12, %s5934_s17  ;;  %v3582_v15 = vsel %vm3454_vm2, %v3204_v19, %v3518_v22  ;;  %v10891_v19 = vld [vmem:[#allocation57_spill] sm:$0xff]  ;;  %vm10896_vm2 = vcmask 1045504  }
 0x2df   :  { %v3209_v31 = vadd.f32 %v8306_v4, %v3208_v13 }
 0x2e0   :  { %1063 = vrot.lane.b32.xlu1 %v928_v3, %s5930_s13  ;;  %vm3456_vm14 = vcmp.gt.f32.partialorder %v3214_v7, 0.0  ;;  %v3520_v38 = vmul.f32 0.1, %v3214_v7  ;;  %v8324_v53 = vpop.permute.xlu0 %1839 }
 0x2e1   :  { %vm3455_vm15 = vcmp.gt.f32.partialorder %v3209_v31, 0.0  ;;  %v3519_v36 = vmul.f32 0.1, %v3209_v31 }
 0x2e2   :  { %v8326_v55 = vpop.permute.xlu1 %1055  ;;  %v3584_v33 = vsel %vm3456_vm14, %v3214_v7, %v3520_v38  ;;  %2061 = vrot.lane.b32.xlu0 %v10890_v42, %s5935_s27  ;;  %v965_v38 = vrot.slane %v10888_v48, 2  ;;  %vm10898_vm14 = vcmask 1044480  }
 0x2e3   :  { %v3638_v18 = vmax.f32 %v3582_v15, %v3584_v33  ;;  %v3583_v40 = vsel %vm3455_vm15, %v3209_v31, %v3519_v36  ;;  %vm10899_vm15 = vmmov %vm10896_vm2 }
 0x2e4   :  { %1283 = vrot.lane.b32.xlu1 %v10888_v48, %s5931_s14  ;;  %v3637_v3 = vmax.f32 %v3581_v5, %v3583_v40  ;;  %v2054_v13 = vpop.permute.xlu0 %2053  ;;  %v10892_v40 = vld [vmem:[#allocation100_spill] sm:$0xff]  ;;  %v964_v5 = vrot.slane %v10887_v27, 2 }
 0x2e5   :  { %v3745_v35 = vrot.slane %v3638_v18, 1 }
 0x2e6   :  { %v8332_v29 = vpop.permute.xlu1 %1275  ;;  %v3681_v1 = vrot.slane %v3637_v3, 1  ;;  %1253 = vrot.lane.b32.xlu0 %v10889_v12, %s5931_s14 }
 0x2e7   :  { %v3777_v33 = vmax.f32 %v3638_v18, %v3745_v35 }
 0x2e8   :  { %1849 = vrot.lane.b32.xlu1 %v10891_v19, %s5934_s17  ;;  %v3713_v22 = vmax.f32 %v3637_v3, %v3681_v1  ;;  %v8338_v7 = vpop.permute.xlu0 %1245 }
 0x2e9   :  { %v3921_v18 = vrot.slane %v3777_v33, 4  ;;  %v3953_v58 = vrot.slane %v3777_v33, 5 }
 0x2ea   :  { %v8340_v25 = vpop.permute.xlu1 %1841  ;;  %v3809_v21 = vrot.slane %v3713_v22, 1  ;;  %v3841_v31 = vrot.slane %v3713_v22, 2  ;;  %1485 = vrot.lane.b32.xlu0 %v10890_v42, %s5932_s15  ;;  %v3873_v36 = vrot.slane %v3713_v22, 3  ;;  %v2378_v42 = vsel %vm2333_vm4, %v10801_v44, %v10893_v28 }
 0x2eb   :  { %v2441_v48 = vsel %vm2396_vm5, %v2378_v42, %v8066_v51  ;;  %v4017_v44 = vrot.slane %v3777_v33, 7 }
 0x2ec   :  { %2063 = vrot.lane.b32.xlu1 %v10892_v40, %s5935_s27  ;;  %v4049_v1 = vsel %vm168_vm0, %v3713_v22, %v3809_v21  ;;  %v8349_v15 = vpop.permute.xlu0 %1477  ;;  %v3985_v22 = vrot.slane %v3777_v33, 6  ;;  %v966_v21 = vsel %vm10896_vm2, %v964_v5, %v965_v38  ;;  %v2506_v28 = vsel %vm2459_vm6, %v2441_v48, %v8121_v57  ;;  %v10902_v48 = vld [vmem:[#allocation98_spill] sm:$0xff] }
 0x2ed   :  { %v4066_v35 = vsel %vm10621_vm1, %v4049_v1, %v3841_v31  ;;  %v967_v33 = vrot.slane %v10902_v48, 2 }
 0x2ee   :  { %v2056_v3 = vpop.permute.xlu1 %2055  ;;  %2033 = vrot.lane.b32.xlu0 %v10894_v41, %s5935_s27  ;;  %v4083_v27 = vsel %vm10895_vm13, %v4066_v35, %v3873_v36  ;;  %v2571_v36 = vsel %vm2524_vm8, %v2506_v28, %v8141_v46  ;;  %vm10900_vm13 = vcmask 1046528  }
 0x2ef   :  { %v4099_v31 = vsel %vm10897_vm3, %v4083_v27, %v3921_v18  ;;  %v2636_v42 = vsel %vm2589_vm7, %v2571_v36, %v8255_v32  ;;  %vm10905_vm3 = vmmov %vm10896_vm2 }
 0x2f0   :  { %1255 = vrot.lane.b32.xlu1 %v10891_v19, %s5931_s14  ;;  %v2026_v1 = vpop.permute.xlu0 %2025  ;;  %v4116_v23 = vsel %vm10898_vm14, %v4099_v31, %v3953_v58  ;;  %v2701_v57 = vsel %vm2654_vm9, %v2636_v42, %v8288_v0  ;;  %v10904_v0 = vld [vmem:[#allocation73_spill] sm:$0xff]  ;;  %vm10907_vm14 = vmmov %vm10896_vm2 }
 0x2f1   :  { %v4132_v51 = vsel %vm10899_vm15, %v4116_v23, %v3985_v22  ;;  %v2766_v58 = vsel %vm2719_vm10, %v2701_v57, %v2054_v13  ;;  %v929_v13 = vrot.slane %v10889_v12, 2  ;;  %v10913_v12 = vld [vmem:[#allocation69_spill] sm:$0xff] }
 0x2f2   :  { %v8369_v35 = vpop.permute.xlu1 %1247  ;;  %2247 = vrot.lane.b32.xlu0 %v966_v21, %s5936_s1  ;;  %v8376_v27 = vsel %vm10900_vm13, %v4132_v51, %v4017_v44  ;;  %v10903_v44 = vld [vmem:[#allocation128_spill] sm:$0xff] }
 0x2f3   :  { %10901 = vst [vmem:[#allocation20_spill] sm:$0xff] %v8376_v27  ;;  %v2379_v32 = vsel %vm2333_vm4, %v10805_v17, %v10903_v44 }
 0x2f4   :  { %1487 = vrot.lane.b32.xlu1 %v10892_v40, %s5932_s15  ;;  %v2240_v46 = vpop.permute.xlu0 %2239  ;;  %v930_v40 = vrot.slane %v10891_v19, 2  ;;  %v2442_v18 = vsel %vm2396_vm5, %v2379_v32, %v8102_v39 }
 0x2f5   :  { %v2831_v23 = vsel %vm2784_vm11, %v2766_v58, %v2240_v46  ;;  %v2507_v31 = vsel %vm2459_vm6, %v2442_v18, %v8152_v47 }
 0x2f6   :  { %v8385_v5 = vpop.permute.xlu1 %1479  ;;  %1457 = vrot.lane.b32.xlu0 %v10894_v41, %s5932_s15  ;;  %5734 = vmatprep.mubr.msk.f32.mxu1 %vm2855_vm12, %v2831_v23  ;;  %v968_v41 = vsel %vm10896_vm2, %v965_v38, %v967_v33  ;;  %v2572_v51 = vsel %vm2524_vm8, %v2507_v31, %v8199_v11  ;;  %v931_v39 = vsel %vm10905_vm3, %v929_v13, %v930_v40 }
 0x2f7   :  { %v2637_v57 = vsel %vm2589_vm7, %v2572_v51, %v8293_v20  ;;  %v2492_v38 = vsel %vm2459_vm6, %v7034_v63, %v8131_v16 }
 0x2f8   :  { %2035 = vrot.lane.b32.xlu1 %v10904_v0, %s5935_s27  ;;  %v8399_v22 = vpop.permute.xlu0 %1449  ;;  %v2702_v47 = vsel %vm2654_vm9, %v2637_v57, %v8317_v43  ;;  %v2557_v11 = vsel %vm2524_vm8, %v2492_v38, %v8223_v61  ;;  %v10906_v43 = vld [vmem:[#allocation67_spill] sm:$0xff] }
 0x2f9   :  { %v5697_v28 = vpop.f32.mrb[20].mxu0  ;;  %v2767_v46 = vsel %vm2719_vm10, %v2702_v47, %v2056_v3  ;;  %v2622_v20 = vsel %vm2589_vm7, %v2557_v11, %v8281_v9  ;;  %v932_v3 = vrot.slane %v10906_v43, 2  ;;  %v87_v9 = vld [vmem:[%s10405_s0 + $0x1b0] sm:$0xff]  ;;  %v10909_v43 = vld [vmem:[#allocation64_spill] sm:$0xff] }
 0x2fa   :  { %v2028_v36 = vpop.permute.xlu1 %2027  ;;  %v3218_v42 = vpop.f32.mrb[21].mxu0  ;;  %1687 = vrot.lane.b32.xlu0 %v966_v21, %s5933_s16  ;;  %v2687_v63 = vsel %vm2654_vm9, %v2622_v20, %v8324_v53  ;;  %v252_v53 = vrot.slane %v87_v9, 7 }
 0x2fb   :  { %v2752_v16 = vsel %vm2719_vm10, %v2687_v63, %v2026_v1  ;;  %v933_v1 = vsel %vm10907_vm14, %v930_v40, %v932_v3 }
 0x2fc   :  { %2249 = vrot.lane.b32.xlu1 %v968_v41, %s5936_s1  ;;  %v8416_v58 = vpop.permute.xlu0 %1679  ;;  %v8456_v31 = vsel %vm168_vm0, 0.0, %v252_v53 }
 0x2fd   :  { %10908 = vst [vmem:[#allocation13_spill] sm:$0xff] %v8456_v31 }
 0x2fe   :  { %v2242_v48 = vpop.permute.xlu1 %2241  ;;  %2219 = vrot.lane.b32.xlu0 %v931_v39, %s5936_s1 }
 0x2ff   :  { %v2832_v33 = vsel %vm2784_vm11, %v2767_v46, %v2242_v48  ;;  %v3219_v46 = vadd.f32 %v8306_v4, %v3218_v42 }
 0x300   :  { %1459 = vrot.lane.b32.xlu1 %v10904_v0, %s5932_s15  ;;  %5735 = vmatmul.mubr.msk.f32.gmra.mrb[2].mxu1 %vm2855_vm12, %v2832_v33  ;;  %v2212_v61 = vpop.permute.xlu0 %2211  ;;  %v2493_v0 = vsel %vm2459_vm6, %v7063_v37, %v8177_v50 }
 0x301   :  { %v2817_v23 = vsel %vm2784_vm11, %v2752_v16, %v2212_v61  ;;  %v2558_v18 = vsel %vm2524_vm8, %v2493_v0, %v8286_v52  ;;  %v88_v52 = vld [vmem:[%s10405_s0 + $0x1b8] sm:$0xff]  ;;  %v3521_v42 = vmul.f32 0.1, %v3219_v46  ;;  %vm3457_vm2 = vcmp.gt.f32.partialorder %v3219_v46, 0.0 }
 0x302   :  { %v8436_v44 = vpop.permute.xlu1 %1451  ;;  %1093 = vrot.lane.b32.xlu0 %v966_v21, %s5930_s13  ;;  %5713 = vmatprep.mubr.msk.f32.mxu0 %vm2855_vm12, %v2817_v23  ;;  %v2623_v21 = vsel %vm2589_vm7, %v2558_v18, %v8301_v24 }
 0x303   :  { %v2688_v40 = vsel %vm2654_vm9, %v2623_v21, %v8340_v25  ;;  %v253_v25 = vrot.slane %v88_v52, 7 }
 0x304   :  { %1689 = vrot.lane.b32.xlu1 %v968_v41, %s5933_s16  ;;  %v8441_v32 = vpop.permute.xlu0 %1085  ;;  %v2753_v37 = vsel %vm2719_vm10, %v2688_v40, %v2028_v36 }
 0x305   :  { %v8480_v47 = vsel %vm168_vm0, %v252_v53, %v253_v25  ;;  %v8507_v21 = vsel %vm168_vm0, %v253_v25, 0.0  ;;  %v10910_v25 = vld [vmem:[#allocation63_spill] sm:$0xff] }
 0x306   :  { %v8447_v13 = vpop.permute.xlu1 %1681  ;;  %1659 = vrot.lane.b32.xlu0 %v931_v39, %s5933_s16  ;;  %v628_v48 = vrot.slane %v8480_v47, 1 }
 0x308   :  { %2221 = vrot.lane.b32.xlu1 %v933_v1, %s5936_s1  ;;  %v8460_v51 = vpop.permute.xlu0 %1651 }
 0x30a   :  { %v2214_v50 = vpop.permute.xlu1 %2213  ;;  %1879 = vrot.lane.b32.xlu0 %v8456_v31, %s5934_s17 }
 0x30b   :  { %v2818_v57 = vsel %vm2784_vm11, %v2753_v37, %v2214_v50  ;;  %v3585_v50 = vsel %vm3457_vm2, %v3219_v46, %v3521_v42  ;;  %vm10916_vm2 = vcmask 1045504  }
 0x30c   :  { %1095 = vrot.lane.b32.xlu1 %v968_v41, %s5930_s13  ;;  %5714 = vmatmul.mubr.msk.f32.gmra.mrb[32].mxu0 %vm2855_vm12, %v2818_v57  ;;  %v8471_v24 = vpop.permute.xlu0 %1871  ;;  %v3224_v41 = vadd.f32 %v8306_v4, %v5697_v28 }
 0x30e   :  { %v8473_v38 = vpop.permute.xlu1 %1087  ;;  %1065 = vrot.lane.b32.xlu0 %v931_v39, %s5930_s13  ;;  %v627_v39 = vrot.slane %v8456_v31, 1  ;;  %v3522_v16 = vmul.f32 0.1, %v3224_v41  ;;  %vm3458_vm15 = vcmp.gt.f32.partialorder %v3224_v41, 0.0 }
 0x310   :  { %1661 = vrot.lane.b32.xlu1 %v933_v1, %s5933_s16  ;;  %v8477_v36 = vpop.permute.xlu0 %1057  ;;  %v629_v9 = vsel %vm10900_vm13, %v627_v39, %v628_v48  ;;  %v3586_v40 = vsel %vm3458_vm15, %v3224_v41, %v3522_v16  ;;  %vm10911_vm15 = vmmov %vm10900_vm13  ;;  %vm10914_vm13 = vcmask 1042432  }
 0x312   :  { %v8482_v11 = vpop.permute.xlu1 %1653  ;;  %1285 = vrot.lane.b32.xlu0 %v8456_v31, %s5931_s14 }
 0x314   :  { %1881 = vrot.lane.b32.xlu1 %v8480_v47, %s5934_s17  ;;  %v8492_v20 = vpop.permute.xlu0 %1277 }
 0x315   :  { %v5700_v33 = vpop.f32.mrb[22].mxu0 }
 0x316   :  { %v8494_v63 = vpop.permute.xlu1 %1873  ;;  %v3234_v28 = vadd.f32 %v8306_v4, %v5700_v33  ;;  %v3228_v61 = vpop.f32.mrb[23].mxu0  ;;  %1851 = vrot.lane.b32.xlu0 %v10909_v43, %s5934_s17  ;;  %v630_v33 = vrot.slane %v8507_v21, 1 }
 0x317   :  { %v3229_v3 = vadd.f32 %v8306_v4, %v3228_v61 }
 0x318   :  { %1067 = vrot.lane.b32.xlu1 %v933_v1, %s5930_s13  ;;  %vm3460_vm3 = vcmp.gt.f32.partialorder %v3234_v28, 0.0  ;;  %v3524_v23 = vmul.f32 0.1, %v3234_v28  ;;  %v8502_v53 = vpop.permute.xlu0 %1843  ;;  %v8522_v16 = vsel %vm10911_vm15, %v628_v48, %v630_v33  ;;  %vm10919_vm15 = vmmov %vm10916_vm2 }
 0x319   :  { %vm3459_vm14 = vcmp.gt.f32.partialorder %v3229_v3, 0.0  ;;  %v3523_v0 = vmul.f32 0.1, %v3229_v3 }
 0x31a   :  { %v8504_v18 = vpop.permute.xlu1 %1059  ;;  %v3588_v37 = vsel %vm3460_vm3, %v3234_v28, %v3524_v23  ;;  %2065 = vrot.lane.b32.xlu0 %v629_v9, %s5935_s27  ;;  %vm10917_vm3 = vcmask 1043456  }
 0x31b   :  { %v3640_v1 = vmax.f32 %v3586_v40, %v3588_v37  ;;  %v3587_v52 = vsel %vm3459_vm14, %v3229_v3, %v3523_v0  ;;  %v969_v0 = vrot.slane %v8456_v31, 2  ;;  %vm10918_vm14 = vcmask 1044480  }
 0x31c   :  { %1287 = vrot.lane.b32.xlu1 %v8480_v47, %s5931_s14  ;;  %v3639_v57 = vmax.f32 %v3585_v50, %v3587_v52  ;;  %v2058_v39 = vpop.permute.xlu0 %2057 }
 0x31d   :  { %v3746_v61 = vrot.slane %v3640_v1, 1 }
 0x31e   :  { %v8513_v27 = vpop.permute.xlu1 %1279  ;;  %v3682_v19 = vrot.slane %v3639_v57, 1  ;;  %1257 = vrot.lane.b32.xlu0 %v10909_v43, %s5931_s14 }
 0x31f   :  { %v3778_v28 = vmax.f32 %v3640_v1, %v3746_v61 }
 0x320   :  { %1853 = vrot.lane.b32.xlu1 %v10910_v25, %s5934_s17  ;;  %v3714_v41 = vmax.f32 %v3639_v57, %v3682_v19  ;;  %v8519_v46 = vpop.permute.xlu0 %1249  ;;  %v10912_v57 = vld [vmem:[#allocation127_spill] sm:$0xff] }
 0x321   :  { %v3922_v48 = vrot.slane %v3778_v28, 4  ;;  %v2380_v33 = vsel %vm2333_vm4, %v10812_v45, %v10912_v57  ;;  %v3954_v61 = vrot.slane %v3778_v28, 5  ;;  %v4018_v17 = vrot.slane %v3778_v28, 7 }
 0x322   :  { %v8524_v42 = vpop.permute.xlu1 %1845  ;;  %v3810_v3 = vrot.slane %v3714_v41, 1  ;;  %v3842_v23 = vrot.slane %v3714_v41, 2  ;;  %1489 = vrot.lane.b32.xlu0 %v629_v9, %s5932_s15  ;;  %v3874_v19 = vrot.slane %v3714_v41, 3  ;;  %v2443_v40 = vsel %vm2396_vm5, %v2380_v33, %v8266_v14 }
 0x323   :  { %v2508_v45 = vsel %vm2459_vm6, %v2443_v40, %v8315_v60  ;;  %v934_v40 = vrot.slane %v10909_v43, 2 }
 0x324   :  { %2067 = vrot.lane.b32.xlu1 %v8522_v16, %s5935_s27  ;;  %v4050_v37 = vsel %vm168_vm0, %v3714_v41, %v3810_v3  ;;  %v8532_v50 = vpop.permute.xlu0 %1481  ;;  %v10915_v41 = vrot.slane %v8480_v47, 2  ;;  %v2573_v14 = vsel %vm2524_vm8, %v2508_v45, %v8349_v15  ;;  %v10922_v45 = vld [vmem:[#allocation113_spill] sm:$0xff] }
 0x325   :  { %v4067_v1 = vsel %vm10621_vm1, %v4050_v37, %v3842_v23  ;;  %v3986_v23 = vrot.slane %v3778_v28, 6 }
 0x326   :  { %v2060_v52 = vpop.permute.xlu1 %2059  ;;  %2037 = vrot.lane.b32.xlu0 %v10913_v12, %s5935_s27  ;;  %v4084_v31 = vsel %vm10914_vm13, %v4067_v1, %v3874_v19  ;;  %v8547_v3 = vsel %vm10916_vm2, %v969_v0, %v10915_v41  ;;  %v2638_v0 = vsel %vm2589_vm7, %v2573_v14, %v8416_v58  ;;  %vm10920_vm13 = vcmask 1046528  }
 0x327   :  { %v4100_v37 = vsel %vm10917_vm3, %v4084_v31, %v3922_v48  ;;  %v2703_v60 = vsel %vm2654_vm9, %v2638_v0, %v8471_v24  ;;  %v935_v48 = vrot.slane %v10910_v25, 2  ;;  %vm10925_vm3 = vmmov %vm10916_vm2 }
 0x328   :  { %755 = vrot.lane.b32.xlu1 %v629_v9, %s5929_s23  ;;  %v2030_v57 = vpop.permute.xlu0 %2029  ;;  %v4117_v19 = vsel %vm10918_vm14, %v4100_v37, %v3954_v61  ;;  %v2768_v15 = vsel %vm2719_vm10, %v2703_v60, %v2058_v39  ;;  %vm10928_vm14 = vmmov %vm10916_vm2 }
 0x329   :  { %v4133_v9 = vsel %vm10919_vm15, %v4117_v19, %v3986_v23  ;;  %v8588_v61 = vsel %vm10916_vm2, %v934_v40, %v935_v48 }
 0x32a   :  { %v8555_v1 = vpop.permute.xlu1 %1251  ;;  %2251 = vrot.lane.b32.xlu0 %v8547_v3, %s5936_s1  ;;  %v8563_v31 = vsel %vm10920_vm13, %v4133_v9, %v4018_v17  ;;  %v10921_v17 = vld [vmem:[#allocation130_spill] sm:$0xff] }
 0x32c   :  { %1461 = vrot.lane.b32.xlu1 %v10913_v12, %s5932_s15  ;;  %v2244_v28 = vpop.permute.xlu0 %2243  ;;  %v2381_v12 = vsel %vm2333_vm4, %v10816_v6, %v10921_v17  ;;  %v2366_v6 = vsel %vm2333_vm4, %v10817_v59, %v10922_v45 }
 0x32d   :  { %v2833_v58 = vsel %vm2784_vm11, %v2768_v15, %v2244_v28  ;;  %v2444_v24 = vsel %vm2396_vm5, %v2381_v12, %v8295_v56  ;;  %v2429_v56 = vsel %vm2396_vm5, %v2366_v6, %v8299_v54  ;;  %v10927_v12 = vld [vmem:[#allocation70_spill] sm:$0xff] }
 0x32e   :  { %v8573_v33 = vpop.permute.xlu1 %1483  ;;  %1259 = vrot.lane.b32.xlu0 %v10910_v25, %s5931_s14  ;;  %5737 = vmatprep.mubr.msk.f32.mxu1 %vm2855_vm12, %v2833_v58  ;;  %v2509_v41 = vsel %vm2459_vm6, %v2444_v24, %v8332_v29  ;;  %v972_v29 = vrot.slane %v8507_v21, 2  ;;  %v2494_v59 = vsel %vm2459_vm6, %v2429_v56, %v8338_v7  ;;  %v10923_v21 = vld [vmem:[#allocation78_spill] sm:$0xff]  ;;  %v937_v24 = vrot.slane %v10927_v12, 2 }
 0x32f   :  { %v2574_v19 = vsel %vm2524_vm8, %v2509_v41, %v8385_v5  ;;  %v2559_v60 = vsel %vm2524_vm8, %v2494_v59, %v8399_v22  ;;  %v10924_v22 = vrot.slane %v8480_v47, 2  ;;  %v89_v41 = vld [vmem:[%s10405_s0 + $0x1c0] sm:$0xff] }
 0x330   :  { %1691 = vrot.lane.b32.xlu1 %v8547_v3, %s5933_s16  ;;  %v8585_v39 = vpop.permute.xlu0 %1453  ;;  %v2639_v9 = vsel %vm2589_vm7, %v2574_v19, %v8447_v13  ;;  %v2624_v13 = vsel %vm2589_vm7, %v2559_v60, %v8460_v51  ;;  %v255_v19 = vrot.slane %v89_v41, 7 }
 0x331   :  { %v5703_v23 = vpop.f32.mrb[24].mxu0  ;;  %v2704_v5 = vsel %vm2654_vm9, %v2639_v9, %v8494_v63  ;;  %v2689_v7 = vsel %vm2654_vm9, %v2624_v13, %v8502_v53  ;;  %v973_v63 = vsel %vm10925_vm3, %v10924_v22, %v972_v29  ;;  %v10926_v53 = vld [vmem:[#allocation116_spill] sm:$0xff] }
 0x332   :  { %v2032_v37 = vpop.permute.xlu1 %2031  ;;  %v3238_v14 = vpop.f32.mrb[25].mxu0  ;;  %1491 = vrot.lane.b32.xlu0 %v8522_v16, %s5932_s15  ;;  %v2769_v54 = vsel %vm2719_vm10, %v2704_v5, %v2060_v52  ;;  %v2754_v52 = vsel %vm2719_vm10, %v2689_v7, %v2030_v57 }
 0x333   :  { %v3239_v5 = vadd.f32 %v8306_v4, %v3238_v14 }
 0x334   :  { %2223 = vrot.lane.b32.xlu1 %v8588_v61, %s5936_s1  ;;  %v8610_v0 = vpop.permute.xlu0 %1683 }
 0x335   :  { %vm3461_vm13 = vcmp.gt.f32.partialorder %v3239_v5, 0.0 }
 0x336   :  { %v2246_v15 = vpop.permute.xlu1 %2245  ;;  %2039 = vrot.lane.b32.xlu0 %v10923_v21, %s5935_s27 }
 0x337   :  { %v2834_v28 = vsel %vm2784_vm11, %v2769_v54, %v2246_v15 }
 0x338   :  { %757 = vrot.lane.b32.xlu1 %v8522_v16, %s5929_s23  ;;  %5738 = vmatmul.mubr.msk.f32.gmra.mrb[4].mxu1 %vm2855_vm12, %v2834_v28  ;;  %v2216_v51 = vpop.permute.xlu0 %2215  ;;  %v2367_v16 = vsel %vm2333_vm4, %v10827_v62, %v10926_v53 }
 0x339   :  { %v2819_v40 = vsel %vm2784_vm11, %v2754_v52, %v2216_v51  ;;  %v2430_v17 = vsel %vm2396_vm5, %v2367_v16, %v8326_v55 }
 0x33a   :  { %v8630_v58 = vpop.permute.xlu1 %1455  ;;  %2253 = vrot.lane.b32.xlu0 %v973_v63, %s5936_s1  ;;  %5716 = vmatprep.mubr.msk.f32.mxu0 %vm2855_vm12, %v2819_v40  ;;  %v2495_v45 = vsel %vm2459_vm6, %v2430_v17, %v8369_v35  ;;  %v938_v35 = vsel %vm10928_vm14, %v935_v48, %v937_v24  ;;  %v90_v48 = vld [vmem:[%s10405_s0 + $0x1c8] sm:$0xff]  ;;  %vm10930_vm14 = vcmask 1046528  }
 0x33b   :  { %v2560_v62 = vsel %vm2524_vm8, %v2495_v45, %v8436_v44  ;;  %v256_v54 = vrot.slane %v90_v48, 7 }
 0x33c   :  { %1463 = vrot.lane.b32.xlu1 %v10923_v21, %s5932_s15  ;;  %v8641_v57 = vpop.permute.xlu0 %1089  ;;  %v2625_v55 = vsel %vm2589_vm7, %v2560_v62, %v8482_v11  ;;  %v8670_v11 = vsel %vm168_vm0, 0.0, %v255_v19 }
 0x33d   :  { %v2690_v56 = vsel %vm2654_vm9, %v2625_v55, %v8524_v42  ;;  %v632_v16 = vrot.slane %v8670_v11, 1 }
 0x33e   :  { %v8649_v6 = vpop.permute.xlu1 %1685  ;;  %1097 = vrot.lane.b32.xlu0 %v8547_v3, %s5930_s13  ;;  %v2755_v29 = vsel %vm2719_vm10, %v2690_v56, %v2032_v37  ;;  %v3244_v37 = vadd.f32 %v8306_v4, %v5703_v23  ;;  %v3525_v23 = vmul.f32 0.1, %v3239_v5 }
 0x340   :  { %1693 = vrot.lane.b32.xlu1 %v973_v63, %s5933_s16  ;;  %v8660_v9 = vpop.permute.xlu0 %1655  ;;  %v3526_v28 = vmul.f32 0.1, %v3244_v37  ;;  %vm3462_vm15 = vcmp.gt.f32.partialorder %v3244_v37, 0.0  ;;  %v3589_v12 = vsel %vm3461_vm13, %v3239_v5, %v3525_v23  ;;  %vm10932_vm13 = vmmov %vm10930_vm14 }
 0x342   :  { %v2218_v59 = vpop.permute.xlu1 %2217  ;;  %1663 = vrot.lane.b32.xlu0 %v8588_v61, %s5933_s16  ;;  %v3590_v40 = vsel %vm3462_vm15, %v3244_v37, %v3526_v28  ;;  %v8717_v37 = vsel %vm168_vm0, %v256_v54, 0.0  ;;  %vm10931_vm15 = vcmask 1042432  }
 0x343   :  { %v2820_v44 = vsel %vm2784_vm11, %v2755_v29, %v2218_v59 }
 0x344   :  { %2225 = vrot.lane.b32.xlu1 %v938_v35, %s5936_s1  ;;  %5717 = vmatmul.mubr.msk.f32.gmra.mrb[34].mxu0 %vm2855_vm12, %v2820_v44  ;;  %v8672_v42 = vpop.permute.xlu0 %1875 }
 0x346   :  { %v8674_v3 = vpop.permute.xlu1 %1091  ;;  %1883 = vrot.lane.b32.xlu0 %v8670_v11, %s5934_s17 }
 0x348   :  { %1099 = vrot.lane.b32.xlu1 %v973_v63, %s5930_s13  ;;  %v8684_v60 = vpop.permute.xlu0 %1061  ;;  %v8696_v63 = vsel %vm168_vm0, %v255_v19, %v256_v54 }
 0x349   :  { %10929 = vst [vmem:[#allocation29_spill] sm:$0xff] %v8696_v63  ;;  %v633_v17 = vrot.slane %v8696_v63, 1 }
 0x34a   :  { %v8686_v15 = vpop.permute.xlu1 %1657  ;;  %1069 = vrot.lane.b32.xlu0 %v8588_v61, %s5930_s13 }
 0x34b   :  { %v5706_v13 = vpop.f32.mrb[26].mxu0  ;;  %v634_v29 = vsel %vm10930_vm14, %v632_v16, %v633_v17  ;;  %vm10936_vm14 = vcmask 1045504  }
 0x34c   :  { %v3254_v21 = vadd.f32 %v8306_v4, %v5706_v13  ;;  %1665 = vrot.lane.b32.xlu1 %v938_v35, %s5933_s16  ;;  %v3248_v7 = vpop.f32.mrb[27].mxu0  ;;  %v8693_v14 = vpop.permute.xlu0 %1281 }
 0x34d   :  { %v3249_v22 = vadd.f32 %v8306_v4, %v3248_v7 }
 0x34e   :  { %vm3464_vm2 = vcmp.gt.f32.partialorder %v3254_v21, 0.0  ;;  %v3528_v52 = vmul.f32 0.1, %v3254_v21  ;;  %v8698_v61 = vpop.permute.xlu1 %1877  ;;  %1289 = vrot.lane.b32.xlu0 %v8670_v11, %s5931_s14 }
 0x34f   :  { %vm3463_vm3 = vcmp.gt.f32.partialorder %v3249_v22, 0.0  ;;  %v3527_v51 = vmul.f32 0.1, %v3249_v22 }
 0x350   :  { %v3592_v53 = vsel %vm3464_vm2, %v3254_v21, %v3528_v52  ;;  %1885 = vrot.lane.b32.xlu1 %v8696_v63, %s5934_s17  ;;  %v8706_v45 = vpop.permute.xlu0 %1847  ;;  %vm10933_vm2 = vcmask 1043456  }
 0x351   :  { %v3642_v24 = vmax.f32 %v3590_v40, %v3592_v53  ;;  %v3591_v41 = vsel %vm3463_vm3, %v3249_v22, %v3527_v51  ;;  %vm10934_vm3 = vcmask 1044480  }
 0x352   :  { %v3641_v62 = vmax.f32 %v3589_v12, %v3591_v41  ;;  %v8708_v55 = vpop.permute.xlu1 %1063  ;;  %1855 = vrot.lane.b32.xlu0 %v6576_v49, %s5934_s17 }
 0x353   :  { %v3747_v19 = vrot.slane %v3642_v24, 1 }
 0x354   :  { %v3683_v56 = vrot.slane %v3641_v62, 1  ;;  %1071 = vrot.lane.b32.xlu1 %v938_v35, %s5930_s13  ;;  %v2062_v59 = vpop.permute.xlu0 %2061  ;;  %v635_v35 = vrot.slane %v8717_v37, 1 }
 0x355   :  { %v3779_v5 = vmax.f32 %v3642_v24, %v3747_v19 }
 0x356   :  { %v3715_v44 = vmax.f32 %v3641_v62, %v3683_v56  ;;  %v8714_v48 = vpop.permute.xlu1 %1283  ;;  %2069 = vrot.lane.b32.xlu0 %v634_v29, %s5935_s27  ;;  %v636_v12 = vsel %vm10932_vm13, %v633_v17, %v635_v35  ;;  %v10935_v56 = vld [vmem:[#allocation129_spill] sm:$0xff]  ;;  %v974_v17 = vrot.slane %v8670_v11, 2 }
 0x357   :  { %v3923_v52 = vrot.slane %v3779_v5, 4  ;;  %v3955_v51 = vrot.slane %v3779_v5, 5  ;;  %v3987_v53 = vrot.slane %v3779_v5, 6  ;;  %v4019_v62 = vrot.slane %v3779_v5, 7 }
 0x358   :  { %v3811_v13 = vrot.slane %v3715_v44, 1  ;;  %v3843_v28 = vrot.slane %v3715_v44, 2  ;;  %1291 = vrot.lane.b32.xlu1 %v8696_v63, %s5931_s14  ;;  %v8722_v21 = vpop.permute.xlu0 %1253  ;;  %v3875_v7 = vrot.slane %v3715_v44, 3 }
 0x35a   :  { %v4051_v23 = vsel %vm168_vm0, %v3715_v44, %v3811_v13  ;;  %v8726_v22 = vpop.permute.xlu1 %1849  ;;  %1261 = vrot.lane.b32.xlu0 %v6576_v49, %s5931_s14  ;;  %v2382_v49 = vsel %vm2333_vm4, %v10836_v2, %v10935_v56 }
 0x35b   :  { %v4068_v54 = vsel %vm10621_vm1, %v4051_v23, %v3843_v28  ;;  %v2445_v13 = vsel %vm2396_vm5, %v2382_v49, %v8441_v32  ;;  %v975_v28 = vrot.slane %v8696_v63, 2 }
 0x35c   :  { %1857 = vrot.lane.b32.xlu1 %v6573_v26, %s5934_s17  ;;  %v4085_v40 = vsel %vm10931_vm15, %v4068_v54, %v3875_v7  ;;  %v8734_v16 = vpop.permute.xlu0 %1485  ;;  %vm10937_vm15 = vmmov %vm10932_vm13  ;;  %v2510_v35 = vsel %vm2459_vm6, %v2445_v13, %v8492_v20 }
 0x35d   :  { %v4101_v24 = vsel %vm10933_vm2, %v4085_v40, %v3923_v52  ;;  %v2575_v7 = vsel %vm2524_vm8, %v2510_v35, %v8532_v50  ;;  %v10938_v52 = vld [vmem:[#allocation74_spill] sm:$0xff]  ;;  %vm10939_vm13 = vmmov %vm10936_vm14  ;;  %v10942_v35 = vld [vmem:[#allocation83_spill] sm:$0xff] }
 0x35e   :  { %v2064_v41 = vpop.permute.xlu1 %2063  ;;  %v4118_v19 = vsel %vm10934_vm3, %v4101_v24, %v3955_v51  ;;  %1493 = vrot.lane.b32.xlu0 %v634_v29, %s5932_s15  ;;  %v2640_v32 = vsel %vm2589_vm7, %v2575_v7, %v8610_v0  ;;  %v976_v51 = vsel %vm10939_vm13, %v974_v17, %v975_v28  ;;  %v10940_v0 = vld [vmem:[#allocation132_spill] sm:$0xff]  ;;  %vm10944_vm2 = vmmov %vm10939_vm13 }
 0x35f   :  { %v4134_v44 = vsel %vm10936_vm14, %v4118_v19, %v3987_v53  ;;  %v2705_v54 = vsel %vm2654_vm9, %v2640_v32, %v8672_v42  ;;  %v2383_v24 = vsel %vm2333_vm4, %v10840_v30, %v10940_v0  ;;  %v10941_v19 = vld [vmem:[#allocation115_spill] sm:$0xff]  ;;  %vm10949_vm3 = vmmov %vm10937_vm15 }
 0x360   :  { %2071 = vrot.lane.b32.xlu1 %v636_v12, %s5935_s27  ;;  %v8750_v5 = vsel %vm10937_vm15, %v4134_v44, %v4019_v62  ;;  %v2034_v2 = vpop.permute.xlu0 %2033  ;;  %v2770_v20 = vsel %vm2719_vm10, %v2705_v54, %v2062_v59  ;;  %v2446_v42 = vsel %vm2396_vm5, %v2383_v24, %v8473_v38  ;;  %v2368_v56 = vsel %vm2333_vm4, %v10841_v8, %v10941_v19  ;;  %vm10951_vm14 = vmmov %vm10944_vm2 }
 0x361   :  { %v2511_v59 = vsel %vm2459_vm6, %v2446_v42, %v8513_v27  ;;  %v2431_v30 = vsel %vm2396_vm5, %v2368_v56, %v8477_v36  ;;  %vm10955_vm15 = vmmov %vm10949_vm3 }
 0x362   :  { %v8756_v23 = vpop.permute.xlu1 %1255  ;;  %2041 = vrot.lane.b32.xlu0 %v10938_v52, %s5935_s27  ;;  %v2576_v49 = vsel %vm2524_vm8, %v2511_v59, %v8573_v33  ;;  %v2496_v27 = vsel %vm2459_vm6, %v2431_v30, %v8519_v46 }
 0x363   :  { %v2641_v38 = vsel %vm2589_vm7, %v2576_v49, %v8649_v6  ;;  %v2561_v33 = vsel %vm2524_vm8, %v2496_v27, %v8585_v39  ;;  %v977_v39 = vrot.slane %v8717_v37, 2 }
 0x364   :  { %759 = vrot.lane.b32.xlu1 %v634_v29, %s5929_s23  ;;  %v2248_v40 = vpop.permute.xlu0 %2247  ;;  %v2706_v8 = vsel %vm2654_vm9, %v2641_v38, %v8698_v61  ;;  %v2626_v36 = vsel %vm2589_vm7, %v2561_v33, %v8660_v9 }
 0x365   :  { %v2835_v50 = vsel %vm2784_vm11, %v2770_v20, %v2248_v40  ;;  %v2691_v46 = vsel %vm2654_vm9, %v2626_v36, %v8706_v45  ;;  %v10943_v45 = vld [vmem:[#allocation118_spill] sm:$0xff]  ;;  %v978_v37 = vsel %vm10944_vm2, %v975_v28, %v977_v39 }
 0x366   :  { %v8768_v53 = vpop.permute.xlu1 %1487  ;;  %2255 = vrot.lane.b32.xlu0 %v976_v51, %s5936_s1  ;;  %5740 = vmatprep.mubr.msk.f32.mxu1 %vm2855_vm12, %v2835_v50  ;;  %v2756_v61 = vsel %vm2719_vm10, %v2691_v46, %v2034_v2  ;;  %v2369_v7 = vsel %vm2333_vm4, %v10844_v10, %v10943_v45 }
 0x367   :  { %v2432_v2 = vsel %vm2396_vm5, %v2369_v7, %v8504_v18 }
 0x368   :  { %1465 = vrot.lane.b32.xlu1 %v10938_v52, %s5932_s15  ;;  %v8779_v29 = vpop.permute.xlu0 %1457  ;;  %v2497_v52 = vsel %vm2459_vm6, %v2432_v2, %v8555_v1  ;;  %v91_v1 = vld [vmem:[%s10405_s0 + $0x1d0] sm:$0xff] }
 0x369   :  { %v2562_v20 = vsel %vm2524_vm8, %v2497_v52, %v8630_v58  ;;  %v10952_v52 = vld [vmem:[#allocation131_spill] sm:$0xff] }
 0x36a   :  { %v2036_v62 = vpop.permute.xlu1 %2035  ;;  %1263 = vrot.lane.b32.xlu0 %v6573_v26, %s5931_s14  ;;  %v2771_v26 = vsel %vm2719_vm10, %v2706_v8, %v2064_v41  ;;  %v2627_v10 = vsel %vm2589_vm7, %v2562_v20, %v8686_v15  ;;  %v92_v15 = vld [vmem:[%s10405_s0 + $0x1d8] sm:$0xff] }
 0x36b   :  { %v2692_v18 = vsel %vm2654_vm9, %v2627_v10, %v8726_v22  ;;  %v258_v22 = vrot.slane %v91_v1, 7  ;;  %v259_v42 = vrot.slane %v92_v15, 7  ;;  %v10948_v8 = vld [vmem:[#allocation72_spill] sm:$0xff]  ;;  %v10953_v20 = vld [vmem:[#allocation87_spill] sm:$0xff] }
 0x36c   :  { %1695 = vrot.lane.b32.xlu1 %v976_v51, %s5933_s16  ;;  %v8799_v44 = vpop.permute.xlu0 %1687  ;;  %v2757_v28 = vsel %vm2719_vm10, %v2692_v18, %v2036_v62  ;;  %v2384_v10 = vsel %vm2333_vm4, %v10953_v20, %v10952_v52  ;;  %v10954_v18 = vld [vmem:[#allocation71_spill] sm:$0xff]  ;;  %v10958_v20 = vld [vmem:[#allocation88_spill] sm:$0xff] }
 0x36d   :  { %v8863_v62 = vsel %vm168_vm0, 0.0, %v258_v22  ;;  %v8870_v49 = vsel %vm168_vm0, %v258_v22, %v259_v42  ;;  %v2447_v1 = vsel %vm2396_vm5, %v2384_v10, %v8641_v57 }
 0x36e   :  { %v2250_v13 = vpop.permute.xlu1 %2249  ;;  %1495 = vrot.lane.b32.xlu0 %v636_v12, %s5932_s15  ;;  %10946 = vst [vmem:[#allocation21_spill] sm:$0xff] %v8863_v62  ;;  %10947 = vst [vmem:[#allocation17_spill] sm:$0xff] %v8870_v49  ;;  %v637_v30 = vrot.slane %v8863_v62, 1  ;;  %v638_v38 = vrot.slane %v8870_v49, 1  ;;  %v979_v39 = vrot.slane %v8863_v62, 2 }
 0x36f   :  { %v2836_v6 = vsel %vm2784_vm11, %v2771_v26, %v2250_v13 }
 0x370   :  { %2227 = vrot.lane.b32.xlu1 %v7629_v34, %s5936_s1  ;;  %5741 = vmatmul.mubr.msk.f32.gmra.mrb[6].mxu1 %vm2855_vm12, %v2836_v6  ;;  %v2220_v41 = vpop.permute.xlu0 %2219  ;;  %v639_v26 = vsel %vm10949_vm3, %v637_v30, %v638_v38 }
 0x371   :  { %v2821_v17 = vsel %vm2784_vm11, %v2756_v61, %v2220_v41  ;;  %v980_v61 = vrot.slane %v8870_v49, 2  ;;  %v426_v41 = vsel %vm168_vm0, %v259_v42, 0.0 }
 0x372   :  { %v8816_v9 = vpop.permute.xlu1 %1459  ;;  %2043 = vrot.lane.b32.xlu0 %v10942_v35, %s5935_s27  ;;  %5719 = vmatprep.mubr.msk.f32.mxu0 %vm2855_vm12, %v2821_v17  ;;  %v640_v45 = vrot.slane %v426_v41, 1 }
 0x374   :  { %761 = vrot.lane.b32.xlu1 %v636_v12, %s5929_s23  ;;  %v8828_v32 = vpop.permute.xlu0 %1093 }
 0x376   :  { %v8832_v54 = vpop.permute.xlu1 %1689  ;;  %2257 = vrot.lane.b32.xlu0 %v978_v37, %s5936_s1 }
 0x378   :  { %1467 = vrot.lane.b32.xlu1 %v10942_v35, %s5932_s15  ;;  %v8843_v12 = vpop.permute.xlu0 %1659  ;;  %v10950_v35 = vld [vmem:[#allocation79_spill] sm:$0xff] }
 0x37a   :  { %v2222_v58 = vpop.permute.xlu1 %2221  ;;  %1101 = vrot.lane.b32.xlu0 %v976_v51, %s5930_s13  ;;  %v10945_v51 = vld [vmem:[#allocation11_spill] sm:$0xff] }
 0x37b   :  { %v2822_v40 = vsel %vm2784_vm11, %v2757_v28, %v2222_v58  ;;  %v8926_v28 = vsel %vm10955_vm15, %v638_v38, %v640_v45  ;;  %v2512_v58 = vsel %vm2459_vm6, %v2447_v1, %v8693_v14  ;;  %v982_v14 = vrot.slane %v426_v41, 2 }
 0x37c   :  { %1697 = vrot.lane.b32.xlu1 %v978_v37, %s5933_s16  ;;  %5720 = vmatmul.mubr.msk.f32.gmra.mrb[36].mxu0 %vm2855_vm12, %v2822_v40  ;;  %v1880_v50 = vpop.permute.xlu0 %1879  ;;  %v2577_v15 = vsel %vm2524_vm8, %v2512_v58, %v8734_v16 }
 0x37d   :  { %v5709_v0 = vpop.f32.mrb[28].mxu0  ;;  %v2642_v42 = vsel %vm2589_vm7, %v2577_v15, %v8799_v44  ;;  %v8957_v10 = vsel %vm10944_vm2, %v980_v61, %v982_v14  ;;  %vm10966_vm2 = vcmask 1043456  }
 0x37e   :  { %v8856_v24 = vpop.permute.xlu1 %1095  ;;  %v3258_v59 = vpop.f32.mrb[29].mxu0  ;;  %1667 = vrot.lane.b32.xlu0 %v7629_v34, %s5933_s16  ;;  %v3264_v57 = vadd.f32 %v8306_v4, %v5709_v0  ;;  %v10956_v0 = vld [vmem:[#allocation117_spill] sm:$0xff] }
 0x37f   :  { %v3259_v30 = vadd.f32 %v8306_v4, %v3258_v59 }
 0x380   :  { %2229 = vrot.lane.b32.xlu1 %v10945_v51, %s5936_s1  ;;  %v8865_v19 = vpop.permute.xlu0 %1065  ;;  %v3530_v52 = vmul.f32 0.1, %v3264_v57  ;;  %vm3466_vm13 = vcmp.gt.f32.partialorder %v3264_v57, 0.0 }
 0x381   :  { %vm3465_vm3 = vcmp.gt.f32.partialorder %v3259_v30, 0.0 }
 0x382   :  { %v8867_v56 = vpop.permute.xlu1 %1661  ;;  %1887 = vrot.lane.b32.xlu0 %v8863_v62, %s5934_s17 }
 0x384   :  { %1293 = vrot.lane.b32.xlu1 %v8863_v62, %s5931_s14  ;;  %v8876_v34 = vpop.permute.xlu0 %1285 }
 0x386   :  { %v8880_v27 = vpop.permute.xlu1 %1881  ;;  %1103 = vrot.lane.b32.xlu0 %v978_v37, %s5930_s13  ;;  %v8912_v37 = vsel %vm10951_vm14, %v979_v39, %v980_v61  ;;  %v93_v61 = vld [vmem:[%s10405_s0 + $0x1e0] sm:$0xff] }
 0x388   :  { %1859 = vrot.lane.b32.xlu1 %v10948_v8, %s5934_s17  ;;  %v8885_v33 = vpop.permute.xlu0 %1851 }
 0x38a   :  { %v8888_v13 = vpop.permute.xlu1 %1067  ;;  %1669 = vrot.lane.b32.xlu0 %v10945_v51, %s5933_s16  ;;  %v2707_v51 = vsel %vm2654_vm9, %v2642_v42, %v1880_v50 }
 0x38c   :  { %2073 = vrot.lane.b32.xlu1 %v639_v26, %s5935_s27  ;;  %v2066_v36 = vpop.permute.xlu0 %2065 }
 0x38d   :  { %v2772_v16 = vsel %vm2719_vm10, %v2707_v51, %v2066_v36  ;;  %v3529_v36 = vmul.f32 0.1, %v3259_v30  ;;  %v3594_v51 = vsel %vm3466_vm13, %v3264_v57, %v3530_v52  ;;  %vm10963_vm13 = vcmask 1042432  }
 0x38e   :  { %v8893_v6 = vpop.permute.xlu1 %1287  ;;  %1889 = vrot.lane.b32.xlu0 %v8870_v49, %s5934_s17 }
 0x390   :  { %1497 = vrot.lane.b32.xlu1 %v639_v26, %s5932_s15  ;;  %v8898_v46 = vpop.permute.xlu0 %1257 }
 0x392   :  { %v8903_v17 = vpop.permute.xlu1 %1853  ;;  %1295 = vrot.lane.b32.xlu0 %v8870_v49, %s5931_s14 }
 0x394   :  { %2045 = vrot.lane.b32.xlu1 %v10950_v35, %s5935_s27  ;;  %v8909_v7 = vpop.permute.xlu0 %1489  ;;  %v10957_v35 = vld [vmem:[#allocation53_spill] sm:$0xff] }
 0x395   :  { %v2370_v45 = vsel %vm2333_vm4, %v10957_v35, %v10956_v0  ;;  %v261_v35 = vrot.slane %v93_v61, 7 }
 0x396   :  { %v8914_v2 = vpop.permute.xlu1 %2067  ;;  %1861 = vrot.lane.b32.xlu0 %v10954_v18, %s5934_s17  ;;  %v2433_v18 = vsel %vm2396_vm5, %v2370_v45, %v8684_v60 }
 0x397   :  { %v2498_v58 = vsel %vm2459_vm6, %v2433_v18, %v8722_v21 }
 0x398   :  { %2259 = vrot.lane.b32.xlu1 %v8912_v37, %s5936_s1  ;;  %v2038_v40 = vpop.permute.xlu0 %2037  ;;  %v2563_v60 = vsel %vm2524_vm8, %v2498_v58, %v8779_v29  ;;  %v9003_v58 = vsel %vm168_vm0, 0.0, %v261_v35 }
 0x399   :  { %v2628_v21 = vsel %vm2589_vm7, %v2563_v60, %v8843_v12  ;;  %v10960_v12 = vld [vmem:[#allocation86_spill] sm:$0xff]  ;;  %10962 = vst [vmem:[#allocation26_spill] sm:$0xff] %v9003_v58 }
 0x39a   :  { %v8932_v22 = vpop.permute.xlu1 %755  ;;  %2075 = vrot.lane.b32.xlu0 %v8926_v28, %s5935_s27  ;;  %v2693_v29 = vsel %vm2654_vm9, %v2628_v21, %v8885_v33 }
 0x39b   :  { %v2758_v45 = vsel %vm2719_vm10, %v2693_v29, %v2038_v40 }
 0x39c   :  { %1499 = vrot.lane.b32.xlu1 %v8926_v28, %s5932_s15  ;;  %v2252_v38 = vpop.permute.xlu0 %2251 }
 0x39d   :  { %v2837_v8 = vsel %vm2784_vm11, %v2772_v16, %v2252_v38  ;;  %v3593_v38 = vsel %vm3465_vm3, %v3259_v30, %v3529_v36  ;;  %vm10968_vm3 = vcmask 1044480  }
 0x39e   :  { %v8945_v39 = vpop.permute.xlu1 %1461  ;;  %v5712_v44 = vpop.f32.mrb[30].mxu0  ;;  %763 = vrot.lane.b32.xlu0 %v639_v26, %s5929_s23  ;;  %5743 = vmatprep.mubr.msk.f32.mxu1 %vm2855_vm12, %v2837_v8 }
 0x39f   :  { %v3274_v50 = vadd.f32 %v8306_v4, %v5712_v44  ;;  %v3268_v59 = vpop.f32.mrb[31].mxu0 }
 0x3a0   :  { %v3269_v41 = vadd.f32 %v8306_v4, %v3268_v59  ;;  %2047 = vrot.lane.b32.xlu1 %v10958_v20, %s5935_s27  ;;  %v8961_v1 = vpop.permute.xlu0 %1259  ;;  %v10959_v59 = vld [vmem:[#allocation134_spill] sm:$0xff]  ;;  %v10961_v20 = vld [vmem:[#allocation19_spill] sm:$0xff] }
 0x3a1   :  { %vm3468_vm14 = vcmp.gt.f32.partialorder %v3274_v50, 0.0  ;;  %v3532_v26 = vmul.f32 0.1, %v3274_v50  ;;  %v8965_v4 = vpop.f32.mrb[0].mxu1  ;;  %v2385_v30 = vsel %vm2333_vm4, %v10960_v12, %v10959_v59 }
 0x3a2   :  { %vm3467_vm15 = vcmp.gt.f32.partialorder %v3269_v41, 0.0  ;;  %v3531_v15 = vmul.f32 0.1, %v3269_v41  ;;  %v8967_v42 = vpop.permute.xlu1 %1691  ;;  %v8975_v16 = vpop.f32.mrb[1].mxu1  ;;  %1699 = vrot.lane.b32.xlu0 %v8912_v37, %s5933_s16  ;;  %v2448_v33 = vsel %vm2396_vm5, %v2385_v30, %v8674_v3  ;;  %v94_v3 = vld [vmem:[%s10405_s0 + $0x1e8] sm:$0xff] }
 0x3a3   :  { %v3596_v14 = vsel %vm3468_vm14, %v3274_v50, %v3532_v26  ;;  %v2513_v40 = vsel %vm2459_vm6, %v2448_v33, %v8714_v48  ;;  %vm10969_vm14 = vcmask 1045504  }
 0x3a4   :  { %v3644_v8 = vmax.f32 %v3594_v51, %v3596_v14  ;;  %v3595_v44 = vsel %vm3467_vm15, %v3269_v41, %v3531_v15  ;;  %2261 = vrot.lane.b32.xlu1 %v8957_v10, %s5936_s1  ;;  %v8986_v0 = vpop.permute.xlu0 %1491  ;;  %v2578_v15 = vsel %vm2524_vm8, %v2513_v40, %v8768_v53  ;;  %vm10971_vm15 = vcmask 1046528  }
 0x3a5   :  { %v3643_v57 = vmax.f32 %v3593_v38, %v3595_v44  ;;  %v262_v44 = vrot.slane %v94_v3, 7  ;;  %v10970_v3 = vld [vmem:[#allocation12_spill] sm:$0xff] }
 0x3a6   :  { %v3748_v52 = vrot.slane %v3644_v8, 1  ;;  %v2224_v50 = vpop.permute.xlu1 %2223  ;;  %2231 = vrot.lane.b32.xlu0 %v10961_v20, %s5936_s1 }
 0x3a7   :  { %v3684_v36 = vrot.slane %v3643_v57, 1  ;;  %v2823_v41 = vsel %vm2784_vm11, %v2758_v45, %v2224_v50  ;;  %v10964_v45 = vld [vmem:[#allocation120_spill] sm:$0xff] }
 0x3a8   :  { %1105 = vrot.lane.b32.xlu1 %v8912_v37, %s5930_s13  ;;  %5722 = vmatprep.mubr.msk.f32.mxu0 %vm2855_vm12, %v2823_v41  ;;  %v2040_v26 = vpop.permute.xlu0 %2039  ;;  %v3780_v61 = vmax.f32 %v3644_v8, %v3748_v52  ;;  %v2643_v37 = vsel %vm2589_vm7, %v2578_v15, %v8832_v54  ;;  %v10965_v52 = vld [vmem:[#allocation52_spill] sm:$0xff]  ;;  %v9042_v41 = vsel %vm168_vm0, %v261_v35, %v262_v44 }
 0x3a9   :  { %v3716_v18 = vmax.f32 %v3643_v57, %v3684_v36  ;;  %v2708_v14 = vsel %vm2654_vm9, %v2643_v37, %v8880_v27  ;;  %v2371_v50 = vsel %vm2333_vm4, %v10965_v52, %v10964_v45  ;;  %10967 = vst [vmem:[#allocation18_spill] sm:$0xff] %v9042_v41  ;;  %v643_v37 = vrot.slane %v9042_v41, 1 }
 0x3aa   :  { %v9007_v60 = vpop.permute.xlu1 %757  ;;  %765 = vrot.lane.b32.xlu0 %v8926_v28, %s5929_s23  ;;  %v2773_v53 = vsel %vm2719_vm10, %v2708_v14, %v8914_v2  ;;  %v3924_v54 = vrot.slane %v3780_v61, 4  ;;  %v3956_v27 = vrot.slane %v3780_v61, 5  ;;  %v3988_v59 = vrot.slane %v3780_v61, 6 }
 0x3ab   :  { %v3812_v51 = vrot.slane %v3716_v18, 1  ;;  %v3844_v48 = vrot.slane %v3716_v18, 2  ;;  %v3876_v21 = vrot.slane %v3716_v18, 3  ;;  %v2434_v30 = vsel %vm2396_vm5, %v2371_v50, %v8708_v55 }
 0x3ac   :  { %1891 = vrot.lane.b32.xlu1 %v9003_v58, %s5934_s17  ;;  %v2254_v8 = vpop.permute.xlu0 %2253  ;;  %v4020_v20 = vrot.slane %v3780_v61, 7  ;;  %v2499_v40 = vsel %vm2459_vm6, %v2434_v30, %v8756_v23  ;;  %v642_v23 = vrot.slane %v9003_v58, 1  ;;  %v95_v30 = vld [vmem:[%s10405_s0 + $0x1f0] sm:$0xff] }
 0x3ad   :  { %v4052_v38 = vsel %vm168_vm0, %v3716_v18, %v3812_v51  ;;  %v2838_v29 = vsel %vm2784_vm11, %v2773_v53, %v2254_v8  ;;  %v2564_v55 = vsel %vm2524_vm8, %v2499_v40, %v8816_v9  ;;  %v264_v40 = vrot.slane %v95_v30, 7 }
 0x3ae   :  { %v9024_v57 = vpop.permute.xlu1 %1463  ;;  %v4069_v28 = vsel %vm10621_vm1, %v4052_v38, %v3844_v48  ;;  %1701 = vrot.lane.b32.xlu0 %v8957_v10, %s5933_s16  ;;  %5744 = vmatmul.mubr.msk.f32.gmra.mrb[8].mxu1 %vm2855_vm12, %v2838_v29  ;;  %v2629_v61 = vsel %vm2589_vm7, %v2564_v55, %v8867_v56 }
 0x3af   :  { %v4086_v2 = vsel %vm10963_vm13, %v4069_v28, %v3876_v21  ;;  %v2694_v51 = vsel %vm2654_vm9, %v2629_v61, %v8903_v17  ;;  %vm10973_vm13 = vmmov %vm10971_vm15 }
 0x3b0   :  { %1107 = vrot.lane.b32.xlu1 %v8957_v10, %s5930_s13  ;;  %v4102_v12 = vsel %vm10966_vm2, %v4086_v2, %v3924_v54  ;;  %v9039_v36 = vpop.permute.xlu0 %1097  ;;  %v427_v10 = vsel %vm168_vm0, %v262_v44, 0.0  ;;  %v2759_v14 = vsel %vm2719_vm10, %v2694_v51, %v2040_v26  ;;  %v644_v56 = vsel %vm10973_vm13, %v642_v23, %v643_v37  ;;  %vm10974_vm2 = vmmov %vm10973_vm13 }
 0x3b1   :  { %v4119_v33 = vsel %vm10968_vm3, %v4102_v12, %v3956_v27  ;;  %v645_v48 = vrot.slane %v427_v10, 1  ;;  %v984_v26 = vrot.slane %v9003_v58, 2  ;;  %v985_v44 = vrot.slane %v9042_v41, 2  ;;  %vm10975_vm3 = vmmov %vm10969_vm14 }
 0x3b2   :  { %v9047_v18 = vpop.permute.xlu1 %1693  ;;  %v4135_v15 = vsel %vm10969_vm14, %v4119_v33, %v3988_v59  ;;  %2233 = vrot.lane.b32.xlu0 %v10970_v3, %s5936_s1  ;;  %v987_v45 = vrot.slane %v427_v10, 2  ;;  %vm10976_vm14 = vmmov %vm10975_vm3  ;;  %v96_v33 = vld [vmem:[%s10405_s0 + $0x1f8] sm:$0xff]  ;;  %v9123_v3 = vld [vmem:[%s10407_s2] ss:$0 sm:$0xff]  ;;  %v9129_v23 = vsel %vm168_vm0, 0.0, %v264_v40  ;;  %s5937_s0 = smov 40  }
 0x3b3   :  { %v9056_v35 = vsel %vm10971_vm15, %v4135_v15, %v4020_v20  ;;  %v646_v17 = vsel %vm10974_vm2, %v643_v37, %v645_v48  ;;  %v986_v28 = vsel %vm10975_vm3, %v984_v26, %v985_v44  ;;  %v265_v15 = vrot.slane %v96_v33, 7 }
 0x3b4   :  { %10972 = vst [vmem:[#allocation34_spill] sm:$0xff] %v9056_v35  ;;  %1893 = vrot.lane.b32.xlu1 %v9042_v41, %s5934_s17  ;;  %v9066_v9 = vpop.permute.xlu0 %1663  ;;  %v988_v59 = vsel %vm10976_vm14, %v985_v44, %v987_v45  ;;  %v3344_v61 = vadd.f32 %v9123_v3, %v8965_v4  ;;  %v3339_v37 = vadd.f32 %v9123_v3, %v8975_v16  ;;  %v10978_v4 = vld [vmem:[#allocation92_spill] sm:$0xff]  ;;  %vm10979_vm14 = vcmask 1046528  }
 0x3b5   :  { %v9136_v48 = vsel %vm168_vm0, %v264_v40, %v265_v15  ;;  %vm10980_vm1 = vmmov %vm10979_vm14 }
 0x3b6   :  { %v2226_v53 = vpop.permute.xlu1 %2225  ;;  %1297 = vrot.lane.b32.xlu0 %v9003_v58, %s5931_s14  ;;  %v1377_v26 = vrot.slane %v9136_v48, 1  ;;  %vm3482_vm15 = vcmp.gt.f32.partialorder %v3344_v61, 0.0  ;;  %v3545_v40 = vmul.f32 0.1, %v3339_v37  ;;  %vm3481_vm13 = vcmp.gt.f32.partialorder %v3339_v37, 0.0 }
 0x3b7   :  { %v2824_v21 = vsel %vm2784_vm11, %v2759_v14, %v2226_v53  ;;  %v9139_v14 = vsel %vm168_vm0, %v265_v15, 0.0 }
 0x3b8   :  { %1299 = vrot.lane.b32.xlu1 %v9042_v41, %s5931_s14  ;;  %5723 = vmatmul.mubr.msk.f32.gmra.mrb[38].mxu0 %vm2855_vm12, %v2824_v21  ;;  %v9076_v38 = vpop.permute.xlu0 %1883  ;;  %v10977_v21 = vld [vmem:[#allocation133_spill] sm:$0xff]  ;;  %v1379_v30 = vrot.slane %v9139_v14, 1  ;;  %v3609_v58 = vsel %vm3481_vm13, %v3339_v37, %v3545_v40  ;;  %v1578_v37 = vrot.slane %v9129_v23, 2  ;;  %vm10987_vm13 = vcmask 1041408  }
 0x3ba   :  { %v9079_v8 = vpop.permute.xlu1 %1099  ;;  %2077 = vrot.lane.b32.xlu0 %v644_v56, %s5935_s27 }
 0x3bc   :  { %2079 = vrot.lane.b32.xlu1 %v646_v17, %s5935_s27  ;;  %v9085_v54 = vpop.permute.xlu0 %1069 }
 0x3be   :  { %v9087_v29 = vpop.permute.xlu1 %1665  ;;  %1501 = vrot.lane.b32.xlu0 %v644_v56, %s5932_s15 }
 0x3c0   :  { %767 = vrot.lane.b32.xlu1 %v644_v56, %s5929_s23  ;;  %v9092_v27 = vpop.permute.xlu0 %1289  ;;  %v2386_v56 = vsel %vm2333_vm4, %v10978_v4, %v10977_v21 }
 0x3c1   :  { %v2449_v44 = vsel %vm2396_vm5, %v2386_v56, %v8828_v32 }
 0x3c2   :  { %v9094_v2 = vpop.permute.xlu1 %1885  ;;  %2263 = vrot.lane.b32.xlu0 %v986_v28, %s5936_s1  ;;  %v2514_v33 = vsel %vm2459_vm6, %v2449_v44, %v8876_v34 }
 0x3c3   :  { %v2579_v32 = vsel %vm2524_vm8, %v2514_v33, %v8909_v7  ;;  %v1380_v33 = vsel %vm10980_vm1, %v1377_v26, %v1379_v30  ;;  %vm10983_vm1 = vcmask 1045504  }
 0x3c4   :  { %1703 = vrot.lane.b32.xlu1 %v986_v28, %s5933_s16  ;;  %v9098_v52 = vpop.permute.xlu0 %1855 }
 0x3c6   :  { %v9100_v50 = vpop.permute.xlu1 %1071  ;;  %1503 = vrot.lane.b32.xlu0 %v646_v17, %s5932_s15 }
 0x3c8   :  { %769 = vrot.lane.b32.xlu1 %v646_v17, %s5929_s23  ;;  %v2070_v12 = vpop.permute.xlu0 %2069  ;;  %v1376_v17 = vrot.slane %v9129_v23, 1 }
 0x3ca   :  { %v9108_v20 = vpop.permute.xlu1 %1291  ;;  %2265 = vrot.lane.b32.xlu0 %v988_v59, %s5936_s1  ;;  %v1378_v34 = vsel %vm10979_vm14, %v1376_v17, %v1377_v26 }
 0x3cc   :  { %1705 = vrot.lane.b32.xlu1 %v988_v59, %s5933_s16  ;;  %v9115_v10 = vpop.permute.xlu0 %1261 }
 0x3ce   :  { %v9117_v55 = vpop.permute.xlu1 %1857  ;;  %1109 = vrot.lane.b32.xlu0 %v986_v28, %s5930_s13  ;;  %v3546_v28 = vmul.f32 0.1, %v3344_v61 }
 0x3d0   :  { %1111 = vrot.lane.b32.xlu1 %v988_v59, %s5930_s13  ;;  %v9133_v51 = vpop.permute.xlu0 %1493  ;;  %v3610_v44 = vsel %vm3482_vm15, %v3344_v61, %v3546_v28  ;;  %v10982_v28 = vld [vmem:[#allocation58_spill] sm:$0xff]  ;;  %vm10984_vm15 = vmmov %vm10983_vm1 }
 0x3d2   :  { %v9141_v53 = vpop.permute.xlu1 %2071  ;;  %1895 = vrot.lane.b32.xlu0 %v9129_v23, %s5934_s17 }
 0x3d3   :  { %v5736_v16 = vpop.f32.mrb[2].mxu1 }
 0x3d4   :  { %v3354_v45 = vadd.f32 %v9123_v3, %v5736_v16  ;;  %1897 = vrot.lane.b32.xlu1 %v9136_v48, %s5934_s17  ;;  %v3348_v59 = vpop.f32.mrb[3].mxu1  ;;  %v2042_v21 = vpop.permute.xlu0 %2041  ;;  %v2644_v16 = vsel %vm2589_vm7, %v2579_v32, %v8967_v42 }
 0x3d5   :  { %v3349_v15 = vadd.f32 %v9123_v3, %v3348_v59  ;;  %v2709_v59 = vsel %vm2654_vm9, %v2644_v16, %v9076_v38  ;;  %v10981_v38 = vld [vmem:[#allocation119_spill] sm:$0xff] }
 0x3d6   :  { %vm3484_vm2 = vcmp.gt.f32.partialorder %v3354_v45, 0.0  ;;  %v3548_v4 = vmul.f32 0.1, %v3354_v45  ;;  %v9161_v56 = vpop.permute.xlu1 %759  ;;  %1301 = vrot.lane.b32.xlu0 %v9129_v23, %s5931_s14  ;;  %v2774_v42 = vsel %vm2719_vm10, %v2709_v59, %v2070_v12  ;;  %v2372_v26 = vsel %vm2333_vm4, %v10982_v28, %v10981_v38 }
 0x3d7   :  { %vm3483_vm3 = vcmp.gt.f32.partialorder %v3349_v15, 0.0  ;;  %v3547_v41 = vmul.f32 0.1, %v3349_v15  ;;  %v1579_v12 = vrot.slane %v9136_v48, 2 }
 0x3d8   :  { %v3612_v7 = vsel %vm3484_vm2, %v3354_v45, %v3548_v4  ;;  %1303 = vrot.lane.b32.xlu1 %v9136_v48, %s5931_s14  ;;  %v2256_v62 = vpop.permute.xlu0 %2255  ;;  %vm10989_vm2 = vcmask 1042432  }
 0x3d9   :  { %v3652_v32 = vmax.f32 %v3610_v44, %v3612_v7  ;;  %v3611_v49 = vsel %vm3483_vm3, %v3349_v15, %v3547_v41  ;;  %v2839_v63 = vsel %vm2784_vm11, %v2774_v42, %v2256_v62  ;;  %v2435_v62 = vsel %vm2396_vm5, %v2372_v26, %v8865_v19  ;;  %v10986_v44 = vld [vmem:[#allocation91_spill] sm:$0xff]  ;;  %vm10994_vm3 = vmmov %vm10979_vm14 }
 0x3da   :  { %v3651_v35 = vmax.f32 %v3609_v58, %v3611_v49  ;;  %v9175_v17 = vpop.permute.xlu1 %1465  ;;  %2081 = vrot.lane.b32.xlu0 %v1378_v34, %s5935_s27  ;;  %5746 = vmatprep.mubr.msk.f32.mxu1 %vm2855_vm12, %v2839_v63  ;;  %v1581_v58 = vrot.slane %v9139_v14, 2  ;;  %v2500_v63 = vsel %vm2459_vm6, %v2435_v62, %v8898_v46  ;;  %v1580_v46 = vsel %vm10983_vm1, %v1578_v37, %v1579_v12 }
 0x3db   :  { %v3752_v61 = vrot.slane %v3652_v32, 1  ;;  %v2565_v23 = vsel %vm2524_vm8, %v2500_v63, %v8945_v39  ;;  %vm10995_vm14 = vcmask 1043456   ;;  %vm10996_vm1 = vcmask 1044480  }
 0x3dc   :  { %v3688_v41 = vrot.slane %v3651_v35, 1  ;;  %2083 = vrot.lane.b32.xlu1 %v1380_v33, %s5935_s27  ;;  %v9187_v49 = vpop.permute.xlu0 %1263  ;;  %v2630_v19 = vsel %vm2589_vm7, %v2565_v23, %v9066_v9  ;;  %v1582_v16 = vsel %vm10984_vm15, %v1579_v12, %v1581_v58  ;;  %v10990_v58 = vld [vmem:[#allocation6_spill] sm:$0xff] }
 0x3dd   :  { %v3784_v48 = vmax.f32 %v3652_v32, %v3752_v61  ;;  %v10991_v63 = vrot.slane %v10990_v58, 1 }
 0x3de   :  { %v3720_v45 = vmax.f32 %v3651_v35, %v3688_v41  ;;  %v9192_v30 = vpop.permute.xlu1 %1695  ;;  %1505 = vrot.lane.b32.xlu0 %v1378_v34, %s5932_s15  ;;  %v2695_v35 = vsel %vm2654_vm9, %v2630_v19, %v9098_v52  ;;  %v10985_v34 = vld [vmem:[#allocation135_spill] sm:$0xff]  ;;  %v10988_v52 = vld [vmem:[#allocation8_spill] sm:$0xff] }
 0x3df   :  { %v9197_v40 = vpop.f32.mrb[32].mxu0  ;;  %v2387_v59 = vsel %vm2333_vm4, %v10986_v44, %v10985_v34  ;;  %v3928_v32 = vrot.slane %v3784_v48, 4  ;;  %v4186_v28 = vrot.slane %v10988_v52, 7  ;;  %v3960_v37 = vrot.slane %v3784_v48, 5  ;;  %v11002_v52 = vld [vmem:[#allocation57_spill] sm:$0xff] }
 0x3e0   :  { %v3816_v15 = vrot.slane %v3720_v45, 1  ;;  %v3848_v4 = vrot.slane %v3720_v45, 2  ;;  %1507 = vrot.lane.b32.xlu1 %v1380_v33, %s5932_s15  ;;  %v9202_v14 = vpop.f32.mrb[33].mxu0  ;;  %v9207_v39 = vpop.permute.xlu0 %1495  ;;  %v3880_v9 = vrot.slane %v3720_v45, 3  ;;  %v2760_v33 = vsel %vm2719_vm10, %v2695_v35, %v2042_v21 }
 0x3e1   :  { %v2450_v26 = vsel %vm2396_vm5, %v2387_v59, %v8856_v24  ;;  %v3992_v41 = vrot.slane %v3784_v48, 6  ;;  %v4024_v35 = vrot.slane %v3784_v48, 7  ;;  %v9243_v44 = vsel %vm168_vm0, 0.0, %v4186_v28 }
 0x3e2   :  { %v4056_v7 = vsel %vm168_vm0, %v3720_v45, %v3816_v15  ;;  %v2228_v42 = vpop.permute.xlu1 %2227  ;;  %2267 = vrot.lane.b32.xlu0 %v1580_v46, %s5936_s1  ;;  %v2515_v12 = vsel %vm2459_vm6, %v2450_v26, %v8893_v6  ;;  %v10992_v45 = vld [vmem:[#allocation5_spill] sm:$0xff]  ;;  %v4234_v59 = vsel %vm168_vm0, %v4186_v28, 0.0 }
 0x3e3   :  { %v4073_v61 = vsel %vm10987_vm13, %v4056_v7, %v3848_v4  ;;  %v2825_v38 = vsel %vm2784_vm11, %v2760_v33, %v2228_v42  ;;  %v10993_v23 = vrot.slane %v10992_v45, 1  ;;  %v2580_v15 = vsel %vm2524_vm8, %v2515_v12, %v8986_v0  ;;  %vm10997_vm13 = vmmov %vm10994_vm3  ;;  %v11003_v26 = vld [vmem:[#allocation9_spill] sm:$0xff] }
 0x3e4   :  { %2269 = vrot.lane.b32.xlu1 %v1582_v16, %s5936_s1  ;;  %5725 = vmatprep.mubr.msk.f32.mxu0 %vm2855_vm12, %v2825_v38  ;;  %v4090_v21 = vsel %vm10989_vm2, %v4073_v61, %v3880_v9  ;;  %v2044_v62 = vpop.permute.xlu0 %2043  ;;  %v2645_v6 = vsel %vm2589_vm7, %v2580_v15, %v9047_v18  ;;  %v10998_v7 = vrot.slane %v10990_v58, 2  ;;  %v10999_v33 = vrot.slane %v10992_v45, 2  ;;  %vm11000_vm2 = vmmov %vm10984_vm15 }
 0x3e5   :  { %v9231_v19 = vsel %vm10994_vm3, %v10993_v23, %v10991_v63  ;;  %v4106_v24 = vsel %vm10995_vm14, %v4090_v21, %v3928_v32  ;;  %v2710_v0 = vsel %vm2654_vm9, %v2645_v6, %v9094_v2  ;;  %v4279_v61 = vrot.slane %v9243_v44, 1  ;;  %vm11005_vm14 = vmmov %vm11000_vm2 }
 0x3e6   :  { %v9236_v4 = vpop.permute.xlu1 %761  ;;  %v4123_v34 = vsel %vm10996_vm1, %v4106_v24, %v3960_v37  ;;  %1707 = vrot.lane.b32.xlu0 %v1580_v46, %s5933_s16  ;;  %v2775_v18 = vsel %vm2719_vm10, %v2710_v0, %v9141_v53  ;;  %v9261_v42 = vsel %vm11000_vm2, %v10999_v33, %v10998_v7  ;;  %v4280_v38 = vrot.slane %v4234_v59, 1  ;;  %v11001_v53 = vld [vmem:[#allocation122_spill] sm:$0xff]  ;;  %vm11006_vm1 = vmmov %vm10994_vm3 }
 0x3e7   :  { %v4139_v9 = vsel %vm10984_vm15, %v4123_v34, %v3992_v41  ;;  %v2373_v28 = vsel %vm2333_vm4, %v11002_v52, %v11001_v53  ;;  %v4187_v37 = vrot.slane %v11003_v26, 7  ;;  %v4367_v63 = vrot.slane %v9243_v44, 2  ;;  %vm11007_vm15 = vmmov %vm11006_vm1 }
 0x3e8   :  { %4321 = vrot.lane.b32.xlu1 %v9231_v19, %s5930_s13  ;;  %v9252_v48 = vsel %vm10997_vm13, %v4139_v9, %v4024_v35  ;;  %v2258_v46 = vpop.permute.xlu0 %2257  ;;  %v2436_v21 = vsel %vm2396_vm5, %v2373_v28, %v8888_v13  ;;  %v4281_v58 = vsel %vm10994_vm3, %v4279_v61, %v4280_v38  ;;  %v4368_v23 = vrot.slane %v4234_v59, 2  ;;  %v11004_v35 = vld [vmem:[#allocation16_spill] sm:$0xff]  ;;  %vm11008_vm13 = vmmov %vm11000_vm2 }
 0x3e9   :  { %v2840_v32 = vsel %vm2784_vm11, %v2775_v18, %v2258_v46  ;;  %v2501_v41 = vsel %vm2459_vm6, %v2436_v21, %v8961_v1  ;;  %v9293_v1 = vsel %vm168_vm0, 0.0, %v4187_v37  ;;  %v4235_v15 = vsel %vm168_vm0, %v4187_v37, 0.0  ;;  %vm11013_vm3 = vmmov %vm11006_vm1 }
 0x3ea   :  { %v9264_v2 = vpop.permute.xlu1 %1467  ;;  %1709 = vrot.lane.b32.xlu0 %v1582_v16, %s5933_s16  ;;  %5747 = vmatmul.mubr.msk.f32.gmra.mrb[10].mxu1 %vm2855_vm12, %v2840_v32  ;;  %v2566_v24 = vsel %vm2524_vm8, %v2501_v41, %v9024_v57  ;;  %v4188_v34 = vrot.slane %v11004_v35, 7  ;;  %v4282_v18 = vrot.slane %v9293_v1, 1  ;;  %v4283_v46 = vrot.slane %v4235_v15, 1 }
 0x3eb   :  { %v2631_v13 = vsel %vm2589_vm7, %v2566_v24, %v9087_v29  ;;  %v4369_v29 = vsel %vm11005_vm14, %v4367_v63, %v4368_v23  ;;  %v4370_v26 = vrot.slane %v9293_v1, 2  ;;  %v4371_v37 = vrot.slane %v4235_v15, 2  ;;  %v4160_v24 = vld [vmem:[%s10408_s3] sm:$0xff] }
 0x3ec   :  { %4409 = vrot.lane.b32.xlu1 %v9261_v42, %s5932_s15  ;;  %v9277_v12 = vpop.permute.xlu0 %1101  ;;  %v2696_v6 = vsel %vm2654_vm9, %v2631_v13, %v9117_v55  ;;  %v9309_v55 = vsel %vm168_vm0, 0.0, %v4188_v34  ;;  %v4236_v7 = vsel %vm168_vm0, %v4188_v34, 0.0  ;;  %v9317_v32 = vsel %vm11006_vm1, %v4282_v18, %v4283_v46  ;;  %v4161_v13 = vld [vmem:[%s10408_s3 + $0x8] sm:$0xff]  ;;  %v4162_v18 = vld [vmem:[%s10408_s3 + $0x10] sm:$0xff]  ;;  %v4163_v46 = vld [vmem:[%s10408_s3 + $0x18] sm:$0xff] }
 0x3ed   :  { %v2761_v57 = vsel %vm2719_vm10, %v2696_v6, %v2044_v62  ;;  %v4285_v61 = vrot.slane %v9309_v55, 1  ;;  %v4286_v38 = vrot.slane %v4236_v7, 1  ;;  %v4373_v63 = vrot.slane %v9309_v55, 2 }
 0x3ee   :  { %v9281_v16 = vpop.permute.xlu1 %1697  ;;  %4323 = vrot.lane.b32.xlu0 %v4281_v58, %s5930_s13  ;;  %v4374_v23 = vrot.slane %v4236_v7, 2  ;;  %v5829_v15 = vpack.c.bf16 %v4161_v13, %v4160_v24 }
 0x3ef   :  { %v9329_v28 = vsel %vm11007_vm15, %v4285_v61, %v4286_v38  ;;  %v5833_v61 = vpack.c.bf16 %v4163_v46, %v4162_v18  ;;  %v4166_v18 = vld [vmem:[%s10408_s3 + $0x30] sm:$0xff]  ;;  %v4167_v46 = vld [vmem:[%s10408_s3 + $0x38] sm:$0xff] }
 0x3f0   :  { %4456 = vrot.lane.b32.xlu1 %v9243_v44, %s5934_s17  ;;  %v9299_v59 = vpop.permute.xlu0 %1667  ;;  %5830 = vmatprep.subr.bf16.mxu1 %v5829_v15  ;;  %v9356_v6 = vsel %vm11000_vm2, %v4373_v63, %v4374_v23  ;;  %vm11014_vm2 = vmmov %vm11013_vm3 }
 0x3f1   :  { %5832 = vmatpush3.bf16.msra.mxu1 %v5829_v15 }
 0x3f2   :  { %v2230_v9 = vpop.permute.xlu1 %2229  ;;  %4411 = vrot.lane.b32.xlu0 %v4369_v29, %s5932_s15  ;;  %5834 = vmatprep.subr.bf16.mxu1 %v5833_v61 }
 0x3f3   :  { %v2826_v0 = vsel %vm2784_vm11, %v2761_v57, %v2230_v9  ;;  %v11009_v57 = vld [vmem:[#allocation13_spill] sm:$0xff] }
 0x3f4   :  { %4512 = vrot.lane.b32.xlu1 %v4281_v58, %s5936_s1  ;;  %5726 = vmatmul.mubr.msk.f32.gmra.mrb[40].mxu0 %vm2855_vm12, %v2826_v0  ;;  %v1888_v62 = vpop.permute.xlu0 %1887  ;;  %v9338_v58 = vsel %vm11008_vm13, %v4370_v26, %v4371_v37  ;;  %v2388_v9 = vsel %vm2333_vm4, %v11009_v57, %v8932_v22 }
 0x3f5   :  { %5836 = vmatpush3.bf16.msra.mxu1 %v5833_v61 }
 0x3f6   :  { %v9312_v33 = vpop.permute.xlu1 %1293  ;;  %4458 = vrot.lane.b32.xlu0 %v9293_v1, %s5934_s17 }
 0x3f8   :  { %4514 = vrot.lane.b32.xlu1 %v9317_v32, %s5936_s1  ;;  %v9322_v53 = vpop.permute.xlu0 %1103 }
 0x3fa   :  { %v9324_v52 = vpop.permute.xlu1 %1859  ;;  %4325 = vrot.lane.b32.xlu0 %v9317_v32, %s5930_s13 }
 0x3fc   :  { %4327 = vrot.lane.b32.xlu1 %v9329_v28, %s5930_s13  ;;  %v9334_v21 = vpop.permute.xlu0 %1669 }
 0x3fe   :  { %v2074_v41 = vpop.permute.xlu1 %2073  ;;  %4566 = vrot.lane.b32.xlu0 %v4369_v29, %s5937_s0  ;;  %v2451_v29 = vsel %vm2396_vm5, %v2388_v9, %v9039_v36  ;;  %v11010_v36 = vld [vmem:[#allocation24_spill] sm:$0xff] }
 0x3ff   :  { %v2516_v7 = vsel %vm2459_vm6, %v2451_v29, %v9092_v27  ;;  %v4189_v26 = vrot.slane %v11010_v36, 7  ;;  %v4164_v27 = vld [vmem:[%s10408_s3 + $0x20] sm:$0xff] }
 0x400   :  { %4568 = vrot.lane.b32.xlu1 %v9338_v58, %s5937_s0  ;;  %v9349_v35 = vpop.permute.xlu0 %1889  ;;  %v2581_v38 = vsel %vm2524_vm8, %v2516_v7, %v9133_v51  ;;  %v4165_v51 = vld [vmem:[%s10408_s3 + $0x28] sm:$0xff]  ;;  %v2389_v7 = vsel %vm2333_vm4, %v8480_v47, %v9007_v60 }
 0x401   :  { %v2646_v37 = vsel %vm2589_vm7, %v2581_v38, %v9192_v30  ;;  %v5837_v24 = vpack.c.bf16 %v4165_v51, %v4164_v27  ;;  %v9402_v9 = vsel %vm168_vm0, 0.0, %v4189_v26  ;;  %v5841_v38 = vpack.c.bf16 %v4167_v46, %v4166_v18 }
 0x402   :  { %v9351_v34 = vpop.permute.xlu1 %1497  ;;  %4413 = vrot.lane.b32.xlu0 %v9338_v58, %s5932_s15  ;;  %v2711_v63 = vsel %vm2654_vm9, %v2646_v37, %v1888_v62  ;;  %v4288_v36 = vrot.slane %v9402_v9, 1  ;;  %v11011_v37 = vld [vmem:[#allocation20_spill] sm:$0xff]  ;;  %v2452_v47 = vsel %vm2396_vm5, %v2389_v7, %v9079_v8  ;;  %v3279_v46 = vadd.f32 %v9123_v3, %v9202_v14 }
 0x403   :  { %v2776_v30 = vsel %vm2719_vm10, %v2711_v63, %v2074_v41  ;;  %5838 = vmatprep.subr.bf16.mxu1 %v5837_v24  ;;  %v9410_v41 = vsel %vm168_vm0, %v4189_v26, 0.0  ;;  %v4190_v27 = vrot.slane %v11011_v37, 7  ;;  %v2517_v51 = vsel %vm2459_vm6, %v2452_v47, %v9108_v20  ;;  %v11012_v63 = vld [vmem:[#allocation121_spill] sm:$0xff] }
 0x404   :  { %4415 = vrot.lane.b32.xlu1 %v9356_v6, %s5932_s15  ;;  %v9365_v0 = vpop.permute.xlu0 %1295  ;;  %5840 = vmatpush3.bf16.msra.mxu1 %v5837_v24  ;;  %v4289_v26 = vrot.slane %v9410_v41, 1  ;;  %v2374_v24 = vsel %vm2333_vm4, %v10909_v43, %v11012_v63  ;;  %v4168_v20 = vld [vmem:[%s10408_s3 + $0x40] sm:$0xff]  ;;  %v3284_v43 = vadd.f32 %v9123_v3, %v9197_v40  ;;  %s5940_s3 = smov 64   ;;  %vm3469_vm1 = vcmp.gt.f32.partialorder %v3279_v46, 0.0 }
 0x405   :  { %5842 = vmatprep.subr.bf16.mxu1 %v5841_v38 }
 0x406   :  { %v9375_v22 = vpop.permute.xlu1 %2045  ;;  %4614 = vrot.lane.b32.xlu0 %v9293_v1, %s5938_s20  ;;  %v9446_v8 = vsel %vm11013_vm3, %v4288_v36, %v4289_v26  ;;  %v3534_v37 = vmul.f32 0.1, %v3284_v43  ;;  %vm3470_vm14 = vcmp.gt.f32.partialorder %v3284_v43, 0.0  ;;  %vm11016_vm3 = vcmask 1045504  }
 0x408   :  { %4616 = vrot.lane.b32.xlu1 %v9309_v55, %s5938_s20  ;;  %v9393_v23 = vpop.permute.xlu0 %1861  ;;  %5844 = vmatpush3.bf16.msra.mxu1 %v5841_v38 }
 0x409   :  { %5777 = vmatprep.subr.mxu1 %v4168_v20 }
 0x40a   :  { %v2260_v13 = vpop.permute.xlu1 %2259  ;;  %4460 = vrot.lane.b32.xlu0 %v9309_v55, %s5934_s17 }
 0x40b   :  { %v2841_v15 = vsel %vm2784_vm11, %v2776_v30, %v2260_v13  ;;  %v9399_v57 = vpop.f32.mrb[4].mxu1  ;;  %v2582_v30 = vsel %vm2524_vm8, %v2517_v51, %v9207_v39  ;;  %v9449_v13 = vsel %vm168_vm0, 0.0, %v4190_v27 }
 0x40c   :  { %4462 = vrot.lane.b32.xlu1 %v9402_v9, %s5934_s17  ;;  %v9406_v62 = vpop.f32.mrb[5].mxu1  ;;  %5749 = vmatprep.mubr.msk.f32.mxu1 %vm2855_vm12, %v2841_v15  ;;  %v2076_v29 = vpop.permute.xlu0 %2075  ;;  %v2437_v15 = vsel %vm2396_vm5, %v2374_v24, %v9085_v54  ;;  %v2647_v39 = vsel %vm2589_vm7, %v2582_v30, %v9281_v16 }
 0x40d   :  { %v2502_v18 = vsel %vm2459_vm6, %v2437_v15, %v9115_v10  ;;  %v2712_v54 = vsel %vm2654_vm9, %v2647_v39, %v9349_v35  ;;  %5778 = vmatpush3.msra.mxu1 %v4168_v20  ;;  %v4291_v35 = vrot.slane %v9449_v13, 1  ;;  %v3598_v39 = vsel %vm3470_vm14, %v3284_v43, %v3534_v37  ;;  %vm11017_vm14 = vmmov %vm11016_vm3 }
 0x40e   :  { %v9421_v61 = vpop.permute.xlu1 %1499  ;;  %4659 = vrot.lane.b32.xlu0 %v9317_v32, %s5939_s30  ;;  %v2567_v16 = vsel %vm2524_vm8, %v2502_v18, %v9175_v17  ;;  %v2777_v7 = vsel %vm2719_vm10, %v2712_v54, %v2076_v29  ;;  %v4379_v43 = vrot.slane %v9449_v13, 2 }
 0x40f   :  { %v2632_v36 = vsel %vm2589_vm7, %v2567_v16, %v9299_v59 }
 0x410   :  { %4661 = vrot.lane.b32.xlu1 %v9329_v28, %s5939_s30  ;;  %v9432_v60 = vpop.permute.xlu0 %763  ;;  %v2697_v17 = vsel %vm2654_vm9, %v2632_v36, %v9324_v52  ;;  %v11015_v36 = vld [vmem:[#allocation124_spill] sm:$0xff] }
 0x411   :  { %v2762_v47 = vsel %vm2719_vm10, %v2697_v17, %v9375_v22  ;;  %v4377_v22 = vrot.slane %v9410_v41, 2 }
 0x412   :  { %v9436_v32 = vpop.permute.xlu1 %2047  ;;  %4516 = vrot.lane.b32.xlu0 %v9329_v28, %s5936_s1  ;;  %v9463_v28 = vsel %vm168_vm0, %v4190_v27, 0.0  ;;  %v4376_v27 = vrot.slane %v9402_v9, 2 }
 0x413   :  { %v4292_v26 = vrot.slane %v9463_v28, 1 }
 0x414   :  { %4329 = vrot.lane.b32.xlu1 %v9446_v8, %s5930_s13  ;;  %v9471_v40 = vpop.permute.xlu0 %1699  ;;  %v9516_v41 = vsel %vm11016_vm3, %v4376_v27, %v4377_v22 }
 0x415   :  { %v9500_v15 = vsel %vm11014_vm2, %v4291_v35, %v4292_v26  ;;  %vm11021_vm2 = vcmask 1044480  }
 0x416   :  { %v2262_v38 = vpop.permute.xlu1 %2261  ;;  %4704 = vrot.lane.b32.xlu0 %v9338_v58, %s5940_s3  ;;  %v3533_v58 = vmul.f32 0.1, %v3279_v46 }
 0x417   :  { %v2842_v10 = vsel %vm2784_vm11, %v2777_v7, %v2262_v38  ;;  %v5718_v14 = vpop.f32.mrb[34].mxu0 }
 0x418   :  { %v3294_v29 = vadd.f32 %v9123_v3, %v5718_v14  ;;  %4570 = vrot.lane.b32.xlu1 %v9356_v6, %s5937_s0  ;;  %5750 = vmatmul.mubr.msk.f32.gmra.mrb[12].mxu1 %vm2855_vm12, %v2842_v10  ;;  %v3288_v59 = vpop.f32.mrb[35].mxu0  ;;  %v2232_v51 = vpop.permute.xlu0 %2231  ;;  %v3597_v54 = vsel %vm3469_vm1, %v3279_v46, %v3533_v58  ;;  %v2375_v10 = vsel %vm2333_vm4, %v10910_v25, %v11015_v36  ;;  %v4380_v46 = vrot.slane %v9463_v28, 2 }
 0x419   :  { %v3289_v63 = vadd.f32 %v9123_v3, %v3288_v59  ;;  %v2827_v24 = vsel %vm2784_vm11, %v2762_v47, %v2232_v51  ;;  %v2438_v37 = vsel %vm2396_vm5, %v2375_v10, %v9100_v50  ;;  %vm11018_vm1 = vcmask 1041408  }
 0x41a   :  { %vm3472_vm15 = vcmp.gt.f32.partialorder %v3294_v29, 0.0  ;;  %v3536_v52 = vmul.f32 0.1, %v3294_v29  ;;  %v9494_v30 = vpop.permute.xlu1 %1105  ;;  %4518 = vrot.lane.b32.xlu0 %v9446_v8, %s5936_s1  ;;  %5728 = vmatprep.mubr.msk.f32.mxu0 %vm2855_vm12, %v2827_v24  ;;  %v2503_v25 = vsel %vm2459_vm6, %v2438_v37, %v9187_v49  ;;  %v9537_v50 = vsel %vm11017_vm14, %v4379_v43, %v4380_v46 }
 0x41b   :  { %vm3471_vm13 = vcmp.gt.f32.partialorder %v3289_v63, 0.0  ;;  %v3535_v20 = vmul.f32 0.1, %v3289_v63  ;;  %vm11022_vm14 = vcmask 1046528  }
 0x41c   :  { %v3600_v18 = vsel %vm3472_vm15, %v3294_v29, %v3536_v52  ;;  %4331 = vrot.lane.b32.xlu1 %v9500_v15, %s5930_s13  ;;  %v9506_v38 = vpop.permute.xlu0 %765  ;;  %vm11019_vm15 = vcmask 1042432  }
 0x41d   :  { %v3646_v16 = vmax.f32 %v3598_v39, %v3600_v18  ;;  %v3599_v7 = vsel %vm3471_vm13, %v3289_v63, %v3535_v20  ;;  %vm11020_vm13 = vcmask 1043456  }
 0x41e   :  { %v3645_v14 = vmax.f32 %v3597_v54, %v3599_v7  ;;  %v9511_v35 = vpop.permute.xlu1 %1891  ;;  %4706 = vrot.lane.b32.xlu0 %v9356_v6, %s5940_s3  ;;  %v2568_v6 = vsel %vm2524_vm8, %v2503_v25, %v9264_v2  ;;  %v2390_v25 = vsel %vm2333_vm4, %v8670_v11, %v9161_v56 }
 0x41f   :  { %v3749_v26 = vrot.slane %v3646_v16, 1  ;;  %v2633_v28 = vsel %vm2589_vm7, %v2568_v6, %v9334_v21 }
 0x420   :  { %v3685_v17 = vrot.slane %v3645_v14, 1  ;;  %4572 = vrot.lane.b32.xlu1 %v9516_v41, %s5937_s0  ;;  %v9526_v29 = vpop.permute.xlu0 %1701  ;;  %v2698_v49 = vsel %vm2654_vm9, %v2633_v28, %v9393_v23  ;;  %v4191_v23 = vrot.slane %v8563_v31, 7  ;;  %v2453_v28 = vsel %vm2396_vm5, %v2390_v25, %v9277_v12 }
 0x421   :  { %v3781_v58 = vmax.f32 %v3646_v16, %v3749_v26  ;;  %v2763_v2 = vsel %vm2719_vm10, %v2698_v49, %v9436_v32  ;;  %v2518_v49 = vsel %vm2459_vm6, %v2453_v28, %v9312_v33 }
 0x422   :  { %v3717_v59 = vmax.f32 %v3645_v14, %v3685_v17  ;;  %v9530_v27 = vpop.permute.xlu1 %1107  ;;  %4417 = vrot.lane.b32.xlu0 %v9516_v41, %s5932_s15  ;;  %v9564_v31 = vsel %vm168_vm0, 0.0, %v4191_v23  ;;  %v4239_v43 = vsel %vm168_vm0, %v4191_v23, 0.0  ;;  %v2583_v11 = vsel %vm2524_vm8, %v2518_v49, %v9351_v34 }
 0x423   :  { %v3925_v22 = vrot.slane %v3781_v58, 4  ;;  %v3957_v18 = vrot.slane %v3781_v58, 5  ;;  %v3989_v54 = vrot.slane %v3781_v58, 6  ;;  %v4021_v10 = vrot.slane %v3781_v58, 7 }
 0x424   :  { %v3813_v47 = vrot.slane %v3717_v59, 1  ;;  %v3845_v51 = vrot.slane %v3717_v59, 2  ;;  %4419 = vrot.lane.b32.xlu1 %v9537_v50, %s5932_s15  ;;  %v2234_v63 = vpop.permute.xlu0 %2233  ;;  %v3877_v21 = vrot.slane %v3717_v59, 3  ;;  %v4294_v6 = vrot.slane %v9564_v31, 1 }
 0x425   :  { %v2828_v24 = vsel %vm2784_vm11, %v2763_v2, %v2234_v63  ;;  %v4192_v58 = vrot.slane %v8750_v5, 7 }
 0x426   :  { %v4053_v52 = vsel %vm168_vm0, %v3717_v59, %v3813_v47  ;;  %v1894_v20 = vpop.permute.xlu1 %1893  ;;  %4618 = vrot.lane.b32.xlu0 %v9402_v9, %s5938_s20  ;;  %5729 = vmatmul.mubr.msk.f32.gmra.mrb[42].mxu0 %vm2855_vm12, %v2828_v24  ;;  %v4295_v59 = vrot.slane %v4239_v43, 1 }
 0x427   :  { %v4070_v39 = vsel %vm11018_vm1, %v4053_v52, %v3845_v51  ;;  %vm11023_vm1 = vmmov %vm11022_vm14  ;;  %v9604_v33 = vsel %vm168_vm0, 0.0, %v4192_v58  ;;  %v4240_v34 = vsel %vm168_vm0, %v4192_v58, 0.0  ;;  %v11024_v51 = vld [vmem:[#allocation29_spill] sm:$0xff] }
 0x428   :  { %4620 = vrot.lane.b32.xlu1 %v9449_v13, %s5938_s20  ;;  %v4087_v32 = vsel %vm11019_vm15, %v4070_v39, %v3877_v21  ;;  %v9555_v16 = vpop.permute.xlu0 %1297  ;;  %v9597_v12 = vsel %vm11023_vm1, %v4294_v6, %v4295_v59  ;;  %v4298_v52 = vrot.slane %v4240_v34, 1  ;;  %vm11025_vm15 = vmmov %vm11023_vm1 }
 0x429   :  { %v4103_v7 = vsel %vm11020_vm13, %v4087_v32, %v3925_v22  ;;  %v4383_v32 = vrot.slane %v4239_v43, 2  ;;  %vm11026_vm13 = vmmov %vm11016_vm3  ;;  %v3359_v43 = vadd.f32 %v9123_v3, %v9406_v62 }
 0x42a   :  { %v9558_v36 = vpop.permute.xlu1 %1299  ;;  %v4120_v14 = vsel %vm11021_vm2, %v4103_v7, %v3957_v18  ;;  %4464 = vrot.lane.b32.xlu0 %v9449_v13, %s5934_s17  ;;  %v4382_v18 = vrot.slane %v9564_v31, 2  ;;  %vm11027_vm2 = vmmov %vm11016_vm3 }
 0x42b   :  { %v4136_v26 = vsel %vm11016_vm3, %v4120_v14, %v3989_v54  ;;  %v4386_v14 = vrot.slane %v4240_v34, 2  ;;  %v3549_v62 = vmul.f32 0.1, %v3359_v43 }
 0x42c   :  { %4466 = vrot.lane.b32.xlu1 %v9564_v31, %s5934_s17  ;;  %v9571_v46 = vsel %vm11022_vm14, %v4136_v26, %v4021_v10  ;;  %v2078_v37 = vpop.permute.xlu0 %2077  ;;  %v9649_v10 = vsel %vm11026_vm13, %v4382_v18, %v4383_v32  ;;  %v3364_v26 = vadd.f32 %v9123_v3, %v9399_v57  ;;  %vm3485_vm14 = vcmp.gt.f32.partialorder %v3359_v43, 0.0  ;;  %v11029_v18 = vld [vmem:[#allocation21_spill] sm:$0xff] }
 0x42d   :  { %v2392_v32 = vsel %vm2333_vm4, %v11029_v18, %v9432_v60  ;;  %vm11033_vm13 = vcmask 1046528  }
 0x42e   :  { %v2080_v17 = vpop.permute.xlu1 %2079  ;;  %4663 = vrot.lane.b32.xlu0 %v9446_v8, %s5939_s30  ;;  %v2648_v8 = vsel %vm2589_vm7, %v2583_v11, %v9471_v40  ;;  %v2391_v40 = vsel %vm2333_vm4, %v11024_v51, %v9236_v4  ;;  %v3550_v6 = vmul.f32 0.1, %v3364_v26  ;;  %vm3486_vm3 = vcmp.gt.f32.partialorder %v3364_v26, 0.0 }
 0x42f   :  { %v2713_v5 = vsel %vm2654_vm9, %v2648_v8, %v9511_v35  ;;  %v4297_v35 = vrot.slane %v9604_v33, 1  ;;  %v2454_v24 = vsel %vm2396_vm5, %v2391_v40, %v9322_v53  ;;  %v11028_v8 = vld [vmem:[#allocation34_spill] sm:$0xff] }
 0x430   :  { %4665 = vrot.lane.b32.xlu1 %v9500_v15, %s5939_s30  ;;  %v9586_v47 = vpop.permute.xlu0 %1501  ;;  %v2519_v4 = vsel %vm2459_vm6, %v2454_v24, %v9365_v0  ;;  %v3614_v51 = vsel %vm3486_vm3, %v3364_v26, %v3550_v6  ;;  %vm11036_vm3 = vcmask 1043456  }
 0x431   :  { %v2584_v39 = vsel %vm2524_vm8, %v2519_v4, %v9421_v61  ;;  %v9635_v53 = vsel %vm11025_vm15, %v4297_v35, %v4298_v52 }
 0x432   :  { %v9590_v56 = vpop.permute.xlu1 %767  ;;  %4520 = vrot.lane.b32.xlu0 %v9500_v15, %s5936_s1  ;;  %v2778_v15 = vsel %vm2719_vm10, %v2713_v5, %v2078_v37  ;;  %v2649_v23 = vsel %vm2589_vm7, %v2584_v39, %v9526_v29  ;;  %v4193_v5 = vrot.slane %v11028_v8, 7 }
 0x433   :  { %v2714_v0 = vsel %vm2654_vm9, %v2649_v23, %v1894_v20  ;;  %v4385_v20 = vrot.slane %v9604_v33, 2 }
 0x434   :  { %4333 = vrot.lane.b32.xlu1 %v9597_v12, %s5930_s13  ;;  %v2264_v2 = vpop.permute.xlu0 %2263  ;;  %v2779_v61 = vsel %vm2719_vm10, %v2714_v0, %v2080_v17  ;;  %v9681_v24 = vsel %vm168_vm0, 0.0, %v4193_v5  ;;  %v9684_v4 = vsel %vm168_vm0, %v4193_v5, 0.0 }
 0x435   :  { %v2843_v63 = vsel %vm2784_vm11, %v2778_v15, %v2264_v2  ;;  %v9665_v25 = vsel %vm11027_vm2, %v4385_v20, %v4386_v14  ;;  %v3613_v15 = vsel %vm3485_vm14, %v3359_v43, %v3549_v62  ;;  %v2455_v20 = vsel %vm2396_vm5, %v2392_v32, %v9494_v30  ;;  %v11030_v14 = vld [vmem:[#allocation17_spill] sm:$0xff] }
 0x436   :  { %v9612_v21 = vpop.permute.xlu1 %1703  ;;  %4708 = vrot.lane.b32.xlu0 %v9516_v41, %s5940_s3  ;;  %5752 = vmatprep.mubr.msk.f32.mxu1 %vm2855_vm12, %v2843_v63  ;;  %v2393_v26 = vsel %vm2333_vm4, %v11030_v14, %v9506_v38  ;;  %v4561_v6 = vrot.slane %v9684_v4, 2  ;;  %vm11035_vm2 = vcmask 1042432   ;;  %vm11037_vm14 = vcmask 1044480  }
 0x437   :  { %v2456_v60 = vsel %vm2396_vm5, %v2393_v26, %v9530_v27 }
 0x438   :  { %4574 = vrot.lane.b32.xlu1 %v9537_v50, %s5937_s0  ;;  %v9624_v22 = vpop.permute.xlu0 %1503 }
 0x43a   :  { %v9628_v41 = vpop.permute.xlu1 %769  ;;  %4522 = vrot.lane.b32.xlu0 %v9597_v12, %s5936_s1 }
 0x43c   :  { %4335 = vrot.lane.b32.xlu1 %v9635_v53, %s5930_s13  ;;  %v2266_v54 = vpop.permute.xlu0 %2265 }
 0x43d   :  { %v2844_v7 = vsel %vm2784_vm11, %v2779_v61, %v2266_v54  ;;  %v4506_v61 = vrot.slane %v9681_v24, 1  ;;  %v4560_v54 = vrot.slane %v9681_v24, 2 }
 0x43e   :  { %v9643_v29 = vpop.permute.xlu1 %1705  ;;  %4710 = vrot.lane.b32.xlu0 %v9537_v50, %s5940_s3  ;;  %5753 = vmatmul.mubr.msk.f32.gmra.mrb[14].mxu1 %vm2855_vm12, %v2844_v7  ;;  %v4507_v7 = vrot.slane %v9684_v4, 1 }
 0x440   :  { %4576 = vrot.lane.b32.xlu1 %v9649_v10, %s5937_s0  ;;  %v9658_v37 = vpop.permute.xlu0 %1109 }
 0x442   :  { %v9660_v50 = vpop.permute.xlu1 %1111  ;;  %4421 = vrot.lane.b32.xlu0 %v9649_v10, %s5932_s15 }
 0x443   :  { %v5742_v17 = vpop.f32.mrb[6].mxu1 }
 0x444   :  { %v3374_v57 = vadd.f32 %v9123_v3, %v5742_v17  ;;  %4423 = vrot.lane.b32.xlu1 %v9665_v25, %s5932_s15  ;;  %v3368_v59 = vpop.f32.mrb[7].mxu1  ;;  %v9671_v58 = vpop.permute.xlu0 %1895 }
 0x445   :  { %v3369_v28 = vadd.f32 %v9123_v3, %v3368_v59  ;;  %v11031_v59 = vld [vmem:[#allocation26_spill] sm:$0xff] }
 0x446   :  { %vm3488_vm1 = vcmp.gt.f32.partialorder %v3374_v57, 0.0  ;;  %v3552_v49 = vmul.f32 0.1, %v3374_v57  ;;  %v1898_v11 = vpop.permute.xlu1 %1897  ;;  %4622 = vrot.lane.b32.xlu0 %v9564_v31, %s5938_s20  ;;  %v2394_v62 = vsel %vm2333_vm4, %v11031_v59, %v9590_v56  ;;  %v2521_v56 = vsel %vm2459_vm6, %v2456_v60, %v9558_v36 }
 0x447   :  { %vm3487_vm15 = vcmp.gt.f32.partialorder %v3369_v28, 0.0  ;;  %v3551_v34 = vmul.f32 0.1, %v3369_v28 }
 0x448   :  { %v3616_v40 = vsel %vm3488_vm1, %v3374_v57, %v3552_v49  ;;  %4624 = vrot.lane.b32.xlu1 %v9604_v33, %s5938_s20  ;;  %v1302_v63 = vpop.permute.xlu0 %1301  ;;  %v2520_v57 = vsel %vm2459_vm6, %v2455_v20, %v9555_v16  ;;  %v11032_v49 = vld [vmem:[#allocation18_spill] sm:$0xff]  ;;  %vm11038_vm1 = vcmask 1045504  }
 0x449   :  { %v3654_v3 = vmax.f32 %v3614_v51, %v3616_v40  ;;  %v3615_v2 = vsel %vm3487_vm15, %v3369_v28, %v3551_v34  ;;  %v2585_v38 = vsel %vm2524_vm8, %v2520_v57, %v9586_v47  ;;  %v2395_v27 = vsel %vm2333_vm4, %v11032_v49, %v9628_v41  ;;  %vm11039_vm15 = vmmov %vm11033_vm13 }
 0x44a   :  { %v3653_v35 = vmax.f32 %v3613_v15, %v3615_v2  ;;  %v9678_v52 = vpop.permute.xlu1 %1303  ;;  %4468 = vrot.lane.b32.xlu0 %v9604_v33, %s5934_s17  ;;  %v9727_v47 = vsel %vm11033_vm13, %v4506_v61, %v4507_v7  ;;  %v4194_v51 = vrot.slane %v9571_v46, 7  ;;  %v2586_v41 = vsel %vm2524_vm8, %v2521_v56, %v9624_v22  ;;  %vm11040_vm13 = vmmov %vm11038_vm1  ;;  %v11043_v56 = vld [vmem:[#allocation15_spill] sm:$0xff] }
 0x44b   :  { %v3753_v39 = vrot.slane %v3654_v3, 1  ;;  %v2457_v40 = vsel %vm2396_vm5, %v2394_v62, %v9658_v37  ;;  %v2651_v36 = vsel %vm2589_vm7, %v2586_v41, %v9643_v29  ;;  %vm11034_vm4 = vcmask 1041408  }
 0x44c   :  { %v3689_v23 = vrot.slane %v3653_v35, 1  ;;  %4470 = vrot.lane.b32.xlu1 %v9681_v24, %s5934_s17  ;;  %v2082_v0 = vpop.permute.xlu0 %2081  ;;  %v2716_v37 = vsel %vm2654_vm9, %v2651_v36, %v1898_v11  ;;  %v4562_v59 = vsel %vm11040_vm13, %v4560_v54, %v4561_v6 }
 0x44d   :  { %v3785_v28 = vmax.f32 %v3654_v3, %v3753_v39  ;;  %v2522_v39 = vsel %vm2459_vm6, %v2457_v40, %v1302_v63  ;;  %v9759_v63 = vsel %vm168_vm0, 0.0, %v4194_v51 }
 0x44e   :  { %v3721_v43 = vmax.f32 %v3653_v35, %v3689_v23  ;;  %v2084_v17 = vpop.permute.xlu1 %2083  ;;  %4667 = vrot.lane.b32.xlu0 %v9597_v12, %s5939_s30  ;;  %v2650_v12 = vsel %vm2589_vm7, %v2585_v38, %v9612_v21  ;;  %v2458_v21 = vsel %vm2396_vm5, %v2395_v27, %v9660_v50  ;;  %v11041_v38 = vld [vmem:[#allocation10_spill] sm:$0xff] }
 0x44f   :  { %v9711_v30 = vpop.f32.mrb[36].mxu0  ;;  %v3929_v35 = vrot.slane %v3785_v28, 4  ;;  %v3961_v46 = vrot.slane %v3785_v28, 5  ;;  %v2715_v22 = vsel %vm2654_vm9, %v2650_v12, %v9671_v58  ;;  %v3993_v18 = vrot.slane %v3785_v28, 6 }
 0x450   :  { %v3817_v8 = vrot.slane %v3721_v43, 1  ;;  %v3849_v5 = vrot.slane %v3721_v43, 2  ;;  %v9718_v16 = vpop.f32.mrb[37].mxu0  ;;  %4669 = vrot.lane.b32.xlu1 %v9635_v53, %s5939_s30  ;;  %v1506_v34 = vpop.permute.xlu0 %1505  ;;  %v3881_v15 = vrot.slane %v3721_v43, 3  ;;  %v2780_v50 = vsel %vm2719_vm10, %v2715_v22, %v2082_v0 }
 0x451   :  { %v4025_v7 = vrot.slane %v3785_v28, 7  ;;  %v4242_v0 = vsel %vm168_vm0, %v4194_v51, 0.0  ;;  %v2523_v26 = vsel %vm2459_vm6, %v2458_v21, %v9678_v52  ;;  %v4300_v52 = vrot.slane %v9759_v63, 1  ;;  %vm11047_vm6 = vmmov %vm11039_vm15 }
 0x452   :  { %v4057_v3 = vsel %vm168_vm0, %v3721_v43, %v3817_v8  ;;  %v1508_v2 = vpop.permute.xlu1 %1507  ;;  %4524 = vrot.lane.b32.xlu0 %v9635_v53, %s5936_s1  ;;  %v2781_v53 = vsel %vm2719_vm10, %v2716_v37, %v2084_v17  ;;  %v4301_v62 = vrot.slane %v4242_v0, 1  ;;  %v11042_v49 = vunpack.i.l.bf16 %v11041_v38 }
 0x453   :  { %v4074_v4 = vsel %vm11034_vm4, %v4057_v3, %v3849_v5  ;;  %v2588_v28 = vsel %vm2524_vm8, %v2523_v26, %v1508_v2  ;;  %v4388_v8 = vrot.slane %v9759_v63, 2  ;;  %v4389_v5 = vrot.slane %v4242_v0, 2  ;;  %vm11049_vm4 = vmmov %vm11038_vm1 }
 0x454   :  { %4526 = vrot.lane.b32.xlu1 %v9727_v47, %s5936_s1  ;;  %v4091_v29 = vsel %vm11035_vm2, %v4074_v4, %v3881_v15  ;;  %v2268_v23 = vpop.permute.xlu0 %2267  ;;  %v11044_v12 = vunpack.i.l.bf16 %v11043_v56  ;;  %v11048_v3 = vunpack.i.h.bf16 %v11041_v38  ;;  %v11050_v21 = vunpack.i.h.bf16 %v11043_v56 }
 0x455   :  { %v4107_v32 = vsel %vm11036_vm3, %v4091_v29, %v3929_v35  ;;  %v2845_v61 = vsel %vm2784_vm11, %v2780_v50, %v2268_v23  ;;  %v9799_v36 = vsel %vm11049_vm4, %v4388_v8, %v4389_v5  ;;  %vm4862_vm2 = vcmask 523264  }
 0x456   :  { %v2270_v58 = vpop.permute.xlu1 %2269  ;;  %v4124_v11 = vsel %vm11037_vm14, %v4107_v32, %v3961_v46  ;;  %4712 = vrot.lane.b32.xlu0 %v9649_v10, %s5940_s3  ;;  %5755 = vmatprep.mubr.msk.f32.mxu1 %vm2855_vm12, %v2845_v61  ;;  %v2587_v10 = vsel %vm2524_vm8, %v2522_v39, %v1506_v34  ;;  %v11045_v34 = vld [vmem:[#allocation14_spill] sm:$0xff]  ;;  %vm4885_vm3 = vcmask 588800   ;;  %vm11053_vm4 = vcmask 1042432  }
 0x457   :  { %v2846_v20 = vsel %vm2784_vm11, %v2781_v53, %v2270_v58  ;;  %v4140_v14 = vsel %vm11038_vm1, %v4124_v11, %v3993_v18  ;;  %v11046_v51 = vunpack.i.l.bf16 %v11045_v34  ;;  %v11051_v46 = vunpack.i.h.bf16 %v11045_v34 }
 0x458   :  { %5756 = vmatmul.mubr.msk.f32.gmra.mrb[16].mxu1 %vm2855_vm12, %v2846_v20  ;;  %4714 = vrot.lane.b32.xlu1 %v9665_v25, %s5940_s3  ;;  %v9769_v43 = vsel %vm11039_vm15, %v4140_v14, %v4025_v7  ;;  %v1708_v17 = vpop.permute.xlu0 %1707 }
 0x459   :  { %v2652_v60 = vsel %vm2589_vm7, %v2587_v10, %v1708_v17 }
 0x45a   :  { %v4322_v57 = vpop.permute.xlu1 %4321  ;;  %v2717_v27 = vsel %vm2654_vm9, %v2652_v60, %v11042_v49  ;;  %4578 = vrot.lane.b32.xlu0 %v9665_v25, %s5937_s0  ;;  %v4302_v25 = vsel %vm11047_vm6, %v4300_v52, %v4301_v62  ;;  %vm11052_vm6 = vcmask 1041408  }
 0x45b   :  { %v2782_v54 = vsel %vm2719_vm10, %v2717_v27, %v11044_v12 }
 0x45c   :  { %4580 = vrot.lane.b32.xlu1 %v4562_v59, %s5937_s0  ;;  %v1710_v6 = vpop.permute.xlu0 %1709  ;;  %v2847_v41 = vsel %vm2784_vm11, %v2782_v54, %v11046_v51 }
 0x45d   :  { %v2653_v40 = vsel %vm2589_vm7, %v2588_v28, %v1710_v6  ;;  %5758 = vmatprep.mubr.msk.f32.mxu1 %vm2855_vm12, %v2847_v41  ;;  %vm4811_vm7 = vcmask 326656   ;;  %v9852_v28 = vld [vmem:[%s10407_s2] ss:$0 sm:$0xff] }
 0x45e   :  { %v4410_v15 = vpop.permute.xlu1 %4409  ;;  %v2718_v2 = vsel %vm2654_vm9, %v2653_v40, %v11048_v3  ;;  %4337 = vrot.lane.b32.xlu0 %v4302_v25, %s5930_s13  ;;  %v3304_v38 = vadd.f32 %v9852_v28, %v9711_v30  ;;  %v3299_v27 = vadd.f32 %v9852_v28, %v9718_v16 }
 0x45f   :  { %v2783_v35 = vsel %vm2719_vm10, %v2718_v2, %v11050_v21  ;;  %vm4828_vm10 = vcmask 392192  }
 0x460   :  { %4425 = vrot.lane.b32.xlu1 %v9799_v36, %s5932_s15  ;;  %v4324_v4 = vpop.permute.xlu0 %4323  ;;  %v2848_v22 = vsel %vm2784_vm11, %v2783_v35, %v11051_v46  ;;  %v3538_v51 = vmul.f32 0.1, %v3304_v38  ;;  %vm3474_vm14 = vcmp.gt.f32.partialorder %v3304_v38, 0.0  ;;  %vm3473_vm1 = vcmp.gt.f32.partialorder %v3299_v27, 0.0 }
 0x461   :  { %5759 = vmatmul.mubr.msk.f32.gmra.mrb[18].mxu1 %vm2855_vm12, %v2848_v22  ;;  %vm4845_vm12 = vcmask 457728   ;;  %v4750_v8 = vsel %vm2396_vm5, %v9243_v44, %v4324_v4  ;;  %v3537_v44 = vmul.f32 0.1, %v3299_v27 }
 0x462   :  { %v4457_v37 = vpop.permute.xlu1 %4456  ;;  %4626 = vrot.lane.b32.xlu0 %v9681_v24, %s5938_s20  ;;  %v3602_v4 = vsel %vm3474_vm14, %v3304_v38, %v3538_v51  ;;  %vm11054_vm14 = vcmask 1043456  }
 0x464   :  { %4628 = vrot.lane.b32.xlu1 %v10992_v45, %s5938_s20  ;;  %v4412_v29 = vpop.permute.xlu0 %4411 }
 0x465   :  { %v4765_v12 = vsel %vm2524_vm8, %v4750_v8, %v4412_v29 }
 0x466   :  { %v4513_v39 = vpop.permute.xlu1 %4512  ;;  %4472 = vrot.lane.b32.xlu0 %v9759_v63, %s5934_s17 }
 0x468   :  { %v4459_v50 = vpop.permute.xlu0 %4458 }
 0x469   :  { %v4780_v30 = vsel %vm2654_vm9, %v4765_v12, %v4459_v50 }
 0x46a   :  { %v4515_v23 = vpop.permute.xlu1 %4514  ;;  %4671 = vrot.lane.b32.xlu0 %v9727_v47, %s5939_s30  ;;  %v4749_v47 = vsel %vm2396_vm5, %v10992_v45, %v4322_v57 }
 0x46b   :  { %v9835_v26 = vsel %vm2524_vm8, %v4749_v47, %v4410_v15 }
 0x46c   :  { %v9818_v18 = vpop.permute.xlu0 %4325 }
 0x46e   :  { %v9820_v32 = vpop.permute.xlu1 %4327  ;;  %4528 = vrot.lane.b32.xlu0 %v4302_v25, %s5936_s1  ;;  %v4796_v25 = vsel %vm2784_vm11, %v4780_v30, %v4515_v23 }
 0x470   :  { %v4567_v24 = vpop.permute.xlu0 %4566 }
 0x472   :  { %v4569_v53 = vpop.permute.xlu1 %4568  ;;  %4716 = vrot.lane.b32.xlu0 %v4562_v59, %s5940_s3  ;;  %v4779_v59 = vsel %vm2654_vm9, %v9835_v26, %v4457_v37  ;;  %v3601_v37 = vsel %vm3473_vm1, %v3299_v27, %v3537_v44  ;;  %vm11055_vm1 = vcmask 1044480  }
 0x473   :  { %v4795_v62 = vsel %vm2784_vm11, %v4779_v59, %v4513_v39  ;;  %v4813_v21 = vsel %vm4811_vm7, %v4796_v25, %v4569_v53 }
 0x474   :  { %v9824_v61 = vpop.permute.xlu0 %4413  ;;  %v4812_v57 = vsel %vm4811_vm7, %v4795_v62, %v4567_v24 }
 0x476   :  { %v9826_v58 = vpop.permute.xlu1 %4415 }
 0x478   :  { %v4615_v7 = vpop.permute.xlu0 %4614 }
 0x479   :  { %v4829_v49 = vsel %vm4828_vm10, %v4812_v57, %v4615_v7 }
 0x47a   :  { %v4617_v11 = vpop.permute.xlu1 %4616 }
 0x47b   :  { %v4830_v46 = vsel %vm4828_vm10, %v4813_v21, %v4617_v11 }
 0x47c   :  { %v9828_v20 = vpop.permute.xlu0 %4460 }
 0x47e   :  { %v9830_v0 = vpop.permute.xlu1 %4462 }
 0x480   :  { %v4660_v14 = vpop.permute.xlu0 %4659 }
 0x481   :  { %v9837_v10 = vpop.f32.mrb[8].mxu1  ;;  %v4846_v5 = vsel %vm4845_vm12, %v4829_v49, %v4660_v14 }
 0x482   :  { %v4662_v17 = vpop.permute.xlu1 %4661  ;;  %v9839_v60 = vpop.f32.mrb[9].mxu1 }
 0x483   :  { %v4847_v29 = vsel %vm4845_vm12, %v4830_v46, %v4662_v17  ;;  %v4751_v46 = vsel %vm2396_vm5, %v9293_v1, %v9818_v18 }
 0x484   :  { %v9843_v52 = vpop.permute.xlu0 %4516 }
 0x486   :  { %v9846_v45 = vpop.permute.xlu1 %4329 }
 0x488   :  { %v4705_v56 = vpop.permute.xlu0 %4704 }
 0x489   :  { %v4863_v54 = vsel %vm4862_vm2, %v4846_v5, %v4705_v56 }
 0x48a   :  { %v9864_v6 = vpop.permute.xlu1 %4570  ;;  %5779 = vmatprep.mubr.msk.f32.mxu1 %vm4885_vm3, %v4863_v54 }
 0x48b   :  { %v5724_v34 = vpop.f32.mrb[38].mxu0 }
 0x48c   :  { %v3314_v16 = vadd.f32 %v9852_v28, %v5724_v34  ;;  %v3308_v41 = vpop.f32.mrb[39].mxu0  ;;  %v9869_v40 = vpop.permute.xlu0 %4518 }
 0x48d   :  { %v3309_v15 = vadd.f32 %v9852_v28, %v3308_v41 }
 0x48e   :  { %vm3476_vm15 = vcmp.gt.f32.partialorder %v3314_v16, 0.0  ;;  %v3540_v3 = vmul.f32 0.1, %v3314_v16  ;;  %v9873_v2 = vpop.permute.xlu1 %4331 }
 0x48f   :  { %vm3475_vm13 = vcmp.gt.f32.partialorder %v3309_v15, 0.0  ;;  %v3539_v35 = vmul.f32 0.1, %v3309_v15 }
 0x490   :  { %v3604_v22 = vsel %vm3476_vm15, %v3314_v16, %v3540_v3  ;;  %v4707_v24 = vpop.permute.xlu0 %4706  ;;  %vm11056_vm15 = vcmask 1045504  }
 0x491   :  { %v3648_v39 = vmax.f32 %v3602_v4, %v3604_v22  ;;  %v3603_v50 = vsel %vm3475_vm13, %v3309_v15, %v3539_v35  ;;  %v4864_v23 = vsel %vm4862_vm2, %v4847_v29, %v4707_v24  ;;  %vm11057_vm13 = vcmask 1046528  }
 0x492   :  { %v3647_v7 = vmax.f32 %v3601_v37, %v3603_v50  ;;  %v4573_v47 = vpop.permute.xlu1 %4572  ;;  %5780 = vmatmul.mubr.msk.f32.vlgmr.msra.gmra.mrb[20].mxu1 %vm4885_vm3, %v4864_v23  ;;  %v4766_v29 = vsel %vm2524_vm8, %v4751_v46, %v9824_v61 }
 0x493   :  { %v3750_v14 = vrot.slane %v3648_v39, 1  ;;  %v4781_v24 = vsel %vm2654_vm9, %v4766_v29, %v9828_v20 }
 0x494   :  { %v3686_v53 = vrot.slane %v3647_v7, 1  ;;  %v9880_v59 = vpop.permute.xlu0 %4417  ;;  %v4797_v1 = vsel %vm2784_vm11, %v4781_v24, %v9843_v52 }
 0x495   :  { %v3782_v11 = vmax.f32 %v3648_v39, %v3750_v14  ;;  %v4814_v61 = vsel %vm4811_vm7, %v4797_v1, %v9864_v6  ;;  %v4752_v6 = vsel %vm2396_vm5, %v9309_v55, %v9820_v32 }
 0x496   :  { %v3718_v62 = vmax.f32 %v3647_v7, %v3686_v53  ;;  %v9882_v57 = vpop.permute.xlu1 %4419 }
 0x497   :  { %v3926_v56 = vrot.slane %v3782_v11, 4  ;;  %v3958_v54 = vrot.slane %v3782_v11, 5  ;;  %v3990_v51 = vrot.slane %v3782_v11, 6  ;;  %v4022_v44 = vrot.slane %v3782_v11, 7 }
 0x498   :  { %v3814_v38 = vrot.slane %v3718_v62, 1  ;;  %v3846_v49 = vrot.slane %v3718_v62, 2  ;;  %v4619_v17 = vpop.permute.xlu0 %4618  ;;  %v3878_v27 = vrot.slane %v3718_v62, 3 }
 0x499   :  { %v4831_v14 = vsel %vm4828_vm10, %v4814_v61, %v4619_v17 }
 0x49a   :  { %v4054_v8 = vsel %vm168_vm0, %v3718_v62, %v3814_v38  ;;  %v4621_v5 = vpop.permute.xlu1 %4620 }
 0x49b   :  { %v4071_v12 = vsel %vm11052_vm6, %v4054_v8, %v3846_v49  ;;  %vm11058_vm6 = vmmov %vm11057_vm13 }
 0x49c   :  { %v4088_v30 = vsel %vm11053_vm4, %v4071_v12, %v3878_v27  ;;  %v9887_v34 = vpop.permute.xlu0 %4464  ;;  %vm11059_vm4 = vmmov %vm11056_vm15 }
 0x49d   :  { %v4104_v16 = vsel %vm11054_vm14, %v4088_v30, %v3926_v56 }
 0x49e   :  { %v9890_v41 = vpop.permute.xlu1 %4466  ;;  %v4121_v15 = vsel %vm11055_vm1, %v4104_v16, %v3958_v54  ;;  %v3379_v16 = vadd.f32 %v9852_v28, %v9839_v60 }
 0x49f   :  { %v4137_v25 = vsel %vm11056_vm15, %v4121_v15, %v3990_v51  ;;  %v3384_v51 = vadd.f32 %v9852_v28, %v9837_v10 }
 0x4a0   :  { %v4153_v3 = vsel %vm11057_vm13, %v4137_v25, %v4022_v44  ;;  %v4664_v21 = vpop.permute.xlu0 %4663  ;;  %vm3489_vm1 = vcmp.gt.f32.partialorder %v3379_v16, 0.0 }
 0x4a1   :  { %v4195_v35 = vrot.slane %v4153_v3, 7  ;;  %v4848_v20 = vsel %vm4845_vm12, %v4831_v14, %v4664_v21  ;;  %v3554_v3 = vmul.f32 0.1, %v3384_v51  ;;  %vm3490_vm14 = vcmp.gt.f32.partialorder %v3384_v51, 0.0 }
 0x4a2   :  { %v4666_v4 = vpop.permute.xlu1 %4665  ;;  %v4753_v14 = vsel %vm2396_vm5, %v9402_v9, %v9846_v45 }
 0x4a3   :  { %v9899_v22 = vsel %vm168_vm0, 0.0, %v4195_v35  ;;  %v4243_v37 = vsel %vm168_vm0, %v4195_v35, 0.0 }
 0x4a4   :  { %4474 = vrot.lane.b32.xlu1 %v9899_v22, %s5934_s17  ;;  %v4303_v39 = vrot.slane %v9899_v22, 1  ;;  %v4304_v50 = vrot.slane %v4243_v37, 1  ;;  %v9909_v7 = vpop.permute.xlu0 %4520  ;;  %v4391_v11 = vrot.slane %v9899_v22, 2  ;;  %v4392_v38 = vrot.slane %v4243_v37, 2 }
 0x4a6   :  { %v9913_v18 = vpop.permute.xlu1 %4333  ;;  %v9916_v23 = vsel %vm11058_vm6, %v4303_v39, %v4304_v50  ;;  %v9945_v55 = vsel %vm11059_vm4, %v4391_v11, %v4392_v38  ;;  %v3618_v39 = vsel %vm3490_vm14, %v3384_v51, %v3554_v3  ;;  %v4768_v11 = vsel %vm2524_vm8, %v4753_v14, %v9880_v59 }
 0x4a7   :  { %4530 = vrot.lane.b32.xlu0 %v9916_v23, %s5936_s1  ;;  %vm11060_vm6 = vcmask 1041408   ;;  %vm11061_vm4 = vcmask 1042432   ;;  %vm11062_vm14 = vcmask 1043456  }
 0x4a8   :  { %4673 = vrot.lane.b32.xlu1 %v9231_v19, %s5939_s30  ;;  %v4709_v53 = vpop.permute.xlu0 %4708  ;;  %v4767_v19 = vsel %vm2524_vm8, %v4752_v6, %v9826_v58 }
 0x4a9   :  { %v4865_v52 = vsel %vm4862_vm2, %v4848_v20, %v4709_v53  ;;  %v4782_v49 = vsel %vm2654_vm9, %v4767_v19, %v9830_v0  ;;  %v4754_v20 = vsel %vm2396_vm5, %v9449_v13, %v9873_v2 }
 0x4aa   :  { %v9927_v62 = vpop.permute.xlu1 %4574  ;;  %5782 = vmatprep.mubr.msk.f32.mxu1 %vm4885_vm3, %v4865_v52  ;;  %v4798_v27 = vsel %vm2784_vm11, %v4782_v49, %v9869_v40  ;;  %v4769_v38 = vsel %vm2524_vm8, %v4754_v20, %v9882_v57  ;;  %v4783_v49 = vsel %vm2654_vm9, %v4768_v11, %v9887_v34 }
 0x4ab   :  { %4718 = vrot.lane.b32.xlu0 %v9261_v42, %s5940_s3  ;;  %v4815_v32 = vsel %vm4811_vm7, %v4798_v27, %v4573_v47  ;;  %v4784_v9 = vsel %vm2654_vm9, %v4769_v38, %v9890_v41  ;;  %v4799_v2 = vsel %vm2784_vm11, %v4783_v49, %v9909_v7 }
 0x4ac   :  { %4339 = vrot.lane.b32.xlu1 %v9916_v23, %s5930_s13  ;;  %v4523_v17 = vpop.permute.xlu0 %4522  ;;  %v4832_v42 = vsel %vm4828_vm10, %v4815_v32, %v4621_v5  ;;  %v4816_v57 = vsel %vm4811_vm7, %v4799_v2, %v9927_v62 }
 0x4ad   :  { %v4849_v58 = vsel %vm4845_vm12, %v4832_v42, %v4666_v4  ;;  %v3553_v4 = vmul.f32 0.1, %v3379_v16  ;;  %v4800_v59 = vsel %vm2784_vm11, %v4784_v9, %v4523_v17 }
 0x4ae   :  { %v4336_v8 = vpop.permute.xlu1 %4335 }
 0x4af   :  { %4427 = vrot.lane.b32.xlu0 %v9945_v55, %s5932_s15  ;;  %v4756_v12 = vsel %vm2396_vm5, %v9604_v33, %v4336_v8  ;;  %v3617_v24 = vsel %vm3489_vm1, %v3379_v16, %v3553_v4  ;;  %vm11063_vm1 = vcmask 1044480  }
 0x4b0   :  { %4582 = vrot.lane.b32.xlu1 %v9799_v36, %s5937_s0  ;;  %v4711_v0 = vpop.permute.xlu0 %4710 }
 0x4b1   :  { %v4866_v56 = vsel %vm4862_vm2, %v4849_v58, %v4711_v0 }
 0x4b2   :  { %v4577_v40 = vpop.permute.xlu1 %4576  ;;  %5783 = vmatmul.mubr.msk.f32.gmra.mrb[22].mxu1 %vm4885_vm3, %v4866_v56 }
 0x4b3   :  { %4630 = vrot.lane.b32.xlu0 %v9899_v22, %s5938_s20  ;;  %v4817_v32 = vsel %vm4811_vm7, %v4800_v59, %v4577_v40 }
 0x4b4   :  { %v9958_v47 = vpop.permute.xlu0 %4421 }
 0x4b6   :  { %v4424_v5 = vpop.permute.xlu1 %4423 }
 0x4b7   :  { %v4771_v54 = vsel %vm2524_vm8, %v4756_v12, %v4424_v5 }
 0x4b8   :  { %v4623_v36 = vpop.permute.xlu0 %4622 }
 0x4b9   :  { %v4833_v41 = vsel %vm4828_vm10, %v4816_v57, %v4623_v36 }
 0x4ba   :  { %v4625_v30 = vpop.permute.xlu1 %4624 }
 0x4bb   :  { %v4834_v58 = vsel %vm4828_vm10, %v4817_v32, %v4625_v30 }
 0x4bc   :  { %v9967_v44 = vpop.permute.xlu0 %4468 }
 0x4bd   :  { %v5748_v15 = vpop.f32.mrb[10].mxu1 }
 0x4be   :  { %v4471_v25 = vpop.permute.xlu1 %4470  ;;  %v3394_v21 = vadd.f32 %v9852_v28, %v5748_v15  ;;  %v3388_v35 = vpop.f32.mrb[11].mxu1 }
 0x4bf   :  { %v4786_v33 = vsel %vm2654_vm9, %v4771_v54, %v4471_v25  ;;  %v3389_v46 = vadd.f32 %v9852_v28, %v3388_v35 }
 0x4c0   :  { %vm3492_vm15 = vcmp.gt.f32.partialorder %v3394_v21, 0.0  ;;  %v3556_v10 = vmul.f32 0.1, %v3394_v21  ;;  %v4668_v37 = vpop.permute.xlu0 %4667 }
 0x4c1   :  { %vm3491_vm13 = vcmp.gt.f32.partialorder %v3389_v46, 0.0  ;;  %v3555_v60 = vmul.f32 0.1, %v3389_v46  ;;  %v4850_v7 = vsel %vm4845_vm12, %v4833_v41, %v4668_v37 }
 0x4c2   :  { %v4670_v29 = vpop.permute.xlu1 %4669  ;;  %v3620_v50 = vsel %vm3492_vm15, %v3394_v21, %v3556_v10  ;;  %vm11064_vm15 = vcmask 1045504  }
 0x4c3   :  { %v3656_v1 = vmax.f32 %v3618_v39, %v3620_v50  ;;  %v3619_v61 = vsel %vm3491_vm13, %v3389_v46, %v3555_v60  ;;  %v4851_v17 = vsel %vm4845_vm12, %v4834_v58, %v4670_v29  ;;  %vm11065_vm13 = vcmask 1046528  }
 0x4c4   :  { %v3655_v53 = vmax.f32 %v3617_v24, %v3619_v61  ;;  %v4525_v52 = vpop.permute.xlu0 %4524  ;;  %v4755_v61 = vsel %vm2396_vm5, %v9564_v31, %v9913_v18 }
 0x4c5   :  { %v3754_v6 = vrot.slane %v3656_v1, 1  ;;  %v4770_v14 = vsel %vm2524_vm8, %v4755_v61, %v9958_v47 }
 0x4c6   :  { %v4527_v19 = vpop.permute.xlu1 %4526  ;;  %v3690_v45 = vrot.slane %v3655_v53, 1 }
 0x4c7   :  { %v9987_v27 = vsel %vm2784_vm11, %v4786_v33, %v4527_v19  ;;  %v5727_v13 = vpop.f32.mrb[40].mxu0  ;;  %v3786_v0 = vmax.f32 %v3656_v1, %v3754_v6 }
 0x4c8   :  { %v3318_v8 = vpop.f32.mrb[41].mxu0  ;;  %v3722_v34 = vmax.f32 %v3655_v53, %v3690_v45  ;;  %v4713_v42 = vpop.permute.xlu0 %4712 }
 0x4c9   :  { %v4867_v54 = vsel %vm4862_vm2, %v4850_v7, %v4713_v42  ;;  %v3930_v16 = vrot.slane %v3786_v0, 4  ;;  %v3962_v25 = vrot.slane %v3786_v0, 5  ;;  %v3994_v21 = vrot.slane %v3786_v0, 6 }
 0x4ca   :  { %v4715_v56 = vpop.permute.xlu1 %4714  ;;  %v3818_v12 = vrot.slane %v3722_v34, 1  ;;  %v3850_v5 = vrot.slane %v3722_v34, 2  ;;  %v3882_v51 = vrot.slane %v3722_v34, 3  ;;  %5785 = vmatprep.mubr.msk.f32.mxu1 %vm4885_vm3, %v4867_v54  ;;  %v4026_v4 = vrot.slane %v3786_v0, 7 }
 0x4cb   :  { %v4868_v62 = vsel %vm4862_vm2, %v4851_v17, %v4715_v56 }
 0x4cc   :  { %v4058_v40 = vsel %vm168_vm0, %v3722_v34, %v3818_v12  ;;  %v4579_v36 = vpop.permute.xlu0 %4578  ;;  %5786 = vmatmul.mubr.msk.f32.gmra.mrb[24].mxu1 %vm4885_vm3, %v4868_v62 }
 0x4cd   :  { %v4075_v30 = vsel %vm11060_vm6, %v4058_v40, %v3850_v5 }
 0x4ce   :  { %v10005_v15 = vpop.permute.xlu1 %4580  ;;  %v4092_v3 = vsel %vm11061_vm4, %v4075_v30, %v3882_v51 }
 0x4cf   :  { %v4108_v35 = vsel %vm11062_vm14, %v4092_v3, %v3930_v16 }
 0x4d0   :  { %v4338_v33 = vpop.permute.xlu0 %4337  ;;  %v4125_v46 = vsel %vm11063_vm1, %v4108_v35, %v3962_v25 }
 0x4d1   :  { %v4757_v10 = vsel %vm2396_vm5, %v9759_v63, %v4338_v33  ;;  %v4141_v60 = vsel %vm11064_vm15, %v4125_v46, %v3994_v21  ;;  %v4785_v63 = vsel %vm2654_vm9, %v4770_v14, %v9967_v44  ;;  %vm11066_vm15 = vcmask 1041408  }
 0x4d2   :  { %v4426_v37 = vpop.permute.xlu1 %4425  ;;  %v10017_v39 = vsel %vm11065_vm13, %v4141_v60, %v4026_v4  ;;  %v4801_v11 = vsel %vm2784_vm11, %v4785_v63, %v4525_v52  ;;  %v3319_v52 = vadd.f32 %v9852_v28, %v3318_v8  ;;  %vm11067_vm13 = vcmask 1042432  }
 0x4d3   :  { %v10014_v29 = vsel %vm2524_vm8, %v4757_v10, %v4426_v37  ;;  %v4818_v6 = vsel %vm4811_vm7, %v4801_v11, %v4579_v36 }
 0x4d4   :  { %v4627_v50 = vpop.permute.xlu0 %4626  ;;  %v3541_v57 = vmul.f32 0.1, %v3319_v52  ;;  %vm3477_vm4 = vcmp.gt.f32.partialorder %v3319_v52, 0.0 }
 0x4d5   :  { %v4835_v19 = vsel %vm4828_vm10, %v4818_v6, %v4627_v50 }
 0x4d6   :  { %v3605_v0 = vsel %vm3477_vm4, %v3319_v52, %v3541_v57  ;;  %vm11069_vm4 = vcmask 1044480   ;;  %v10050_v50 = vpop.permute.xlu1 %4628 }
 0x4d8   :  { %v4473_v24 = vpop.permute.xlu0 %4472 }
 0x4d9   :  { %v4787_v20 = vsel %vm2654_vm9, %v9835_v26, %v4473_v24  ;;  %v3324_v26 = vadd.f32 %v9852_v28, %v5727_v13 }
 0x4db   :  { %v3542_v45 = vmul.f32 0.1, %v3324_v26  ;;  %vm3478_vm6 = vcmp.gt.f32.partialorder %v3324_v26, 0.0 }
 0x4dc   :  { %v4672_v1 = vpop.permute.xlu0 %4671 }
 0x4dd   :  { %v4852_v31 = vsel %vm4845_vm12, %v4835_v19, %v4672_v1  ;;  %v3606_v41 = vsel %vm3478_vm6, %v3324_v26, %v3542_v45  ;;  %vm11068_vm6 = vcmask 1043456  }
 0x4e0   :  { %v4529_v53 = vpop.permute.xlu0 %4528 }
 0x4e1   :  { %v10030_v38 = vsel %vm2784_vm11, %v4787_v20, %v4529_v53 }
 0x4e4   :  { %v4717_v18 = vpop.permute.xlu0 %4716 }
 0x4e5   :  { %v4869_v47 = vsel %vm4862_vm2, %v4852_v31, %v4717_v18 }
 0x4e6   :  { %5788 = vmatprep.mubr.msk.f32.mxu1 %vm4885_vm3, %v4869_v47 }
 0x4eb   :  { %v5751_v44 = vpop.f32.mrb[12].mxu1 }
 0x4ec   :  { %v3398_v49 = vpop.f32.mrb[13].mxu1  ;;  %v3404_v46 = vadd.f32 %v9852_v28, %v5751_v44 }
 0x4ed   :  { %v3399_v37 = vadd.f32 %v9852_v28, %v3398_v49 }
 0x4ee   :  { %v3558_v14 = vmul.f32 0.1, %v3404_v46 }
 0x4ef   :  { %v3557_v6 = vmul.f32 0.1, %v3399_v37 }
 0x4f9   :  { %v5730_v9 = vpop.f32.mrb[42].mxu0 }
 0x4fa   :  { %v3334_v2 = vadd.f32 %v9852_v28, %v5730_v9  ;;  %v3328_v59 = vpop.f32.mrb[43].mxu0  ;;  %v4197_v9 = vrot.slane %v9252_v48, 7  ;;  %v4819_v48 = vsel %vm4811_vm7, %v9987_v27, %v10005_v15 }
 0x4fb   :  { %v3329_v32 = vadd.f32 %v9852_v28, %v3328_v59 }
 0x4fc   :  { %vm3480_vm14 = vcmp.gt.f32.partialorder %v3334_v2, 0.0  ;;  %v3544_v34 = vmul.f32 0.1, %v3334_v2 }
 0x4fd   :  { %vm3479_vm1 = vcmp.gt.f32.partialorder %v3329_v32, 0.0  ;;  %v3543_v42 = vmul.f32 0.1, %v3329_v32 }
 0x4fe   :  { %v3608_v58 = vsel %vm3480_vm14, %v3334_v2, %v3544_v34  ;;  %vm11070_vm14 = vcmask 1045504  }
 0x4ff   :  { %v3650_v13 = vmax.f32 %v3606_v41, %v3608_v58  ;;  %v3607_v56 = vsel %vm3479_vm1, %v3329_v32, %v3543_v42  ;;  %vm11071_vm1 = vcmask 1046528  }
 0x500   :  { %v3649_v8 = vmax.f32 %v3605_v0, %v3607_v56  ;;  %v10081_v0 = vsel %vm168_vm0, 0.0, %v4197_v9  ;;  %v4836_v56 = vsel %vm4828_vm10, %v4819_v48, %v10050_v50 }
 0x501   :  { %v3751_v12 = vrot.slane %v3650_v13, 1 }
 0x502   :  { %v3687_v5 = vrot.slane %v3649_v8, 1 }
 0x503   :  { %v3783_v17 = vmax.f32 %v3650_v13, %v3751_v12  ;;  %v4245_v13 = vsel %vm168_vm0, %v4197_v9, 0.0 }
 0x504   :  { %v3719_v7 = vmax.f32 %v3649_v8, %v3687_v5 }
 0x505   :  { %v3927_v36 = vrot.slane %v3783_v17, 4  ;;  %v3959_v30 = vrot.slane %v3783_v17, 5  ;;  %v3991_v3 = vrot.slane %v3783_v17, 6  ;;  %v4023_v35 = vrot.slane %v3783_v17, 7 }
 0x506   :  { %v3815_v54 = vrot.slane %v3719_v7, 1  ;;  %v3847_v62 = vrot.slane %v3719_v7, 2  ;;  %v3879_v51 = vrot.slane %v3719_v7, 3  ;;  %v4309_v17 = vrot.slane %v10081_v0, 1 }
 0x508   :  { %v4055_v40 = vsel %vm168_vm0, %v3719_v7, %v3815_v54  ;;  %v4310_v54 = vrot.slane %v4245_v13, 1 }
 0x509   :  { %v4072_v16 = vsel %vm11066_vm15, %v4055_v40, %v3847_v62  ;;  %vm3494_vm15 = vcmp.gt.f32.partialorder %v3404_v46, 0.0 }
 0x50a   :  { %v4089_v25 = vsel %vm11067_vm13, %v4072_v16, %v3879_v51  ;;  %vm3493_vm13 = vcmp.gt.f32.partialorder %v3399_v37, 0.0  ;;  %v3622_v49 = vsel %vm3494_vm15, %v3404_v46, %v3558_v14  ;;  %vm11074_vm15 = vcmask 1041408  }
 0x50b   :  { %v4105_v21 = vsel %vm11068_vm6, %v4089_v25, %v3927_v36  ;;  %v3621_v45 = vsel %vm3493_vm13, %v3399_v37, %v3557_v6  ;;  %v4397_v46 = vrot.slane %v10081_v0, 2 }
 0x50c   :  { %v4122_v33 = vsel %vm11069_vm4, %v4105_v21, %v3959_v30  ;;  %vm11072_vm4 = vmmov %vm11071_vm1 }
 0x50d   :  { %v4138_v4 = vsel %vm11070_vm14, %v4122_v33, %v3991_v3  ;;  %vm11075_vm13 = vmmov %vm11072_vm4 }
 0x50e   :  { %v4154_v10 = vsel %vm11071_vm1, %v4138_v4, %v4023_v35  ;;  %vm11073_vm1 = vcmask 1045504   ;;  %v4311_v25 = vsel %vm11075_vm13, %v4309_v17, %v4310_v54 }
 0x50f   :  { %v4196_v60 = vrot.slane %v4154_v10, 7  ;;  %v4398_v10 = vrot.slane %v4245_v13, 2 }
 0x511   :  { %v5754_v24 = vpop.f32.mrb[14].mxu1  ;;  %v10053_v1 = vsel %vm168_vm0, 0.0, %v4196_v60  ;;  %v4244_v61 = vsel %vm168_vm0, %v4196_v60, 0.0 }
 0x512   :  { %v3414_v63 = vadd.f32 %v9852_v28, %v5754_v24  ;;  %v3408_v20 = vpop.f32.mrb[15].mxu1  ;;  %4476 = vrot.lane.b32.xlu0 %v10053_v1, %s5934_s17  ;;  %v4306_v53 = vrot.slane %v10053_v1, 1  ;;  %v4307_v11 = vrot.slane %v4244_v61, 1  ;;  %v4394_v34 = vrot.slane %v10053_v1, 2 }
 0x513   :  { %v3409_v19 = vadd.f32 %v9852_v28, %v3408_v20  ;;  %v4395_v42 = vrot.slane %v4244_v61, 2  ;;  %v4198_v61 = vrot.slane %v9769_v43, 7 }
 0x514   :  { %vm3496_vm6 = vcmp.gt.f32.partialorder %v3414_v63, 0.0  ;;  %v3560_v31 = vmul.f32 0.1, %v3414_v63  ;;  %v4308_v18 = vsel %vm11072_vm4, %v4306_v53, %v4307_v11  ;;  %vm11077_vm4 = vcmask 1043456  }
 0x515   :  { %vm3495_vm14 = vcmp.gt.f32.partialorder %v3409_v19, 0.0  ;;  %v3559_v47 = vmul.f32 0.1, %v3409_v19  ;;  %4341 = vrot.lane.b32.xlu1 %v4308_v18, %s5930_s13  ;;  %v4396_v7 = vsel %vm11073_vm1, %v4394_v34, %v4395_v42  ;;  %v10121_v20 = vsel %vm168_vm0, 0.0, %v4198_v61 }
 0x516   :  { %v4475_v44 = vpop.permute.xlu1 %4474  ;;  %v3624_v26 = vsel %vm3496_vm6, %v3414_v63, %v3560_v31  ;;  %4675 = vrot.lane.b32.xlu0 %v9916_v23, %s5939_s30  ;;  %vm11076_vm6 = vcmask 1042432   ;;  %v4246_v53 = vsel %vm168_vm0, %v4198_v61, 0.0  ;;  %v4312_v11 = vrot.slane %v10121_v20, 1 }
 0x517   :  { %v4788_v52 = vsel %vm2654_vm9, %v10014_v29, %v4475_v44  ;;  %v3658_v2 = vmax.f32 %v3622_v49, %v3624_v26  ;;  %v3623_v59 = vsel %vm3495_vm14, %v3409_v19, %v3559_v47  ;;  %vm11078_vm14 = vcmask 1044480  }
 0x518   :  { %v3657_v57 = vmax.f32 %v3621_v45, %v3623_v59  ;;  %v4313_v6 = vrot.slane %v4246_v53, 1  ;;  %v4199_v26 = vrot.slane %v10017_v39, 7  ;;  %v4400_v59 = vrot.slane %v10121_v20, 2 }
 0x519   :  { %v4531_v32 = vpop.permute.xlu0 %4530  ;;  %v3755_v41 = vrot.slane %v3658_v2, 1  ;;  %4584 = vrot.lane.b32.xlu1 %v9945_v55, %s5937_s0 }
 0x51a   :  { %v10070_v58 = vsel %vm2784_vm11, %v4788_v52, %v4531_v32  ;;  %v10074_v23 = vpop.permute.xlu1 %4673  ;;  %v3691_v29 = vrot.slane %v3657_v57, 1  ;;  %4532 = vrot.lane.b32.xlu0 %v4308_v18, %s5936_s1  ;;  %v10141_v39 = vsel %vm168_vm0, 0.0, %v4199_v26  ;;  %v4247_v48 = vsel %vm168_vm0, %v4199_v26, 0.0 }
 0x51b   :  { %v4853_v12 = vsel %vm4845_vm12, %v4836_v56, %v10074_v23  ;;  %v3787_v27 = vmax.f32 %v3658_v2, %v3755_v41 }
 0x51c   :  { %v3723_v8 = vmax.f32 %v3657_v57, %v3691_v29  ;;  %v4401_v57 = vrot.slane %v4246_v53, 2 }
 0x51d   :  { %v10088_v5 = vpop.permute.xlu0 %4718  ;;  %4429 = vrot.lane.b32.xlu1 %v4396_v7, %s5932_s15  ;;  %v3931_v16 = vrot.slane %v3787_v27, 4  ;;  %v3963_v3 = vrot.slane %v3787_v27, 5  ;;  %v3995_v35 = vrot.slane %v3787_v27, 6  ;;  %v4027_v33 = vrot.slane %v3787_v27, 7 }
 0x51e   :  { %v4870_v15 = vsel %vm4862_vm2, %v4853_v12, %v10088_v5  ;;  %v3819_v62 = vrot.slane %v3723_v8, 1  ;;  %v3851_v51 = vrot.slane %v3723_v8, 2  ;;  %4720 = vrot.lane.b32.xlu0 %v9945_v55, %s5940_s3  ;;  %v3883_v40 = vrot.slane %v3723_v8, 3 }
 0x51f   :  { %5789 = vmatmul.mubr.msk.f32.gmra.mrb[26].mxu1 %vm4885_vm3, %v4870_v15  ;;  %v4315_v12 = vrot.slane %v10141_v39, 1 }
 0x520   :  { %v4059_v36 = vsel %vm168_vm0, %v3723_v8, %v3819_v62 }
 0x521   :  { %v4076_v30 = vsel %vm11074_vm15, %v4059_v36, %v3851_v51  ;;  %4632 = vrot.lane.b32.xlu1 %v10053_v1, %s5938_s20  ;;  %vm11079_vm15 = vmmov %vm11075_vm13 }
 0x522   :  { %4534 = vrot.lane.b32.xlu0 %v4311_v25, %s5936_s1  ;;  %v4093_v21 = vsel %vm11076_vm6, %v4076_v30, %v3883_v40  ;;  %vm11080_vm13 = vmmov %vm11073_vm1  ;;  %v4403_v30 = vrot.slane %v10141_v39, 2 }
 0x523   :  { %v4109_v55 = vsel %vm11077_vm4, %v4093_v21, %v3931_v16  ;;  %v4399_v24 = vsel %vm11080_vm13, %v4397_v46, %v4398_v10  ;;  %vm11081_vm6 = vmmov %vm11079_vm15  ;;  %v4402_v56 = vsel %vm11080_vm13, %v4400_v59, %v4401_v57 }
 0x524   :  { %v4126_v4 = vsel %vm11078_vm14, %v4109_v55, %v3963_v3 }
 0x525   :  { %4478 = vrot.lane.b32.xlu1 %v10081_v0, %s5934_s17  ;;  %v4142_v37 = vsel %vm11073_vm1, %v4126_v4, %v3995_v35 }
 0x526   :  { %4722 = vrot.lane.b32.xlu0 %v4396_v7, %s5940_s3  ;;  %v10113_v60 = vsel %vm11079_vm15, %v4142_v37, %v4027_v33 }
 0x527   :  { %v4200_v37 = vrot.slane %v10113_v60, 7 }
 0x529   :  { %4677 = vrot.lane.b32.xlu1 %v4308_v18, %s5939_s30  ;;  %v4314_v18 = vsel %vm11081_vm6, %v4312_v11, %v4313_v6  ;;  %v10170_v61 = vsel %vm168_vm0, 0.0, %v4200_v37 }
 0x52a   :  { %4431 = vrot.lane.b32.xlu0 %v4399_v24, %s5932_s15  ;;  %v4406_v11 = vrot.slane %v10170_v61, 2 }
 0x52b   :  { %v5757_v14 = vpop.f32.mrb[16].mxu1 }
 0x52c   :  { %v3418_v63 = vpop.f32.mrb[17].mxu1  ;;  %v3424_v19 = vadd.f32 %v9852_v28, %v5757_v14  ;;  %v4248_v14 = vsel %vm168_vm0, %v4200_v37, 0.0 }
 0x52d   :  { %4343 = vrot.lane.b32.xlu1 %v4311_v25, %s5930_s13  ;;  %v3419_v43 = vadd.f32 %v9852_v28, %v3418_v63  ;;  %v4318_v63 = vrot.slane %v10170_v61, 1  ;;  %v4319_v53 = vrot.slane %v4248_v14, 1  ;;  %v4407_v6 = vrot.slane %v4248_v14, 2 }
 0x52e   :  { %4634 = vrot.lane.b32.xlu0 %v10081_v0, %s5938_s20  ;;  %v3562_v47 = vmul.f32 0.1, %v3424_v19  ;;  %vm3498_vm4 = vcmp.gt.f32.partialorder %v3424_v19, 0.0 }
 0x52f   :  { %v3561_v52 = vmul.f32 0.1, %v3419_v43  ;;  %vm3497_vm14 = vcmp.gt.f32.partialorder %v3419_v43, 0.0 }
 0x530   :  { %v3626_v32 = vsel %vm3498_vm4, %v3424_v19, %v3562_v47  ;;  %vm11082_vm4 = vcmask 1041408  }
 0x531   :  { %4586 = vrot.lane.b32.xlu1 %v4396_v7, %s5937_s0  ;;  %v3625_v42 = vsel %vm3497_vm14, %v3419_v43, %v3561_v52  ;;  %v4316_v7 = vrot.slane %v4247_v48, 1  ;;  %vm11083_vm14 = vcmask 1042432  }
 0x532   :  { %4480 = vrot.lane.b32.xlu0 %v10121_v20, %s5934_s17 }
 0x533   :  { %v4317_v62 = vsel %vm11081_vm6, %v4315_v12, %v4316_v7  ;;  %vm11086_vm6 = vmmov %vm11080_vm13 }
 0x534   :  { %v5760_v31 = vpop.f32.mrb[18].mxu1 }
 0x535   :  { %v3434_v44 = vadd.f32 %v9852_v28, %v5760_v31  ;;  %v3428_v49 = vpop.f32.mrb[19].mxu1  ;;  %4345 = vrot.lane.b32.xlu1 %v4314_v18, %s5930_s13 }
 0x536   :  { %v3429_v9 = vadd.f32 %v9852_v28, %v3428_v49  ;;  %4679 = vrot.lane.b32.xlu0 %v4311_v25, %s5939_s30  ;;  %v4404_v25 = vrot.slane %v4247_v48, 2  ;;  %v10196_v49 = vld [vmem:[%s10409_s4] ss:$0 sm:$0xff] }
 0x537   :  { %vm3500_vm1 = vcmp.gt.f32.partialorder %v3434_v44, 0.0  ;;  %v3564_v45 = vmul.f32 0.1, %v3434_v44 }
 0x538   :  { %vm3499_vm15 = vcmp.gt.f32.partialorder %v3429_v9, 0.0  ;;  %v3563_v2 = vmul.f32 0.1, %v3429_v9  ;;  %v4405_v10 = vsel %vm11086_vm6, %v4403_v30, %v4404_v25 }
 0x539   :  { %v3628_v34 = vsel %vm3500_vm1, %v3434_v44, %v3564_v45  ;;  %4588 = vrot.lane.b32.xlu1 %v4399_v24, %s5937_s0  ;;  %vm11084_vm1 = vcmask 1043456  }
 0x53a   :  { %v3660_v41 = vmax.f32 %v3626_v32, %v3628_v34  ;;  %v3627_v28 = vsel %vm3499_vm15, %v3429_v9, %v3563_v2  ;;  %4536 = vrot.lane.b32.xlu0 %v4314_v18, %s5936_s1  ;;  %vm11085_vm15 = vcmask 1044480  }
 0x53b   :  { %v3659_v29 = vmax.f32 %v3625_v42, %v3627_v28 }
 0x53c   :  { %v3756_v13 = vrot.slane %v3660_v41, 1 }
 0x53d   :  { %v3692_v8 = vrot.slane %v3659_v29, 1  ;;  %4433 = vrot.lane.b32.xlu1 %v4402_v56, %s5932_s15 }
 0x53e   :  { %4724 = vrot.lane.b32.xlu0 %v4399_v24, %s5940_s3  ;;  %v3788_v15 = vmax.f32 %v3660_v41, %v3756_v13  ;;  %v10212_v13 = vpop.permute.xlu1 %4339 }
 0x53f   :  { %v3724_v27 = vmax.f32 %v3659_v29, %v3692_v8  ;;  %v10210_v29 = vpop.permute.xlu0 %4427 }
 0x540   :  { %v3932_v36 = vrot.slane %v3788_v15, 4  ;;  %v3964_v3 = vrot.slane %v3788_v15, 5  ;;  %v3996_v35 = vrot.slane %v3788_v15, 6  ;;  %v4028_v33 = vrot.slane %v3788_v15, 7 }
 0x541   :  { %v3820_v17 = vrot.slane %v3724_v27, 1  ;;  %v3852_v54 = vrot.slane %v3724_v27, 2  ;;  %4636 = vrot.lane.b32.xlu1 %v10121_v20, %s5938_s20  ;;  %v3884_v51 = vrot.slane %v3724_v27, 3 }
 0x542   :  { %4538 = vrot.lane.b32.xlu0 %v4317_v62, %s5936_s1  ;;  %v4583_v12 = vpop.permute.xlu1 %4582 }
 0x543   :  { %v4060_v40 = vsel %vm168_vm0, %v3724_v27, %v3820_v17 }
 0x544   :  { %v4077_v16 = vsel %vm11082_vm4, %v4060_v40, %v3852_v54  ;;  %vm11087_vm4 = vcmask 1046528  }
 0x545   :  { %4482 = vrot.lane.b32.xlu1 %v10141_v39, %s5934_s17  ;;  %v4094_v21 = vsel %vm11083_vm14, %v4077_v16, %v3884_v51  ;;  %vm11088_vm14 = vmmov %vm11087_vm4 }
 0x546   :  { %4726 = vrot.lane.b32.xlu0 %v4402_v56, %s5940_s3  ;;  %v4110_v55 = vsel %vm11084_vm1, %v4094_v21, %v3932_v36  ;;  %v4320_v60 = vsel %vm11088_vm14, %v4318_v63, %v4319_v53  ;;  %vm11089_vm1 = vmmov %vm11086_vm6 }
 0x547   :  { %v4127_v4 = vsel %vm11085_vm15, %v4110_v55, %v3964_v3  ;;  %v4408_v43 = vsel %vm11089_vm1, %v4406_v11, %v4407_v6  ;;  %vm11090_vm15 = vmmov %vm11089_vm1 }
 0x548   :  { %v4143_v46 = vsel %vm11080_vm13, %v4127_v4, %v3996_v35  ;;  %v4820_v4 = vsel %vm4811_vm7, %v10030_v38, %v4583_v12 }
 0x549   :  { %4681 = vrot.lane.b32.xlu1 %v4314_v18, %s5939_s30  ;;  %v4159_v24 = vsel %vm11087_vm4, %v4143_v46, %v4028_v33 }
 0x54a   :  { %4435 = vrot.lane.b32.xlu0 %v4405_v10, %s5932_s15  ;;  %v4201_v19 = vrot.slane %v4159_v24, 7 }
 0x54c   :  { %v4233_v31 = vsel %vm168_vm0, 0.0, %v4201_v19  ;;  %v4249_v18 = vsel %vm168_vm0, %v4201_v19, 0.0 }
 0x54d   :  { %4347 = vrot.lane.b32.xlu1 %v4317_v62, %s5930_s13  ;;  %v4563_v47 = vrot.slane %v4233_v31, 2  ;;  %v4564_v44 = vrot.slane %v4249_v18, 2  ;;  %v4509_v52 = vrot.slane %v4233_v31, 1  ;;  %v4510_v45 = vrot.slane %v4249_v18, 1 }
 0x54e   :  { %4638 = vrot.lane.b32.xlu0 %v10141_v39, %s5938_s20 }
 0x54f   :  { %v4565_v9 = vsel %vm11090_vm15, %v4563_v47, %v4564_v44  ;;  %v4511_v42 = vsel %vm11087_vm4, %v4509_v52, %v4510_v45  ;;  %vm11091_vm15 = vcmask 1041408  }
 0x550   :  { %vm11093_vm4 = vmmov %vm11091_vm15 }
 0x551   :  { %4590 = vrot.lane.b32.xlu1 %v4402_v56, %s5937_s0  ;;  %v4631_v56 = vpop.permute.xlu0 %4630 }
 0x552   :  { %4484 = vrot.lane.b32.xlu0 %v10170_v61, %s5934_s17  ;;  %v4837_v37 = vsel %vm4828_vm10, %v4820_v4, %v4631_v56 }
 0x555   :  { %4349 = vrot.lane.b32.xlu1 %v4320_v60, %s5930_s13 }
 0x556   :  { %4683 = vrot.lane.b32.xlu0 %v4317_v62, %s5939_s30 }
 0x559   :  { %4592 = vrot.lane.b32.xlu1 %v4405_v10, %s5937_s0 }
 0x55a   :  { %4540 = vrot.lane.b32.xlu0 %v4320_v60, %s5936_s1 }
 0x55d   :  { %4437 = vrot.lane.b32.xlu1 %v4408_v43, %s5932_s15 }
 0x55e   :  { %4728 = vrot.lane.b32.xlu0 %v4405_v10, %s5940_s3 }
 0x561   :  { %4640 = vrot.lane.b32.xlu1 %v10170_v61, %s5938_s20 }
 0x562   :  { %4594 = vrot.lane.b32.xlu0 %v4408_v43, %s5937_s0 }
 0x565   :  { %v5781_v26 = vpop.f32.mrb[20].mxu1  ;;  %4486 = vrot.lane.b32.xlu1 %v4233_v31, %s5934_s17 }
 0x566   :  { %v5006_v2 = vadd.f32 %v5781_v26, %v10196_v49  ;;  %v5000_v59 = vpop.f32.mrb[21].mxu1  ;;  %4596 = vrot.lane.b32.xlu0 %v4565_v9, %s5937_s0 }
 0x567   :  { %v5001_v57 = vadd.f32 %v10196_v49, %v5000_v59 }
 0x568   :  { %vm5080_vm13 = vcmp.gt.f32.partialorder %v5006_v2, 0.0  ;;  %v5096_v32 = vmul.f32 0.1, %v5006_v2 }
 0x569   :  { %vm5079_vm6 = vcmp.gt.f32.partialorder %v5001_v57, 0.0  ;;  %v5095_v34 = vmul.f32 0.1, %v5001_v57  ;;  %4685 = vrot.lane.b32.xlu1 %v4320_v60, %s5939_s30 }
 0x56a   :  { %v5112_v41 = vsel %vm5080_vm13, %v5006_v2, %v5096_v32  ;;  %4687 = vrot.lane.b32.xlu0 %v4511_v42, %s5939_s30  ;;  %vm11092_vm13 = vcmask 1042432  }
 0x56b   :  { %v5111_v28 = vsel %vm5079_vm6, %v5001_v57, %v5095_v34  ;;  %vm5247_vm6 = vcmask 125952  }
 0x56c   :  { %v5127_v48 = vmax.f32 %v5111_v28, %v5112_v41 }
 0x56d   :  { %4542 = vrot.lane.b32.xlu1 %v4511_v42, %s5936_s1 }
 0x56e   :  { %v5143_v8 = vrot.slane %v5127_v48, 1 }
 0x570   :  { %v5159_v15 = vmax.f32 %v5127_v48, %v5143_v8 }
 0x571   :  { %4730 = vrot.lane.b32.xlu1 %v4408_v43, %s5940_s3 }
 0x572   :  { %v5175_v30 = vrot.slane %v5159_v15, 1  ;;  %v5191_v33 = vrot.slane %v5159_v15, 2  ;;  %v5207_v6 = vrot.slane %v5159_v15, 3 }
 0x574   :  { %v5223_v46 = vsel %vm168_vm0, %v5159_v15, %v5175_v30 }
 0x575   :  { %4642 = vrot.lane.b32.xlu1 %v4233_v31, %s5938_s20  ;;  %v5231_v60 = vsel %vm11091_vm15, %v5223_v46, %v5191_v33 }
 0x576   :  { %v5239_v31 = vsel %vm11092_vm13, %v5231_v60, %v5207_v6 }
 0x579   :  { %4732 = vrot.lane.b32.xlu1 %v4565_v9, %s5940_s3  ;;  %v5248_v9 = vsel %vm5247_vm6, %v5239_v31, 0.0 }
 0x584   :  { %v10214_v7 = vpop.permute.xlu0 %4476 }
 0x585   :  { %v5784_v27 = vpop.f32.mrb[22].mxu1 }
 0x586   :  { %v5016_v17 = vadd.f32 %v5784_v27, %v10196_v49  ;;  %v5010_v54 = vpop.f32.mrb[23].mxu1 }
 0x587   :  { %v5011_v62 = vadd.f32 %v10196_v49, %v5010_v54  ;;  %v10218_v51 = vpop.permute.xlu1 %4341 }
 0x588   :  { %vm5082_vm14 = vcmp.gt.f32.partialorder %v5016_v17, 0.0  ;;  %v5098_v40 = vmul.f32 0.1, %v5016_v17  ;;  %v4676_v36 = vpop.permute.xlu0 %4675 }
 0x589   :  { %vm5081_vm1 = vcmp.gt.f32.partialorder %v5011_v62, 0.0  ;;  %v5097_v16 = vmul.f32 0.1, %v5011_v62  ;;  %v4854_v63 = vsel %vm4845_vm12, %v4837_v37, %v4676_v36 }
 0x58a   :  { %v5114_v25 = vsel %vm5082_vm14, %v5016_v17, %v5098_v40  ;;  %vm11094_vm14 = vmmov %vm11092_vm13 }
 0x58b   :  { %v5113_v3 = vsel %vm5081_vm1, %v5011_v62, %v5097_v16  ;;  %v4585_v21 = vpop.permute.xlu1 %4584  ;;  %vm11095_vm13 = vmmov %vm11093_vm4 }
 0x58c   :  { %v5128_v35 = vmax.f32 %v5113_v3, %v5114_v25  ;;  %v4533_v55 = vpop.permute.xlu0 %4532  ;;  %v4821_v32 = vsel %vm4811_vm7, %v10070_v58, %v4585_v21  ;;  %v4758_v3 = vsel %vm2396_vm5, %v9899_v22, %v10212_v13 }
 0x58e   :  { %v5144_v10 = vrot.slane %v5128_v35, 1 }
 0x58f   :  { %v10224_v24 = vpop.permute.xlu1 %4429 }
 0x590   :  { %v5160_v14 = vmax.f32 %v5128_v35, %v5144_v10  ;;  %v4721_v53 = vpop.permute.xlu0 %4720  ;;  %v4773_v35 = vsel %vm2524_vm8, %v4758_v3, %v10210_v29 }
 0x591   :  { %v4871_v11 = vsel %vm4862_vm2, %v4854_v63, %v4721_v53  ;;  %v4789_v4 = vsel %vm2654_vm9, %v4773_v35, %v10214_v7 }
 0x592   :  { %v5176_v19 = vrot.slane %v5160_v14, 1  ;;  %v5192_v43 = vrot.slane %v5160_v14, 2  ;;  %5791 = vmatprep.mubr.msk.f32.mxu1 %vm4885_vm3, %v4871_v11  ;;  %v5208_v18 = vrot.slane %v5160_v14, 3  ;;  %v4805_v46 = vsel %vm2784_vm11, %v4789_v4, %v4533_v55 }
 0x593   :  { %v4633_v38 = vpop.permute.xlu1 %4632 }
 0x594   :  { %v5224_v47 = vsel %vm168_vm0, %v5160_v14, %v5176_v19  ;;  %v10232_v44 = vpop.permute.xlu0 %4534  ;;  %v4838_v34 = vsel %vm4828_vm10, %v4821_v32, %v4633_v38 }
 0x595   :  { %v5232_v26 = vsel %vm11093_vm4, %v5224_v47, %v5192_v43  ;;  %vm11096_vm4 = vmmov %vm11094_vm14  ;;  %v4759_v47 = vsel %vm2396_vm5, %v10053_v1, %v10218_v51 }
 0x596   :  { %v5240_v52 = vsel %vm11094_vm14, %v5232_v26, %v5208_v18 }
 0x597   :  { %v5249_v45 = vsel %vm5247_vm6, %v5240_v52, 0.0  ;;  %v4479_v2 = vpop.permute.xlu1 %4478  ;;  %v4774_v52 = vsel %vm2524_vm8, %v4759_v47, %v10224_v24 }
 0x598   :  { %v5250_v59 = vadd.f32 %v5249_v45, %v5248_v9  ;;  %v4723_v57 = vpop.permute.xlu0 %4722  ;;  %v4790_v9 = vsel %vm2654_vm9, %v4774_v52, %v4479_v2 }
 0x599   :  { %v4806_v32 = vsel %vm2784_vm11, %v4790_v9, %v10232_v44 }
 0x59b   :  { %v4678_v42 = vpop.permute.xlu1 %4677 }
 0x59c   :  { %v4855_v41 = vsel %vm4845_vm12, %v4838_v34, %v4678_v42  ;;  %v10242_v28 = vpop.permute.xlu0 %4431 }
 0x59d   :  { %v4872_v48 = vsel %vm4862_vm2, %v4855_v41, %v4723_v57 }
 0x59e   :  { %5792 = vmatmul.mubr.msk.f32.gmra.mrb[28].mxu1 %vm4885_vm3, %v4872_v48 }
 0x59f   :  { %v4344_v56 = vpop.permute.xlu1 %4343  ;;  %v5787_v8 = vpop.f32.mrb[24].mxu1 }
 0x5a0   :  { %v4635_v12 = vpop.permute.xlu0 %4634  ;;  %v5026_v27 = vadd.f32 %v5787_v8, %v10196_v49  ;;  %v5020_v15 = vpop.f32.mrb[25].mxu1 }
 0x5a1   :  { %v5021_v17 = vadd.f32 %v10196_v49, %v5020_v15 }
 0x5a2   :  { %vm5084_vm1 = vcmp.gt.f32.partialorder %v5026_v27, 0.0  ;;  %v5100_v58 = vmul.f32 0.1, %v5026_v27 }
 0x5a3   :  { %v4587_v54 = vpop.permute.xlu1 %4586  ;;  %vm5083_vm15 = vcmp.gt.f32.partialorder %v5021_v17, 0.0  ;;  %v5099_v62 = vmul.f32 0.1, %v5021_v17 }
 0x5a4   :  { %v4481_v40 = vpop.permute.xlu0 %4480  ;;  %v5116_v36 = vsel %vm5084_vm1, %v5026_v27, %v5100_v58  ;;  %v4822_v14 = vsel %vm4811_vm7, %v4805_v46, %v4587_v54 }
 0x5a5   :  { %v5115_v16 = vsel %vm5083_vm15, %v5021_v17, %v5099_v62  ;;  %v4839_v13 = vsel %vm4828_vm10, %v4822_v14, %v4635_v12  ;;  %v4760_v12 = vsel %vm2396_vm5, %v10081_v0, %v4344_v56 }
 0x5a6   :  { %v5129_v30 = vmax.f32 %v5115_v16, %v5116_v36  ;;  %v4775_v15 = vsel %vm2524_vm8, %v4760_v12, %v10242_v28 }
 0x5a7   :  { %v4346_v25 = vpop.permute.xlu1 %4345  ;;  %v4791_v17 = vsel %vm2654_vm9, %v4775_v15, %v4481_v40 }
 0x5a8   :  { %v4680_v21 = vpop.permute.xlu0 %4679  ;;  %v5145_v33 = vrot.slane %v5129_v30, 1  ;;  %v4761_v40 = vsel %vm2396_vm5, %v10121_v20, %v4346_v25 }
 0x5a9   :  { %v4856_v19 = vsel %vm4845_vm12, %v4839_v13, %v4680_v21 }
 0x5aa   :  { %v5161_v10 = vmax.f32 %v5129_v30, %v5145_v33 }
 0x5ab   :  { %v4589_v37 = vpop.permute.xlu1 %4588 }
 0x5ac   :  { %v4537_v63 = vpop.permute.xlu0 %4536  ;;  %v5177_v53 = vrot.slane %v5161_v10, 1  ;;  %v5193_v60 = vrot.slane %v5161_v10, 2  ;;  %v5209_v11 = vrot.slane %v5161_v10, 3  ;;  %v4823_v34 = vsel %vm4811_vm7, %v4806_v32, %v4589_v37 }
 0x5ad   :  { %v4807_v58 = vsel %vm2784_vm11, %v4791_v17, %v4537_v63 }
 0x5ae   :  { %v5225_v22 = vsel %vm168_vm0, %v5161_v10, %v5177_v53 }
 0x5af   :  { %v4434_v6 = vpop.permute.xlu1 %4433  ;;  %v5233_v29 = vsel %vm11095_vm13, %v5225_v22, %v5193_v60 }
 0x5b0   :  { %v4725_v7 = vpop.permute.xlu0 %4724  ;;  %v5241_v55 = vsel %vm11096_vm4, %v5233_v29, %v5209_v11  ;;  %v4776_v33 = vsel %vm2524_vm8, %v4761_v40, %v4434_v6 }
 0x5b1   :  { %v4873_v43 = vsel %vm4862_vm2, %v4856_v19, %v4725_v7  ;;  %v5251_v38 = vsel %vm5247_vm6, %v5241_v55, 0.0 }
 0x5b2   :  { %5794 = vmatprep.mubr.msk.f32.mxu1 %vm4885_vm3, %v4873_v43  ;;  %v10265_v18 = vadd.f32 %v5251_v38, %v5250_v59 }
 0x5b3   :  { %v4637_v31 = vpop.permute.xlu1 %4636 }
 0x5b4   :  { %v4539_v26 = vpop.permute.xlu0 %4538  ;;  %v4840_v59 = vsel %vm4828_vm10, %v4823_v34, %v4637_v31 }
 0x5b7   :  { %v4483_v45 = vpop.permute.xlu1 %4482 }
 0x5b8   :  { %v4727_v57 = vpop.permute.xlu0 %4726  ;;  %v4792_v4 = vsel %vm2654_vm9, %v4776_v33, %v4483_v45 }
 0x5b9   :  { %v4808_v63 = vsel %vm2784_vm11, %v4792_v4, %v4539_v26 }
 0x5bb   :  { %v4682_v42 = vpop.permute.xlu1 %4681 }
 0x5bc   :  { %v4857_v41 = vsel %vm4845_vm12, %v4840_v59, %v4682_v42  ;;  %v4436_v48 = vpop.permute.xlu0 %4435 }
 0x5bd   :  { %v4874_v1 = vsel %vm4862_vm2, %v4857_v41, %v4727_v57 }
 0x5be   :  { %5795 = vmatmul.mubr.msk.f32.gmra.mrb[30].mxu1 %vm4885_vm3, %v4874_v1 }
 0x5bf   :  { %v4348_v51 = vpop.permute.xlu1 %4347 }
 0x5c0   :  { %v4639_v24 = vpop.permute.xlu0 %4638  ;;  %v4762_v60 = vsel %vm2396_vm5, %v10141_v39, %v4348_v51 }
 0x5c1   :  { %v4777_v6 = vsel %vm2524_vm8, %v4762_v60, %v4436_v48 }
 0x5c3   :  { %v4591_v2 = vpop.permute.xlu1 %4590 }
 0x5c4   :  { %v4485_v8 = vpop.permute.xlu0 %4484  ;;  %v4824_v62 = vsel %vm4811_vm7, %v4807_v58, %v4591_v2  ;;  %v5278_v58 = vld [vmem:[%s10410_s5] sm:$0xff] }
 0x5c5   :  { %v4841_v16 = vsel %vm4828_vm10, %v4824_v62, %v4639_v24  ;;  %v4793_v7 = vsel %vm2654_vm9, %v4777_v6, %v4485_v8  ;;  %v5941_v62 = vmov 0.0|0.0  }
 0x5c6   :  { %5845 = vmatprep.subr.bf16.mxu1 %v5941_v62 }
 0x5c7   :  { %v4350_v44 = vpop.permute.xlu1 %4349 }
 0x5c8   :  { %v4684_v27 = vpop.permute.xlu0 %4683  ;;  %v4763_v10 = vsel %vm2396_vm5, %v10170_v61, %v4350_v44 }
 0x5c9   :  { %v4858_v3 = vsel %vm4845_vm12, %v4841_v16, %v4684_v27  ;;  %v11099_v16 = vmov 0.0  }
 0x5cb   :  { %v4593_v54 = vpop.permute.xlu1 %4592 }
 0x5cc   :  { %v4541_v36 = vpop.permute.xlu0 %4540  ;;  %v4825_v20 = vsel %vm4811_vm7, %v4808_v63, %v4593_v54  ;;  %v5279_v54 = vld [vmem:[%s10410_s5 + $0x8] sm:$0xff] }
 0x5cd   :  { %v4809_v39 = vsel %vm2784_vm11, %v4793_v7, %v4541_v36  ;;  %v5846_v36 = vpack.c.bf16 %v5279_v54, %v5278_v58 }
 0x5cf   :  { %v4438_v30 = vpop.permute.xlu1 %4437  ;;  %5847 = vmatpush3.bf16.msra.mxu1 %v5846_v36 }
 0x5d0   :  { %v4729_v21 = vpop.permute.xlu0 %4728  ;;  %v4778_v37 = vsel %vm2524_vm8, %v4763_v10, %v4438_v30  ;;  %5848 = vmatprep.subr.bf16.mxu1 %v5941_v62 }
 0x5d1   :  { %v4875_v0 = vsel %vm4862_vm2, %v4858_v3, %v4729_v21 }
 0x5d2   :  { %5797 = vmatprep.mubr.msk.f32.mxu1 %vm4885_vm3, %v4875_v0 }
 0x5d3   :  { %v4641_v56 = vpop.permute.xlu1 %4640 }
 0x5d4   :  { %v4595_v46 = vpop.permute.xlu0 %4594  ;;  %v4842_v11 = vsel %vm4828_vm10, %v4825_v20, %v4641_v56 }
 0x5d5   :  { %v4826_v55 = vsel %vm4811_vm7, %v4809_v39, %v4595_v46 }
 0x5d7   :  { %v4487_v28 = vpop.permute.xlu1 %4486 }
 0x5d8   :  { %v4794_v53 = vsel %vm2654_vm9, %v4778_v37, %v4487_v28  ;;  %v4597_v22 = vpop.permute.xlu0 %4596 }
 0x5db   :  { %v4686_v35 = vpop.permute.xlu1 %4685 }
 0x5dc   :  { %v4859_v13 = vsel %vm4845_vm12, %v4842_v11, %v4686_v35  ;;  %v4688_v47 = vpop.permute.xlu0 %4687 }
 0x5df   :  { %v4543_v14 = vpop.permute.xlu1 %4542 }
 0x5e0   :  { %v4810_v25 = vsel %vm2784_vm11, %v4794_v53, %v4543_v14 }
 0x5e1   :  { %v4827_v29 = vsel %vm4811_vm7, %v4810_v25, %v4597_v22  ;;  %vm11097_vm7 = vmmov %vm11095_vm13 }
 0x5e2   :  { %v4844_v43 = vsel %vm4828_vm10, %v4827_v29, %v10050_v50  ;;  %vm11100_vm15 = vmmov %vm11097_vm7 }
 0x5e3   :  { %v4731_v61 = vpop.permute.xlu1 %4730  ;;  %v4861_v26 = vsel %vm4845_vm12, %v4844_v43, %v10074_v23  ;;  %vm11101_vm13 = vmmov %vm11096_vm4 }
 0x5e4   :  { %v4876_v19 = vsel %vm4862_vm2, %v4859_v13, %v4731_v61  ;;  %v4878_v57 = vsel %vm4862_vm2, %v4861_v26, %v10088_v5 }
 0x5e5   :  { %5798 = vmatmul.mubr.msk.f32.gmra.mrb[32].mxu1 %vm4885_vm3, %v4876_v19 }
 0x5e7   :  { %v4643_v38 = vpop.permute.xlu1 %4642 }
 0x5e8   :  { %v4843_v31 = vsel %vm4828_vm10, %v4826_v55, %v4643_v38  ;;  %vm11098_vm10 = vmmov %vm11096_vm4 }
 0x5e9   :  { %v4860_v52 = vsel %vm4845_vm12, %v4843_v31, %v4688_v47  ;;  %vm5942_vm12 = vmmov 0   ;;  %vm11102_vm4 = vmmov %vm11097_vm7 }
 0x5eb   :  { %v4733_v9 = vpop.permute.xlu1 %4732 }
 0x5ec   :  { %v4877_v45 = vsel %vm4862_vm2, %v4860_v52, %v4733_v9 }
 0x5ed   :  { %5800 = vmatprep.mubr.msk.f32.mxu1 %vm4885_vm3, %v4877_v45 }
 0x5ee   :  { %5801 = vmatmul.mubr.msk.f32.gmra.mrb[34].mxu1 %vm4885_vm3, %v4878_v57 }
 0x5ef   :  { %5807 = vmatprep.mubr.msk.f32.mxu1 %vm5942_vm12, %v11099_v16 }
 0x5f2   :  { %v5790_v50 = vpop.f32.mrb[26].mxu1 }
 0x5f3   :  { %v5036_v32 = vadd.f32 %v5790_v50, %v10196_v49  ;;  %v5030_v34 = vpop.f32.mrb[27].mxu1 }
 0x5f4   :  { %v5031_v59 = vadd.f32 %v10196_v49, %v5030_v34 }
 0x5f5   :  { %vm5086_vm5 = vcmp.gt.f32.partialorder %v5036_v32, 0.0  ;;  %v5102_v23 = vmul.f32 0.1, %v5036_v32 }
 0x5f6   :  { %vm5085_vm9 = vcmp.gt.f32.partialorder %v5031_v59, 0.0  ;;  %v5101_v42 = vmul.f32 0.1, %v5031_v59 }
 0x5f7   :  { %v5118_v41 = vsel %vm5086_vm5, %v5036_v32, %v5102_v23  ;;  %vm11103_vm5 = vmmov %vm11098_vm10 }
 0x5f8   :  { %v5117_v48 = vsel %vm5085_vm9, %v5031_v59, %v5101_v42 }
 0x5f9   :  { %v5130_v1 = vmax.f32 %v5117_v48, %v5118_v41 }
 0x5fb   :  { %v5146_v51 = vrot.slane %v5130_v1, 1 }
 0x5fd   :  { %v5162_v24 = vmax.f32 %v5130_v1, %v5146_v51 }
 0x5ff   :  { %v5178_v2 = vrot.slane %v5162_v24, 1  ;;  %v5194_v8 = vrot.slane %v5162_v24, 2  ;;  %v5210_v5 = vrot.slane %v5162_v24, 3 }
 0x601   :  { %v5226_v12 = vsel %vm168_vm0, %v5162_v24, %v5178_v2 }
 0x602   :  { %v5234_v44 = vsel %vm11097_vm7, %v5226_v12, %v5194_v8 }
 0x603   :  { %v5242_v27 = vsel %vm11098_vm10, %v5234_v44, %v5210_v5 }
 0x604   :  { %v5253_v15 = vsel %vm5247_vm6, %v5242_v27, 0.0 }
 0x605   :  { %v10331_v17 = vadd.f32 %v5253_v15, %v10265_v18 }
 0x671   :  { %v5793_v18 = vpop.f32.mrb[28].mxu1 }
 0x672   :  { %v5046_v30 = vadd.f32 %v5793_v18, %v10196_v49  ;;  %v5040_v3 = vpop.f32.mrb[29].mxu1 }
 0x673   :  { %v5041_v21 = vadd.f32 %v10196_v49, %v5040_v3 }
 0x674   :  { %vm5088_vm2 = vcmp.gt.f32.partialorder %v5046_v30, 0.0  ;;  %v5104_v0 = vmul.f32 0.1, %v5046_v30 }
 0x675   :  { %vm5087_vm3 = vcmp.gt.f32.partialorder %v5041_v21, 0.0  ;;  %v5103_v56 = vmul.f32 0.1, %v5041_v21 }
 0x676   :  { %v5120_v28 = vsel %vm5088_vm2, %v5046_v30, %v5104_v0 }
 0x677   :  { %v5119_v40 = vsel %vm5087_vm3, %v5041_v21, %v5103_v56  ;;  %vm11104_vm3 = vmmov %vm11102_vm4  ;;  %v5262_v21 = vsel %vm5247_vm6, %v10331_v17, 0.0 }
 0x678   :  { %v5131_v35 = vmax.f32 %v5119_v40, %v5120_v28  ;;  %v5263_v28 = vrot.slane %v5262_v21, 4 }
 0x67a   :  { %v5147_v33 = vrot.slane %v5131_v35, 1 }
 0x67c   :  { %v5163_v46 = vmax.f32 %v5131_v35, %v5147_v33 }
 0x67e   :  { %v5179_v60 = vrot.slane %v5163_v46, 1  ;;  %v5195_v22 = vrot.slane %v5163_v46, 2  ;;  %v5211_v19 = vrot.slane %v5163_v46, 3 }
 0x680   :  { %v5227_v13 = vsel %vm168_vm0, %v5163_v46, %v5179_v60 }
 0x681   :  { %v5235_v29 = vsel %vm11100_vm15, %v5227_v13, %v5195_v22  ;;  %vm11107_vm15 = vmmov %vm11103_vm5 }
 0x682   :  { %v5243_v55 = vsel %vm11101_vm13, %v5235_v29, %v5211_v19  ;;  %v5366_v19 = vld [vmem:[%s10412_s7] sm:$0xff] }
 0x683   :  { %v5255_v26 = vsel %vm5247_vm6, %v5243_v55, 0.0 }
 0x691   :  { %v5796_v4 = vpop.f32.mrb[30].mxu1 }
 0x692   :  { %v5056_v10 = vadd.f32 %v5796_v4, %v10196_v49  ;;  %v5050_v37 = vpop.f32.mrb[31].mxu1  ;;  %v5264_v4 = vadd.f32 %v5263_v28, %v5262_v21 }
 0x693   :  { %v5051_v14 = vadd.f32 %v10196_v49, %v5050_v37 }
 0x694   :  { %vm5090_vm14 = vcmp.gt.f32.partialorder %v5056_v10, 0.0  ;;  %v5106_v63 = vmul.f32 0.1, %v5056_v10 }
 0x695   :  { %vm5089_vm1 = vcmp.gt.f32.partialorder %v5051_v14, 0.0  ;;  %v5105_v53 = vmul.f32 0.1, %v5051_v14 }
 0x696   :  { %v5122_v20 = vsel %vm5090_vm14, %v5056_v10, %v5106_v63  ;;  %vm11105_vm14 = vmmov %vm11103_vm5 }
 0x697   :  { %v5121_v25 = vsel %vm5089_vm1, %v5051_v14, %v5105_v53  ;;  %vm11106_vm1 = vmmov %vm11104_vm3  ;;  %v5265_v53 = vrot.slane %v5264_v4, 2 }
 0x698   :  { %v5132_v11 = vmax.f32 %v5121_v25, %v5122_v20 }
 0x699   :  { %v5266_v20 = vadd.f32 %v5265_v53, %v5264_v4 }
 0x69a   :  { %v5148_v61 = vrot.slane %v5132_v11, 1 }
 0x69b   :  { %v5267_v22 = vrot.slane %v5266_v20, 1 }
 0x69c   :  { %v5164_v6 = vmax.f32 %v5132_v11, %v5148_v61 }
 0x69e   :  { %v5180_v7 = vrot.slane %v5164_v6, 1  ;;  %v5196_v39 = vrot.slane %v5164_v6, 2  ;;  %v5212_v43 = vrot.slane %v5164_v6, 3 }
 0x6a0   :  { %v5228_v38 = vsel %vm168_vm0, %v5164_v6, %v5180_v7  ;;  %v5268_v6 = vadd.f32 %v5267_v22, %v5266_v20  ;;  %v5367_v7 = vld [vmem:[%s10412_s7 + $0x8] sm:$0xff] }
 0x6a1   :  { %v5236_v31 = vsel %vm11102_vm4, %v5228_v38, %v5196_v39  ;;  %v5849_v38 = vpack.c.bf16 %v5367_v7, %v5366_v19 }
 0x6a2   :  { %v5244_v47 = vsel %vm11103_vm5, %v5236_v31, %v5212_v43  ;;  %v5276_v55 = vmul.f32 0.0625, %v5268_v6 }
 0x6a3   :  { %v5256_v52 = vsel %vm5247_vm6, %v5244_v47, 0.0  ;;  %v5368_v47 = vld [vmem:[%s10412_s7 + $0x10] sm:$0xff] }
 0x6a4   :  { %v5257_v9 = vadd.f32 %v5256_v52, %v5255_v26  ;;  %v5369_v26 = vld [vmem:[%s10412_s7 + $0x18] sm:$0xff]  ;;  %s5458_s7 = sshll.u32 %s5943_s28, 4  ;;  %s5459_s7 = int_to_ptr.vmem [resolvable:$true] %s5458_s7 }
 0x6a5   :  { %v5852_v52 = vpack.c.bf16 %v5369_v26, %v5368_v47  ;;  %p5909_p1 = scmp.lt.s32.totalorder %s5459_s7, %s5459_s7 }
 0x6b8   :  { %v5799_v45 = vpop.f32.mrb[32].mxu1 }
 0x6b9   :  { %v5066_v57 = vadd.f32 %v5799_v45, %v10196_v49  ;;  %v5060_v50 = vpop.f32.mrb[33].mxu1 }
 0x6ba   :  { %v5061_v32 = vadd.f32 %v10196_v49, %v5060_v50 }
 0x6bb   :  { %vm5092_vm9 = vcmp.gt.f32.partialorder %v5066_v57, 0.0  ;;  %v5108_v34 = vmul.f32 0.1, %v5066_v57 }
 0x6bc   :  { %vm5091_vm7 = vcmp.gt.f32.partialorder %v5061_v32, 0.0  ;;  %v5107_v59 = vmul.f32 0.1, %v5061_v32 }
 0x6bd   :  { %v5124_v23 = vsel %vm5092_vm9, %v5066_v57, %v5108_v34 }
 0x6be   :  { %v5123_v42 = vsel %vm5091_vm7, %v5061_v32, %v5107_v59  ;;  %v5551_v32 = vld [vmem:[%s10413_s8] ss:$0 sm:$0xff] }
 0x6bf   :  { %v5133_v41 = vmax.f32 %v5123_v42, %v5124_v23 }
 0x6c1   :  { %v5149_v48 = vrot.slane %v5133_v41, 1  ;;  %v5802_v1 = vpop.f32.mrb[34].mxu1 }
 0x6c2   :  { %v5076_v51 = vadd.f32 %v5802_v1, %v10196_v49  ;;  %v5070_v24 = vpop.f32.mrb[35].mxu1 }
 0x6c3   :  { %v5165_v2 = vmax.f32 %v5133_v41, %v5149_v48  ;;  %v5071_v8 = vadd.f32 %v10196_v49, %v5070_v24 }
 0x6c4   :  { %vm5094_vm10 = vcmp.gt.f32.partialorder %v5076_v51, 0.0  ;;  %v5110_v5 = vmul.f32 0.1, %v5076_v51 }
 0x6c5   :  { %v5181_v12 = vrot.slane %v5165_v2, 1  ;;  %v5197_v44 = vrot.slane %v5165_v2, 2  ;;  %vm5093_vm2 = vcmp.gt.f32.partialorder %v5071_v8, 0.0  ;;  %v5109_v15 = vmul.f32 0.1, %v5071_v8 }
 0x6c6   :  { %v5126_v27 = vsel %vm5094_vm10, %v5076_v51, %v5110_v5  ;;  %v5213_v58 = vrot.slane %v5165_v2, 3 }
 0x6c7   :  { %v5229_v54 = vsel %vm168_vm0, %v5165_v2, %v5181_v12  ;;  %v5125_v18 = vsel %vm5093_vm2, %v5071_v8, %v5109_v15 }
 0x6c8   :  { %v5237_v36 = vsel %vm11104_vm3, %v5229_v54, %v5197_v44  ;;  %v5134_v3 = vmax.f32 %v5125_v18, %v5126_v27 }
 0x6c9   :  { %v5245_v30 = vsel %vm11105_vm14, %v5237_v36, %v5213_v58 }
 0x6ca   :  { %v5258_v49 = vsel %vm5247_vm6, %v5245_v30, 0.0  ;;  %v5150_v0 = vrot.slane %v5134_v3, 1 }
 0x6cb   :  { %v5259_v56 = vadd.f32 %v5258_v49, %v5257_v9  ;;  %v5549_v9 = vld [vmem:[%s10411_s6] ss:$0 sm:$0xff]  ;;  %s5904_s6 = scalar_lea.vmem %s5459_s7, 32 }
 0x6cc   :  { %v5166_v40 = vmax.f32 %v5134_v3, %v5150_v0  ;;  %p5905_p0 = scmp.ne.s32.totalorder %s5459_s7, %s5904_s6  ;;  %p5910_p2 = scmp.lt.s32.totalorder %s5904_s6, %s5904_s6 }
 0x6ce   :  { %v5182_v35 = vrot.slane %v5166_v40, 1  ;;  %v5198_v33 = vrot.slane %v5166_v40, 2  ;;  %v5214_v46 = vrot.slane %v5166_v40, 3  ;;  %p5911_p3 = por %p5910_p2, %p5909_p1 }
 0x6d0   :  { %v5230_v10 = vsel %vm168_vm0, %v5166_v40, %v5182_v35  ;;  %vm5289_vm0 = vcmask 1041409   ;;  %p5912_p4 = pnand %p5911_p3, %p5905_p0 }
 0x6d1   :  { %v5238_v37 = vsel %vm11106_vm1, %v5230_v10, %v5198_v33 }
 0x6d2   :  { %v5246_v14 = vsel %vm11107_vm15, %v5238_v37, %v5214_v46 }
 0x6d3   :  { %v5260_v63 = vsel %vm5247_vm6, %v5246_v14, 0.0 }
 0x6d4   :  { %v5261_v17 = vadd.f32 %v5260_v63, %v5259_v56 }
 0x6d6   :  { %v5269_v60 = vsel %vm5247_vm6, %v5261_v17, 0.0  ;;  %vm5450_vm6 = vcmask 254976  }
 0x6d7   :  { %v5270_v25 = vrot.slane %v5269_v60, 4 }
 0x6d9   :  { %v5271_v11 = vadd.f32 %v5270_v25, %v5269_v60 }
 0x6db   :  { %v5272_v13 = vrot.slane %v5271_v11, 2 }
 0x6dd   :  { %v5273_v61 = vadd.f32 %v5272_v13, %v5271_v11 }
 0x6df   :  { %v5274_v29 = vrot.slane %v5273_v61, 1 }
 0x6e1   :  { %v5275_v39 = vadd.f32 %v5274_v29, %v5273_v61 }
 0x6e3   :  { %v5277_v43 = vmul.f32 0.0625, %v5275_v39 }
 0x6e5   :  { %v5290_v31 = vsel %vm5289_vm0, %v5277_v43, %v5276_v55 }
 0x6e6   :  { %5808 = vmatmul.mubr.msk.f32.vlgmr.msra.gmra.mrb[36].mxu1 %vm2524_vm8, %v5290_v31 }
 0x6e7   :  { %5850 = vmatpush3.bf16.msra.mxu1 %v5849_v38  ;;  %5818 = vmatprep.mubr.msk.f32.mxu1 %vm5942_vm12, %v11099_v16 }
 0x6e8   :  { %5851 = vmatprep.subr.bf16.mxu1 %v5941_v62 }
 0x6eb   :  { %5853 = vmatpush3.bf16.msra.mxu1 %v5852_v52 }
 0x7b9   :  { %v5359_v45 = vpop.f32.mrb[36].mxu1 }
 0x7ba   :  { %v5360_v57 = vadd.f32 %v5549_v9, %v5359_v45  ;;  %v5809_v50 = vpop.f32.mrb[37].mxu1 }
 0x7bc   :  { %vm5363_vm8 = vcmp.gt.f32.partialorder %v5360_v57, 0.0  ;;  %v5364_v16 = vmul.f32 0.1, %v5360_v57 }
 0x7be   :  { %v5365_v62 = vsel %vm5363_vm8, %v5360_v57, %v5364_v16 }
 0x7bf   :  { %5819 = vmatmul.mubr.msk.f32.vlgmr.msra.gmra.mrb[38].mxu1 %vm2784_vm11, %v5365_v62 }
 0x892   :  { %v5446_v34 = vpop.f32.mrb[38].mxu1 }
 0x893   :  { %v5447_v59 = vadd.f32 %v5551_v32, %v5446_v34  ;;  %v5820_v23 = vpop.f32.mrb[39].mxu1 }
 0x895   :  { %5451 = vst.msk [vmem:[#allocation2] sm:$0x3] %vm5450_vm6, %v5447_v59 }
 0x896   :  { %5915 = shalt.err (!%p5912_p4)
}
 0x897   :  { %s5916_s30 = scalar_lea.hbm %s10414_s9, 32 }
 0x898   :  { %p5917_p5 = scmp.ne.s32.totalorder %s10414_s9, %s5916_s30  ;;  %p5920_p6 = scmp.lt.u32.totalorder %s5916_s30, %s10414_s9 }
 0x89a   :  { %p5922_p7 = pnand %p5920_p6, %p5917_p5 }
 0x89c   :  { %5925 = shalt.err (!%p5922_p7)
}
 0x89d   :  { %5461 = dma.vmem_to_hbm [thread:$0]  %s5459_s7, 32, %s10414_s9, [#allocation3]  }
 0x89e   :  { %5926 = dma.done.wait [#allocation3], 32  }
 0x89f   :  { %5927 = vsyncadd [#allocation3], 4294967264 }
 0x8a0   :  { %5465 = vsyncpa [#allocation3], 1 }

</bundles_post_ra>
